<compile_context>
chip_gen: v7x
topology: tpu7x:2x2x1
jax: 0.10.0
libtpu: 0.0.40
codegen_flags: <defaults>
</compile_context>

<pallas_src>
import math
import functools

import jax
import jax.numpy as jnp
from jax.experimental import pallas as pl
from jax.experimental.pallas import tpu as pltpu


SQRT_HALF = math.sqrt(0.5)
VMEM_LIMIT = 48 * 1024 * 1024  # explicit scoped-VMEM budget (< v7x 64 MiB physical)
COMPUTE_DTYPE = jnp.bfloat16   # MXU operand dtype; accumulation is f32


# ----------------------------------------------------------------------------
# Pallas kernels
# ----------------------------------------------------------------------------

def _linear_kernel(x_ref, w_ref, b_ref, o_ref):
    # x: (tm, Cin) bf16, w: (Cin, Cout) bf16, b: (1, Cout) f32
    acc = jnp.dot(x_ref[...], w_ref[...], preferred_element_type=jnp.float32)
    o_ref[...] = (acc + b_ref[...]).astype(o_ref.dtype)


def _conv_glu_kernel(x_ref, wa_ref, wg_ref, ba_ref, bg_ref, o_ref):
    # x: (1, tT, k*Cin) bf16, wa/wg: (k*Cin, Cout) bf16, ba/bg: (1, Cout) f32
    x = x_ref[0]
    a = jnp.dot(x, wa_ref[...], preferred_element_type=jnp.float32) + ba_ref[...]
    g = jnp.dot(x, wg_ref[...], preferred_element_type=jnp.float32) + bg_ref[...]
    o_ref[0] = (a * jax.nn.sigmoid(g)).astype(o_ref.dtype)


def _conv_glu_res_kernel(x_ref, wa_ref, wg_ref, ba_ref, bg_ref, res_ref, o_ref):
    x = x_ref[0]
    a = jnp.dot(x, wa_ref[...], preferred_element_type=jnp.float32) + ba_ref[...]
    g = jnp.dot(x, wg_ref[...], preferred_element_type=jnp.float32) + bg_ref[...]
    out = a * jax.nn.sigmoid(g)
    out = (out + res_ref[0].astype(jnp.float32)) * SQRT_HALF
    o_ref[0] = out.astype(o_ref.dtype)


def _fc2_tail_kernel(h_ref, w_ref, b_ref, m_ref, e_ref, x_ref, y_ref):
    # h: (tm, Cin) bf16, w: (Cin, E) bf16, b: (1, E) f32,
    # m: (tm, 1) f32 mask, e: (tm, E) f32 input embedding
    acc = jnp.dot(h_ref[...], w_ref[...], preferred_element_type=jnp.float32)
    xo = (acc + b_ref[...]) * m_ref[...]
    x_ref[...] = xo.astype(x_ref.dtype)
    y_ref[...] = ((xo + e_ref[...]) * SQRT_HALF).astype(y_ref.dtype)


# ----------------------------------------------------------------------------
# Pallas wrappers
# ----------------------------------------------------------------------------

def _row_tile(M):
    return M if M <= 256 else 256


def linear(x, w, b, out_dtype=None):
    """Weight-normalized Linear. x: (M, Cin) bf16, w: (Cin, Cout) bf16."""
    M, Cin = x.shape
    Cout = w.shape[1]
    out_dtype = out_dtype or x.dtype
    tm = _row_tile(M)
    return pl.pallas_call(
        _linear_kernel,
        out_shape=jax.ShapeDtypeStruct((M, Cout), out_dtype),
        grid=(pl.cdiv(M, tm),),
        in_specs=[
            pl.BlockSpec((tm, Cin), lambda i: (i, 0)),
            pl.BlockSpec((Cin, Cout), lambda i: (0, 0)),
            pl.BlockSpec((1, Cout), lambda i: (0, 0)),
        ],
        out_specs=pl.BlockSpec((tm, Cout), lambda i: (i, 0)),
        compiler_params=pltpu.CompilerParams(
            dimension_semantics=("parallel",),
            vmem_limit_bytes=VMEM_LIMIT),
    )(x, w, b.reshape(1, Cout).astype(jnp.float32))


def conv_glu_layer(x, mask_c, w, b, residual, k):
    """Masked Conv1d (same padding, odd k) + GLU (+ residual), fused.

    x: (B, T, Cin) bf16, mask_c: (B, T) bf16, w: (k, Cin, 2*Cout) f32 params,
    b: (2*Cout,) f32, residual: (B, T, Cout) bf16 or None.
    """
    B, T, Cin = x.shape
    assert k % 2 == 1, "FConvEncoder requires odd kernel sizes"
    cout2 = w.shape[2]
    cout = cout2 // 2
    p = k // 2
    cdt = x.dtype

    # Fold the mask into the pad + im2col tap-stacking (plain-JAX glue, fused
    # by XLA). Column index layout: dk * Cin + ci.
    xm = x * mask_c[..., None]
    xp = jnp.pad(xm, ((0, 0), (p, p), (0, 0)))
    xcat = jnp.concatenate([xp[:, dk:dk + T, :] for dk in range(k)], axis=-1)

    w2d = w.reshape(k * Cin, cout2).astype(cdt)     # row index: dk * Cin + ci
    wa, wg = w2d[:, :cout], w2d[:, cout:]
    ba = b[:cout].reshape(1, cout).astype(jnp.float32)
    bg = b[cout:].reshape(1, cout).astype(jnp.float32)

    tT = T if T <= 128 else 128
    nT = pl.cdiv(T, tT)
    kCin = k * Cin

    in_specs = [
        pl.BlockSpec((1, tT, kCin), lambda bb, tt: (bb, tt, 0)),
        pl.BlockSpec((kCin, cout), lambda bb, tt: (0, 0)),
        pl.BlockSpec((kCin, cout), lambda bb, tt: (0, 0)),
        pl.BlockSpec((1, cout), lambda bb, tt: (0, 0)),
        pl.BlockSpec((1, cout), lambda bb, tt: (0, 0)),
    ]
    out_spec = pl.BlockSpec((1, tT, cout), lambda bb, tt: (bb, tt, 0))
    cparams = pltpu.CompilerParams(
        dimension_semantics=("parallel", "parallel"),
        vmem_limit_bytes=VMEM_LIMIT)

    if residual is None:
        return pl.pallas_call(
            _conv_glu_kernel,
            out_shape=jax.ShapeDtypeStruct((B, T, cout), cdt),
            grid=(B, nT),
            in_specs=in_specs,
            out_specs=out_spec,
            compiler_params=cparams,
        )(xcat, wa, wg, ba, bg)

    return pl.pallas_call(
        _conv_glu_res_kernel,
        out_shape=jax.ShapeDtypeStruct((B, T, cout), cdt),
        grid=(B, nT),
        in_specs=in_specs + [pl.BlockSpec((1, tT, cout), lambda bb, tt: (bb, tt, 0))],
        out_specs=out_spec,
        compiler_params=cparams,
    )(xcat, wa, wg, ba, bg, residual.astype(cdt))


def fc2_tail(h, w, b, mask_col, emb):
    """Fused encoder tail: fc2 + output mask + (x + input_embedding)*sqrt(0.5)."""
    M, Cin = h.shape
    E = w.shape[1]
    tm = _row_tile(M)
    return pl.pallas_call(
        _fc2_tail_kernel,
        out_shape=(jax.ShapeDtypeStruct((M, E), jnp.float32),
                   jax.ShapeDtypeStruct((M, E), jnp.float32)),
        grid=(pl.cdiv(M, tm),),
        in_specs=[
            pl.BlockSpec((tm, Cin), lambda i: (i, 0)),
            pl.BlockSpec((Cin, E), lambda i: (0, 0)),
            pl.BlockSpec((1, E), lambda i: (0, 0)),
            pl.BlockSpec((tm, 1), lambda i: (i, 0)),
            pl.BlockSpec((tm, E), lambda i: (i, 0)),
        ],
        out_specs=(pl.BlockSpec((tm, E), lambda i: (i, 0)),
                   pl.BlockSpec((tm, E), lambda i: (i, 0))),
        compiler_params=pltpu.CompilerParams(
            dimension_semantics=("parallel",),
            vmem_limit_bytes=VMEM_LIMIT),
    )(h, w, b.reshape(1, E).astype(jnp.float32), mask_col, emb)


# ----------------------------------------------------------------------------
# Module setup (parameters) and forward pass
# ----------------------------------------------------------------------------

def extend_conv_spec(convolutions):
    extended = []
    for spec in convolutions:
        if len(spec) == 3:
            extended.append(spec)
        elif len(spec) == 2:
            extended.append(spec + (1,))
        else:
            raise Exception("invalid conv spec " + str(spec))
    return tuple(extended)


def init_params(key, num_embeddings, emb_dim, max_positions, convolutions,
                dropout, pad_idx):
    specs = extend_conv_spec(convolutions)
    in_channels = specs[0][0]
    keys = jax.random.split(key, 5 + 2 * len(specs))
    ki = iter(keys)

    params = {}
    # Embedding(num_embeddings, emb_dim, pad_idx): N(0, 0.1), pad row zeroed
    tok = 0.1 * jax.random.normal(next(ki), (num_embeddings, emb_dim), jnp.float32)
    params["tok_emb"] = tok.at[pad_idx].set(0.0)
    pos = 0.1 * jax.random.normal(next(ki), (max_positions, emb_dim), jnp.float32)
    params["pos_emb"] = pos.at[pad_idx].set(0.0)

    # fc1: Linear(emb_dim, in_channels, dropout): std = sqrt((1-dropout)/emb_dim)
    std = math.sqrt((1.0 - dropout) / emb_dim)
    params["fc1_w"] = std * jax.random.normal(next(ki), (emb_dim, in_channels), jnp.float32)
    params["fc1_b"] = jnp.zeros((in_channels,), jnp.float32)

    conv_w, conv_b, proj = [], [], []
    layer_in_channels = [in_channels]
    cur_in = in_channels
    for (out_ch, ksz, res) in specs:
        residual_dim = out_ch if res == 0 else layer_in_channels[-res]
        if residual_dim != out_ch:
            pstd = math.sqrt(1.0 / residual_dim)
            proj.append((pstd * jax.random.normal(next(ki), (residual_dim, out_ch), jnp.float32),
                         jnp.zeros((out_ch,), jnp.float32)))
        else:
            proj.append(None)
            next(ki)
        # Conv1D(in, out*2, k, dropout): std = sqrt(4*(1-dropout)/(k*in))
        cstd = math.sqrt(4.0 * (1.0 - dropout) / (ksz * cur_in))
        conv_w.append(cstd * jax.random.normal(next(ki), (ksz, cur_in, 2 * out_ch), jnp.float32))
        conv_b.append(jnp.zeros((2 * out_ch,), jnp.float32))
        cur_in = out_ch
        layer_in_channels.append(out_ch)
    params["conv_w"], params["conv_b"], params["proj"] = conv_w, conv_b, proj

    # fc2: Linear(in_channels, emb_dim): std = sqrt(1/in_channels)
    std2 = math.sqrt(1.0 / cur_in)
    params["fc2_w"] = std2 * jax.random.normal(next(ki), (cur_in, emb_dim), jnp.float32)
    params["fc2_b"] = jnp.zeros((emb_dim,), jnp.float32)
    return params


def fconv_encoder_forward(params, src_tokens, src_mask, convolutions):
    B, T = src_tokens.shape
    specs = extend_conv_spec(convolutions)
    cdt = COMPUTE_DTYPE

    mask_f = src_mask.astype(jnp.float32)
    src_pos = (jnp.cumsum(mask_f, axis=1) * mask_f).astype(jnp.int32)
    # embedding lookups (gather) are glue; done in plain JAX
    x_emb = params["tok_emb"][src_tokens] + params["pos_emb"][src_pos]   # f32
    # dropout: identity (eval mode)
    input_embedding = x_emb
    emb_dim = x_emb.shape[-1]

    h = linear(x_emb.astype(cdt).reshape(B * T, emb_dim),
               params["fc1_w"].astype(cdt), params["fc1_b"])
    h = h.reshape(B, T, -1)

    mask_c = src_mask.astype(cdt)
    residuals = [h]
    for i, (out_ch, ksz, res) in enumerate(specs):
        if res > 0:
            residual = residuals[-res]
            if residual.shape[-1] != out_ch:
                pw, pb = params["proj"][i]
                residual = linear(residual.reshape(B * T, -1),
                                  pw.astype(cdt), pb).reshape(B, T, out_ch)
        else:
            residual = None
        # mask * dropout(identity) * conv * GLU * residual fused in the kernel
        h = conv_glu_layer(h, mask_c, params["conv_w"][i],
                           params["conv_b"][i], residual, ksz)
        residuals.append(h)

    # Grad_Multiply: identity in forward
    x_out, y_out = fc2_tail(h.reshape(B * T, -1),
                            params["fc2_w"].astype(cdt), params["fc2_b"],
                            mask_f.reshape(B * T, 1),
                            input_embedding.reshape(B * T, emb_dim))
    return x_out.reshape(B, T, emb_dim), y_out.reshape(B, T, emb_dim)


# ----------------------------------------------------------------------------
# Pure-JAX f32 reference (mirrors the PyTorch forward) for a sanity check
# ----------------------------------------------------------------------------

def reference_forward(params, src_tokens, src_mask, convolutions):
    specs = extend_conv_spec(convolutions)
    B, T = src_tokens.shape
    m = src_mask.astype(jnp.float32)
    src_pos = (jnp.cumsum(m, axis=1) * m).astype(jnp.int32)
    x = params["tok_emb"][src_tokens] + params["pos_emb"][src_pos]
    input_embedding = x
    h = x @ params["fc1_w"] + params["fc1_b"]
    residuals = [h]
    for i, (out_ch, ksz, res) in enumerate(specs):
        if res > 0:
            residual = residuals[-res]
            if residual.shape[-1] != out_ch:
                pw, pb = params["proj"][i]
                residual = residual @ pw + pb
        else:
            residual = None
        p = ksz // 2
        hm = h * m[..., None]
        hp = jnp.pad(hm, ((0, 0), (p, p), (0, 0)))
        w = params["conv_w"][i]
        acc = jnp.zeros((B, T, w.shape[2]), jnp.float32)
        for dk in range(ksz):
            acc = acc + jnp.einsum("btc,cd->btd", hp[:, dk:dk + T, :], w[dk])
        acc = acc + params["conv_b"][i]
        a, g = acc[..., :out_ch], acc[..., out_ch:]
        h = a * jax.nn.sigmoid(g)
        if residual is not None:
            h = (h + residual) * SQRT_HALF
        residuals.append(h)
    xo = (h @ params["fc2_w"] + params["fc2_b"]) * m[..., None]
    y = (xo + input_embedding) * SQRT_HALF
    return xo, y


# ----------------------------------------------------------------------------
# Main
# ----------------------------------------------------------------------------

if __name__ == "__main__":
    B, T = 2, 256
    num_embeddings = 64
    emb_dim = 128
    max_positions = 512                       # > T so positions 1..T are valid
    convolutions = ((128, 3), (256, 3), (128, 3))   # exercises proj + no-proj paths
    dropout = 0.1
    pad_idx = 0

    root = jax.random.PRNGKey(0)
    k_params, k_tok = jax.random.split(root)

    params = init_params(k_params, num_embeddings, emb_dim, max_positions,
                         convolutions, dropout, pad_idx)

    lengths = jnp.array([T, (2 * T) // 3], dtype=jnp.int32)
    src_mask = (jnp.arange(T)[None, :] < lengths[:, None]).astype(jnp.float32)
    src_tokens = jax.random.randint(k_tok, (B, T), 1, num_embeddings, dtype=jnp.int32)
    src_tokens = jnp.where(src_mask > 0, src_tokens, pad_idx)

    fwd = jax.jit(functools.partial(fconv_encoder_forward, convolutions=convolutions))
    x_out, y_out = fwd(params, src_tokens, src_mask)
    jax.block_until_ready((x_out, y_out))
    assert x_out.shape == (B, T, emb_dim) and y_out.shape == (B, T, emb_dim)

    # numerical sanity check vs. the f32 reference (bf16 MXU => loose tol)
    x_ref, y_ref = reference_forward(params, src_tokens, src_mask, convolutions)
    assert jnp.allclose(x_out, x_ref, atol=5e-2, rtol=5e-2), \
        float(jnp.max(jnp.abs(x_out - x_ref)))
    assert jnp.allclose(y_out, y_ref, atol=5e-2, rtol=5e-2), \
        float(jnp.max(jnp.abs(y_out - y_ref)))

    print("KERNEL_OK")
</pallas_src>

<mosaic_0001>
module attributes {stable_mosaic.version = 11 : i64} {
  func.func @_linear_kernel(%arg0: i32, %arg1: memref<256x128xbf16, #tpu.memory_space<vmem>>, %arg2: memref<128x128xbf16, #tpu.memory_space<vmem>>, %arg3: memref<1x128xf32, #tpu.memory_space<vmem>>, %arg4: memref<256x128xbf16, #tpu.memory_space<vmem>>) attributes {dimension_semantics = [#tpu.dimension_semantics<parallel>], iteration_bounds = array<i64: 2>, scalar_prefetch = 0 : i64, scratch_operands = 0 : i64, tpu.core_type = #tpu.core_type<tc>, window_params = [{transform_indices = @transform_0, window_bounds = array<i64: 256, 128>}, {pipeline_mode = #tpu.pipeline_mode<synchronous>, transform_indices = @transform_1, window_bounds = array<i64: 128, 128>}, {pipeline_mode = #tpu.pipeline_mode<synchronous>, transform_indices = @transform_2, window_bounds = array<i64: 1, 128>}, {transform_indices = @transform_3, window_bounds = array<i64: 256, 128>}]} {
    %c0 = arith.constant 0 : index
    %c0_0 = arith.constant 0 : index
    %0 = vector.load %arg1[%c0, %c0_0] : memref<256x128xbf16, #tpu.memory_space<vmem>>, vector<256x128xbf16>
    %c0_1 = arith.constant 0 : index
    %c0_2 = arith.constant 0 : index
    %1 = vector.load %arg2[%c0_1, %c0_2] : memref<128x128xbf16, #tpu.memory_space<vmem>>, vector<128x128xbf16>
    %cst = arith.constant dense<0.000000e+00> : vector<256x128xf32>
    %2 = tpu.matmul %0, %1, %cst {dimension_numbers = #tpu.dot_dimension_numbers<[1], [0], [0], [1], [0, 0, 1, 1], [], []>} : vector<256x128xbf16>, vector<128x128xbf16>, vector<256x128xf32> -> vector<256x128xf32>
    %c0_3 = arith.constant 0 : index
    %c0_4 = arith.constant 0 : index
    %3 = vector.load %arg3[%c0_3, %c0_4] : memref<1x128xf32, #tpu.memory_space<vmem>>, vector<1x128xf32>
    %4 = vector.broadcast %3 : vector<1x128xf32> to vector<256x128xf32>
    %5 = arith.addf %2, %4 : vector<256x128xf32>
    %6 = arith.truncf %5 : vector<256x128xf32> to vector<256x128xbf16>
    %c0_5 = arith.constant 0 : index
    %c0_6 = arith.constant 0 : index
    %7 = vector.load %arg4[%c0_5, %c0_6] : memref<256x128xbf16, #tpu.memory_space<vmem>>, vector<256x128xbf16>
    tpu.vector_store %arg4[%c0_5, %c0_6], %6 {strides = array<i32>} : memref<256x128xbf16, #tpu.memory_space<vmem>>, vector<256x128xbf16>,
    return
  }
  func.func @transform_0(%arg0: i32) -> (i32, i32) {
    %c0_i32 = arith.constant 0 : i32
    %c0_i32_0 = arith.constant 0 : i32
    return %arg0, %c0_i32 : i32, i32
  }
  func.func @transform_1(%arg0: i32) -> (i32, i32) {
    %c0_i32 = arith.constant 0 : i32
    %c0_i32_0 = arith.constant 0 : i32
    %c0_i32_1 = arith.constant 0 : i32
    return %c0_i32, %c0_i32_0 : i32, i32
  }
  func.func @transform_2(%arg0: i32) -> (i32, i32) {
    %c0_i32 = arith.constant 0 : i32
    %c0_i32_0 = arith.constant 0 : i32
    %c0_i32_1 = arith.constant 0 : i32
    return %c0_i32, %c0_i32_0 : i32, i32
  }
  func.func @transform_3(%arg0: i32) -> (i32, i32) {
    %c0_i32 = arith.constant 0 : i32
    %c0_i32_0 = arith.constant 0 : i32
    return %arg0, %c0_i32 : i32, i32
  }
}

module attributes {stable_mosaic.version = 11 : i64} {
  func.func @_conv_glu_res_kernel(%arg0: i32, %arg1: i32, %arg2: memref<1x128x384xbf16, #tpu.memory_space<vmem>>, %arg3: memref<384x128xbf16, #tpu.memory_space<vmem>>, %arg4: memref<384x128xbf16, #tpu.memory_space<vmem>>, %arg5: memref<1x128xf32, #tpu.memory_space<vmem>>, %arg6: memref<1x128xf32, #tpu.memory_space<vmem>>, %arg7: memref<1x128x128xbf16, #tpu.memory_space<vmem>>, %arg8: memref<1x128x128xbf16, #tpu.memory_space<vmem>>) attributes {dimension_semantics = [#tpu.dimension_semantics<parallel>, #tpu.dimension_semantics<parallel>], iteration_bounds = array<i64: 2, 2>, scalar_prefetch = 0 : i64, scratch_operands = 0 : i64, tpu.core_type = #tpu.core_type<tc>, window_params = [{transform_indices = @transform_0, window_bounds = array<i64: 1, 128, 384>}, {pipeline_mode = #tpu.pipeline_mode<synchronous>, transform_indices = @transform_1, window_bounds = array<i64: 384, 128>}, {pipeline_mode = #tpu.pipeline_mode<synchronous>, transform_indices = @transform_2, window_bounds = array<i64: 384, 128>}, {pipeline_mode = #tpu.pipeline_mode<synchronous>, transform_indices = @transform_3, window_bounds = array<i64: 1, 128>}, {pipeline_mode = #tpu.pipeline_mode<synchronous>, transform_indices = @transform_4, window_bounds = array<i64: 1, 128>}, {transform_indices = @transform_5, window_bounds = array<i64: 1, 128, 128>}, {transform_indices = @transform_6, window_bounds = array<i64: 1, 128, 128>}]} {
    %c0 = arith.constant 0 : index
    %c0_0 = arith.constant 0 : index
    %c0_1 = arith.constant 0 : index
    %0 = vector.load %arg2[%c0, %c0_0, %c0_1] : memref<1x128x384xbf16, #tpu.memory_space<vmem>>, vector<1x128x384xbf16>
    %1 = vector.shape_cast %0 : vector<1x128x384xbf16> to vector<128x384xbf16>
    %c0_2 = arith.constant 0 : index
    %c0_3 = arith.constant 0 : index
    %2 = vector.load %arg3[%c0_2, %c0_3] : memref<384x128xbf16, #tpu.memory_space<vmem>>, vector<384x128xbf16>
    %cst = arith.constant dense<0.000000e+00> : vector<128x128xf32>
    %3 = tpu.matmul %1, %2, %cst {dimension_numbers = #tpu.dot_dimension_numbers<[1], [0], [0], [1], [0, 0, 1, 1], [], []>} : vector<128x384xbf16>, vector<384x128xbf16>, vector<128x128xf32> -> vector<128x128xf32>
    %c0_4 = arith.constant 0 : index
    %c0_5 = arith.constant 0 : index
    %4 = vector.load %arg5[%c0_4, %c0_5] : memref<1x128xf32, #tpu.memory_space<vmem>>, vector<1x128xf32>
    %5 = vector.broadcast %4 : vector<1x128xf32> to vector<128x128xf32>
    %6 = arith.addf %3, %5 : vector<128x128xf32>
    %c0_6 = arith.constant 0 : index
    %c0_7 = arith.constant 0 : index
    %7 = vector.load %arg4[%c0_6, %c0_7] : memref<384x128xbf16, #tpu.memory_space<vmem>>, vector<384x128xbf16>
    %cst_8 = arith.constant dense<0.000000e+00> : vector<128x128xf32>
    %8 = tpu.matmul %1, %7, %cst_8 {dimension_numbers = #tpu.dot_dimension_numbers<[1], [0], [0], [1], [0, 0, 1, 1], [], []>} : vector<128x384xbf16>, vector<384x128xbf16>, vector<128x128xf32> -> vector<128x128xf32>
    %c0_9 = arith.constant 0 : index
    %c0_10 = arith.constant 0 : index
    %9 = vector.load %arg6[%c0_9, %c0_10] : memref<1x128xf32, #tpu.memory_space<vmem>>, vector<1x128xf32>
    %10 = vector.broadcast %9 : vector<1x128xf32> to vector<128x128xf32>
    %11 = arith.addf %8, %10 : vector<128x128xf32>
    %12 = arith.negf %11 : vector<128x128xf32>
    %13 = math.exp %12 : vector<128x128xf32>
    %cst_11 = arith.constant 1.000000e+00 : f32
    %14 = vector.broadcast %cst_11 : f32 to vector<128x128xf32>
    %15 = arith.addf %14, %13 : vector<128x128xf32>
    %16 = arith.divf %14, %15 : vector<128x128xf32>
    %17 = arith.mulf %6, %16 : vector<128x128xf32>
    %c0_12 = arith.constant 0 : index
    %c0_13 = arith.constant 0 : index
    %c0_14 = arith.constant 0 : index
    %18 = vector.load %arg7[%c0_12, %c0_13, %c0_14] : memref<1x128x128xbf16, #tpu.memory_space<vmem>>, vector<1x128x128xbf16>
    %19 = vector.shape_cast %18 : vector<1x128x128xbf16> to vector<128x128xbf16>
    %20 = arith.extf %19 : vector<128x128xbf16> to vector<128x128xf32>
    %21 = arith.addf %17, %20 : vector<128x128xf32>
    %cst_15 = arith.constant 0.707106769 : f32
    %22 = vector.broadcast %cst_15 : f32 to vector<128x128xf32>
    %23 = arith.mulf %21, %22 : vector<128x128xf32>
    %24 = arith.truncf %23 : vector<128x128xf32> to vector<128x128xbf16>
    %c0_16 = arith.constant 0 : index
    %c0_17 = arith.constant 0 : index
    %c0_18 = arith.constant 0 : index
    %25 = vector.load %arg8[%c0_16, %c0_17, %c0_18] : memref<1x128x128xbf16, #tpu.memory_space<vmem>>, vector<1x128x128xbf16>
    %26 = vector.shape_cast %25 : vector<1x128x128xbf16> to vector<128x128xbf16>
    %27 = vector.shape_cast %24 : vector<128x128xbf16> to vector<1x128x128xbf16>
    tpu.vector_store %arg8[%c0_16, %c0_17, %c0_18], %27 {strides = array<i32>} : memref<1x128x128xbf16, #tpu.memory_space<vmem>>, vector<1x128x128xbf16>,
    return
  }
  func.func @transform_0(%arg0: i32, %arg1: i32) -> (i32, i32, i32) {
    %c0_i32 = arith.constant 0 : i32
    %c0_i32_0 = arith.constant 0 : i32
    return %arg0, %arg1, %c0_i32 : i32, i32, i32
  }
  func.func @transform_1(%arg0: i32, %arg1: i32) -> (i32, i32) {
    %c0_i32 = arith.constant 0 : i32
    %c0_i32_0 = arith.constant 0 : i32
    %c0_i32_1 = arith.constant 0 : i32
    return %c0_i32, %c0_i32_0 : i32, i32
  }
  func.func @transform_2(%arg0: i32, %arg1: i32) -> (i32, i32) {
    %c0_i32 = arith.constant 0 : i32
    %c0_i32_0 = arith.constant 0 : i32
    %c0_i32_1 = arith.constant 0 : i32
    return %c0_i32, %c0_i32_0 : i32, i32
  }
  func.func @transform_3(%arg0: i32, %arg1: i32) -> (i32, i32) {
    %c0_i32 = arith.constant 0 : i32
    %c0_i32_0 = arith.constant 0 : i32
    %c0_i32_1 = arith.constant 0 : i32
    return %c0_i32, %c0_i32_0 : i32, i32
  }
  func.func @transform_4(%arg0: i32, %arg1: i32) -> (i32, i32) {
    %c0_i32 = arith.constant 0 : i32
    %c0_i32_0 = arith.constant 0 : i32
    %c0_i32_1 = arith.constant 0 : i32
    return %c0_i32, %c0_i32_0 : i32, i32
  }
  func.func @transform_5(%arg0: i32, %arg1: i32) -> (i32, i32, i32) {
    %c0_i32 = arith.constant 0 : i32
    %c0_i32_0 = arith.constant 0 : i32
    return %arg0, %arg1, %c0_i32 : i32, i32, i32
  }
  func.func @transform_6(%arg0: i32, %arg1: i32) -> (i32, i32, i32) {
    %c0_i32 = arith.constant 0 : i32
    %c0_i32_0 = arith.constant 0 : i32
    return %arg0, %arg1, %c0_i32 : i32, i32, i32
  }
}

module attributes {stable_mosaic.version = 11 : i64} {
  func.func @_linear_kernel(%arg0: i32, %arg1: memref<256x128xbf16, #tpu.memory_space<vmem>>, %arg2: memref<128x256xbf16, #tpu.memory_space<vmem>>, %arg3: memref<1x256xf32, #tpu.memory_space<vmem>>, %arg4: memref<256x256xbf16, #tpu.memory_space<vmem>>) attributes {dimension_semantics = [#tpu.dimension_semantics<parallel>], iteration_bounds = array<i64: 2>, scalar_prefetch = 0 : i64, scratch_operands = 0 : i64, tpu.core_type = #tpu.core_type<tc>, window_params = [{transform_indices = @transform_0, window_bounds = array<i64: 256, 128>}, {pipeline_mode = #tpu.pipeline_mode<synchronous>, transform_indices = @transform_1, window_bounds = array<i64: 128, 256>}, {pipeline_mode = #tpu.pipeline_mode<synchronous>, transform_indices = @transform_2, window_bounds = array<i64: 1, 256>}, {transform_indices = @transform_3, window_bounds = array<i64: 256, 256>}]} {
    %c0 = arith.constant 0 : index
    %c0_0 = arith.constant 0 : index
    %0 = vector.load %arg1[%c0, %c0_0] : memref<256x128xbf16, #tpu.memory_space<vmem>>, vector<256x128xbf16>
    %c0_1 = arith.constant 0 : index
    %c0_2 = arith.constant 0 : index
    %1 = vector.load %arg2[%c0_1, %c0_2] : memref<128x256xbf16, #tpu.memory_space<vmem>>, vector<128x256xbf16>
    %cst = arith.constant dense<0.000000e+00> : vector<256x256xf32>
    %2 = tpu.matmul %0, %1, %cst {dimension_numbers = #tpu.dot_dimension_numbers<[1], [0], [0], [1], [0, 0, 1, 1], [], []>} : vector<256x128xbf16>, vector<128x256xbf16>, vector<256x256xf32> -> vector<256x256xf32>
    %c0_3 = arith.constant 0 : index
    %c0_4 = arith.constant 0 : index
    %3 = vector.load %arg3[%c0_3, %c0_4] : memref<1x256xf32, #tpu.memory_space<vmem>>, vector<1x256xf32>
    %4 = vector.broadcast %3 : vector<1x256xf32> to vector<256x256xf32>
    %5 = arith.addf %2, %4 : vector<256x256xf32>
    %6 = arith.truncf %5 : vector<256x256xf32> to vector<256x256xbf16>
    %c0_5 = arith.constant 0 : index
    %c0_6 = arith.constant 0 : index
    %7 = vector.load %arg4[%c0_5, %c0_6] : memref<256x256xbf16, #tpu.memory_space<vmem>>, vector<256x256xbf16>
    tpu.vector_store %arg4[%c0_5, %c0_6], %6 {strides = array<i32>} : memref<256x256xbf16, #tpu.memory_space<vmem>>, vector<256x256xbf16>,
    return
  }
  func.func @transform_0(%arg0: i32) -> (i32, i32) {
    %c0_i32 = arith.constant 0 : i32
    %c0_i32_0 = arith.constant 0 : i32
    return %arg0, %c0_i32 : i32, i32
  }
  func.func @transform_1(%arg0: i32) -> (i32, i32) {
    %c0_i32 = arith.constant 0 : i32
    %c0_i32_0 = arith.constant 0 : i32
    %c0_i32_1 = arith.constant 0 : i32
    return %c0_i32, %c0_i32_0 : i32, i32
  }
  func.func @transform_2(%arg0: i32) -> (i32, i32) {
    %c0_i32 = arith.constant 0 : i32
    %c0_i32_0 = arith.constant 0 : i32
    %c0_i32_1 = arith.constant 0 : i32
    return %c0_i32, %c0_i32_0 : i32, i32
  }
  func.func @transform_3(%arg0: i32) -> (i32, i32) {
    %c0_i32 = arith.constant 0 : i32
    %c0_i32_0 = arith.constant 0 : i32
    return %arg0, %c0_i32 : i32, i32
  }
}

module attributes {stable_mosaic.version = 11 : i64} {
  func.func @_conv_glu_res_kernel(%arg0: i32, %arg1: i32, %arg2: memref<1x128x384xbf16, #tpu.memory_space<vmem>>, %arg3: memref<384x256xbf16, #tpu.memory_space<vmem>>, %arg4: memref<384x256xbf16, #tpu.memory_space<vmem>>, %arg5: memref<1x256xf32, #tpu.memory_space<vmem>>, %arg6: memref<1x256xf32, #tpu.memory_space<vmem>>, %arg7: memref<1x128x256xbf16, #tpu.memory_space<vmem>>, %arg8: memref<1x128x256xbf16, #tpu.memory_space<vmem>>) attributes {dimension_semantics = [#tpu.dimension_semantics<parallel>, #tpu.dimension_semantics<parallel>], iteration_bounds = array<i64: 2, 2>, scalar_prefetch = 0 : i64, scratch_operands = 0 : i64, tpu.core_type = #tpu.core_type<tc>, window_params = [{transform_indices = @transform_0, window_bounds = array<i64: 1, 128, 384>}, {pipeline_mode = #tpu.pipeline_mode<synchronous>, transform_indices = @transform_1, window_bounds = array<i64: 384, 256>}, {pipeline_mode = #tpu.pipeline_mode<synchronous>, transform_indices = @transform_2, window_bounds = array<i64: 384, 256>}, {pipeline_mode = #tpu.pipeline_mode<synchronous>, transform_indices = @transform_3, window_bounds = array<i64: 1, 256>}, {pipeline_mode = #tpu.pipeline_mode<synchronous>, transform_indices = @transform_4, window_bounds = array<i64: 1, 256>}, {transform_indices = @transform_5, window_bounds = array<i64: 1, 128, 256>}, {transform_indices = @transform_6, window_bounds = array<i64: 1, 128, 256>}]} {
    %c0 = arith.constant 0 : index
    %c0_0 = arith.constant 0 : index
    %c0_1 = arith.constant 0 : index
    %0 = vector.load %arg2[%c0, %c0_0, %c0_1] : memref<1x128x384xbf16, #tpu.memory_space<vmem>>, vector<1x128x384xbf16>
    %1 = vector.shape_cast %0 : vector<1x128x384xbf16> to vector<128x384xbf16>
    %c0_2 = arith.constant 0 : index
    %c0_3 = arith.constant 0 : index
    %2 = vector.load %arg3[%c0_2, %c0_3] : memref<384x256xbf16, #tpu.memory_space<vmem>>, vector<384x256xbf16>
    %cst = arith.constant dense<0.000000e+00> : vector<128x256xf32>
    %3 = tpu.matmul %1, %2, %cst {dimension_numbers = #tpu.dot_dimension_numbers<[1], [0], [0], [1], [0, 0, 1, 1], [], []>} : vector<128x384xbf16>, vector<384x256xbf16>, vector<128x256xf32> -> vector<128x256xf32>
    %c0_4 = arith.constant 0 : index
    %c0_5 = arith.constant 0 : index
    %4 = vector.load %arg5[%c0_4, %c0_5] : memref<1x256xf32, #tpu.memory_space<vmem>>, vector<1x256xf32>
    %5 = vector.broadcast %4 : vector<1x256xf32> to vector<128x256xf32>
    %6 = arith.addf %3, %5 : vector<128x256xf32>
    %c0_6 = arith.constant 0 : index
    %c0_7 = arith.constant 0 : index
    %7 = vector.load %arg4[%c0_6, %c0_7] : memref<384x256xbf16, #tpu.memory_space<vmem>>, vector<384x256xbf16>
    %cst_8 = arith.constant dense<0.000000e+00> : vector<128x256xf32>
    %8 = tpu.matmul %1, %7, %cst_8 {dimension_numbers = #tpu.dot_dimension_numbers<[1], [0], [0], [1], [0, 0, 1, 1], [], []>} : vector<128x384xbf16>, vector<384x256xbf16>, vector<128x256xf32> -> vector<128x256xf32>
    %c0_9 = arith.constant 0 : index
    %c0_10 = arith.constant 0 : index
    %9 = vector.load %arg6[%c0_9, %c0_10] : memref<1x256xf32, #tpu.memory_space<vmem>>, vector<1x256xf32>
    %10 = vector.broadcast %9 : vector<1x256xf32> to vector<128x256xf32>
    %11 = arith.addf %8, %10 : vector<128x256xf32>
    %12 = arith.negf %11 : vector<128x256xf32>
    %13 = math.exp %12 : vector<128x256xf32>
    %cst_11 = arith.constant 1.000000e+00 : f32
    %14 = vector.broadcast %cst_11 : f32 to vector<128x256xf32>
    %15 = arith.addf %14, %13 : vector<128x256xf32>
    %16 = arith.divf %14, %15 : vector<128x256xf32>
    %17 = arith.mulf %6, %16 : vector<128x256xf32>
    %c0_12 = arith.constant 0 : index
    %c0_13 = arith.constant 0 : index
    %c0_14 = arith.constant 0 : index
    %18 = vector.load %arg7[%c0_12, %c0_13, %c0_14] : memref<1x128x256xbf16, #tpu.memory_space<vmem>>, vector<1x128x256xbf16>
    %19 = vector.shape_cast %18 : vector<1x128x256xbf16> to vector<128x256xbf16>
    %20 = arith.extf %19 : vector<128x256xbf16> to vector<128x256xf32>
    %21 = arith.addf %17, %20 : vector<128x256xf32>
    %cst_15 = arith.constant 0.707106769 : f32
    %22 = vector.broadcast %cst_15 : f32 to vector<128x256xf32>
    %23 = arith.mulf %21, %22 : vector<128x256xf32>
    %24 = arith.truncf %23 : vector<128x256xf32> to vector<128x256xbf16>
    %c0_16 = arith.constant 0 : index
    %c0_17 = arith.constant 0 : index
    %c0_18 = arith.constant 0 : index
    %25 = vector.load %arg8[%c0_16, %c0_17, %c0_18] : memref<1x128x256xbf16, #tpu.memory_space<vmem>>, vector<1x128x256xbf16>
    %26 = vector.shape_cast %25 : vector<1x128x256xbf16> to vector<128x256xbf16>
    %27 = vector.shape_cast %24 : vector<128x256xbf16> to vector<1x128x256xbf16>
    tpu.vector_store %arg8[%c0_16, %c0_17, %c0_18], %27 {strides = array<i32>} : memref<1x128x256xbf16, #tpu.memory_space<vmem>>, vector<1x128x256xbf16>,
    return
  }
  func.func @transform_0(%arg0: i32, %arg1: i32) -> (i32, i32, i32) {
    %c0_i32 = arith.constant 0 : i32
    %c0_i32_0 = arith.constant 0 : i32
    return %arg0, %arg1, %c0_i32 : i32, i32, i32
  }
  func.func @transform_1(%arg0: i32, %arg1: i32) -> (i32, i32) {
    %c0_i32 = arith.constant 0 : i32
    %c0_i32_0 = arith.constant 0 : i32
    %c0_i32_1 = arith.constant 0 : i32
    return %c0_i32, %c0_i32_0 : i32, i32
  }
  func.func @transform_2(%arg0: i32, %arg1: i32) -> (i32, i32) {
    %c0_i32 = arith.constant 0 : i32
    %c0_i32_0 = arith.constant 0 : i32
    %c0_i32_1 = arith.constant 0 : i32
    return %c0_i32, %c0_i32_0 : i32, i32
  }
  func.func @transform_3(%arg0: i32, %arg1: i32) -> (i32, i32) {
    %c0_i32 = arith.constant 0 : i32
    %c0_i32_0 = arith.constant 0 : i32
    %c0_i32_1 = arith.constant 0 : i32
    return %c0_i32, %c0_i32_0 : i32, i32
  }
  func.func @transform_4(%arg0: i32, %arg1: i32) -> (i32, i32) {
    %c0_i32 = arith.constant 0 : i32
    %c0_i32_0 = arith.constant 0 : i32
    %c0_i32_1 = arith.constant 0 : i32
    return %c0_i32, %c0_i32_0 : i32, i32
  }
  func.func @transform_5(%arg0: i32, %arg1: i32) -> (i32, i32, i32) {
    %c0_i32 = arith.constant 0 : i32
    %c0_i32_0 = arith.constant 0 : i32
    return %arg0, %arg1, %c0_i32 : i32, i32, i32
  }
  func.func @transform_6(%arg0: i32, %arg1: i32) -> (i32, i32, i32) {
    %c0_i32 = arith.constant 0 : i32
    %c0_i32_0 = arith.constant 0 : i32
    return %arg0, %arg1, %c0_i32 : i32, i32, i32
  }
}

module attributes {stable_mosaic.version = 11 : i64} {
  func.func @_linear_kernel(%arg0: i32, %arg1: memref<256x256xbf16, #tpu.memory_space<vmem>>, %arg2: memref<256x128xbf16, #tpu.memory_space<vmem>>, %arg3: memref<1x128xf32, #tpu.memory_space<vmem>>, %arg4: memref<256x128xbf16, #tpu.memory_space<vmem>>) attributes {dimension_semantics = [#tpu.dimension_semantics<parallel>], iteration_bounds = array<i64: 2>, scalar_prefetch = 0 : i64, scratch_operands = 0 : i64, tpu.core_type = #tpu.core_type<tc>, window_params = [{transform_indices = @transform_0, window_bounds = array<i64: 256, 256>}, {pipeline_mode = #tpu.pipeline_mode<synchronous>, transform_indices = @transform_1, window_bounds = array<i64: 256, 128>}, {pipeline_mode = #tpu.pipeline_mode<synchronous>, transform_indices = @transform_2, window_bounds = array<i64: 1, 128>}, {transform_indices = @transform_3, window_bounds = array<i64: 256, 128>}]} {
    %c0 = arith.constant 0 : index
    %c0_0 = arith.constant 0 : index
    %0 = vector.load %arg1[%c0, %c0_0] : memref<256x256xbf16, #tpu.memory_space<vmem>>, vector<256x256xbf16>
    %c0_1 = arith.constant 0 : index
    %c0_2 = arith.constant 0 : index
    %1 = vector.load %arg2[%c0_1, %c0_2] : memref<256x128xbf16, #tpu.memory_space<vmem>>, vector<256x128xbf16>
    %cst = arith.constant dense<0.000000e+00> : vector<256x128xf32>
    %2 = tpu.matmul %0, %1, %cst {dimension_numbers = #tpu.dot_dimension_numbers<[1], [0], [0], [1], [0, 0, 1, 1], [], []>} : vector<256x256xbf16>, vector<256x128xbf16>, vector<256x128xf32> -> vector<256x128xf32>
    %c0_3 = arith.constant 0 : index
    %c0_4 = arith.constant 0 : index
    %3 = vector.load %arg3[%c0_3, %c0_4] : memref<1x128xf32, #tpu.memory_space<vmem>>, vector<1x128xf32>
    %4 = vector.broadcast %3 : vector<1x128xf32> to vector<256x128xf32>
    %5 = arith.addf %2, %4 : vector<256x128xf32>
    %6 = arith.truncf %5 : vector<256x128xf32> to vector<256x128xbf16>
    %c0_5 = arith.constant 0 : index
    %c0_6 = arith.constant 0 : index
    %7 = vector.load %arg4[%c0_5, %c0_6] : memref<256x128xbf16, #tpu.memory_space<vmem>>, vector<256x128xbf16>
    tpu.vector_store %arg4[%c0_5, %c0_6], %6 {strides = array<i32>} : memref<256x128xbf16, #tpu.memory_space<vmem>>, vector<256x128xbf16>,
    return
  }
  func.func @transform_0(%arg0: i32) -> (i32, i32) {
    %c0_i32 = arith.constant 0 : i32
    %c0_i32_0 = arith.constant 0 : i32
    return %arg0, %c0_i32 : i32, i32
  }
  func.func @transform_1(%arg0: i32) -> (i32, i32) {
    %c0_i32 = arith.constant 0 : i32
    %c0_i32_0 = arith.constant 0 : i32
    %c0_i32_1 = arith.constant 0 : i32
    return %c0_i32, %c0_i32_0 : i32, i32
  }
  func.func @transform_2(%arg0: i32) -> (i32, i32) {
    %c0_i32 = arith.constant 0 : i32
    %c0_i32_0 = arith.constant 0 : i32
    %c0_i32_1 = arith.constant 0 : i32
    return %c0_i32, %c0_i32_0 : i32, i32
  }
  func.func @transform_3(%arg0: i32) -> (i32, i32) {
    %c0_i32 = arith.constant 0 : i32
    %c0_i32_0 = arith.constant 0 : i32
    return %arg0, %c0_i32 : i32, i32
  }
}

module attributes {stable_mosaic.version = 11 : i64} {
  func.func @_conv_glu_res_kernel(%arg0: i32, %arg1: i32, %arg2: memref<1x128x768xbf16, #tpu.memory_space<vmem>>, %arg3: memref<768x128xbf16, #tpu.memory_space<vmem>>, %arg4: memref<768x128xbf16, #tpu.memory_space<vmem>>, %arg5: memref<1x128xf32, #tpu.memory_space<vmem>>, %arg6: memref<1x128xf32, #tpu.memory_space<vmem>>, %arg7: memref<1x128x128xbf16, #tpu.memory_space<vmem>>, %arg8: memref<1x128x128xbf16, #tpu.memory_space<vmem>>) attributes {dimension_semantics = [#tpu.dimension_semantics<parallel>, #tpu.dimension_semantics<parallel>], iteration_bounds = array<i64: 2, 2>, scalar_prefetch = 0 : i64, scratch_operands = 0 : i64, tpu.core_type = #tpu.core_type<tc>, window_params = [{transform_indices = @transform_0, window_bounds = array<i64: 1, 128, 768>}, {pipeline_mode = #tpu.pipeline_mode<synchronous>, transform_indices = @transform_1, window_bounds = array<i64: 768, 128>}, {pipeline_mode = #tpu.pipeline_mode<synchronous>, transform_indices = @transform_2, window_bounds = array<i64: 768, 128>}, {pipeline_mode = #tpu.pipeline_mode<synchronous>, transform_indices = @transform_3, window_bounds = array<i64: 1, 128>}, {pipeline_mode = #tpu.pipeline_mode<synchronous>, transform_indices = @transform_4, window_bounds = array<i64: 1, 128>}, {transform_indices = @transform_5, window_bounds = array<i64: 1, 128, 128>}, {transform_indices = @transform_6, window_bounds = array<i64: 1, 128, 128>}]} {
    %c0 = arith.constant 0 : index
    %c0_0 = arith.constant 0 : index
    %c0_1 = arith.constant 0 : index
    %0 = vector.load %arg2[%c0, %c0_0, %c0_1] : memref<1x128x768xbf16, #tpu.memory_space<vmem>>, vector<1x128x768xbf16>
    %1 = vector.shape_cast %0 : vector<1x128x768xbf16> to vector<128x768xbf16>
    %c0_2 = arith.constant 0 : index
    %c0_3 = arith.constant 0 : index
    %2 = vector.load %arg3[%c0_2, %c0_3] : memref<768x128xbf16, #tpu.memory_space<vmem>>, vector<768x128xbf16>
    %cst = arith.constant dense<0.000000e+00> : vector<128x128xf32>
    %3 = tpu.matmul %1, %2, %cst {dimension_numbers = #tpu.dot_dimension_numbers<[1], [0], [0], [1], [0, 0, 1, 1], [], []>} : vector<128x768xbf16>, vector<768x128xbf16>, vector<128x128xf32> -> vector<128x128xf32>
    %c0_4 = arith.constant 0 : index
    %c0_5 = arith.constant 0 : index
    %4 = vector.load %arg5[%c0_4, %c0_5] : memref<1x128xf32, #tpu.memory_space<vmem>>, vector<1x128xf32>
    %5 = vector.broadcast %4 : vector<1x128xf32> to vector<128x128xf32>
    %6 = arith.addf %3, %5 : vector<128x128xf32>
    %c0_6 = arith.constant 0 : index
    %c0_7 = arith.constant 0 : index
    %7 = vector.load %arg4[%c0_6, %c0_7] : memref<768x128xbf16, #tpu.memory_space<vmem>>, vector<768x128xbf16>
    %cst_8 = arith.constant dense<0.000000e+00> : vector<128x128xf32>
    %8 = tpu.matmul %1, %7, %cst_8 {dimension_numbers = #tpu.dot_dimension_numbers<[1], [0], [0], [1], [0, 0, 1, 1], [], []>} : vector<128x768xbf16>, vector<768x128xbf16>, vector<128x128xf32> -> vector<128x128xf32>
    %c0_9 = arith.constant 0 : index
    %c0_10 = arith.constant 0 : index
    %9 = vector.load %arg6[%c0_9, %c0_10] : memref<1x128xf32, #tpu.memory_space<vmem>>, vector<1x128xf32>
    %10 = vector.broadcast %9 : vector<1x128xf32> to vector<128x128xf32>
    %11 = arith.addf %8, %10 : vector<128x128xf32>
    %12 = arith.negf %11 : vector<128x128xf32>
    %13 = math.exp %12 : vector<128x128xf32>
    %cst_11 = arith.constant 1.000000e+00 : f32
    %14 = vector.broadcast %cst_11 : f32 to vector<128x128xf32>
    %15 = arith.addf %14, %13 : vector<128x128xf32>
    %16 = arith.divf %14, %15 : vector<128x128xf32>
    %17 = arith.mulf %6, %16 : vector<128x128xf32>
    %c0_12 = arith.constant 0 : index
    %c0_13 = arith.constant 0 : index
    %c0_14 = arith.constant 0 : index
    %18 = vector.load %arg7[%c0_12, %c0_13, %c0_14] : memref<1x128x128xbf16, #tpu.memory_space<vmem>>, vector<1x128x128xbf16>
    %19 = vector.shape_cast %18 : vector<1x128x128xbf16> to vector<128x128xbf16>
    %20 = arith.extf %19 : vector<128x128xbf16> to vector<128x128xf32>
    %21 = arith.addf %17, %20 : vector<128x128xf32>
    %cst_15 = arith.constant 0.707106769 : f32
    %22 = vector.broadcast %cst_15 : f32 to vector<128x128xf32>
    %23 = arith.mulf %21, %22 : vector<128x128xf32>
    %24 = arith.truncf %23 : vector<128x128xf32> to vector<128x128xbf16>
    %c0_16 = arith.constant 0 : index
    %c0_17 = arith.constant 0 : index
    %c0_18 = arith.constant 0 : index
    %25 = vector.load %arg8[%c0_16, %c0_17, %c0_18] : memref<1x128x128xbf16, #tpu.memory_space<vmem>>, vector<1x128x128xbf16>
    %26 = vector.shape_cast %25 : vector<1x128x128xbf16> to vector<128x128xbf16>
    %27 = vector.shape_cast %24 : vector<128x128xbf16> to vector<1x128x128xbf16>
    tpu.vector_store %arg8[%c0_16, %c0_17, %c0_18], %27 {strides = array<i32>} : memref<1x128x128xbf16, #tpu.memory_space<vmem>>, vector<1x128x128xbf16>,
    return
  }
  func.func @transform_0(%arg0: i32, %arg1: i32) -> (i32, i32, i32) {
    %c0_i32 = arith.constant 0 : i32
    %c0_i32_0 = arith.constant 0 : i32
    return %arg0, %arg1, %c0_i32 : i32, i32, i32
  }
  func.func @transform_1(%arg0: i32, %arg1: i32) -> (i32, i32) {
    %c0_i32 = arith.constant 0 : i32
    %c0_i32_0 = arith.constant 0 : i32
    %c0_i32_1 = arith.constant 0 : i32
    return %c0_i32, %c0_i32_0 : i32, i32
  }
  func.func @transform_2(%arg0: i32, %arg1: i32) -> (i32, i32) {
    %c0_i32 = arith.constant 0 : i32
    %c0_i32_0 = arith.constant 0 : i32
    %c0_i32_1 = arith.constant 0 : i32
    return %c0_i32, %c0_i32_0 : i32, i32
  }
  func.func @transform_3(%arg0: i32, %arg1: i32) -> (i32, i32) {
    %c0_i32 = arith.constant 0 : i32
    %c0_i32_0 = arith.constant 0 : i32
    %c0_i32_1 = arith.constant 0 : i32
    return %c0_i32, %c0_i32_0 : i32, i32
  }
  func.func @transform_4(%arg0: i32, %arg1: i32) -> (i32, i32) {
    %c0_i32 = arith.constant 0 : i32
    %c0_i32_0 = arith.constant 0 : i32
    %c0_i32_1 = arith.constant 0 : i32
    return %c0_i32, %c0_i32_0 : i32, i32
  }
  func.func @transform_5(%arg0: i32, %arg1: i32) -> (i32, i32, i32) {
    %c0_i32 = arith.constant 0 : i32
    %c0_i32_0 = arith.constant 0 : i32
    return %arg0, %arg1, %c0_i32 : i32, i32, i32
  }
  func.func @transform_6(%arg0: i32, %arg1: i32) -> (i32, i32, i32) {
    %c0_i32 = arith.constant 0 : i32
    %c0_i32_0 = arith.constant 0 : i32
    return %arg0, %arg1, %c0_i32 : i32, i32, i32
  }
}

module attributes {stable_mosaic.version = 11 : i64} {
  func.func @_fc2_tail_kernel(%arg0: i32, %arg1: memref<256x128xbf16, #tpu.memory_space<vmem>>, %arg2: memref<128x128xbf16, #tpu.memory_space<vmem>>, %arg3: memref<1x128xf32, #tpu.memory_space<vmem>>, %arg4: memref<256x1xf32, #tpu.memory_space<vmem>>, %arg5: memref<256x128xf32, #tpu.memory_space<vmem>>, %arg6: memref<256x128xf32, #tpu.memory_space<vmem>>, %arg7: memref<256x128xf32, #tpu.memory_space<vmem>>) attributes {dimension_semantics = [#tpu.dimension_semantics<parallel>], iteration_bounds = array<i64: 2>, scalar_prefetch = 0 : i64, scratch_operands = 0 : i64, tpu.core_type = #tpu.core_type<tc>, window_params = [{transform_indices = @transform_0, window_bounds = array<i64: 256, 128>}, {pipeline_mode = #tpu.pipeline_mode<synchronous>, transform_indices = @transform_1, window_bounds = array<i64: 128, 128>}, {pipeline_mode = #tpu.pipeline_mode<synchronous>, transform_indices = @transform_2, window_bounds = array<i64: 1, 128>}, {transform_indices = @transform_3, window_bounds = array<i64: 256, 1>}, {transform_indices = @transform_4, window_bounds = array<i64: 256, 128>}, {transform_indices = @transform_5, window_bounds = array<i64: 256, 128>}, {transform_indices = @transform_6, window_bounds = array<i64: 256, 128>}]} {
    %c0 = arith.constant 0 : index
    %c0_0 = arith.constant 0 : index
    %0 = vector.load %arg1[%c0, %c0_0] : memref<256x128xbf16, #tpu.memory_space<vmem>>, vector<256x128xbf16>
    %c0_1 = arith.constant 0 : index
    %c0_2 = arith.constant 0 : index
    %1 = vector.load %arg2[%c0_1, %c0_2] : memref<128x128xbf16, #tpu.memory_space<vmem>>, vector<128x128xbf16>
    %cst = arith.constant dense<0.000000e+00> : vector<256x128xf32>
    %2 = tpu.matmul %0, %1, %cst {dimension_numbers = #tpu.dot_dimension_numbers<[1], [0], [0], [1], [0, 0, 1, 1], [], []>} : vector<256x128xbf16>, vector<128x128xbf16>, vector<256x128xf32> -> vector<256x128xf32>
    %c0_3 = arith.constant 0 : index
    %c0_4 = arith.constant 0 : index
    %3 = vector.load %arg3[%c0_3, %c0_4] : memref<1x128xf32, #tpu.memory_space<vmem>>, vector<1x128xf32>
    %4 = vector.broadcast %3 : vector<1x128xf32> to vector<256x128xf32>
    %5 = arith.addf %2, %4 : vector<256x128xf32>
    %c0_5 = arith.constant 0 : index
    %c0_6 = arith.constant 0 : index
    %6 = vector.load %arg4[%c0_5, %c0_6] : memref<256x1xf32, #tpu.memory_space<vmem>>, vector<256x1xf32>
    %7 = vector.broadcast %6 : vector<256x1xf32> to vector<256x128xf32>
    %8 = arith.mulf %5, %7 : vector<256x128xf32>
    %c0_7 = arith.constant 0 : index
    %c0_8 = arith.constant 0 : index
    %9 = vector.load %arg6[%c0_7, %c0_8] : memref<256x128xf32, #tpu.memory_space<vmem>>, vector<256x128xf32>
    tpu.vector_store %arg6[%c0_7, %c0_8], %8 {strides = array<i32>} : memref<256x128xf32, #tpu.memory_space<vmem>>, vector<256x128xf32>,
    %c0_9 = arith.constant 0 : index
    %c0_10 = arith.constant 0 : index
    %10 = vector.load %arg5[%c0_9, %c0_10] : memref<256x128xf32, #tpu.memory_space<vmem>>, vector<256x128xf32>
    %11 = arith.addf %8, %10 : vector<256x128xf32>
    %cst_11 = arith.constant 0.707106769 : f32
    %12 = vector.broadcast %cst_11 : f32 to vector<256x128xf32>
    %13 = arith.mulf %11, %12 : vector<256x128xf32>
    %c0_12 = arith.constant 0 : index
    %c0_13 = arith.constant 0 : index
    %14 = vector.load %arg7[%c0_12, %c0_13] : memref<256x128xf32, #tpu.memory_space<vmem>>, vector<256x128xf32>
    tpu.vector_store %arg7[%c0_12, %c0_13], %13 {strides = array<i32>} : memref<256x128xf32, #tpu.memory_space<vmem>>, vector<256x128xf32>,
    return
  }
  func.func @transform_0(%arg0: i32) -> (i32, i32) {
    %c0_i32 = arith.constant 0 : i32
    %c0_i32_0 = arith.constant 0 : i32
    return %arg0, %c0_i32 : i32, i32
  }
  func.func @transform_1(%arg0: i32) -> (i32, i32) {
    %c0_i32 = arith.constant 0 : i32
    %c0_i32_0 = arith.constant 0 : i32
    %c0_i32_1 = arith.constant 0 : i32
    return %c0_i32, %c0_i32_0 : i32, i32
  }
  func.func @transform_2(%arg0: i32) -> (i32, i32) {
    %c0_i32 = arith.constant 0 : i32
    %c0_i32_0 = arith.constant 0 : i32
    %c0_i32_1 = arith.constant 0 : i32
    return %c0_i32, %c0_i32_0 : i32, i32
  }
  func.func @transform_3(%arg0: i32) -> (i32, i32) {
    %c0_i32 = arith.constant 0 : i32
    %c0_i32_0 = arith.constant 0 : i32
    return %arg0, %c0_i32 : i32, i32
  }
  func.func @transform_4(%arg0: i32) -> (i32, i32) {
    %c0_i32 = arith.constant 0 : i32
    %c0_i32_0 = arith.constant 0 : i32
    return %arg0, %c0_i32 : i32, i32
  }
  func.func @transform_5(%arg0: i32) -> (i32, i32) {
    %c0_i32 = arith.constant 0 : i32
    %c0_i32_0 = arith.constant 0 : i32
    return %arg0, %c0_i32 : i32, i32
  }
  func.func @transform_6(%arg0: i32) -> (i32, i32) {
    %c0_i32 = arith.constant 0 : i32
    %c0_i32_0 = arith.constant 0 : i32
    return %arg0, %c0_i32 : i32, i32
  }
}

</mosaic_0001>

<bundles_post_ra>
// kernel: fconv_encoder_forward.7
= control target key start
LH: loop header
LB: loop body
LE: loop exit
PB: predicated region body
PF: predicated region fallthrough
CT: control target
= control target key end

     0   :  { %s1094_s12 = smov 0   ;;  %s1215_s0 = inlined_call_operand.vmem [shape: bf16[512,128], index: 0, kind: input, shape index: {}]   ;;  %s1216_s1 = inlined_call_operand.vmem [shape: bf16[128,128], index: 1, kind: input, shape index: {}]   ;;  %s1217_s2 = inlined_call_operand.vmem [shape: f32[1,128], index: 2, kind: input, shape index: {}]   ;;  %s1218_s3 = inlined_call_operand.vmem [shape: bf16[512,128], index: 3, kind: output, shape index: {}]  }
   0x1 LB: > { %s751_s13 = sadd.s32 4294967295, %s1072_s12   ;;  %p755_p0 = scmp.ge.s32.totalorder %s1072_s12, 1  ;;  %s1072_s12 = sphi %s1094_s12, %s13_s12  }
   0x2   : > { %p138_p1 = scmp.lt.s32.totalorder %s1072_s12, 3 }
   0x4   : > { %p139_p2 = pnand %p755_p0, %p138_p1 }
   0x5   : > { %v1042_v0 = vld [vmem:[%s1216_s1] sm:$0xff] (!%p139_p2)   ;;  %s756_s16 = sshll.u32 (!%p139_p2), %s751_s13, 5  ;;  %v1043_v1 = vld [vmem:[%s1216_s1 + $0x8] sm:$0xff] (!%p139_p2)   ;;  %v1044_v2 = vld [vmem:[%s1216_s1 + $0x10] sm:$0xff] (!%p139_p2)  }
   0x6   : > { %142 = sbr.rel (%p139_p2) target bundleno = 282 (0x11a), region = 32  ;;  %p163_p3 = scmp.lt.s32.totalorder (!%p139_p2), %s756_s16, 63  ;;  %970 = vmatprep.subr.bf16.mxu0 (!%p139_p2), %v1042_v0  ;;  %1018 = vmatprep.subr.bf16.mxu1 (!%p139_p2), %v1042_v0  ;;  %v1045_v3 = vld [vmem:[%s1216_s1 + $0x18] sm:$0xff] (!%p139_p2)   ;;  %v1046_v6 = vld [vmem:[%s1216_s1 + $0x20] sm:$0xff] (!%p139_p2)   ;;  %v1047_v7 = vld [vmem:[%s1216_s1 + $0x28] sm:$0xff] (!%p139_p2)  }
   0x7   : > { %971 = vmatpush3.bf16.msra.mxu0 (!%p139_p2), %v1042_v0  ;;  %1026 = vmatpush3.bf16.msra.mxu1 (!%p139_p2), %v1042_v0  ;;  %v1048_v8 = vld [vmem:[%s1216_s1 + $0x30] sm:$0xff] (!%p139_p2)   ;;  %v1049_v9 = vld [vmem:[%s1216_s1 + $0x38] sm:$0xff] (!%p139_p2)   ;;  %v1155_v25 = vld [vmem:[%s1217_s2] ss:$0 sm:$0xff] (!%p139_p2) }
   0x8   : > { %972 = vmatprep.subr.bf16.mxu0 (!%p139_p2), %v1043_v1  ;;  %1019 = vmatprep.subr.bf16.mxu1 (!%p139_p2), %v1043_v1 }
   0xb   : > { %973 = vmatpush3.bf16.msra.mxu0 (!%p139_p2), %v1043_v1  ;;  %1027 = vmatpush3.bf16.msra.mxu1 (!%p139_p2), %v1043_v1 }
   0xc   : > { %974 = vmatprep.subr.bf16.mxu0 (!%p139_p2), %v1044_v2  ;;  %1020 = vmatprep.subr.bf16.mxu1 (!%p139_p2), %v1044_v2 }
   0xd   : > { %s1220_s16 = smov (!%p163_p3, %s756_s16), 63 }
   0xe   : > { %s757_s21 = sshll.u32 %s1220_s16, 2 }
   0xf   : > { %s1119_s24 = scalar_lea.vmem %s1215_s0, %s757_s21  ;;  %975 = vmatpush3.bf16.msra.mxu0 %v1044_v2  ;;  %1028 = vmatpush3.bf16.msra.mxu1 %v1044_v2  ;;  %s1168_s13 = scalar_lea.vmem %s1218_s3, %s757_s21 }
  0x10   : > { %v1050_v4 = vld [vmem:[%s1119_s24] sm:$0xff]   ;;  %976 = vmatprep.subr.bf16.mxu0 %v1045_v3  ;;  %1021 = vmatprep.subr.bf16.mxu1 %v1045_v3  ;;  %v1052_v10 = vld [vmem:[%s1119_s24 + $0x8] sm:$0xff]   ;;  %v1054_v12 = vld [vmem:[%s1119_s24 + $0x10] sm:$0xff]  }
  0x11   : > { %v1051_v5 = vld [vmem:[%s1119_s24 + $0x40] sm:$0xff]   ;;  %986 = vmatprep.mubr.bf16.mxu0 %v1050_v4  ;;  %v1053_v11 = vld [vmem:[%s1119_s24 + $0x48] sm:$0xff]   ;;  %v1055_v13 = vld [vmem:[%s1119_s24 + $0x50] sm:$0xff]  }
  0x12   : > { %1002 = vmatprep.mubr.bf16.mxu1 %v1051_v5  ;;  %v1056_v14 = vld [vmem:[%s1119_s24 + $0x18] sm:$0xff]   ;;  %v1058_v16 = vld [vmem:[%s1119_s24 + $0x20] sm:$0xff]   ;;  %v1060_v18 = vld [vmem:[%s1119_s24 + $0x28] sm:$0xff]  }
  0x13   : > { %977 = vmatpush3.bf16.msra.mxu0 %v1045_v3  ;;  %1029 = vmatpush3.bf16.msra.mxu1 %v1045_v3  ;;  %v1057_v15 = vld [vmem:[%s1119_s24 + $0x58] sm:$0xff]   ;;  %v1059_v17 = vld [vmem:[%s1119_s24 + $0x60] sm:$0xff]   ;;  %v1061_v19 = vld [vmem:[%s1119_s24 + $0x68] sm:$0xff]  }
  0x14   : > { %978 = vmatprep.subr.bf16.mxu0 %v1046_v6  ;;  %1022 = vmatprep.subr.bf16.mxu1 %v1046_v6  ;;  %v1062_v20 = vld [vmem:[%s1119_s24 + $0x30] sm:$0xff]   ;;  %v1064_v22 = vld [vmem:[%s1119_s24 + $0x38] sm:$0xff]  }
  0x15   : > { %v1063_v21 = vld [vmem:[%s1119_s24 + $0x70] sm:$0xff]   ;;  %v1065_v23 = vld [vmem:[%s1119_s24 + $0x78] sm:$0xff]  }
  0x17   : > { %979 = vmatpush3.bf16.msra.mxu0 %v1046_v6  ;;  %1030 = vmatpush3.bf16.msra.mxu1 %v1046_v6 }
  0x18   : > { %980 = vmatprep.subr.bf16.mxu0 %v1047_v7  ;;  %1023 = vmatprep.subr.bf16.mxu1 %v1047_v7 }
  0x1b   : > { %981 = vmatpush3.bf16.msra.mxu0 %v1047_v7  ;;  %1031 = vmatpush3.bf16.msra.mxu1 %v1047_v7 }
  0x1c   : > { %982 = vmatprep.subr.bf16.mxu0 %v1048_v8  ;;  %1024 = vmatprep.subr.bf16.mxu1 %v1048_v8 }
  0x1f   : > { %983 = vmatpush3.bf16.msra.mxu0 %v1048_v8  ;;  %1032 = vmatpush3.bf16.msra.mxu1 %v1048_v8 }
  0x20   : > { %984 = vmatprep.subr.bf16.mxu0 %v1049_v9  ;;  %1025 = vmatprep.subr.bf16.mxu1 %v1049_v9 }
  0x23   : > { %985 = vmatpush3.bf16.msra.mxu0 %v1049_v9  ;;  %1033 = vmatpush3.bf16.msra.mxu1 %v1049_v9 }
  0x26   : > { %987 = vmatmul.mubr.bf16.vlgmr.msra.gmra.mrb[0].mxu0 %v1052_v10  ;;  %1003 = vmatmul.mubr.bf16.vlgmr.msra.gmra.mrb[0].mxu1 %v1053_v11 }
  0x27   : > { %990 = vmatprep.mubr.bf16.mxu0 %v1054_v12  ;;  %1006 = vmatprep.mubr.bf16.mxu1 %v1055_v13 }
  0x2e   : > { %991 = vmatmul.mubr.bf16.gmra.mrb[4].mxu0 %v1056_v14  ;;  %1007 = vmatmul.mubr.bf16.gmra.mrb[4].mxu1 %v1057_v15 }
  0x2f   : > { %994 = vmatprep.mubr.bf16.mxu0 %v1058_v16  ;;  %1010 = vmatprep.mubr.bf16.mxu1 %v1059_v17 }
  0x36   : > { %995 = vmatmul.mubr.bf16.gmra.mrb[8].mxu0 %v1060_v18  ;;  %1011 = vmatmul.mubr.bf16.gmra.mrb[8].mxu1 %v1061_v19 }
  0x37   : > { %998 = vmatprep.mubr.bf16.mxu0 %v1062_v20  ;;  %1014 = vmatprep.mubr.bf16.mxu1 %v1063_v21 }
  0x3e   : > { %999 = vmatmul.mubr.bf16.gmra.mrb[12].mxu0 %v1064_v22  ;;  %1015 = vmatmul.mubr.bf16.gmra.mrb[12].mxu1 %v1065_v23 }
  0xf9   : > { %v988_v24 = vpop.f32.mrb[0].mxu0  ;;  %v1004_v26 = vpop.f32.mrb[0].mxu1 }
  0xfa   : > { %v408_v27 = vpop.f32.mrb[1].mxu0  ;;  %v472_v28 = vpop.f32.mrb[1].mxu1  ;;  %v417_v31 = vadd.f32 %v988_v24, %v1155_v25  ;;  %v481_v32 = vadd.f32 %v1004_v26, %v1155_v25 }
  0xfb   : > { %v989_v29 = vpop.f32.mrb[2].mxu0  ;;  %v1005_v30 = vpop.f32.mrb[2].mxu1  ;;  %v409_v37 = vadd.f32 %v1155_v25, %v408_v27  ;;  %v473_v38 = vadd.f32 %v1155_v25, %v472_v28 }
  0xfc   : > { %v420_v33 = vadd.f32 %v989_v29, %v1155_v25  ;;  %v484_v34 = vadd.f32 %v1005_v30, %v1155_v25  ;;  %v411_v35 = vpop.f32.mrb[3].mxu0  ;;  %v475_v36 = vpop.f32.mrb[3].mxu1 }
  0xfd   : > { %v412_v39 = vadd.f32 %v1155_v25, %v411_v35  ;;  %v476_v40 = vadd.f32 %v1155_v25, %v475_v36 }
  0xfe   : > { %v859_v41 = vpack.c.bf16 %v420_v33, %v417_v31  ;;  %v899_v42 = vpack.c.bf16 %v484_v34, %v481_v32 }
  0xff   : > { %v854_v43 = vpack.c.bf16 %v412_v39, %v409_v37  ;;  %v894_v44 = vpack.c.bf16 %v476_v40, %v473_v38 }
 0x100   : > { %931 = vst [vmem:[%s1168_s13 + $0x8] sm:$0xff] %v859_v41   ;;  %939 = vst [vmem:[%s1168_s13 + $0x48] sm:$0xff] %v899_v42  }
 0x101   : > { %855 = vst [vmem:[%s1168_s13] sm:$0xff] %v854_v43   ;;  %938 = vst [vmem:[%s1168_s13 + $0x40] sm:$0xff] %v894_v44   ;;  %v992_v45 = vpop.f32.mrb[4].mxu0  ;;  %v1008_v46 = vpop.f32.mrb[4].mxu1 }
 0x102   : > { %v424_v47 = vpop.f32.mrb[5].mxu0  ;;  %v488_v48 = vpop.f32.mrb[5].mxu1  ;;  %v433_v51 = vadd.f32 %v992_v45, %v1155_v25  ;;  %v497_v52 = vadd.f32 %v1008_v46, %v1155_v25 }
 0x103   : > { %v993_v49 = vpop.f32.mrb[6].mxu0  ;;  %v1009_v50 = vpop.f32.mrb[6].mxu1  ;;  %v425_v57 = vadd.f32 %v1155_v25, %v424_v47  ;;  %v489_v58 = vadd.f32 %v1155_v25, %v488_v48 }
 0x104   : > { %v436_v53 = vadd.f32 %v993_v49, %v1155_v25  ;;  %v500_v54 = vadd.f32 %v1009_v50, %v1155_v25  ;;  %v427_v55 = vpop.f32.mrb[7].mxu0  ;;  %v491_v56 = vpop.f32.mrb[7].mxu1 }
 0x105   : > { %v428_v59 = vadd.f32 %v1155_v25, %v427_v55  ;;  %v492_v60 = vadd.f32 %v1155_v25, %v491_v56 }
 0x106   : > { %v869_v61 = vpack.c.bf16 %v436_v53, %v433_v51  ;;  %v909_v62 = vpack.c.bf16 %v500_v54, %v497_v52 }
 0x107   : > { %v864_v63 = vpack.c.bf16 %v428_v59, %v425_v57  ;;  %v904_v0 = vpack.c.bf16 %v492_v60, %v489_v58 }
 0x108   : > { %933 = vst [vmem:[%s1168_s13 + $0x18] sm:$0xff] %v869_v61   ;;  %941 = vst [vmem:[%s1168_s13 + $0x58] sm:$0xff] %v909_v62  }
 0x109   : > { %932 = vst [vmem:[%s1168_s13 + $0x10] sm:$0xff] %v864_v63   ;;  %940 = vst [vmem:[%s1168_s13 + $0x50] sm:$0xff] %v904_v0   ;;  %v996_v1 = vpop.f32.mrb[8].mxu0  ;;  %v1012_v2 = vpop.f32.mrb[8].mxu1 }
 0x10a   : > { %v440_v3 = vpop.f32.mrb[9].mxu0  ;;  %v504_v4 = vpop.f32.mrb[9].mxu1  ;;  %v449_v7 = vadd.f32 %v996_v1, %v1155_v25  ;;  %v513_v8 = vadd.f32 %v1012_v2, %v1155_v25 }
 0x10b   : > { %v997_v5 = vpop.f32.mrb[10].mxu0  ;;  %v1013_v6 = vpop.f32.mrb[10].mxu1  ;;  %v441_v13 = vadd.f32 %v1155_v25, %v440_v3  ;;  %v505_v14 = vadd.f32 %v1155_v25, %v504_v4 }
 0x10c   : > { %v452_v9 = vadd.f32 %v997_v5, %v1155_v25  ;;  %v516_v10 = vadd.f32 %v1013_v6, %v1155_v25  ;;  %v443_v11 = vpop.f32.mrb[11].mxu0  ;;  %v507_v12 = vpop.f32.mrb[11].mxu1 }
 0x10d   : > { %v444_v15 = vadd.f32 %v1155_v25, %v443_v11  ;;  %v508_v16 = vadd.f32 %v1155_v25, %v507_v12 }
 0x10e   : > { %v879_v17 = vpack.c.bf16 %v452_v9, %v449_v7  ;;  %v919_v18 = vpack.c.bf16 %v516_v10, %v513_v8 }
 0x10f   : > { %v874_v19 = vpack.c.bf16 %v444_v15, %v441_v13  ;;  %v914_v20 = vpack.c.bf16 %v508_v16, %v505_v14 }
 0x110   : > { %935 = vst [vmem:[%s1168_s13 + $0x28] sm:$0xff] %v879_v17   ;;  %943 = vst [vmem:[%s1168_s13 + $0x68] sm:$0xff] %v919_v18  }
 0x111   : > { %934 = vst [vmem:[%s1168_s13 + $0x20] sm:$0xff] %v874_v19   ;;  %942 = vst [vmem:[%s1168_s13 + $0x60] sm:$0xff] %v914_v20   ;;  %v1000_v21 = vpop.f32.mrb[12].mxu0  ;;  %v1016_v22 = vpop.f32.mrb[12].mxu1 }
 0x112   : > { %v456_v23 = vpop.f32.mrb[13].mxu0  ;;  %v520_v24 = vpop.f32.mrb[13].mxu1  ;;  %v465_v28 = vadd.f32 %v1000_v21, %v1155_v25  ;;  %v529_v29 = vadd.f32 %v1016_v22, %v1155_v25 }
 0x113   : > { %v1001_v26 = vpop.f32.mrb[14].mxu0  ;;  %v1017_v27 = vpop.f32.mrb[14].mxu1  ;;  %v457_v34 = vadd.f32 %v1155_v25, %v456_v23  ;;  %v521_v35 = vadd.f32 %v1155_v25, %v520_v24 }
 0x114   : > { %v468_v30 = vadd.f32 %v1001_v26, %v1155_v25  ;;  %v532_v31 = vadd.f32 %v1017_v27, %v1155_v25  ;;  %v459_v32 = vpop.f32.mrb[15].mxu0  ;;  %v523_v33 = vpop.f32.mrb[15].mxu1 }
 0x115   : > { %v460_v36 = vadd.f32 %v1155_v25, %v459_v32  ;;  %v524_v37 = vadd.f32 %v1155_v25, %v523_v33 }
 0x116   : > { %v889_v38 = vpack.c.bf16 %v468_v30, %v465_v28  ;;  %v929_v39 = vpack.c.bf16 %v532_v31, %v529_v29 }
 0x117   : > { %v884_v40 = vpack.c.bf16 %v460_v36, %v457_v34  ;;  %v924_v41 = vpack.c.bf16 %v524_v37, %v521_v35 }
 0x118   : > { %937 = vst [vmem:[%s1168_s13 + $0x38] sm:$0xff] %v889_v38   ;;  %945 = vst [vmem:[%s1168_s13 + $0x78] sm:$0xff] %v929_v39  }
 0x119   : > { %936 = vst [vmem:[%s1168_s13 + $0x30] sm:$0xff] %v884_v40   ;;  %944 = vst [vmem:[%s1168_s13 + $0x70] sm:$0xff] %v924_v41  }
 0x11a PF: > { %s13_s12 = sadd.s32 1, %s1072_s12  }
 0x11b   : > { %p10_p4 = scmp.ge.s32.totalorder %s13_s12, 4  }
 0x11d   :  { %12 = sbr.rel (!%p10_p4) target bundleno = 1 (0x1), region = 62 }

// kernel: fconv_encoder_forward.9
= control target key start
LH: loop header
LB: loop body
LE: loop exit
PB: predicated region body
PF: predicated region fallthrough
CT: control target
= control target key end

     0   :  { %s1091_s12 = smov 0   ;;  %s1299_s0 = inlined_call_operand.vmem [shape: bf16[512,128], index: 0, kind: input, shape index: {}]   ;;  %s1300_s1 = inlined_call_operand.vmem [shape: bf16[128,256], index: 1, kind: input, shape index: {}]   ;;  %s1301_s2 = inlined_call_operand.vmem [shape: f32[1,256], index: 2, kind: input, shape index: {}]   ;;  %s1302_s3 = inlined_call_operand.vmem [shape: bf16[512,256], index: 3, kind: output, shape index: {}]  }
   0x1 LB: > { %s888_s13 = sadd.s32 4294967295, %s1068_s12   ;;  %p892_p0 = scmp.ge.s32.totalorder %s1068_s12, 1  ;;  %s1068_s12 = sphi %s1091_s12, %s13_s12  }
   0x2   : > { %p138_p1 = scmp.lt.s32.totalorder %s1068_s12, 3 }
   0x4   : > { %p139_p2 = pnand %p892_p0, %p138_p1 }
   0x5   : > { %v1022_v0 = vld [vmem:[%s1300_s1 + $0x4] ss:$8 sps:$4 sm:$0xff] (!%p139_p2)   ;;  %s893_s16 = sshll.u32 (!%p139_p2), %s888_s13, 5  ;;  %v1024_v1 = vld [vmem:[%s1300_s1] ss:$8 sps:$4 sm:$0xff] (!%p139_p2)   ;;  %v1070_v2 = vmov (!%p139_p2), 0   ;;  %v227_v33 = vlaneseq (!%p139_p2) }
   0x6   : > { %142 = sbr.rel (%p139_p2) target bundleno = 315 (0x13b), region = 32  ;;  %445 = vmatprep.mubr.bf16.mxu0 (!%p139_p2), %v1070_v2  ;;  %525 = vmatprep.mubr.bf16.mxu1 (!%p139_p2), %v1070_v2  ;;  %p164_p3 = scmp.lt.s32.totalorder (!%p139_p2), %s893_s16, 63  ;;  %v1025_v3 = vld [vmem:[%s1300_s1 + $0x14] ss:$8 sps:$4 sm:$0xff] (!%p139_p2)   ;;  %v1027_v4 = vld [vmem:[%s1300_s1 + $0x10] ss:$8 sps:$4 sm:$0xff] (!%p139_p2)  }
   0x7   : > { %413 = vmatprep.subr.bf16.mxu0 (!%p139_p2), %v1022_v0  ;;  %997 = vmatprep.subr.bf16.mxu1 (!%p139_p2), %v1022_v0  ;;  %v1028_v5 = vld [vmem:[%s1300_s1 + $0x24] ss:$8 sps:$4 sm:$0xff] (!%p139_p2)   ;;  %v1030_v6 = vld [vmem:[%s1300_s1 + $0x20] ss:$8 sps:$4 sm:$0xff] (!%p139_p2)   ;;  %v1031_v7 = vld [vmem:[%s1300_s1 + $0x34] ss:$8 sps:$4 sm:$0xff] (!%p139_p2)  }
   0x8   : > { %414 = vmatpush1.bf16.msra.mxu0 (!%p139_p2), %v1024_v1  ;;  %1005 = vmatpush1.bf16.msra.mxu1 (!%p139_p2), %v1024_v1  ;;  %v1033_v8 = vld [vmem:[%s1300_s1 + $0x30] ss:$8 sps:$4 sm:$0xff] (!%p139_p2)   ;;  %v1034_v9 = vld [vmem:[%s1300_s1 + $0x44] ss:$8 sps:$4 sm:$0xff] (!%p139_p2)   ;;  %v1036_v10 = vld [vmem:[%s1300_s1 + $0x40] ss:$8 sps:$4 sm:$0xff] (!%p139_p2)  }
   0x9   : > { %415 = vmatprep.subr.bf16.mxu0 (!%p139_p2), %v1025_v3  ;;  %998 = vmatprep.subr.bf16.mxu1 (!%p139_p2), %v1025_v3  ;;  %v1037_v11 = vld [vmem:[%s1300_s1 + $0x54] ss:$8 sps:$4 sm:$0xff] (!%p139_p2)   ;;  %v1039_v12 = vld [vmem:[%s1300_s1 + $0x50] ss:$8 sps:$4 sm:$0xff] (!%p139_p2)   ;;  %v1040_v13 = vld [vmem:[%s1300_s1 + $0x64] ss:$8 sps:$4 sm:$0xff] (!%p139_p2)  }
   0xa   : > { %v1042_v14 = vld [vmem:[%s1300_s1 + $0x60] ss:$8 sps:$4 sm:$0xff] (!%p139_p2)   ;;  %v1043_v15 = vld [vmem:[%s1300_s1 + $0x74] ss:$8 sps:$4 sm:$0xff] (!%p139_p2)   ;;  %v1045_v16 = vld [vmem:[%s1300_s1 + $0x70] ss:$8 sps:$4 sm:$0xff] (!%p139_p2)  }
   0xb   : > { %v228_v34 = vshrl.u32 (!%p139_p2), %v227_v33, 7  ;;  %v225_v36 = vld [vmem:[%s1301_s2] sm:$0x3] (!%p139_p2) }
   0xc   : > { %416 = vmatpush1.bf16.msra.mxu0 (!%p139_p2), %v1027_v4  ;;  %1006 = vmatpush1.bf16.msra.mxu1 (!%p139_p2), %v1027_v4 }
   0xd   : > { %s1304_s16 = smov (!%p164_p3, %s893_s16), 63  ;;  %417 = vmatprep.subr.bf16.mxu0 %v1028_v5  ;;  %999 = vmatprep.subr.bf16.mxu1 %v1028_v5  ;;  %v229_v35 = vsub.s32 0, %v228_v34  ;;  %v233_v37 = vsub.s32 1, %v228_v34 }
   0xe   : > { %s894_s25 = sshll.u32 %s1304_s16, 2  ;;  %s964_s28 = sshll.u32 %s1304_s16, 3 }
   0xf   : > { %s1128_s5 = scalar_lea.vmem %s1299_s0, %s894_s25  ;;  %v1190_v38 = vrot.slane %v225_v36, %v229_v35  ;;  %v1192_v39 = vrot.slane %v225_v36, %v233_v37  ;;  %s1202_s4 = scalar_lea.vmem %s1302_s3, %s964_s28 }
  0x10   : > { %418 = vmatpush1.bf16.msra.mxu0 %v1030_v6  ;;  %1007 = vmatpush1.bf16.msra.mxu1 %v1030_v6  ;;  %v1046_v17 = vld [vmem:[%s1128_s5] sm:$0xff]   ;;  %v1048_v19 = vld [vmem:[%s1128_s5 + $0x8] sm:$0xff]   ;;  %v1050_v21 = vld [vmem:[%s1128_s5 + $0x10] sm:$0xff]  }
  0x11   : > { %419 = vmatprep.subr.bf16.mxu0 %v1031_v7  ;;  %1000 = vmatprep.subr.bf16.mxu1 %v1031_v7  ;;  %v1047_v18 = vld [vmem:[%s1128_s5 + $0x40] sm:$0xff]   ;;  %v1049_v20 = vld [vmem:[%s1128_s5 + $0x48] sm:$0xff]   ;;  %v1051_v22 = vld [vmem:[%s1128_s5 + $0x50] sm:$0xff]  }
  0x12   : > { %v1052_v23 = vld [vmem:[%s1128_s5 + $0x18] sm:$0xff]   ;;  %v1054_v25 = vld [vmem:[%s1128_s5 + $0x20] sm:$0xff]   ;;  %v1056_v27 = vld [vmem:[%s1128_s5 + $0x28] sm:$0xff]  }
  0x13   : > { %v1053_v24 = vld [vmem:[%s1128_s5 + $0x58] sm:$0xff]   ;;  %v1055_v26 = vld [vmem:[%s1128_s5 + $0x60] sm:$0xff]   ;;  %v1057_v28 = vld [vmem:[%s1128_s5 + $0x68] sm:$0xff]  }
  0x14   : > { %420 = vmatpush1.bf16.msra.mxu0 %v1033_v8  ;;  %1008 = vmatpush1.bf16.msra.mxu1 %v1033_v8  ;;  %v1058_v29 = vld [vmem:[%s1128_s5 + $0x30] sm:$0xff]   ;;  %v1060_v31 = vld [vmem:[%s1128_s5 + $0x38] sm:$0xff]  }
  0x15   : > { %421 = vmatprep.subr.bf16.mxu0 %v1034_v9  ;;  %1001 = vmatprep.subr.bf16.mxu1 %v1034_v9  ;;  %v1059_v30 = vld [vmem:[%s1128_s5 + $0x70] sm:$0xff]   ;;  %v1061_v32 = vld [vmem:[%s1128_s5 + $0x78] sm:$0xff]  }
  0x18   : > { %422 = vmatpush1.bf16.msra.mxu0 %v1036_v10  ;;  %1009 = vmatpush1.bf16.msra.mxu1 %v1036_v10 }
  0x19   : > { %423 = vmatprep.subr.bf16.mxu0 %v1037_v11  ;;  %1002 = vmatprep.subr.bf16.mxu1 %v1037_v11 }
  0x1c   : > { %424 = vmatpush1.bf16.msra.mxu0 %v1039_v12  ;;  %1010 = vmatpush1.bf16.msra.mxu1 %v1039_v12 }
  0x1d   : > { %425 = vmatprep.subr.bf16.mxu0 %v1040_v13  ;;  %1003 = vmatprep.subr.bf16.mxu1 %v1040_v13 }
  0x20   : > { %426 = vmatpush1.bf16.msra.mxu0 %v1042_v14  ;;  %1011 = vmatpush1.bf16.msra.mxu1 %v1042_v14 }
  0x21   : > { %427 = vmatprep.subr.bf16.mxu0 %v1043_v15  ;;  %1004 = vmatprep.subr.bf16.mxu1 %v1043_v15 }
  0x24   : > { %428 = vmatpush1.bf16.msra.mxu0 %v1045_v16  ;;  %1012 = vmatpush1.bf16.msra.mxu1 %v1045_v16 }
  0x27   : > { %446 = vmatmul.mubr.bf16.vlgmr.msra.gmra.mrb[0].mxu0 %v1046_v17  ;;  %526 = vmatmul.mubr.bf16.vlgmr.msra.gmra.mrb[0].mxu1 %v1047_v18 }
  0x28   : > { %455 = vmatprep.mubr.bf16.mxu0 %v1070_v2  ;;  %535 = vmatprep.mubr.bf16.mxu1 %v1070_v2 }
  0x2f   : > { %456 = vmatmul.mubr.bf16.gmra.mrb[4].mxu0 %v1048_v19  ;;  %536 = vmatmul.mubr.bf16.gmra.mrb[4].mxu1 %v1049_v20 }
  0x30   : > { %465 = vmatprep.mubr.bf16.mxu0 %v1070_v2  ;;  %545 = vmatprep.mubr.bf16.mxu1 %v1070_v2 }
  0x37   : > { %466 = vmatmul.mubr.bf16.gmra.mrb[8].mxu0 %v1050_v21  ;;  %546 = vmatmul.mubr.bf16.gmra.mrb[8].mxu1 %v1051_v22 }
  0x38   : > { %475 = vmatprep.mubr.bf16.mxu0 %v1070_v2  ;;  %555 = vmatprep.mubr.bf16.mxu1 %v1070_v2 }
  0x3f   : > { %476 = vmatmul.mubr.bf16.gmra.mrb[12].mxu0 %v1052_v23  ;;  %556 = vmatmul.mubr.bf16.gmra.mrb[12].mxu1 %v1053_v24 }
  0x40   : > { %485 = vmatprep.mubr.bf16.mxu0 %v1070_v2  ;;  %565 = vmatprep.mubr.bf16.mxu1 %v1070_v2 }
  0x47   : > { %486 = vmatmul.mubr.bf16.gmra.mrb[16].mxu0 %v1054_v25  ;;  %566 = vmatmul.mubr.bf16.gmra.mrb[16].mxu1 %v1055_v26 }
  0x48   : > { %495 = vmatprep.mubr.bf16.mxu0 %v1070_v2  ;;  %575 = vmatprep.mubr.bf16.mxu1 %v1070_v2 }
  0x4f   : > { %496 = vmatmul.mubr.bf16.gmra.mrb[20].mxu0 %v1056_v27  ;;  %576 = vmatmul.mubr.bf16.gmra.mrb[20].mxu1 %v1057_v28 }
  0x50   : > { %505 = vmatprep.mubr.bf16.mxu0 %v1070_v2  ;;  %585 = vmatprep.mubr.bf16.mxu1 %v1070_v2 }
  0x57   : > { %506 = vmatmul.mubr.bf16.gmra.mrb[24].mxu0 %v1058_v29  ;;  %586 = vmatmul.mubr.bf16.gmra.mrb[24].mxu1 %v1059_v30 }
  0x58   : > { %515 = vmatprep.mubr.bf16.mxu0 %v1070_v2  ;;  %595 = vmatprep.mubr.bf16.mxu1 %v1070_v2 }
  0x5f   : > { %516 = vmatmul.mubr.bf16.gmra.mrb[28].mxu0 %v1060_v31  ;;  %596 = vmatmul.mubr.bf16.gmra.mrb[28].mxu1 %v1061_v32 }
  0xfa   : > { %v447_v40 = vpop.f32.mrb[0].mxu0  ;;  %v527_v41 = vpop.f32.mrb[0].mxu1 }
  0xfb   : > { %v448_v42 = vadd.f32 %v447_v40, %v1190_v38  ;;  %v528_v43 = vadd.f32 %v527_v41, %v1190_v38  ;;  %v449_v44 = vpop.f32.mrb[1].mxu0  ;;  %v529_v45 = vpop.f32.mrb[1].mxu1 }
  0xfc   : > { %v450_v46 = vadd.f32 %v449_v44, %v1192_v39  ;;  %v530_v47 = vadd.f32 %v529_v45, %v1192_v39  ;;  %v451_v48 = vpop.f32.mrb[2].mxu0  ;;  %v531_v49 = vpop.f32.mrb[2].mxu1 }
  0xfd   : > { %v452_v50 = vadd.f32 %v451_v48, %v1190_v38  ;;  %v532_v51 = vadd.f32 %v531_v49, %v1190_v38  ;;  %v453_v52 = vpop.f32.mrb[3].mxu0  ;;  %v533_v53 = vpop.f32.mrb[3].mxu1 }
  0xfe   : > { %v965_v54 = vpack.c.bf16 %v450_v46, %v448_v42  ;;  %v981_v55 = vpack.c.bf16 %v530_v47, %v528_v43  ;;  %v454_v56 = vadd.f32 %v453_v52, %v1192_v39  ;;  %v534_v57 = vadd.f32 %v533_v53, %v1192_v39 }
 0x100   : > { %798 = vst [vmem:[%s1202_s4] sm:$0xff] %v965_v54  ;;  %814 = vst [vmem:[%s1202_s4 + $0x80] sm:$0xff] %v981_v55  ;;  %v966_v58 = vpack.c.bf16 %v454_v56, %v452_v50  ;;  %v982_v59 = vpack.c.bf16 %v534_v57, %v532_v51 }
 0x102   : > { %799 = vst [vmem:[%s1202_s4 + $0x8] sm:$0xff] %v966_v58  ;;  %815 = vst [vmem:[%s1202_s4 + $0x88] sm:$0xff] %v982_v59  ;;  %v457_v60 = vpop.f32.mrb[4].mxu0  ;;  %v537_v61 = vpop.f32.mrb[4].mxu1 }
 0x103   : > { %v458_v62 = vadd.f32 %v457_v60, %v1190_v38  ;;  %v538_v63 = vadd.f32 %v537_v61, %v1190_v38  ;;  %v459_v0 = vpop.f32.mrb[5].mxu0  ;;  %v539_v1 = vpop.f32.mrb[5].mxu1 }
 0x104   : > { %v460_v2 = vadd.f32 %v459_v0, %v1192_v39  ;;  %v540_v3 = vadd.f32 %v539_v1, %v1192_v39  ;;  %v461_v4 = vpop.f32.mrb[6].mxu0  ;;  %v541_v5 = vpop.f32.mrb[6].mxu1 }
 0x105   : > { %v462_v6 = vadd.f32 %v461_v4, %v1190_v38  ;;  %v542_v7 = vadd.f32 %v541_v5, %v1190_v38  ;;  %v463_v8 = vpop.f32.mrb[7].mxu0  ;;  %v543_v9 = vpop.f32.mrb[7].mxu1 }
 0x106   : > { %v967_v10 = vpack.c.bf16 %v460_v2, %v458_v62  ;;  %v983_v11 = vpack.c.bf16 %v540_v3, %v538_v63  ;;  %v464_v12 = vadd.f32 %v463_v8, %v1192_v39  ;;  %v544_v13 = vadd.f32 %v543_v9, %v1192_v39 }
 0x108   : > { %800 = vst [vmem:[%s1202_s4 + $0x10] sm:$0xff] %v967_v10  ;;  %816 = vst [vmem:[%s1202_s4 + $0x90] sm:$0xff] %v983_v11  ;;  %v968_v14 = vpack.c.bf16 %v464_v12, %v462_v6  ;;  %v984_v15 = vpack.c.bf16 %v544_v13, %v542_v7 }
 0x10a   : > { %801 = vst [vmem:[%s1202_s4 + $0x18] sm:$0xff] %v968_v14  ;;  %817 = vst [vmem:[%s1202_s4 + $0x98] sm:$0xff] %v984_v15  ;;  %v467_v16 = vpop.f32.mrb[8].mxu0  ;;  %v547_v17 = vpop.f32.mrb[8].mxu1 }
 0x10b   : > { %v468_v18 = vadd.f32 %v467_v16, %v1190_v38  ;;  %v548_v19 = vadd.f32 %v547_v17, %v1190_v38  ;;  %v469_v20 = vpop.f32.mrb[9].mxu0  ;;  %v549_v21 = vpop.f32.mrb[9].mxu1 }
 0x10c   : > { %v470_v22 = vadd.f32 %v469_v20, %v1192_v39  ;;  %v550_v23 = vadd.f32 %v549_v21, %v1192_v39  ;;  %v471_v24 = vpop.f32.mrb[10].mxu0  ;;  %v551_v25 = vpop.f32.mrb[10].mxu1 }
 0x10d   : > { %v472_v26 = vadd.f32 %v471_v24, %v1190_v38  ;;  %v552_v27 = vadd.f32 %v551_v25, %v1190_v38  ;;  %v473_v28 = vpop.f32.mrb[11].mxu0  ;;  %v553_v29 = vpop.f32.mrb[11].mxu1 }
 0x10e   : > { %v969_v30 = vpack.c.bf16 %v470_v22, %v468_v18  ;;  %v985_v31 = vpack.c.bf16 %v550_v23, %v548_v19  ;;  %v474_v32 = vadd.f32 %v473_v28, %v1192_v39  ;;  %v554_v33 = vadd.f32 %v553_v29, %v1192_v39 }
 0x110   : > { %802 = vst [vmem:[%s1202_s4 + $0x20] sm:$0xff] %v969_v30  ;;  %818 = vst [vmem:[%s1202_s4 + $0xa0] sm:$0xff] %v985_v31  ;;  %v970_v34 = vpack.c.bf16 %v474_v32, %v472_v26  ;;  %v986_v35 = vpack.c.bf16 %v554_v33, %v552_v27 }
 0x112   : > { %803 = vst [vmem:[%s1202_s4 + $0x28] sm:$0xff] %v970_v34  ;;  %819 = vst [vmem:[%s1202_s4 + $0xa8] sm:$0xff] %v986_v35  ;;  %v477_v36 = vpop.f32.mrb[12].mxu0  ;;  %v557_v37 = vpop.f32.mrb[12].mxu1 }
 0x113   : > { %v478_v40 = vadd.f32 %v477_v36, %v1190_v38  ;;  %v558_v41 = vadd.f32 %v557_v37, %v1190_v38  ;;  %v479_v42 = vpop.f32.mrb[13].mxu0  ;;  %v559_v43 = vpop.f32.mrb[13].mxu1 }
 0x114   : > { %v480_v44 = vadd.f32 %v479_v42, %v1192_v39  ;;  %v560_v45 = vadd.f32 %v559_v43, %v1192_v39  ;;  %v481_v46 = vpop.f32.mrb[14].mxu0  ;;  %v561_v47 = vpop.f32.mrb[14].mxu1 }
 0x115   : > { %v482_v48 = vadd.f32 %v481_v46, %v1190_v38  ;;  %v562_v49 = vadd.f32 %v561_v47, %v1190_v38  ;;  %v483_v50 = vpop.f32.mrb[15].mxu0  ;;  %v563_v51 = vpop.f32.mrb[15].mxu1 }
 0x116   : > { %v971_v52 = vpack.c.bf16 %v480_v44, %v478_v40  ;;  %v987_v53 = vpack.c.bf16 %v560_v45, %v558_v41  ;;  %v484_v54 = vadd.f32 %v483_v50, %v1192_v39  ;;  %v564_v55 = vadd.f32 %v563_v51, %v1192_v39 }
 0x118   : > { %804 = vst [vmem:[%s1202_s4 + $0x30] sm:$0xff] %v971_v52  ;;  %820 = vst [vmem:[%s1202_s4 + $0xb0] sm:$0xff] %v987_v53  ;;  %v972_v56 = vpack.c.bf16 %v484_v54, %v482_v48  ;;  %v988_v57 = vpack.c.bf16 %v564_v55, %v562_v49 }
 0x11a   : > { %805 = vst [vmem:[%s1202_s4 + $0x38] sm:$0xff] %v972_v56  ;;  %821 = vst [vmem:[%s1202_s4 + $0xb8] sm:$0xff] %v988_v57  ;;  %v487_v58 = vpop.f32.mrb[16].mxu0  ;;  %v567_v59 = vpop.f32.mrb[16].mxu1 }
 0x11b   : > { %v488_v60 = vadd.f32 %v487_v58, %v1190_v38  ;;  %v568_v61 = vadd.f32 %v567_v59, %v1190_v38  ;;  %v489_v62 = vpop.f32.mrb[17].mxu0  ;;  %v569_v63 = vpop.f32.mrb[17].mxu1 }
 0x11c   : > { %v490_v0 = vadd.f32 %v489_v62, %v1192_v39  ;;  %v570_v1 = vadd.f32 %v569_v63, %v1192_v39  ;;  %v491_v2 = vpop.f32.mrb[18].mxu0  ;;  %v571_v3 = vpop.f32.mrb[18].mxu1 }
 0x11d   : > { %v492_v4 = vadd.f32 %v491_v2, %v1190_v38  ;;  %v572_v5 = vadd.f32 %v571_v3, %v1190_v38  ;;  %v493_v6 = vpop.f32.mrb[19].mxu0  ;;  %v573_v7 = vpop.f32.mrb[19].mxu1 }
 0x11e   : > { %v973_v8 = vpack.c.bf16 %v490_v0, %v488_v60  ;;  %v989_v9 = vpack.c.bf16 %v570_v1, %v568_v61  ;;  %v494_v10 = vadd.f32 %v493_v6, %v1192_v39  ;;  %v574_v11 = vadd.f32 %v573_v7, %v1192_v39 }
 0x120   : > { %806 = vst [vmem:[%s1202_s4 + $0x40] sm:$0xff] %v973_v8  ;;  %822 = vst [vmem:[%s1202_s4 + $0xc0] sm:$0xff] %v989_v9  ;;  %v974_v12 = vpack.c.bf16 %v494_v10, %v492_v4  ;;  %v990_v13 = vpack.c.bf16 %v574_v11, %v572_v5 }
 0x122   : > { %807 = vst [vmem:[%s1202_s4 + $0x48] sm:$0xff] %v974_v12  ;;  %823 = vst [vmem:[%s1202_s4 + $0xc8] sm:$0xff] %v990_v13  ;;  %v497_v14 = vpop.f32.mrb[20].mxu0  ;;  %v577_v15 = vpop.f32.mrb[20].mxu1 }
 0x123   : > { %v498_v16 = vadd.f32 %v497_v14, %v1190_v38  ;;  %v578_v17 = vadd.f32 %v577_v15, %v1190_v38  ;;  %v499_v18 = vpop.f32.mrb[21].mxu0  ;;  %v579_v19 = vpop.f32.mrb[21].mxu1 }
 0x124   : > { %v500_v20 = vadd.f32 %v499_v18, %v1192_v39  ;;  %v580_v21 = vadd.f32 %v579_v19, %v1192_v39  ;;  %v501_v22 = vpop.f32.mrb[22].mxu0  ;;  %v581_v23 = vpop.f32.mrb[22].mxu1 }
 0x125   : > { %v502_v24 = vadd.f32 %v501_v22, %v1190_v38  ;;  %v582_v25 = vadd.f32 %v581_v23, %v1190_v38  ;;  %v503_v26 = vpop.f32.mrb[23].mxu0  ;;  %v583_v27 = vpop.f32.mrb[23].mxu1 }
 0x126   : > { %v975_v28 = vpack.c.bf16 %v500_v20, %v498_v16  ;;  %v991_v29 = vpack.c.bf16 %v580_v21, %v578_v17  ;;  %v504_v30 = vadd.f32 %v503_v26, %v1192_v39  ;;  %v584_v31 = vadd.f32 %v583_v27, %v1192_v39 }
 0x128   : > { %808 = vst [vmem:[%s1202_s4 + $0x50] sm:$0xff] %v975_v28  ;;  %824 = vst [vmem:[%s1202_s4 + $0xd0] sm:$0xff] %v991_v29  ;;  %v976_v32 = vpack.c.bf16 %v504_v30, %v502_v24  ;;  %v992_v33 = vpack.c.bf16 %v584_v31, %v582_v25 }
 0x12a   : > { %809 = vst [vmem:[%s1202_s4 + $0x58] sm:$0xff] %v976_v32  ;;  %825 = vst [vmem:[%s1202_s4 + $0xd8] sm:$0xff] %v992_v33  ;;  %v507_v34 = vpop.f32.mrb[24].mxu0  ;;  %v587_v35 = vpop.f32.mrb[24].mxu1 }
 0x12b   : > { %v508_v36 = vadd.f32 %v507_v34, %v1190_v38  ;;  %v588_v37 = vadd.f32 %v587_v35, %v1190_v38  ;;  %v509_v40 = vpop.f32.mrb[25].mxu0  ;;  %v589_v41 = vpop.f32.mrb[25].mxu1 }
 0x12c   : > { %v510_v42 = vadd.f32 %v509_v40, %v1192_v39  ;;  %v590_v43 = vadd.f32 %v589_v41, %v1192_v39  ;;  %v511_v44 = vpop.f32.mrb[26].mxu0  ;;  %v591_v45 = vpop.f32.mrb[26].mxu1 }
 0x12d   : > { %v512_v46 = vadd.f32 %v511_v44, %v1190_v38  ;;  %v592_v47 = vadd.f32 %v591_v45, %v1190_v38  ;;  %v513_v48 = vpop.f32.mrb[27].mxu0  ;;  %v593_v49 = vpop.f32.mrb[27].mxu1 }
 0x12e   : > { %v977_v50 = vpack.c.bf16 %v510_v42, %v508_v36  ;;  %v993_v51 = vpack.c.bf16 %v590_v43, %v588_v37  ;;  %v514_v52 = vadd.f32 %v513_v48, %v1192_v39  ;;  %v594_v53 = vadd.f32 %v593_v49, %v1192_v39 }
 0x130   : > { %810 = vst [vmem:[%s1202_s4 + $0x60] sm:$0xff] %v977_v50  ;;  %826 = vst [vmem:[%s1202_s4 + $0xe0] sm:$0xff] %v993_v51  ;;  %v978_v54 = vpack.c.bf16 %v514_v52, %v512_v46  ;;  %v994_v55 = vpack.c.bf16 %v594_v53, %v592_v47 }
 0x132   : > { %811 = vst [vmem:[%s1202_s4 + $0x68] sm:$0xff] %v978_v54  ;;  %827 = vst [vmem:[%s1202_s4 + $0xe8] sm:$0xff] %v994_v55  ;;  %v517_v56 = vpop.f32.mrb[28].mxu0  ;;  %v597_v57 = vpop.f32.mrb[28].mxu1 }
 0x133   : > { %v518_v58 = vadd.f32 %v517_v56, %v1190_v38  ;;  %v598_v59 = vadd.f32 %v597_v57, %v1190_v38  ;;  %v519_v60 = vpop.f32.mrb[29].mxu0  ;;  %v599_v61 = vpop.f32.mrb[29].mxu1 }
 0x134   : > { %v520_v62 = vadd.f32 %v519_v60, %v1192_v39  ;;  %v600_v63 = vadd.f32 %v599_v61, %v1192_v39  ;;  %v521_v0 = vpop.f32.mrb[30].mxu0  ;;  %v601_v1 = vpop.f32.mrb[30].mxu1 }
 0x135   : > { %v522_v2 = vadd.f32 %v521_v0, %v1190_v38  ;;  %v602_v3 = vadd.f32 %v601_v1, %v1190_v38  ;;  %v523_v4 = vpop.f32.mrb[31].mxu0  ;;  %v603_v5 = vpop.f32.mrb[31].mxu1 }
 0x136   : > { %v979_v6 = vpack.c.bf16 %v520_v62, %v518_v58  ;;  %v995_v7 = vpack.c.bf16 %v600_v63, %v598_v59  ;;  %v524_v8 = vadd.f32 %v523_v4, %v1192_v39  ;;  %v604_v9 = vadd.f32 %v603_v5, %v1192_v39 }
 0x138   : > { %812 = vst [vmem:[%s1202_s4 + $0x70] sm:$0xff] %v979_v6  ;;  %828 = vst [vmem:[%s1202_s4 + $0xf0] sm:$0xff] %v995_v7  ;;  %v980_v10 = vpack.c.bf16 %v524_v8, %v522_v2  ;;  %v996_v11 = vpack.c.bf16 %v604_v9, %v602_v3 }
 0x13a   : > { %813 = vst [vmem:[%s1202_s4 + $0x78] sm:$0xff] %v980_v10  ;;  %829 = vst [vmem:[%s1202_s4 + $0xf8] sm:$0xff] %v996_v11 }
 0x13b PF: > { %s13_s12 = sadd.s32 1, %s1068_s12  }
 0x13c   : > { %p10_p4 = scmp.ge.s32.totalorder %s13_s12, 4  }
 0x13e   :  { %12 = sbr.rel (!%p10_p4) target bundleno = 1 (0x1), region = 62 }

// kernel: fconv_encoder_forward.8
= control target key start
LH: loop header
LB: loop body
LE: loop exit
PB: predicated region body
PF: predicated region fallthrough
CT: control target
= control target key end

     0   :  { %s2352_s21 = smov 0   ;;  %s2354_s22 = smov 0   ;;  %s2784_s0 = inlined_call_operand.vmem [shape: bf16[2,256,384], index: 0, kind: input, shape index: {}]   ;;  %s2785_s1 = inlined_call_operand.vmem [shape: bf16[384,128], index: 1, kind: input, shape index: {}]   ;;  %s2786_s2 = inlined_call_operand.vmem [shape: bf16[384,128], index: 2, kind: input, shape index: {}]   ;;  %s2787_s3 = inlined_call_operand.vmem [shape: f32[1,128], index: 3, kind: input, shape index: {}]   ;;  %s2788_s4 = inlined_call_operand.vmem [shape: f32[1,128], index: 4, kind: input, shape index: {}]   ;;  %s2789_s5 = inlined_call_operand.vmem [shape: bf16[2,256,128], index: 5, kind: input, shape index: {}]   ;;  %s2790_s6 = inlined_call_operand.vmem [shape: bf16[2,256,128], index: 6, kind: output, shape index: {}]  }
   0x1   :  { %s2356_s23 = smov 0   ;;  %s2358_s24 = smov 0  }
   0x2   :  { %s2360_s25 = smov 0  }
   0x3 LB: > { %s25_s26 = sadd.s32 1, %s2307_s23  ;;  %s28_s27 = sadd.s32 1, %s2311_s24  ;;  %s2315_s25 = sphi %s2360_s25, %s16_s25   ;;  %s2311_s24 = sphi %s2358_s24, %s2794_s24   ;;  %s2307_s23 = sphi %s2356_s23, %s2793_s23   ;;  %s2303_s22 = sphi %s2354_s22, %s2792_s22   ;;  %s2299_s21 = sphi %s2352_s21, %s2791_s21  }
   0x4   : > { %p26_p0 = scmp.ge.s32.totalorder %s25_s26, 2  ;;  %p1648_p1 = scmp.ge.s32.totalorder %s2315_s25, 1 }
   0x5   : > { %p251_p2 = scmp.lt.s32.totalorder %s2315_s25, 5 }
   0x6   : > { %s2796_s26 = smov (%p26_p0, %s25_s26), 0  ;;  %s2798_s27 = smov (!%p26_p0, %s28_s27), %s2311_s24 }
   0x7   : > { %p252_p3 = pnand %p1648_p1, %p251_p2  ;;  %p30_p4 = scmp.ge.s32.totalorder %s2798_s27, 2 }
   0x8   : > { %v2133_v0 = vld [vmem:[%s2785_s1 + $0x40] sm:$0xff] (!%p252_p3)   ;;  %s1649_s8 = sshll.u32 (!%p252_p3), %s2299_s21, 4  ;;  %v2136_v3 = vld [vmem:[%s2785_s1 + $0x48] sm:$0xff] (!%p252_p3)   ;;  %p300_p5 = scmp.lt.s32.totalorder (!%p252_p3), %s2303_s22, 1  ;;  %v2139_v6 = vld [vmem:[%s2785_s1 + $0x50] sm:$0xff] (!%p252_p3)  }
   0x9   : > { %s2800_s27 = smov (%p30_p4, %s2798_s27), 0  ;;  %255 = sbr.rel (%p252_p3) target bundleno = 391 (0x187), region = 44 }
   0xa   : > { %v2134_v1 = vld [vmem:[%s2785_s1 + $0x80] sm:$0xff] (!%p252_p3)   ;;  %1867 = vmatprep.subr.bf16.mxu0 (!%p252_p3), %v2133_v0  ;;  %v2137_v4 = vld [vmem:[%s2785_s1 + $0x88] sm:$0xff] (!%p252_p3)   ;;  %p302_p6 = scmp.lt.s32.totalorder (!%p252_p3), %s1649_s8, 31  ;;  %v2140_v7 = vld [vmem:[%s2785_s1 + $0x90] sm:$0xff] (!%p252_p3)  }
   0xb   : > { %v2135_v2 = vld [vmem:[%s2785_s1] sm:$0xff] (!%p252_p3)   ;;  %2027 = vmatprep.subr.bf16.mxu1 (!%p252_p3), %v2134_v1  ;;  %v2138_v5 = vld [vmem:[%s2785_s1 + $0x8] sm:$0xff] (!%p252_p3)   ;;  %v2141_v8 = vld [vmem:[%s2785_s1 + $0x10] sm:$0xff] (!%p252_p3)  }
   0xc   : > { %1868 = vmatpush3.bf16.msra.mxu0 (!%p252_p3), %v2135_v2  ;;  %2028 = vmatpush3.bf16.msra.mxu1 (!%p252_p3), %v2134_v1  ;;  %v2142_v9 = vld [vmem:[%s2785_s1 + $0x58] sm:$0xff] (!%p252_p3)   ;;  %v2145_v12 = vld [vmem:[%s2785_s1 + $0x60] sm:$0xff] (!%p252_p3)   ;;  %v2148_v15 = vld [vmem:[%s2785_s1 + $0x68] sm:$0xff] (!%p252_p3)  }
   0xd   : > { %1869 = vmatprep.subr.bf16.mxu0 (!%p252_p3), %v2136_v3  ;;  %2029 = vmatprep.subr.bf16.mxu1 (!%p252_p3), %v2137_v4  ;;  %v2143_v10 = vld [vmem:[%s2785_s1 + $0x98] sm:$0xff] (!%p252_p3)   ;;  %v2146_v13 = vld [vmem:[%s2785_s1 + $0xa0] sm:$0xff] (!%p252_p3)   ;;  %v2149_v16 = vld [vmem:[%s2785_s1 + $0xa8] sm:$0xff] (!%p252_p3)  }
   0xe   : > { %v2144_v11 = vld [vmem:[%s2785_s1 + $0x18] sm:$0xff] (!%p252_p3)   ;;  %v2147_v14 = vld [vmem:[%s2785_s1 + $0x20] sm:$0xff] (!%p252_p3)   ;;  %v2150_v17 = vld [vmem:[%s2785_s1 + $0x28] sm:$0xff] (!%p252_p3)  }
   0xf   : > { %v2151_v18 = vld [vmem:[%s2785_s1 + $0x70] sm:$0xff] (!%p252_p3)   ;;  %v2154_v21 = vld [vmem:[%s2785_s1 + $0x78] sm:$0xff] (!%p252_p3)   ;;  %v2162_v28 = vld [vmem:[%s2786_s2 + $0x40] sm:$0xff] (!%p252_p3)  }
  0x10   : > { %s2802_s22 = smov (!%p300_p5, %s2303_s22), 1  ;;  %1870 = vmatpush3.bf16.msra.mxu0 %v2138_v5  ;;  %2030 = vmatpush3.bf16.msra.mxu1 %v2137_v4  ;;  %s2804_s8 = smov (!%p302_p6, %s1649_s8), 31  ;;  %v2152_v19 = vld [vmem:[%s2785_s1 + $0xb0] sm:$0xff]   ;;  %v2155_v22 = vld [vmem:[%s2785_s1 + $0xb8] sm:$0xff]   ;;  %v2163_v29 = vld [vmem:[%s2786_s2] sm:$0xff]  }
  0x11   : > { %1871 = vmatprep.subr.bf16.mxu0 %v2139_v6  ;;  %2031 = vmatprep.subr.bf16.mxu1 %v2140_v7  ;;  %s2092_s12 = smul.u32 96, %s2802_s22  ;;  %v2153_v20 = vld [vmem:[%s2785_s1 + $0x30] sm:$0xff]   ;;  %v2156_v25 = vld [vmem:[%s2785_s1 + $0x38] sm:$0xff]   ;;  %v2165_v30 = vld [vmem:[%s2786_s2 + $0x80] sm:$0xff]   ;;  %s1652_s13 = sshll.u32 %s2802_s22, 5 }
  0x12   : > { %s2091_s15 = smul.u32 3, %s2804_s8  ;;  %v2164_v31 = vld [vmem:[%s2786_s2 + $0x48] sm:$0xff]   ;;  %v2172_v37 = vld [vmem:[%s2786_s2 + $0x50] sm:$0xff]   ;;  %v2174_v40 = vld [vmem:[%s2786_s2 + $0x58] sm:$0xff]  }
  0x13   : > { %v2166_v34 = vld [vmem:[%s2786_s2 + $0x8] sm:$0xff]   ;;  %v2173_v38 = vld [vmem:[%s2786_s2 + $0x10] sm:$0xff]   ;;  %v2176_v43 = vld [vmem:[%s2786_s2 + $0x18] sm:$0xff]  }
  0x14   : > { %1872 = vmatpush3.bf16.msra.mxu0 %v2141_v8  ;;  %2032 = vmatpush3.bf16.msra.mxu1 %v2140_v7  ;;  %s306_s28 = sadd.s32 %s2092_s12, %s2091_s15  ;;  %v2175_v39 = vld [vmem:[%s2786_s2 + $0x88] sm:$0xff]   ;;  %v2182_v46 = vld [vmem:[%s2786_s2 + $0x60] sm:$0xff]   ;;  %v2185_v48 = vld [vmem:[%s2786_s2 + $0x90] sm:$0xff]   ;;  %s2704_s12 = sadd.s32 %s1652_s13, %s2804_s8 }
  0x15   : > { %1873 = vmatprep.subr.bf16.mxu0 %v2142_v9  ;;  %2033 = vmatprep.subr.bf16.mxu1 %v2143_v10  ;;  %s1650_s10 = sshll.u32 %s306_s28, 2  ;;  %v2183_v47 = vld [vmem:[%s2786_s2 + $0x20] sm:$0xff]   ;;  %v2184_v49 = vld [vmem:[%s2786_s2 + $0x68] sm:$0xff]   ;;  %v2192_v54 = vld [vmem:[%s2786_s2 + $0x70] sm:$0xff]   ;;  %s1653_s22 = sshll.u32 %s2704_s12, 2 }
  0x16   : > { %s2461_s19 = scalar_lea.vmem %s2784_s0, %s1650_s10  ;;  %v2186_v52 = vld [vmem:[%s2786_s2 + $0x28] sm:$0xff]   ;;  %v2193_v56 = vld [vmem:[%s2786_s2 + $0x30] sm:$0xff]   ;;  %v2195_v57 = vld [vmem:[%s2786_s2 + $0x98] sm:$0xff]   ;;  %s2716_s15 = scalar_lea.vmem %s2789_s5, %s1653_s22 }
  0x17   : > { %v2470_v23 = vld [vmem:[%s2461_s19 + $0x4] ss:$12 sps:$4 sm:$0xff]   ;;  %v2473_v24 = vld [vmem:[%s2461_s19 + $0x8] ss:$12 sps:$4 sm:$0xff]   ;;  %v2480_v26 = vld [vmem:[%s2461_s19] ss:$12 sps:$4 sm:$0xff]   ;;  %s2742_s18 = scalar_lea.vmem %s2790_s6, %s1653_s22 }
  0x18   : > { %1874 = vmatpush3.bf16.msra.mxu0 %v2144_v11  ;;  %2034 = vmatpush3.bf16.msra.mxu1 %v2143_v10  ;;  %v2483_v27 = vld [vmem:[%s2461_s19 + $0x20] ss:$12 sps:$4 sm:$0xff]   ;;  %v2499_v32 = vld [vmem:[%s2461_s19 + $0x1c] ss:$12 sps:$4 sm:$0xff]   ;;  %v2502_v33 = vld [vmem:[%s2461_s19 + $0x38] ss:$12 sps:$4 sm:$0xff]  }
  0x19   : > { %1875 = vmatprep.subr.bf16.mxu0 %v2145_v12  ;;  %2035 = vmatprep.subr.bf16.mxu1 %v2146_v13  ;;  %v2511_v35 = vld [vmem:[%s2461_s19 + $0x18] ss:$12 sps:$4 sm:$0xff]   ;;  %v2514_v36 = vld [vmem:[%s2461_s19 + $0x50] ss:$12 sps:$4 sm:$0xff]   ;;  %v2530_v41 = vld [vmem:[%s2461_s19 + $0x34] ss:$12 sps:$4 sm:$0xff]  }
  0x1a   : > { %722 = vmatprep.mubr.bf16.mxu0 %v2470_v23  ;;  %2043 = vmatprep.mubr.bf16.mxu1 %v2473_v24  ;;  %v2533_v42 = vld [vmem:[%s2461_s19 + $0x68] ss:$12 sps:$4 sm:$0xff]   ;;  %v2543_v44 = vld [vmem:[%s2461_s19 + $0x30] ss:$12 sps:$4 sm:$0xff]   ;;  %v2546_v45 = vld [vmem:[%s2461_s19 + $0x80] ss:$12 sps:$4 sm:$0xff]  }
  0x1b   : > { %v2187_v50 = vld [vmem:[%s2461_s19 + $0x4c] ss:$12 sps:$4 sm:$0xff]   ;;  %v2190_v53 = vld [vmem:[%s2461_s19 + $0x48] ss:$12 sps:$4 sm:$0xff]   ;;  %v2575_v55 = vld [vmem:[%s2461_s19 + $0xb0] ss:$12 sps:$4 sm:$0xff]  }
  0x1c   : > { %1876 = vmatpush3.bf16.msra.mxu0 %v2147_v14  ;;  %2036 = vmatpush3.bf16.msra.mxu1 %v2146_v13  ;;  %v2562_v51 = vld [vmem:[%s2461_s19 + $0x98] ss:$12 sps:$4 sm:$0xff]   ;;  %v2204_v62 = vld [vmem:[%s2786_s2 + $0xa8] sm:$0xff]   ;;  %v2208_v1 = vld [vmem:[%s2786_s2 + $0xb0] sm:$0xff]  }
  0x1d   : > { %1877 = vmatprep.subr.bf16.mxu0 %v2148_v15  ;;  %2037 = vmatprep.subr.bf16.mxu1 %v2149_v16  ;;  %v2194_v58 = vld [vmem:[%s2786_s2 + $0x78] sm:$0xff]   ;;  %v2197_v59 = vld [vmem:[%s2461_s19 + $0x64] ss:$12 sps:$4 sm:$0xff]   ;;  %v2199_v63 = vld [vmem:[%s2461_s19 + $0x60] ss:$12 sps:$4 sm:$0xff]  }
  0x1e   : > { %v2200_v60 = vld [vmem:[%s2786_s2 + $0xa0] sm:$0xff]   ;;  %v2196_v61 = vld [vmem:[%s2786_s2 + $0x38] sm:$0xff]   ;;  %v2211_v7 = vld [vmem:[%s2461_s19 + $0xa8] ss:$12 sps:$4 sm:$0xff]  }
  0x1f   : > { %v2201_v0 = vld [vmem:[%s2461_s19 + $0x7c] ss:$12 sps:$4 sm:$0xff]   ;;  %v2203_v3 = vld [vmem:[%s2461_s19 + $0x78] ss:$12 sps:$4 sm:$0xff]   ;;  %v2205_v4 = vld [vmem:[%s2461_s19 + $0x94] ss:$12 sps:$4 sm:$0xff]  }
  0x20   : > { %1878 = vmatpush3.bf16.msra.mxu0 %v2150_v17  ;;  %2038 = vmatpush3.bf16.msra.mxu1 %v2149_v16  ;;  %v2212_v2 = vld [vmem:[%s2786_s2 + $0xb8] sm:$0xff]   ;;  %v2627_v11 = vld [vmem:[%s2787_s3] ss:$0 sm:$0xff] }
  0x21   : > { %1879 = vmatprep.subr.bf16.mxu0 %v2151_v18  ;;  %2039 = vmatprep.subr.bf16.mxu1 %v2152_v19  ;;  %v2207_v5 = vld [vmem:[%s2461_s19 + $0x90] ss:$12 sps:$4 sm:$0xff]   ;;  %v2209_v6 = vld [vmem:[%s2461_s19 + $0xac] ss:$12 sps:$4 sm:$0xff]  }
  0x24   : > { %1880 = vmatpush3.bf16.msra.mxu0 %v2153_v20  ;;  %2040 = vmatpush3.bf16.msra.mxu1 %v2152_v19 }
  0x25   : > { %1881 = vmatprep.subr.bf16.mxu0 %v2154_v21  ;;  %2041 = vmatprep.subr.bf16.mxu1 %v2155_v22 }
  0x28   : > { %1882 = vmatpush3.bf16.msra.mxu0 %v2156_v25  ;;  %2042 = vmatpush3.bf16.msra.mxu1 %v2155_v22 }
  0x29   : > { %1947 = vmatprep.subr.bf16.mxu1 %v2162_v28  ;;  %2059 = vmatprep.subr.bf16.mxu0 %v2165_v30 }
  0x2b   : > { %723 = vmatmul.mubr.bf16.vlgmr.msra.gmra.mrb[0].mxu0 %v2480_v26  ;;  %2044 = vmatmul.mubr.bf16.vlgmr.msra.gmra.mrb[0].mxu1 %v2483_v27 }
  0x2c   : > { %1948 = vmatpush3.bf16.msra.mxu1 %v2163_v29  ;;  %2060 = vmatpush3.bf16.msra.mxu0 %v2165_v30 }
  0x2d   : > { %1949 = vmatprep.subr.bf16.mxu1 %v2164_v31  ;;  %730 = vmatprep.mubr.bf16.mxu0 %v2499_v32 }
  0x2e   : > { %2047 = vmatprep.mubr.bf16.mxu1 %v2502_v33  ;;  %2061 = vmatprep.subr.bf16.mxu0 %v2175_v39 }
  0x30   : > { %1950 = vmatpush3.bf16.msra.mxu1 %v2166_v34  ;;  %2062 = vmatpush3.bf16.msra.mxu0 %v2175_v39 }
  0x31   : > { %1951 = vmatprep.subr.bf16.mxu1 %v2172_v37  ;;  %2063 = vmatprep.subr.bf16.mxu0 %v2185_v48 }
  0x33   : > { %731 = vmatmul.mubr.bf16.gmra.mrb[4].mxu0 %v2511_v35  ;;  %2048 = vmatmul.mubr.bf16.gmra.mrb[4].mxu1 %v2514_v36 }
  0x34   : > { %1952 = vmatpush3.bf16.msra.mxu1 %v2173_v38  ;;  %738 = vmatprep.mubr.bf16.mxu0 %v2530_v41 }
  0x35   : > { %1953 = vmatprep.subr.bf16.mxu1 %v2174_v40  ;;  %2051 = vmatprep.mubr.bf16.mxu1 %v2533_v42 }
  0x36   : > { %2064 = vmatpush3.bf16.msra.mxu0 %v2185_v48 }
  0x37   : > { %2065 = vmatprep.subr.bf16.mxu0 %v2195_v57 }
  0x38   : > { %1954 = vmatpush3.bf16.msra.mxu1 %v2176_v43 }
  0x39   : > { %1955 = vmatprep.subr.bf16.mxu1 %v2182_v46 }
  0x3a   : > { %2066 = vmatpush3.bf16.msra.mxu0 %v2195_v57 }
  0x3b   : > { %739 = vmatmul.mubr.bf16.gmra.mrb[8].mxu0 %v2543_v44  ;;  %2052 = vmatmul.mubr.bf16.gmra.mrb[8].mxu1 %v2546_v45 }
  0x3c   : > { %1956 = vmatpush3.bf16.msra.mxu1 %v2183_v47  ;;  %746 = vmatprep.mubr.bf16.mxu0 %v2187_v50 }
  0x3d   : > { %1957 = vmatprep.subr.bf16.mxu1 %v2184_v49  ;;  %2055 = vmatprep.mubr.bf16.mxu1 %v2562_v51 }
  0x3e   : > { %2067 = vmatprep.subr.bf16.mxu0 %v2200_v60 }
  0x3f   : > { %2068 = vmatpush3.bf16.msra.mxu0 %v2200_v60 }
  0x40   : > { %1958 = vmatpush3.bf16.msra.mxu1 %v2186_v52  ;;  %2069 = vmatprep.subr.bf16.mxu0 %v2204_v62 }
  0x41   : > { %1959 = vmatprep.subr.bf16.mxu1 %v2192_v54 }
  0x43   : > { %747 = vmatmul.mubr.bf16.gmra.mrb[12].mxu0 %v2190_v53  ;;  %2056 = vmatmul.mubr.bf16.gmra.mrb[12].mxu1 %v2575_v55 }
  0x44   : > { %1960 = vmatpush3.bf16.msra.mxu1 %v2193_v56  ;;  %754 = vmatprep.mubr.bf16.mxu0 %v2197_v59 }
  0x45   : > { %1961 = vmatprep.subr.bf16.mxu1 %v2194_v58  ;;  %1115 = vmatprep.mubr.bf16.mxu1 %v2470_v23 }
  0x46   : > { %2070 = vmatpush3.bf16.msra.mxu0 %v2204_v62 }
  0x47   : > { %2071 = vmatprep.subr.bf16.mxu0 %v2208_v1 }
  0x48   : > { %1962 = vmatpush3.bf16.msra.mxu1 %v2196_v61 }
  0x4a   : > { %2072 = vmatpush3.bf16.msra.mxu0 %v2208_v1 }
  0x4b   : > { %755 = vmatmul.mubr.bf16.gmra.mrb[16].mxu0 %v2199_v63  ;;  %1116 = vmatmul.mubr.bf16.vlgmr.msra.gmra.mrb[16].mxu1 %v2480_v26 }
  0x4c   : > { %762 = vmatprep.mubr.bf16.mxu0 %v2201_v0  ;;  %1123 = vmatprep.mubr.bf16.mxu1 %v2499_v32 }
  0x4d   : > { %2073 = vmatprep.subr.bf16.mxu0 %v2212_v2 }
  0x4e   : > { %2074 = vmatpush3.bf16.msra.mxu0 %v2212_v2 }
  0x53   : > { %763 = vmatmul.mubr.bf16.gmra.mrb[20].mxu0 %v2203_v3  ;;  %1124 = vmatmul.mubr.bf16.gmra.mrb[20].mxu1 %v2511_v35 }
  0x54   : > { %770 = vmatprep.mubr.bf16.mxu0 %v2205_v4  ;;  %1131 = vmatprep.mubr.bf16.mxu1 %v2530_v41 }
  0x5b   : > { %771 = vmatmul.mubr.bf16.gmra.mrb[24].mxu0 %v2207_v5  ;;  %1132 = vmatmul.mubr.bf16.gmra.mrb[24].mxu1 %v2543_v44 }
  0x5c   : > { %778 = vmatprep.mubr.bf16.mxu0 %v2209_v6  ;;  %1139 = vmatprep.mubr.bf16.mxu1 %v2187_v50 }
  0x63   : > { %779 = vmatmul.mubr.bf16.gmra.mrb[28].mxu0 %v2211_v7  ;;  %1140 = vmatmul.mubr.bf16.gmra.mrb[28].mxu1 %v2190_v53 }
  0x64   : > { %1147 = vmatprep.mubr.bf16.mxu1 %v2197_v59  ;;  %2075 = vmatprep.mubr.bf16.mxu0 %v2473_v24 }
  0x6b   : > { %1148 = vmatmul.mubr.bf16.gmra.mrb[32].mxu1 %v2199_v63  ;;  %2076 = vmatmul.mubr.bf16.vlgmr.msra.gmra.mrb[32].mxu0 %v2483_v27 }
  0x6c   : > { %1155 = vmatprep.mubr.bf16.mxu1 %v2201_v0  ;;  %2079 = vmatprep.mubr.bf16.mxu0 %v2502_v33 }
  0x73   : > { %1156 = vmatmul.mubr.bf16.gmra.mrb[36].mxu1 %v2203_v3  ;;  %2080 = vmatmul.mubr.bf16.gmra.mrb[36].mxu0 %v2514_v36 }
  0x74   : > { %1163 = vmatprep.mubr.bf16.mxu1 %v2205_v4  ;;  %2083 = vmatprep.mubr.bf16.mxu0 %v2533_v42 }
  0x7b   : > { %1164 = vmatmul.mubr.bf16.gmra.mrb[40].mxu1 %v2207_v5  ;;  %2084 = vmatmul.mubr.bf16.gmra.mrb[40].mxu0 %v2546_v45 }
  0x7c   : > { %1171 = vmatprep.mubr.bf16.mxu1 %v2209_v6  ;;  %2087 = vmatprep.mubr.bf16.mxu0 %v2562_v51 }
  0x83   : > { %1172 = vmatmul.mubr.bf16.gmra.mrb[44].mxu1 %v2211_v7  ;;  %2088 = vmatmul.mubr.bf16.gmra.mrb[44].mxu0 %v2575_v55 }
  0xfe   : > { %v1883_v8 = vpop.f32.mrb[0].mxu0  ;;  %v2045_v9 = vpop.f32.mrb[0].mxu1 }
  0xff   : > { %v1884_v10 = vpop.f32.mrb[1].mxu0  ;;  %v821_v12 = vpop.f32.mrb[1].mxu1 }
 0x100   : > { %v1885_v13 = vadd.f32 %v1884_v10, %v1883_v8  ;;  %v1886_v14 = vpop.f32.mrb[2].mxu0  ;;  %v2046_v15 = vpop.f32.mrb[2].mxu1 }
 0x101   : > { %v1887_v16 = vpop.f32.mrb[3].mxu0  ;;  %v824_v17 = vpop.f32.mrb[3].mxu1 }
 0x102   : > { %v725_v18 = vadd.f32 %v1885_v13, %v2627_v11  ;;  %v1888_v19 = vadd.f32 %v1887_v16, %v1886_v14 }
 0x104   : > { %v2630_v20 = vadd.f32 %v821_v12, %v725_v18  ;;  %v728_v21 = vadd.f32 %v1888_v19, %v2627_v11 }
 0x106   : > { %v2633_v22 = vadd.f32 %v824_v17, %v728_v21  ;;  %v1889_v23 = vpop.f32.mrb[4].mxu0  ;;  %v2049_v24 = vpop.f32.mrb[4].mxu1 }
 0x107   : > { %v1890_v25 = vpop.f32.mrb[5].mxu0  ;;  %v837_v26 = vpop.f32.mrb[5].mxu1 }
 0x108   : > { %v1891_v27 = vadd.f32 %v1890_v25, %v1889_v23  ;;  %v1892_v28 = vpop.f32.mrb[6].mxu0  ;;  %v2050_v29 = vpop.f32.mrb[6].mxu1 }
 0x109   : > { %v1893_v30 = vpop.f32.mrb[7].mxu0  ;;  %v840_v31 = vpop.f32.mrb[7].mxu1 }
 0x10a   : > { %v733_v32 = vadd.f32 %v1891_v27, %v2627_v11  ;;  %v1894_v33 = vadd.f32 %v1893_v30, %v1892_v28 }
 0x10c   : > { %v2636_v34 = vadd.f32 %v2045_v9, %v733_v32  ;;  %v736_v35 = vadd.f32 %v1894_v33, %v2627_v11 }
 0x10e   : > { %v2639_v36 = vadd.f32 %v2046_v15, %v736_v35  ;;  %v1895_v37 = vpop.f32.mrb[8].mxu0  ;;  %v2053_v38 = vpop.f32.mrb[8].mxu1 }
 0x10f   : > { %v1896_v39 = vpop.f32.mrb[9].mxu0  ;;  %v853_v40 = vpop.f32.mrb[9].mxu1 }
 0x110   : > { %v1897_v41 = vadd.f32 %v1896_v39, %v1895_v37  ;;  %v1898_v42 = vpop.f32.mrb[10].mxu0  ;;  %v2054_v43 = vpop.f32.mrb[10].mxu1 }
 0x111   : > { %v1899_v44 = vpop.f32.mrb[11].mxu0  ;;  %v856_v45 = vpop.f32.mrb[11].mxu1 }
 0x112   : > { %v741_v46 = vadd.f32 %v1897_v41, %v2627_v11  ;;  %v1900_v47 = vadd.f32 %v1899_v44, %v1898_v42 }
 0x114   : > { %v2642_v48 = vadd.f32 %v837_v26, %v741_v46  ;;  %v744_v49 = vadd.f32 %v1900_v47, %v2627_v11 }
 0x116   : > { %v2645_v50 = vadd.f32 %v840_v31, %v744_v49  ;;  %v1901_v51 = vpop.f32.mrb[12].mxu0  ;;  %v2647_v52 = vpop.f32.mrb[12].mxu1 }
 0x117   : > { %v1902_v53 = vpop.f32.mrb[13].mxu0  ;;  %v869_v54 = vpop.f32.mrb[13].mxu1 }
 0x118   : > { %v1903_v55 = vadd.f32 %v1902_v53, %v1901_v51  ;;  %v1904_v56 = vpop.f32.mrb[14].mxu0  ;;  %v2649_v57 = vpop.f32.mrb[14].mxu1 }
 0x119   : > { %v1905_v58 = vpop.f32.mrb[15].mxu0  ;;  %v872_v59 = vpop.f32.mrb[15].mxu1 }
 0x11a   : > { %v749_v60 = vadd.f32 %v1903_v55, %v2627_v11  ;;  %v1906_v61 = vadd.f32 %v1905_v58, %v1904_v56 }
 0x11c   : > { %v2652_v62 = vadd.f32 %v2049_v24, %v749_v60  ;;  %v752_v63 = vadd.f32 %v1906_v61, %v2627_v11 }
 0x11e   : > { %v2655_v0 = vadd.f32 %v2050_v29, %v752_v63  ;;  %v1907_v1 = vpop.f32.mrb[16].mxu0  ;;  %v1963_v2 = vpop.f32.mrb[16].mxu1 }
 0x11f   : > { %v1908_v3 = vpop.f32.mrb[17].mxu0  ;;  %v1964_v4 = vpop.f32.mrb[17].mxu1 }
 0x120   : > { %v1909_v5 = vadd.f32 %v1908_v3, %v1907_v1  ;;  %v2657_v6 = vadd.f32 %v1964_v4, %v1963_v2  ;;  %v1910_v7 = vpop.f32.mrb[18].mxu0  ;;  %v1966_v8 = vpop.f32.mrb[18].mxu1 }
 0x121   : > { %v1911_v9 = vpop.f32.mrb[19].mxu0  ;;  %v1967_v10 = vpop.f32.mrb[19].mxu1 }
 0x122   : > { %v757_v12 = vadd.f32 %v1909_v5, %v2627_v11  ;;  %v1912_v13 = vadd.f32 %v1911_v9, %v1910_v7  ;;  %v2660_v14 = vadd.f32 %v1967_v10, %v1966_v8 }
 0x124   : > { %v2662_v15 = vadd.f32 %v853_v40, %v757_v12  ;;  %v760_v16 = vadd.f32 %v1912_v13, %v2627_v11 }
 0x126   : > { %v2665_v17 = vadd.f32 %v856_v45, %v760_v16  ;;  %v1913_v18 = vpop.f32.mrb[20].mxu0  ;;  %v1969_v19 = vpop.f32.mrb[20].mxu1 }
 0x127   : > { %v1914_v21 = vpop.f32.mrb[21].mxu0  ;;  %v1970_v23 = vpop.f32.mrb[21].mxu1 }
 0x128   : > { %v1915_v24 = vadd.f32 %v1914_v21, %v1913_v18  ;;  %v1971_v25 = vadd.f32 %v1970_v23, %v1969_v19  ;;  %v1916_v26 = vpop.f32.mrb[22].mxu0  ;;  %v1972_v27 = vpop.f32.mrb[22].mxu1 }
 0x129   : > { %v1917_v28 = vpop.f32.mrb[23].mxu0  ;;  %v1973_v29 = vpop.f32.mrb[23].mxu1 }
 0x12a   : > { %v765_v30 = vadd.f32 %v1915_v24, %v2627_v11  ;;  %v1918_v31 = vadd.f32 %v1917_v28, %v1916_v26  ;;  %v1974_v32 = vadd.f32 %v1973_v29, %v1972_v27 }
 0x12c   : > { %v2668_v33 = vadd.f32 %v2053_v38, %v765_v30  ;;  %v768_v35 = vadd.f32 %v1918_v31, %v2627_v11 }
 0x12e   : > { %v2671_v37 = vadd.f32 %v2054_v43, %v768_v35  ;;  %v1919_v39 = vpop.f32.mrb[24].mxu0  ;;  %v1975_v40 = vpop.f32.mrb[24].mxu1 }
 0x12f   : > { %v1920_v41 = vpop.f32.mrb[25].mxu0  ;;  %v1976_v42 = vpop.f32.mrb[25].mxu1 }
 0x130   : > { %v1921_v44 = vadd.f32 %v1920_v41, %v1919_v39  ;;  %v1977_v45 = vadd.f32 %v1976_v42, %v1975_v40  ;;  %v1922_v46 = vpop.f32.mrb[26].mxu0  ;;  %v1978_v47 = vpop.f32.mrb[26].mxu1 }
 0x131   : > { %v1923_v49 = vpop.f32.mrb[27].mxu0  ;;  %v1979_v51 = vpop.f32.mrb[27].mxu1 }
 0x132   : > { %v773_v53 = vadd.f32 %v1921_v44, %v2627_v11  ;;  %v1924_v55 = vadd.f32 %v1923_v49, %v1922_v46  ;;  %v1980_v56 = vadd.f32 %v1979_v51, %v1978_v47 }
 0x134   : > { %v2674_v38 = vadd.f32 %v869_v54, %v773_v53  ;;  %v776_v58 = vadd.f32 %v1924_v55, %v2627_v11  ;;  %v2683_v54 = vld [vmem:[%s2788_s4] ss:$0 sm:$0xff] }
 0x135   : > { %v1126_v16 = vadd.f32 %v1971_v25, %v2683_v54  ;;  %v1118_v23 = vadd.f32 %v2657_v6, %v2683_v54  ;;  %v1129_v28 = vadd.f32 %v1974_v32, %v2683_v54 }
 0x136   : > { %v2677_v43 = vadd.f32 %v872_v59, %v776_v58  ;;  %v1925_v60 = vpop.f32.mrb[28].mxu0  ;;  %v1981_v61 = vpop.f32.mrb[28].mxu1 }
 0x137   : > { %v1926_v63 = vpop.f32.mrb[29].mxu0  ;;  %v1982_v1 = vpop.f32.mrb[29].mxu1 }
 0x138   : > { %v1927_v2 = vadd.f32 %v1926_v63, %v1925_v60  ;;  %v1983_v3 = vadd.f32 %v1982_v1, %v1981_v61  ;;  %v1928_v4 = vpop.f32.mrb[30].mxu0  ;;  %v1984_v5 = vpop.f32.mrb[30].mxu1  ;;  %v1137_v1 = vadd.f32 %v1980_v56, %v2683_v54 }
 0x139   : > { %v1929_v7 = vpop.f32.mrb[31].mxu0  ;;  %v1985_v8 = vpop.f32.mrb[31].mxu1 }
 0x13a   : > { %v781_v9 = vadd.f32 %v1927_v2, %v2627_v11  ;;  %v1930_v10 = vadd.f32 %v1929_v7, %v1928_v4  ;;  %v1986_v12 = vadd.f32 %v1985_v8, %v1984_v5  ;;  %v1142_v32 = vadd.f32 %v1983_v3, %v2683_v54 }
 0x13c   : > { %v2686_v59 = vadd.f32 %v2647_v52, %v781_v9  ;;  %v784_v13 = vadd.f32 %v1930_v10, %v2627_v11  ;;  %v1121_v11 = vadd.f32 %v2660_v14, %v2683_v54  ;;  %v1134_v14 = vadd.f32 %v1977_v45, %v2683_v54 }
 0x13d   : > { %v1145_v55 = vadd.f32 %v1986_v12, %v2683_v54 }
 0x13e   : > { %v2691_v18 = vadd.f32 %v2649_v57, %v784_v13  ;;  %v1987_v19 = vpop.f32.mrb[32].mxu1  ;;  %v2077_v21 = vpop.f32.mrb[32].mxu0 }
 0x13f   : > { %v1223_v24 = vadd.f32 %v2077_v21, %v1126_v16  ;;  %v1988_v26 = vpop.f32.mrb[33].mxu1  ;;  %v1214_v27 = vpop.f32.mrb[33].mxu0 }
 0x140   : > { %v1989_v29 = vadd.f32 %v1988_v26, %v1987_v19  ;;  %v1215_v52 = vadd.f32 %v1214_v27, %v1118_v23  ;;  %v1990_v30 = vpop.f32.mrb[34].mxu1  ;;  %v2078_v31 = vpop.f32.mrb[34].mxu0 }
 0x141   : > { %v1733_v25 = vmul.f32 -1.442695, %v1223_v24  ;;  %v1226_v57 = vadd.f32 %v2078_v31, %v1129_v28  ;;  %v1991_v35 = vpop.f32.mrb[35].mxu1  ;;  %v1217_v39 = vpop.f32.mrb[35].mxu0 }
 0x142   : > { %v1731_v40 = vmul.f32 -1.442695, %v1215_v52  ;;  %v1992_v41 = vadd.f32 %v1991_v35, %v1990_v30  ;;  %v1218_v6 = vadd.f32 %v1217_v39, %v1121_v11  ;;  %v1150_v23 = vadd.f32 %v1989_v29, %v2683_v54 }
 0x143   : > { %2213 = vpow2.f32 %v1733_v25  ;;  %v1734_v42 = vmul.f32 -1.442695, %v1226_v57 }
 0x144   : > { %2215 = vpow2.f32 %v1731_v40  ;;  %v1732_v44 = vmul.f32 -1.442695, %v1218_v6  ;;  %v1153_v31 = vadd.f32 %v1992_v41, %v2683_v54 }
 0x145   : > { %2217 = vpow2.f32 %v1734_v42 }
 0x146   : > { %2219 = vpow2.f32 %v1732_v44  ;;  %v1993_v46 = vpop.f32.mrb[36].mxu1  ;;  %v2081_v47 = vpop.f32.mrb[36].mxu0 }
 0x147   : > { %v1239_v49 = vadd.f32 %v2081_v47, %v1142_v32  ;;  %v1994_v51 = vpop.f32.mrb[37].mxu1  ;;  %v1230_v53 = vpop.f32.mrb[37].mxu0 }
 0x148   : > { %v1995_v58 = vadd.f32 %v1994_v51, %v1993_v46  ;;  %v1231_v60 = vadd.f32 %v1230_v53, %v1134_v14  ;;  %v1996_v61 = vpop.f32.mrb[38].mxu1  ;;  %v2082_v63 = vpop.f32.mrb[38].mxu0  ;;  %v2720_v51 = vld [vmem:[%s2716_s15] sm:$0xff]  }
 0x149   : > { %v1737_v2 = vmul.f32 -1.442695, %v1239_v49  ;;  %v1242_v3 = vadd.f32 %v2082_v63, %v1145_v55  ;;  %v1997_v4 = vpop.f32.mrb[39].mxu1  ;;  %v1233_v5 = vpop.f32.mrb[39].mxu0  ;;  %v1853_v49 = vld [vmem:[%s2716_s15 + $0x8] sm:$0xff]  }
 0x14a   : > { %v1735_v7 = vmul.f32 -1.442695, %v1231_v60  ;;  %v1998_v8 = vadd.f32 %v1997_v4, %v1996_v61  ;;  %v1234_v45 = vadd.f32 %v1233_v5, %v1137_v1  ;;  %v1158_v13 = vadd.f32 %v1995_v58, %v2683_v54 }
 0x14b   : > { %2221 = vpow2.f32 %v1737_v2  ;;  %v1738_v9 = vmul.f32 -1.442695, %v1242_v3  ;;  %v1787_v3 = vunpack.c.l.bf16 %v1853_v49  ;;  %v1783_v4 = vunpack.c.l.bf16 %v2720_v51 }
 0x14c   : > { %2223 = vpow2.f32 %v1735_v7  ;;  %v1736_v10 = vmul.f32 -1.442695, %v1234_v45  ;;  %v1161_v30 = vadd.f32 %v1998_v8, %v2683_v54 }
 0x14d   : > { %v2214_v12 = vpop.eup %2213  ;;  %2225 = vpow2.f32 %v1738_v9 }
 0x14e   : > { %v2216_v16 = vpop.eup %2215  ;;  %v1327_v56 = vadd.f32 1.0, %v2214_v12  ;;  %2227 = vpow2.f32 %v1736_v10  ;;  %v1999_v19 = vpop.f32.mrb[40].mxu1 }
 0x14f   : > { %v2085_v21 = vpop.f32.mrb[40].mxu0  ;;  %v2218_v24 = vpop.eup %2217  ;;  %v1325_v26 = vadd.f32 1.0, %v2216_v16 }
 0x150   : > { %v1255_v27 = vadd.f32 %v2085_v21, %v1158_v13  ;;  %v2000_v28 = vpop.f32.mrb[41].mxu1  ;;  %v1246_v52 = vpop.f32.mrb[41].mxu0  ;;  %2229 = vrcp.f32 %v1327_v56  ;;  %v1328_v25 = vadd.f32 1.0, %v2218_v24  ;;  %v1788_v56 = vunpack.c.h.bf16 %v1853_v49 }
 0x151   : > { %v2220_v11 = vpop.eup %2219  ;;  %v2001_v57 = vadd.f32 %v2000_v28, %v1999_v19  ;;  %v1247_v35 = vadd.f32 %v1246_v52, %v1150_v23  ;;  %v2002_v39 = vpop.f32.mrb[42].mxu1  ;;  %2231 = vrcp.f32 %v1325_v26 }
 0x152   : > { %v2086_v40 = vpop.f32.mrb[42].mxu0  ;;  %v1326_v29 = vadd.f32 1.0, %v2220_v11  ;;  %v1741_v6 = vmul.f32 -1.442695, %v1255_v27  ;;  %v2003_v41 = vpop.f32.mrb[43].mxu1  ;;  %2233 = vrcp.f32 %v1328_v25  ;;  %v2726_v27 = vld [vmem:[%s2716_s15 + $0x18] sm:$0xff]   ;;  %v1784_v25 = vunpack.c.h.bf16 %v2720_v51 }
 0x153   : > { %v1258_v42 = vadd.f32 %v2086_v40, %v1161_v30  ;;  %v1249_v44 = vpop.f32.mrb[43].mxu0  ;;  %v1739_v32 = vmul.f32 -1.442695, %v1247_v35  ;;  %v2004_v46 = vadd.f32 %v2003_v41, %v2002_v39  ;;  %v1166_v1 = vadd.f32 %v2001_v57, %v2683_v54  ;;  %v1854_v40 = vld [vmem:[%s2716_s15 + $0x10] sm:$0xff]  }
 0x154   : > { %v1250_v47 = vadd.f32 %v1249_v44, %v1153_v31  ;;  %2235 = vrcp.f32 %v1326_v29 }
 0x155   : > { %v1742_v14 = vmul.f32 -1.442695, %v1258_v42  ;;  %2237 = vpow2.f32 %v1741_v6  ;;  %v2222_v55 = vpop.eup %2221  ;;  %v1169_v23 = vadd.f32 %v2004_v46, %v2683_v54 }
 0x156   : > { %v1740_v53 = vmul.f32 -1.442695, %v1250_v47  ;;  %2239 = vpow2.f32 %v1739_v32  ;;  %v2224_v58 = vpop.eup %2223  ;;  %v1331_v60 = vadd.f32 1.0, %v2222_v55  ;;  %v2005_v61 = vpop.f32.mrb[44].mxu1  ;;  %v1795_v32 = vunpack.c.l.bf16 %v2726_v27 }
 0x157   : > { %2241 = vpow2.f32 %v1742_v14  ;;  %v2089_v63 = vpop.f32.mrb[44].mxu0  ;;  %v2226_v2 = vpop.eup %2225  ;;  %v1329_v5 = vadd.f32 1.0, %v2224_v58  ;;  %v1791_v55 = vunpack.c.l.bf16 %v1854_v40 }
 0x158   : > { %2243 = vpow2.f32 %v1740_v53  ;;  %v2006_v7 = vpop.f32.mrb[45].mxu1  ;;  %v1262_v8 = vpop.f32.mrb[45].mxu0  ;;  %v1332_v9 = vadd.f32 1.0, %v2226_v2 }
 0x159   : > { %v2228_v45 = vpop.eup %2227  ;;  %2245 = vrcp.f32 %v1331_v60  ;;  %v2007_v10 = vadd.f32 %v2006_v7, %v2005_v61  ;;  %v1263_v12 = vadd.f32 %v1262_v8, %v1166_v1  ;;  %v2008_v13 = vpop.f32.mrb[46].mxu1 }
 0x15a   : > { %v2090_v16 = vpop.f32.mrb[46].mxu0  ;;  %2247 = vrcp.f32 %v1329_v5  ;;  %v1330_v19 = vadd.f32 1.0, %v2228_v45  ;;  %v2009_v21 = vpop.f32.mrb[47].mxu1 }
 0x15b   : > { %v1265_v24 = vpop.f32.mrb[47].mxu0  ;;  %v2230_v26 = vpop.eup %2229  ;;  %2249 = vrcp.f32 %v1332_v9  ;;  %v1174_v28 = vadd.f32 %v2007_v10, %v2683_v54  ;;  %v1743_v52 = vmul.f32 -1.442695, %v1263_v12  ;;  %v2010_v30 = vadd.f32 %v2009_v21, %v2008_v13 }
 0x15c   : > { %v2232_v31 = vpop.eup %2231  ;;  %v1375_v11 = vmul.f32 %v2230_v26, %v2636_v34  ;;  %2251 = vrcp.f32 %v1330_v19  ;;  %v1266_v57 = vadd.f32 %v1265_v24, %v1169_v23  ;;  %v1796_v10 = vunpack.c.h.bf16 %v2726_v27 }
 0x15d   : > { %v2234_v35 = vpop.eup %2233  ;;  %v1373_v39 = vmul.f32 %v2232_v31, %v2630_v20  ;;  %v1271_v29 = vadd.f32 %v2089_v63, %v1174_v28  ;;  %2253 = vpow2.f32 %v1743_v52  ;;  %v1177_v6 = vadd.f32 %v2010_v30, %v2683_v54  ;;  %v1857_v28 = vld [vmem:[%s2716_s15 + $0x28] sm:$0xff]   ;;  %v1856_v31 = vld [vmem:[%s2716_s15 + $0x20] sm:$0xff]  }
 0x15e   : > { %v2236_v42 = vpop.eup %2235  ;;  %v1423_v41 = vadd.f32 %v1787_v3, %v1375_v11  ;;  %v1376_v44 = vmul.f32 %v2234_v35, %v2639_v36  ;;  %v1744_v46 = vmul.f32 -1.442695, %v1266_v57 }
 0x15f   : > { %v2238_v34 = vpop.eup %2237  ;;  %v1421_v47 = vadd.f32 %v1783_v4, %v1373_v39  ;;  %v1374_v14 = vmul.f32 %v2236_v42, %v2633_v22  ;;  %v1745_v49 = vmul.f32 -1.442695, %v1271_v29  ;;  %v1274_v51 = vadd.f32 %v2090_v16, %v1177_v6 }
 0x160   : > { %v2240_v53 = vpop.eup %2239  ;;  %v1424_v20 = vadd.f32 %v1788_v56, %v1376_v44  ;;  %v1335_v58 = vadd.f32 1.0, %v2238_v34  ;;  %2255 = vpow2.f32 %v1744_v46  ;;  %v1439_v60 = vmul.f32 0.70710677, %v1423_v41 }
 0x161   : > { %v2242_v54 = vpop.eup %2241  ;;  %v1422_v61 = vadd.f32 %v1784_v25, %v1374_v14  ;;  %v1333_v63 = vadd.f32 1.0, %v2240_v53  ;;  %2257 = vpow2.f32 %v1745_v49  ;;  %v1746_v3 = vmul.f32 -1.442695, %v1274_v51 }
 0x162   : > { %v2244_v36 = vpop.eup %2243  ;;  %v1440_v1 = vmul.f32 0.70710677, %v1424_v20  ;;  %2259 = vrcp.f32 %v1335_v58  ;;  %v1336_v2 = vadd.f32 1.0, %v2242_v54  ;;  %v1437_v22 = vmul.f32 0.70710677, %v1421_v47 }
 0x163   : > { %v2246_v4 = vpop.eup %2245  ;;  %v1438_v5 = vmul.f32 0.70710677, %v1422_v61  ;;  %2261 = vrcp.f32 %v1333_v63  ;;  %v1334_v7 = vadd.f32 1.0, %v2244_v36  ;;  %v1792_v56 = vunpack.c.h.bf16 %v1854_v40 }
 0x164   : > { %v2248_v8 = vpop.eup %2247  ;;  %v1821_v45 = vpack.c.bf16 %v1440_v1, %v1439_v60  ;;  %v1379_v9 = vmul.f32 %v2246_v4, %v2652_v62  ;;  %2263 = vrcp.f32 %v1336_v2  ;;  %v1799_v42 = vunpack.c.l.bf16 %v1856_v31 }
 0x165   : > { %v2250_v12 = vpop.eup %2249  ;;  %v1816_v13 = vpack.c.bf16 %v1438_v5, %v1437_v22  ;;  %v1377_v16 = vmul.f32 %v2248_v8, %v2642_v48  ;;  %2265 = vrcp.f32 %v1334_v7  ;;  %v1804_v46 = vunpack.c.h.bf16 %v1857_v28  ;;  %v1859_v7 = vld [vmem:[%s2716_s15 + $0x38] sm:$0xff]  }
 0x166   : > { %v2252_v19 = vpop.eup %2251  ;;  %1860 = vst [vmem:[%s2742_s18 + $0x8] sm:$0xff] %v1821_v45   ;;  %v1427_v21 = vadd.f32 %v1795_v32, %v1379_v9  ;;  %v1380_v23 = vmul.f32 %v2250_v12, %v2655_v0  ;;  %2267 = vpow2.f32 %v1746_v3  ;;  %v1803_v0 = vunpack.c.l.bf16 %v1857_v28 }
 0x167   : > { %v2254_v24 = vpop.eup %2253  ;;  %1817 = vst [vmem:[%s2742_s18] sm:$0xff] %v1816_v13   ;;  %v1425_v62 = vadd.f32 %v1791_v55, %v1377_v16  ;;  %v1378_v26 = vmul.f32 %v2252_v19, %v2645_v50  ;;  %v1800_v14 = vunpack.c.h.bf16 %v1856_v31  ;;  %v1811_v12 = vunpack.c.l.bf16 %v1859_v7 }
 0x168   : > { %v1428_v27 = vadd.f32 %v1796_v10, %v1380_v23  ;;  %v1337_v52 = vadd.f32 1.0, %v2254_v24  ;;  %v1443_v11 = vmul.f32 0.70710677, %v1427_v21 }
 0x169   : > { %v1426_v30 = vadd.f32 %v1792_v56, %v1378_v26  ;;  %v1441_v35 = vmul.f32 0.70710677, %v1425_v62  ;;  %v1812_v56 = vunpack.c.h.bf16 %v1859_v7 }
 0x16a   : > { %v2256_v48 = vpop.eup %2255  ;;  %v1444_v25 = vmul.f32 0.70710677, %v1428_v27  ;;  %2269 = vrcp.f32 %v1337_v52 }
 0x16b   : > { %v2258_v57 = vpop.eup %2257  ;;  %v1442_v39 = vmul.f32 0.70710677, %v1426_v30  ;;  %v1338_v40 = vadd.f32 1.0, %v2256_v48 }
 0x16c   : > { %v2260_v29 = vpop.eup %2259  ;;  %v1831_v6 = vpack.c.bf16 %v1444_v25, %v1443_v11  ;;  %v1339_v50 = vadd.f32 1.0, %v2258_v57 }
 0x16d   : > { %v2262_v41 = vpop.eup %2261  ;;  %v1826_v44 = vpack.c.bf16 %v1442_v39, %v1441_v35  ;;  %v1383_v32 = vmul.f32 %v2260_v29, %v2668_v33  ;;  %2271 = vrcp.f32 %v1338_v40  ;;  %v1858_v33 = vld [vmem:[%s2716_s15 + $0x30] sm:$0xff]  }
 0x16e   : > { %v2264_v34 = vpop.eup %2263  ;;  %1862 = vst [vmem:[%s2742_s18 + $0x18] sm:$0xff] %v1831_v6   ;;  %v1381_v47 = vmul.f32 %v2262_v41, %v2662_v15  ;;  %2273 = vrcp.f32 %v1339_v50  ;;  %v1807_v3 = vunpack.c.l.bf16 %v1858_v33  ;;  %v1808_v5 = vunpack.c.h.bf16 %v1858_v33 }
 0x16f   : > { %v2266_v49 = vpop.eup %2265  ;;  %1861 = vst [vmem:[%s2742_s18 + $0x10] sm:$0xff] %v1826_v44   ;;  %v1431_v51 = vadd.f32 %v1803_v0, %v1383_v32  ;;  %v1384_v53 = vmul.f32 %v2264_v34, %v2671_v37 }
 0x170   : > { %v2268_v20 = vpop.eup %2267  ;;  %v1429_v55 = vadd.f32 %v1799_v42, %v1381_v47  ;;  %v1382_v58 = vmul.f32 %v2266_v49, %v2665_v17 }
 0x171   : > { %v1432_v54 = vadd.f32 %v1804_v46, %v1384_v53  ;;  %v1340_v60 = vadd.f32 1.0, %v2268_v20  ;;  %v1447_v63 = vmul.f32 0.70710677, %v1431_v51 }
 0x172   : > { %v1430_v61 = vadd.f32 %v1800_v14, %v1382_v58  ;;  %v1445_v1 = vmul.f32 0.70710677, %v1429_v55 }
 0x173   : > { %v1448_v15 = vmul.f32 0.70710677, %v1432_v54  ;;  %2275 = vrcp.f32 %v1340_v60 }
 0x174   : > { %v2270_v36 = vpop.eup %2269  ;;  %v1446_v2 = vmul.f32 0.70710677, %v1430_v61 }
 0x175   : > { %v1841_v4 = vpack.c.bf16 %v1448_v15, %v1447_v63  ;;  %v1385_v37 = vmul.f32 %v2270_v36, %v2674_v38 }
 0x176   : > { %v1836_v22 = vpack.c.bf16 %v1446_v2, %v1445_v1 }
 0x177   : > { %v2272_v17 = vpop.eup %2271  ;;  %1864 = vst [vmem:[%s2742_s18 + $0x28] sm:$0xff] %v1841_v4   ;;  %v1433_v45 = vadd.f32 %v1807_v3, %v1385_v37 }
 0x178   : > { %v2274_v8 = vpop.eup %2273  ;;  %1863 = vst [vmem:[%s2742_s18 + $0x20] sm:$0xff] %v1836_v22   ;;  %v1386_v9 = vmul.f32 %v2272_v17, %v2677_v43 }
 0x179   : > { %v1387_v10 = vmul.f32 %v2274_v8, %v2686_v59  ;;  %v1449_v16 = vmul.f32 0.70710677, %v1433_v45 }
 0x17a   : > { %v1434_v13 = vadd.f32 %v1808_v5, %v1386_v9 }
 0x17b   : > { %v1435_v21 = vadd.f32 %v1811_v12, %v1387_v10 }
 0x17c   : > { %v1450_v19 = vmul.f32 0.70710677, %v1434_v13 }
 0x17d   : > { %v2276_v38 = vpop.eup %2275  ;;  %v1451_v26 = vmul.f32 0.70710677, %v1435_v21 }
 0x17e   : > { %v1388_v23 = vmul.f32 %v2276_v38, %v2691_v18  ;;  %v1846_v24 = vpack.c.bf16 %v1450_v19, %v1449_v16 }
 0x180   : > { %v1436_v62 = vadd.f32 %v1812_v56, %v1388_v23  ;;  %1865 = vst [vmem:[%s2742_s18 + $0x30] sm:$0xff] %v1846_v24  }
 0x182   : > { %v1452_v27 = vmul.f32 0.70710677, %v1436_v62 }
 0x184   : > { %v1851_v28 = vpack.c.bf16 %v1452_v27, %v1451_v26 }
 0x186   : > { %1866 = vst [vmem:[%s2742_s18 + $0x38] sm:$0xff] %v1851_v28  }
 0x187 PF: > { %s16_s25 = sadd.s32 1, %s2315_s25   ;;  %s2791_s21 = smov %s2307_s23 }
 0x188   : > { %p13_p7 = scmp.ge.s32.totalorder %s16_s25, 6   ;;  %s2792_s22 = smov %s2311_s24 }
 0x189   : > { %s2793_s23 = smov %s2796_s26  ;;  %s2794_s24 = smov %s2800_s27 }
 0x18a   :  { %15 = sbr.rel (!%p13_p7) target bundleno = 3 (0x3), region = 77 }

// kernel: fconv_encoder_forward.10
= control target key start
LH: loop header
LB: loop body
LE: loop exit
PB: predicated region body
PF: predicated region fallthrough
CT: control target
= control target key end

     0   :  { %s2868_s21 = smov 0   ;;  %s2870_s22 = smov 0   ;;  %s3540_s0 = inlined_call_operand.vmem [shape: bf16[2,256,384], index: 0, kind: input, shape index: {}]   ;;  %s3541_s1 = inlined_call_operand.vmem [shape: bf16[384,256], index: 1, kind: input, shape index: {}]   ;;  %s3542_s2 = inlined_call_operand.vmem [shape: bf16[384,256], index: 2, kind: input, shape index: {}]   ;;  %s3543_s3 = inlined_call_operand.vmem [shape: f32[1,256], index: 3, kind: input, shape index: {}]   ;;  %s3544_s4 = inlined_call_operand.vmem [shape: f32[1,256], index: 4, kind: input, shape index: {}]   ;;  %s3545_s5 = inlined_call_operand.vmem [shape: bf16[2,256,256], index: 5, kind: input, shape index: {}]   ;;  %s3546_s6 = inlined_call_operand.vmem [shape: bf16[2,256,256], index: 6, kind: output, shape index: {}]  }
   0x1   :  { %s2872_s23 = smov 0   ;;  %s2874_s24 = smov 0  }
   0x2   :  { %s2876_s25 = smov 0  }
   0x3 LB: > { %s25_s26 = sadd.s32 1, %s2822_s23  ;;  %s28_s27 = sadd.s32 1, %s2826_s24  ;;  %s2830_s25 = sphi %s2876_s25, %s16_s25   ;;  %s2826_s24 = sphi %s2874_s24, %s3550_s24   ;;  %s2822_s23 = sphi %s2872_s23, %s3549_s23   ;;  %s2818_s22 = sphi %s2870_s22, %s3548_s22   ;;  %s2814_s21 = sphi %s2868_s21, %s3547_s21  }
   0x4   : > { %p26_p0 = scmp.ge.s32.totalorder %s25_s26, 2  ;;  %p2120_p1 = scmp.ge.s32.totalorder %s2830_s25, 1 }
   0x5   : > { %p252_p2 = scmp.lt.s32.totalorder %s2830_s25, 5 }
   0x6   : > { %s3552_s26 = smov (%p26_p0, %s25_s26), 0  ;;  %s3554_s27 = smov (!%p26_p0, %s28_s27), %s2826_s24 }
   0x7   : > { %p253_p3 = pnand %p2120_p1, %p252_p2  ;;  %p30_p4 = scmp.ge.s32.totalorder %s3554_s27, 2 }
   0x8   : > { %v2488_v0 = vld [vmem:[%s3541_s1 + $0x4] ss:$8 sps:$4 sm:$0xff] (!%p253_p3)   ;;  %v2492_v2 = vld [vmem:[%s3541_s1] ss:$8 sps:$4 sm:$0xff] (!%p253_p3)   ;;  %v2494_v4 = vld [vmem:[%s3541_s1 + $0x14] ss:$8 sps:$4 sm:$0xff] (!%p253_p3)  }
   0x9   : > { %s3556_s27 = smov (%p30_p4, %s3554_s27), 0  ;;  %256 = sbr.rel (%p253_p3) target bundleno = 460 (0x1cc), region = 44 }
   0xa   : > { %v2490_v1 = vld [vmem:[%s3542_s2 + $0x4] ss:$8 sps:$4 sm:$0xff] (!%p253_p3)   ;;  %796 = vmatprep.subr.bf16.mxu0 (!%p253_p3), %v2488_v0  ;;  %v2493_v3 = vld [vmem:[%s3542_s2] ss:$8 sps:$4 sm:$0xff] (!%p253_p3)   ;;  %v2496_v5 = vld [vmem:[%s3542_s2 + $0x14] ss:$8 sps:$4 sm:$0xff] (!%p253_p3)  }
   0xb   : > { %1322 = vmatprep.subr.bf16.mxu1 (!%p253_p3), %v2490_v1  ;;  %797 = vmatpush1.bf16.msra.mxu0 (!%p253_p3), %v2492_v2  ;;  %v2498_v6 = vld [vmem:[%s3541_s1 + $0x10] ss:$8 sps:$4 sm:$0xff] (!%p253_p3)   ;;  %v2500_v8 = vld [vmem:[%s3541_s1 + $0x24] ss:$8 sps:$4 sm:$0xff] (!%p253_p3)   ;;  %v2504_v10 = vld [vmem:[%s3541_s1 + $0x20] ss:$8 sps:$4 sm:$0xff] (!%p253_p3)  }
   0xc   : > { %1323 = vmatpush1.bf16.msra.mxu1 (!%p253_p3), %v2493_v3  ;;  %798 = vmatprep.subr.bf16.mxu0 (!%p253_p3), %v2494_v4  ;;  %v2499_v7 = vld [vmem:[%s3542_s2 + $0x10] ss:$8 sps:$4 sm:$0xff] (!%p253_p3)   ;;  %v2502_v9 = vld [vmem:[%s3542_s2 + $0x24] ss:$8 sps:$4 sm:$0xff] (!%p253_p3)   ;;  %v2505_v11 = vld [vmem:[%s3542_s2 + $0x20] ss:$8 sps:$4 sm:$0xff] (!%p253_p3)  }
   0xd   : > { %1324 = vmatprep.subr.bf16.mxu1 (!%p253_p3), %v2496_v5  ;;  %v2506_v12 = vld [vmem:[%s3541_s1 + $0x34] ss:$8 sps:$4 sm:$0xff] (!%p253_p3)   ;;  %v2510_v14 = vld [vmem:[%s3541_s1 + $0x30] ss:$8 sps:$4 sm:$0xff] (!%p253_p3)   ;;  %v2512_v16 = vld [vmem:[%s3541_s1 + $0x44] ss:$8 sps:$4 sm:$0xff] (!%p253_p3)  }
   0xe   : > { %v2508_v13 = vld [vmem:[%s3542_s2 + $0x34] ss:$8 sps:$4 sm:$0xff] (!%p253_p3)   ;;  %v2511_v15 = vld [vmem:[%s3542_s2 + $0x30] ss:$8 sps:$4 sm:$0xff] (!%p253_p3)   ;;  %v2514_v17 = vld [vmem:[%s3542_s2 + $0x44] ss:$8 sps:$4 sm:$0xff] (!%p253_p3)  }
   0xf   : > { %799 = vmatpush1.bf16.msra.mxu0 (!%p253_p3), %v2498_v6  ;;  %v2516_v18 = vld [vmem:[%s3541_s1 + $0x40] ss:$8 sps:$4 sm:$0xff] (!%p253_p3)   ;;  %v2518_v20 = vld [vmem:[%s3541_s1 + $0x54] ss:$8 sps:$4 sm:$0xff] (!%p253_p3)   ;;  %v2522_v22 = vld [vmem:[%s3541_s1 + $0x50] ss:$8 sps:$4 sm:$0xff] (!%p253_p3)  }
  0x10   : > { %1325 = vmatpush1.bf16.msra.mxu1 %v2499_v7  ;;  %800 = vmatprep.subr.bf16.mxu0 %v2500_v8  ;;  %v2517_v19 = vld [vmem:[%s3542_s2 + $0x40] ss:$8 sps:$4 sm:$0xff]   ;;  %v2520_v21 = vld [vmem:[%s3542_s2 + $0x54] ss:$8 sps:$4 sm:$0xff]   ;;  %s2121_s16 = sshll.u32 %s2814_s21, 4  ;;  %p303_p5 = scmp.lt.s32.totalorder %s2818_s22, 1 }
  0x11   : > { %1326 = vmatprep.subr.bf16.mxu1 %v2502_v9  ;;  %v2523_v23 = vld [vmem:[%s3542_s2 + $0x50] ss:$8 sps:$4 sm:$0xff]   ;;  %v2524_v24 = vld [vmem:[%s3541_s1 + $0x64] ss:$8 sps:$4 sm:$0xff]   ;;  %p305_p6 = scmp.lt.s32.totalorder %s2121_s16, 31 }
  0x12   : > { %v2526_v25 = vld [vmem:[%s3542_s2 + $0x64] ss:$8 sps:$4 sm:$0xff]   ;;  %v2528_v26 = vld [vmem:[%s3541_s1 + $0x60] ss:$8 sps:$4 sm:$0xff]   ;;  %v2530_v28 = vld [vmem:[%s3541_s1 + $0x74] ss:$8 sps:$4 sm:$0xff]  }
  0x13   : > { %801 = vmatpush1.bf16.msra.mxu0 %v2504_v10  ;;  %v2529_v27 = vld [vmem:[%s3542_s2 + $0x60] ss:$8 sps:$4 sm:$0xff]   ;;  %v2532_v29 = vld [vmem:[%s3542_s2 + $0x74] ss:$8 sps:$4 sm:$0xff]   ;;  %s3558_s22 = smov (!%p303_p5, %s2818_s22), 1  ;;  %s3560_s16 = smov (!%p305_p6, %s2121_s16), 31 }
  0x14   : > { %1327 = vmatpush1.bf16.msra.mxu1 %v2505_v11  ;;  %802 = vmatprep.subr.bf16.mxu0 %v2506_v12  ;;  %v2534_v30 = vld [vmem:[%s3541_s1 + $0x70] ss:$8 sps:$4 sm:$0xff]   ;;  %v2536_v32 = vld [vmem:[%s3541_s1 + $0x84] ss:$8 sps:$4 sm:$0xff]   ;;  %s2446_s29 = smul.u32 96, %s3558_s22  ;;  %s2125_s8 = sshll.u32 %s3558_s22, 6 }
  0x15   : > { %1328 = vmatprep.subr.bf16.mxu1 %v2508_v13  ;;  %v2535_v31 = vld [vmem:[%s3542_s2 + $0x70] ss:$8 sps:$4 sm:$0xff]   ;;  %v2538_v33 = vld [vmem:[%s3542_s2 + $0x84] ss:$8 sps:$4 sm:$0xff]   ;;  %s2445_s21 = smul.u32 3, %s3560_s16 }
  0x16   : > { %v2540_v34 = vld [vmem:[%s3541_s1 + $0x80] ss:$8 sps:$4 sm:$0xff]   ;;  %v2542_v36 = vld [vmem:[%s3541_s1 + $0x94] ss:$8 sps:$4 sm:$0xff]   ;;  %v2546_v38 = vld [vmem:[%s3541_s1 + $0x90] ss:$8 sps:$4 sm:$0xff]  }
  0x17   : > { %803 = vmatpush1.bf16.msra.mxu0 %v2510_v14  ;;  %v2541_v35 = vld [vmem:[%s3542_s2 + $0x80] ss:$8 sps:$4 sm:$0xff]   ;;  %v2544_v37 = vld [vmem:[%s3542_s2 + $0x94] ss:$8 sps:$4 sm:$0xff]   ;;  %s309_s14 = sadd.s32 %s2446_s29, %s2445_s21  ;;  %v2547_v39 = vld [vmem:[%s3542_s2 + $0x90] ss:$8 sps:$4 sm:$0xff]  }
  0x18   : > { %1329 = vmatpush1.bf16.msra.mxu1 %v2511_v15  ;;  %804 = vmatprep.subr.bf16.mxu0 %v2512_v16  ;;  %v2548_v40 = vld [vmem:[%s3541_s1 + $0xa4] ss:$8 sps:$4 sm:$0xff]   ;;  %s2122_s29 = sshll.u32 %s309_s14, 2  ;;  %v2552_v42 = vld [vmem:[%s3541_s1 + $0xa0] ss:$8 sps:$4 sm:$0xff]   ;;  %s2124_s21 = sshll.u32 %s3560_s16, 1 }
  0x19   : > { %1330 = vmatprep.subr.bf16.mxu1 %v2514_v17  ;;  %v2550_v41 = vld [vmem:[%s3542_s2 + $0xa4] ss:$8 sps:$4 sm:$0xff]   ;;  %v2553_v43 = vld [vmem:[%s3542_s2 + $0xa0] ss:$8 sps:$4 sm:$0xff]   ;;  %v2554_v44 = vld [vmem:[%s3541_s1 + $0xb4] ss:$8 sps:$4 sm:$0xff]   ;;  %s3049_s17 = scalar_lea.vmem %s3540_s0, %s2122_s29 }
  0x1a   : > { %v2556_v45 = vld [vmem:[%s3542_s2 + $0xb4] ss:$8 sps:$4 sm:$0xff]   ;;  %v2558_v46 = vld [vmem:[%s3541_s1 + $0xb0] ss:$8 sps:$4 sm:$0xff]   ;;  %v2560_v49 = vld [vmem:[%s3541_s1 + $0xc4] ss:$8 sps:$4 sm:$0xff]  }
  0x1b   : > { %805 = vmatpush1.bf16.msra.mxu0 %v2516_v18  ;;  %v2559_v47 = vld [vmem:[%s3542_s2 + $0xb0] ss:$8 sps:$4 sm:$0xff]   ;;  %v2562_v50 = vld [vmem:[%s3542_s2 + $0xc4] ss:$8 sps:$4 sm:$0xff]   ;;  %v2564_v51 = vld [vmem:[%s3541_s1 + $0xc0] ss:$8 sps:$4 sm:$0xff]  }
  0x1c   : > { %1331 = vmatpush1.bf16.msra.mxu1 %v2517_v19  ;;  %806 = vmatprep.subr.bf16.mxu0 %v2518_v20  ;;  %v2586_v48 = vld [vmem:[%s3049_s17 + $0x4] ss:$12 sps:$4 sm:$0xff]   ;;  %v2565_v52 = vld [vmem:[%s3542_s2 + $0xc0] ss:$8 sps:$4 sm:$0xff]   ;;  %v2566_v53 = vld [vmem:[%s3541_s1 + $0xd4] ss:$8 sps:$4 sm:$0xff]  }
  0x1d   : > { %1332 = vmatprep.subr.bf16.mxu1 %v2520_v21  ;;  %828 = vmatprep.mubr.bf16.mxu0 %v2586_v48  ;;  %v2568_v54 = vld [vmem:[%s3542_s2 + $0xd4] ss:$8 sps:$4 sm:$0xff]   ;;  %v2570_v55 = vld [vmem:[%s3541_s1 + $0xd0] ss:$8 sps:$4 sm:$0xff]   ;;  %v2572_v57 = vld [vmem:[%s3541_s1 + $0xe4] ss:$8 sps:$4 sm:$0xff]  }
  0x1e   : > { %1354 = vmatprep.mubr.bf16.mxu1 %v2586_v48  ;;  %v2571_v56 = vld [vmem:[%s3542_s2 + $0xd0] ss:$8 sps:$4 sm:$0xff]   ;;  %v2574_v58 = vld [vmem:[%s3542_s2 + $0xe4] ss:$8 sps:$4 sm:$0xff]   ;;  %v2576_v59 = vld [vmem:[%s3541_s1 + $0xe0] ss:$8 sps:$4 sm:$0xff]  }
  0x1f   : > { %807 = vmatpush1.bf16.msra.mxu0 %v2522_v22  ;;  %v2577_v60 = vld [vmem:[%s3542_s2 + $0xe0] ss:$8 sps:$4 sm:$0xff]   ;;  %v2578_v61 = vld [vmem:[%s3541_s1 + $0xf4] ss:$8 sps:$4 sm:$0xff]   ;;  %v2582_v63 = vld [vmem:[%s3541_s1 + $0xf0] ss:$8 sps:$4 sm:$0xff]  }
  0x20   : > { %1333 = vmatpush1.bf16.msra.mxu1 %v2523_v23  ;;  %808 = vmatprep.subr.bf16.mxu0 %v2524_v24  ;;  %v2580_v62 = vld [vmem:[%s3542_s2 + $0xf4] ss:$8 sps:$4 sm:$0xff]   ;;  %v2583_v0 = vld [vmem:[%s3542_s2 + $0xf0] ss:$8 sps:$4 sm:$0xff]   ;;  %v2589_v1 = vld [vmem:[%s3542_s2 + $0x104] ss:$8 sps:$4 sm:$0xff]  }
  0x21   : > { %1334 = vmatprep.subr.bf16.mxu1 %v2526_v25  ;;  %v2610_v2 = vld [vmem:[%s3541_s1 + $0x104] ss:$8 sps:$4 sm:$0xff]   ;;  %v2587_v4 = vld [vmem:[%s3542_s2 + $0x100] ss:$8 sps:$4 sm:$0xff]   ;;  %v2595_v6 = vld [vmem:[%s3542_s2 + $0x114] ss:$8 sps:$4 sm:$0xff]  }
  0x22   : > { %v2584_v3 = vld [vmem:[%s3049_s17] ss:$12 sps:$4 sm:$0xff]   ;;  %v2590_v5 = vld [vmem:[%s3049_s17 + $0x1c] ss:$12 sps:$4 sm:$0xff]   ;;  %v2593_v9 = vld [vmem:[%s3542_s2 + $0x110] ss:$8 sps:$4 sm:$0xff]  }
  0x23   : > { %809 = vmatpush1.bf16.msra.mxu0 %v2528_v26  ;;  %v2608_v7 = vld [vmem:[%s3541_s1 + $0x100] ss:$8 sps:$4 sm:$0xff]   ;;  %v2619_v8 = vld [vmem:[%s3541_s1 + $0x114] ss:$8 sps:$4 sm:$0xff]   ;;  %v2601_v10 = vld [vmem:[%s3542_s2 + $0x124] ss:$8 sps:$4 sm:$0xff]  }
  0x24   : > { %1335 = vmatpush1.bf16.msra.mxu1 %v2529_v27  ;;  %810 = vmatprep.subr.bf16.mxu0 %v2530_v28  ;;  %v2617_v11 = vld [vmem:[%s3541_s1 + $0x110] ss:$8 sps:$4 sm:$0xff]   ;;  %v2596_v13 = vld [vmem:[%s3049_s17 + $0x34] ss:$12 sps:$4 sm:$0xff]   ;;  %v2625_v15 = vld [vmem:[%s3541_s1 + $0x124] ss:$8 sps:$4 sm:$0xff]  }
  0x25   : > { %1336 = vmatprep.subr.bf16.mxu1 %v2532_v29  ;;  %v2592_v12 = vld [vmem:[%s3049_s17 + $0x18] ss:$12 sps:$4 sm:$0xff]   ;;  %v2599_v14 = vld [vmem:[%s3542_s2 + $0x120] ss:$8 sps:$4 sm:$0xff]   ;;  %v2607_v16 = vld [vmem:[%s3542_s2 + $0x134] ss:$8 sps:$4 sm:$0xff]  }
  0x26   : > { %v2623_v17 = vld [vmem:[%s3541_s1 + $0x120] ss:$8 sps:$4 sm:$0xff]   ;;  %v2631_v18 = vld [vmem:[%s3541_s1 + $0x134] ss:$8 sps:$4 sm:$0xff]   ;;  %v2605_v19 = vld [vmem:[%s3542_s2 + $0x130] ss:$8 sps:$4 sm:$0xff]  }
  0x27   : > { %811 = vmatpush1.bf16.msra.mxu0 %v2534_v30  ;;  %v2598_v20 = vld [vmem:[%s3049_s17 + $0x30] ss:$12 sps:$4 sm:$0xff]   ;;  %v2616_v21 = vld [vmem:[%s3542_s2 + $0x144] ss:$8 sps:$4 sm:$0xff]   ;;  %v2614_v24 = vld [vmem:[%s3542_s2 + $0x140] ss:$8 sps:$4 sm:$0xff]  }
  0x28   : > { %1337 = vmatpush1.bf16.msra.mxu1 %v2535_v31  ;;  %812 = vmatprep.subr.bf16.mxu0 %v2536_v32  ;;  %v2629_v22 = vld [vmem:[%s3541_s1 + $0x130] ss:$8 sps:$4 sm:$0xff]   ;;  %v2637_v25 = vld [vmem:[%s3541_s1 + $0x144] ss:$8 sps:$4 sm:$0xff]   ;;  %v2628_v26 = vld [vmem:[%s3542_s2 + $0x154] ss:$8 sps:$4 sm:$0xff]  }
  0x29   : > { %1338 = vmatprep.subr.bf16.mxu1 %v2538_v33  ;;  %v2602_v23 = vld [vmem:[%s3049_s17 + $0x4c] ss:$12 sps:$4 sm:$0xff]   ;;  %v2635_v27 = vld [vmem:[%s3541_s1 + $0x140] ss:$8 sps:$4 sm:$0xff]   ;;  %v2643_v28 = vld [vmem:[%s3541_s1 + $0x154] ss:$8 sps:$4 sm:$0xff]  }
  0x2a   : > { %v2626_v29 = vld [vmem:[%s3542_s2 + $0x150] ss:$8 sps:$4 sm:$0xff]   ;;  %v2640_v30 = vld [vmem:[%s3542_s2 + $0x164] ss:$8 sps:$4 sm:$0xff]   ;;  %v2604_v32 = vld [vmem:[%s3049_s17 + $0x48] ss:$12 sps:$4 sm:$0xff]  }
  0x2b   : > { %813 = vmatpush1.bf16.msra.mxu0 %v2540_v34  ;;  %v2641_v31 = vld [vmem:[%s3541_s1 + $0x150] ss:$8 sps:$4 sm:$0xff]   ;;  %v2638_v34 = vld [vmem:[%s3542_s2 + $0x160] ss:$8 sps:$4 sm:$0xff]   ;;  %v2832_v48 = vmov 0  }
  0x2c   : > { %1339 = vmatpush1.bf16.msra.mxu1 %v2541_v35  ;;  %814 = vmatprep.subr.bf16.mxu0 %v2542_v36  ;;  %v2611_v33 = vld [vmem:[%s3049_s17 + $0x64] ss:$12 sps:$4 sm:$0xff]   ;;  %v2647_v36 = vld [vmem:[%s3541_s1 + $0x160] ss:$8 sps:$4 sm:$0xff]  }
  0x2d   : > { %1340 = vmatprep.subr.bf16.mxu1 %v2544_v37  ;;  %v2649_v35 = vld [vmem:[%s3541_s1 + $0x164] ss:$8 sps:$4 sm:$0xff]   ;;  %v2652_v37 = vld [vmem:[%s3542_s2 + $0x174] ss:$8 sps:$4 sm:$0xff]  }
  0x2f   : > { %815 = vmatpush1.bf16.msra.mxu0 %v2546_v38  ;;  %v2655_v38 = vld [vmem:[%s3541_s1 + $0x174] ss:$8 sps:$4 sm:$0xff]  }
  0x30   : > { %1341 = vmatpush1.bf16.msra.mxu1 %v2547_v39  ;;  %816 = vmatprep.subr.bf16.mxu0 %v2548_v40  ;;  %v2650_v39 = vld [vmem:[%s3542_s2 + $0x170] ss:$8 sps:$4 sm:$0xff]  }
  0x31   : > { %1342 = vmatprep.subr.bf16.mxu1 %v2550_v41  ;;  %v2653_v40 = vld [vmem:[%s3541_s1 + $0x170] ss:$8 sps:$4 sm:$0xff]   ;;  %v2613_v41 = vld [vmem:[%s3049_s17 + $0x60] ss:$12 sps:$4 sm:$0xff]  }
  0x33   : > { %817 = vmatpush1.bf16.msra.mxu0 %v2552_v42  ;;  %v2620_v42 = vld [vmem:[%s3049_s17 + $0x7c] ss:$12 sps:$4 sm:$0xff]  }
  0x34   : > { %1343 = vmatpush1.bf16.msra.mxu1 %v2553_v43  ;;  %818 = vmatprep.subr.bf16.mxu0 %v2554_v44  ;;  %v2622_v43 = vld [vmem:[%s3049_s17 + $0x78] ss:$12 sps:$4 sm:$0xff]   ;;  %v2632_v44 = vld [vmem:[%s3049_s17 + $0x94] ss:$12 sps:$4 sm:$0xff]  }
  0x35   : > { %1344 = vmatprep.subr.bf16.mxu1 %v2556_v45  ;;  %v2634_v45 = vld [vmem:[%s3049_s17 + $0x90] ss:$12 sps:$4 sm:$0xff]  }
  0x37   : > { %819 = vmatpush1.bf16.msra.mxu0 %v2558_v46  ;;  %v2644_v46 = vld [vmem:[%s3049_s17 + $0xac] ss:$12 sps:$4 sm:$0xff]  }
  0x38   : > { %1345 = vmatpush1.bf16.msra.mxu1 %v2559_v47  ;;  %820 = vmatprep.subr.bf16.mxu0 %v2560_v49  ;;  %v2646_v47 = vld [vmem:[%s3049_s17 + $0xa8] ss:$12 sps:$4 sm:$0xff]  }
  0x39   : > { %1346 = vmatprep.subr.bf16.mxu1 %v2562_v50  ;;  %v2656_v49 = vld [vmem:[%s3049_s17 + $0x8] ss:$12 sps:$4 sm:$0xff]   ;;  %v2657_v50 = vld [vmem:[%s3049_s17 + $0x20] ss:$12 sps:$4 sm:$0xff]  }
  0x3b   : > { %821 = vmatpush1.bf16.msra.mxu0 %v2564_v51  ;;  %v2658_v51 = vld [vmem:[%s3049_s17 + $0x38] ss:$12 sps:$4 sm:$0xff]  }
  0x3c   : > { %1347 = vmatpush1.bf16.msra.mxu1 %v2565_v52  ;;  %822 = vmatprep.subr.bf16.mxu0 %v2566_v53  ;;  %v2659_v52 = vld [vmem:[%s3049_s17 + $0x50] ss:$12 sps:$4 sm:$0xff]   ;;  %v2660_v53 = vld [vmem:[%s3049_s17 + $0x68] ss:$12 sps:$4 sm:$0xff]  }
  0x3d   : > { %1348 = vmatprep.subr.bf16.mxu1 %v2568_v54  ;;  %v2661_v54 = vld [vmem:[%s3049_s17 + $0x80] ss:$12 sps:$4 sm:$0xff]  }
  0x3f   : > { %823 = vmatpush1.bf16.msra.mxu0 %v2570_v55  ;;  %v2662_v55 = vld [vmem:[%s3049_s17 + $0x98] ss:$12 sps:$4 sm:$0xff]  }
  0x40   : > { %1349 = vmatpush1.bf16.msra.mxu1 %v2571_v56  ;;  %824 = vmatprep.subr.bf16.mxu0 %v2572_v57  ;;  %v2663_v56 = vld [vmem:[%s3049_s17 + $0xb0] ss:$12 sps:$4 sm:$0xff]   ;;  %v418_v57 = vlaneseq  ;;  %s3245_s17 = sadd.s32 %s2125_s8, %s2124_s21 }
  0x41   : > { %1350 = vmatprep.subr.bf16.mxu1 %v2574_v58  ;;  %s2126_s22 = sshll.u32 %s3245_s17, 2 }
  0x42   : > { %v419_v58 = vshrl.u32 %v418_v57, 7  ;;  %s3259_s10 = scalar_lea.vmem %s3545_s5, %s2126_s22  ;;  %s3377_s14 = scalar_lea.vmem %s3546_s6, %s2126_s22 }
  0x43   : > { %825 = vmatpush1.bf16.msra.mxu0 %v2576_v59  ;;  %v3302_v57 = vld [vmem:[%s3259_s10 + $0x20] sm:$0xff] }
  0x44   : > { %1351 = vmatpush1.bf16.msra.mxu1 %v2577_v60  ;;  %826 = vmatprep.subr.bf16.mxu0 %v2578_v61  ;;  %v420_v59 = vsub.s32 0, %v419_v58  ;;  %v1070_v60 = vld [vmem:[%s3544_s4] sm:$0x3]  ;;  %v424_v61 = vsub.s32 1, %v419_v58 }
  0x45   : > { %1352 = vmatprep.subr.bf16.mxu1 %v2580_v62 }
  0x46   : > { %v3231_v62 = vrot.slane %v1070_v60, %v420_v59 }
  0x47   : > { %827 = vmatpush1.bf16.msra.mxu0 %v2582_v63  ;;  %v3233_v63 = vrot.slane %v1070_v60, %v424_v61 }
  0x48   : > { %1353 = vmatpush1.bf16.msra.mxu1 %v2583_v0  ;;  %909 = vmatprep.subr.bf16.mxu0 %v2610_v2 }
  0x49   : > { %1435 = vmatprep.subr.bf16.mxu1 %v2589_v1 }
  0x4a   : > { %829 = vmatmul.mubr.bf16.vlgmr.msra.gmra.mrb[0].mxu0 %v2584_v3 }
  0x4b   : > { %1355 = vmatmul.mubr.bf16.vlgmr.msra.gmra.mrb[0].mxu1 %v2584_v3  ;;  %838 = vmatprep.mubr.bf16.mxu0 %v2590_v5 }
  0x4c   : > { %1436 = vmatpush1.bf16.msra.mxu1 %v2587_v4  ;;  %1364 = vmatprep.mubr.bf16.mxu1 %v2590_v5 }
  0x4d   : > { %1437 = vmatprep.subr.bf16.mxu1 %v2595_v6  ;;  %910 = vmatpush1.bf16.msra.mxu0 %v2608_v7 }
  0x4e   : > { %911 = vmatprep.subr.bf16.mxu0 %v2619_v8 }
  0x50   : > { %1438 = vmatpush1.bf16.msra.mxu1 %v2593_v9 }
  0x51   : > { %1439 = vmatprep.subr.bf16.mxu1 %v2601_v10  ;;  %912 = vmatpush1.bf16.msra.mxu0 %v2617_v11 }
  0x52   : > { %839 = vmatmul.mubr.bf16.gmra.mrb[4].mxu0 %v2592_v12  ;;  %913 = vmatprep.subr.bf16.mxu0 %v2625_v15 }
  0x53   : > { %1365 = vmatmul.mubr.bf16.gmra.mrb[4].mxu1 %v2592_v12  ;;  %848 = vmatprep.mubr.bf16.mxu0 %v2596_v13 }
  0x54   : > { %1374 = vmatprep.mubr.bf16.mxu1 %v2596_v13  ;;  %1440 = vmatpush1.bf16.msra.mxu1 %v2599_v14 }
  0x55   : > { %1441 = vmatprep.subr.bf16.mxu1 %v2607_v16  ;;  %914 = vmatpush1.bf16.msra.mxu0 %v2623_v17 }
  0x56   : > { %915 = vmatprep.subr.bf16.mxu0 %v2631_v18 }
  0x58   : > { %1442 = vmatpush1.bf16.msra.mxu1 %v2605_v19 }
  0x59   : > { %1443 = vmatprep.subr.bf16.mxu1 %v2616_v21  ;;  %916 = vmatpush1.bf16.msra.mxu0 %v2629_v22 }
  0x5a   : > { %849 = vmatmul.mubr.bf16.gmra.mrb[8].mxu0 %v2598_v20  ;;  %917 = vmatprep.subr.bf16.mxu0 %v2637_v25 }
  0x5b   : > { %1375 = vmatmul.mubr.bf16.gmra.mrb[8].mxu1 %v2598_v20  ;;  %858 = vmatprep.mubr.bf16.mxu0 %v2602_v23 }
  0x5c   : > { %1384 = vmatprep.mubr.bf16.mxu1 %v2602_v23  ;;  %1444 = vmatpush1.bf16.msra.mxu1 %v2614_v24 }
  0x5d   : > { %1445 = vmatprep.subr.bf16.mxu1 %v2628_v26  ;;  %918 = vmatpush1.bf16.msra.mxu0 %v2635_v27 }
  0x5e   : > { %919 = vmatprep.subr.bf16.mxu0 %v2643_v28  ;;  %v416_v28 = vld [vmem:[%s3543_s3] sm:$0x3] }
  0x60   : > { %1446 = vmatpush1.bf16.msra.mxu1 %v2626_v29  ;;  %v3274_v29 = vld [vmem:[%s3259_s10] sm:$0xff] }
  0x61   : > { %1447 = vmatprep.subr.bf16.mxu1 %v2640_v30  ;;  %920 = vmatpush1.bf16.msra.mxu0 %v2641_v31 }
  0x62   : > { %859 = vmatmul.mubr.bf16.gmra.mrb[12].mxu0 %v2604_v32  ;;  %921 = vmatprep.subr.bf16.mxu0 %v2649_v35 }
  0x63   : > { %1385 = vmatmul.mubr.bf16.gmra.mrb[12].mxu1 %v2604_v32  ;;  %868 = vmatprep.mubr.bf16.mxu0 %v2611_v33  ;;  %v3278_v32 = vld [vmem:[%s3259_s10 + $0x8] sm:$0xff] }
  0x64   : > { %1394 = vmatprep.mubr.bf16.mxu1 %v2611_v33  ;;  %1448 = vmatpush1.bf16.msra.mxu1 %v2638_v34  ;;  %v3281_v34 = vld [vmem:[%s3259_s10 + $0x10] sm:$0xff] }
  0x65   : > { %1449 = vmatprep.subr.bf16.mxu1 %v2652_v37  ;;  %922 = vmatpush1.bf16.msra.mxu0 %v2647_v36  ;;  %v3283_v37 = vrot.slane %v416_v28, %v420_v59 }
  0x66   : > { %923 = vmatprep.subr.bf16.mxu0 %v2655_v38  ;;  %v1788_v38 = vunpack.c.l.bf16 %v3274_v29 }
  0x68   : > { %1450 = vmatpush1.bf16.msra.mxu1 %v2650_v39  ;;  %v3286_v39 = vrot.slane %v416_v28, %v424_v61 }
  0x69   : > { %924 = vmatpush1.bf16.msra.mxu0 %v2653_v40 }
  0x6a   : > { %869 = vmatmul.mubr.bf16.gmra.mrb[16].mxu0 %v2613_v41 }
  0x6b   : > { %1395 = vmatmul.mubr.bf16.gmra.mrb[16].mxu1 %v2613_v41  ;;  %878 = vmatprep.mubr.bf16.mxu0 %v2620_v42 }
  0x6c   : > { %1404 = vmatprep.mubr.bf16.mxu1 %v2620_v42  ;;  %v1789_v42 = vunpack.c.h.bf16 %v3274_v29 }
  0x72   : > { %879 = vmatmul.mubr.bf16.gmra.mrb[20].mxu0 %v2622_v43 }
  0x73   : > { %1405 = vmatmul.mubr.bf16.gmra.mrb[20].mxu1 %v2622_v43  ;;  %888 = vmatprep.mubr.bf16.mxu0 %v2632_v44  ;;  %v1790_v43 = vunpack.c.l.bf16 %v3278_v32 }
  0x74   : > { %1414 = vmatprep.mubr.bf16.mxu1 %v2632_v44  ;;  %v3291_v44 = vld [vmem:[%s3259_s10 + $0x18] sm:$0xff] }
  0x7a   : > { %889 = vmatmul.mubr.bf16.gmra.mrb[24].mxu0 %v2634_v45 }
  0x7b   : > { %1415 = vmatmul.mubr.bf16.gmra.mrb[24].mxu1 %v2634_v45  ;;  %898 = vmatprep.mubr.bf16.mxu0 %v2644_v46 }
  0x7c   : > { %1424 = vmatprep.mubr.bf16.mxu1 %v2644_v46 }
  0x82   : > { %899 = vmatmul.mubr.bf16.gmra.mrb[28].mxu0 %v2646_v47 }
  0x83   : > { %1425 = vmatmul.mubr.bf16.gmra.mrb[28].mxu1 %v2646_v47  ;;  %941 = vmatprep.mubr.bf16.mxu0 %v2832_v48 }
  0x84   : > { %1467 = vmatprep.mubr.bf16.mxu1 %v2832_v48 }
  0x8a   : > { %942 = vmatmul.mubr.bf16.vlgmr.msra.gmra.mrb[0].mxu0 %v2656_v49 }
  0x8b   : > { %1468 = vmatmul.mubr.bf16.vlgmr.msra.gmra.mrb[0].mxu1 %v2656_v49  ;;  %951 = vmatprep.mubr.bf16.mxu0 %v2832_v48  ;;  %v1791_v49 = vunpack.c.h.bf16 %v3278_v32 }
  0x8c   : > { %1477 = vmatprep.mubr.bf16.mxu1 %v2832_v48 }
  0x92   : > { %952 = vmatmul.mubr.bf16.gmra.mrb[4].mxu0 %v2657_v50 }
  0x93   : > { %1478 = vmatmul.mubr.bf16.gmra.mrb[4].mxu1 %v2657_v50  ;;  %961 = vmatprep.mubr.bf16.mxu0 %v2832_v48  ;;  %v1792_v50 = vunpack.c.l.bf16 %v3281_v34 }
  0x94   : > { %1487 = vmatprep.mubr.bf16.mxu1 %v2832_v48 }
  0x9a   : > { %962 = vmatmul.mubr.bf16.gmra.mrb[8].mxu0 %v2658_v51 }
  0x9b   : > { %1488 = vmatmul.mubr.bf16.gmra.mrb[8].mxu1 %v2658_v51  ;;  %971 = vmatprep.mubr.bf16.mxu0 %v2832_v48 }
  0x9c   : > { %1497 = vmatprep.mubr.bf16.mxu1 %v2832_v48 }
  0xa2   : > { %972 = vmatmul.mubr.bf16.gmra.mrb[12].mxu0 %v2659_v52 }
  0xa3   : > { %1498 = vmatmul.mubr.bf16.gmra.mrb[12].mxu1 %v2659_v52  ;;  %981 = vmatprep.mubr.bf16.mxu0 %v2832_v48 }
  0xa4   : > { %1507 = vmatprep.mubr.bf16.mxu1 %v2832_v48 }
  0xaa   : > { %982 = vmatmul.mubr.bf16.gmra.mrb[16].mxu0 %v2660_v53 }
  0xab   : > { %1508 = vmatmul.mubr.bf16.gmra.mrb[16].mxu1 %v2660_v53  ;;  %991 = vmatprep.mubr.bf16.mxu0 %v2832_v48 }
  0xac   : > { %1517 = vmatprep.mubr.bf16.mxu1 %v2832_v48 }
  0xb2   : > { %992 = vmatmul.mubr.bf16.gmra.mrb[20].mxu0 %v2661_v54 }
  0xb3   : > { %1518 = vmatmul.mubr.bf16.gmra.mrb[20].mxu1 %v2661_v54  ;;  %1001 = vmatprep.mubr.bf16.mxu0 %v2832_v48 }
  0xb4   : > { %1527 = vmatprep.mubr.bf16.mxu1 %v2832_v48 }
  0xba   : > { %1002 = vmatmul.mubr.bf16.gmra.mrb[24].mxu0 %v2662_v55 }
  0xbb   : > { %1528 = vmatmul.mubr.bf16.gmra.mrb[24].mxu1 %v2662_v55  ;;  %1011 = vmatprep.mubr.bf16.mxu0 %v2832_v48 }
  0xbc   : > { %1537 = vmatprep.mubr.bf16.mxu1 %v2832_v48 }
  0xc2   : > { %1012 = vmatmul.mubr.bf16.gmra.mrb[28].mxu0 %v2663_v56 }
  0xc3   : > { %1538 = vmatmul.mubr.bf16.gmra.mrb[28].mxu1 %v2663_v56  ;;  %v1793_v56 = vunpack.c.h.bf16 %v3281_v34 }
 0x15d   : > { %v3235_v0 = vpop.f32.mrb[0].mxu0 }
 0x15e   : > { %v1469_v1 = vpop.f32.mrb[0].mxu1  ;;  %v3240_v3 = vpop.f32.mrb[1].mxu0 }
 0x15f   : > { %v2349_v2 = vadd.f32 %v1469_v1, %v3231_v62  ;;  %v1471_v4 = vpop.f32.mrb[1].mxu1  ;;  %v3243_v6 = vpop.f32.mrb[2].mxu0  ;;  %v1794_v1 = vunpack.c.l.bf16 %v3291_v44 }
 0x160   : > { %v2350_v5 = vadd.f32 %v1471_v4, %v3233_v63  ;;  %v1473_v7 = vpop.f32.mrb[2].mxu1  ;;  %v3248_v10 = vpop.f32.mrb[3].mxu0  ;;  %v3309_v4 = vld [vmem:[%s3259_s10 + $0x28] sm:$0xff] }
 0x161   : > { %v2251_v8 = vmul.f32 -1.442695, %v2349_v2  ;;  %v2351_v9 = vadd.f32 %v1473_v7, %v3231_v62  ;;  %v1475_v11 = vpop.f32.mrb[3].mxu1 }
 0x162   : > { %v2252_v12 = vmul.f32 -1.442695, %v2350_v5  ;;  %v2352_v13 = vadd.f32 %v1475_v11, %v3233_v63 }
 0x163   : > { %2664 = vpow2.f32 %v2251_v8  ;;  %v2253_v14 = vmul.f32 -1.442695, %v2351_v9  ;;  %v1795_v8 = vunpack.c.h.bf16 %v3291_v44 }
 0x164   : > { %2666 = vpow2.f32 %v2252_v12  ;;  %v2254_v15 = vmul.f32 -1.442695, %v2352_v13  ;;  %v3316_v12 = vld [vmem:[%s3259_s10 + $0x30] sm:$0xff]  ;;  %v1796_v13 = vunpack.c.l.bf16 %v3302_v57 }
 0x165   : > { %2668 = vpow2.f32 %v2253_v14  ;;  %v3252_v16 = vpop.f32.mrb[4].mxu0  ;;  %v1797_v14 = vunpack.c.h.bf16 %v3302_v57 }
 0x166   : > { %2670 = vpow2.f32 %v2254_v15  ;;  %v1479_v17 = vpop.f32.mrb[4].mxu1  ;;  %v3262_v19 = vpop.f32.mrb[5].mxu0 }
 0x167   : > { %v2353_v18 = vadd.f32 %v1479_v17, %v3231_v62  ;;  %v1481_v20 = vpop.f32.mrb[5].mxu1  ;;  %v3265_v22 = vpop.f32.mrb[6].mxu0  ;;  %v3322_v17 = vld [vmem:[%s3259_s10 + $0x38] sm:$0xff] }
 0x168   : > { %v2354_v21 = vadd.f32 %v1481_v20, %v3233_v63  ;;  %v1483_v23 = vpop.f32.mrb[6].mxu1  ;;  %v3268_v26 = vpop.f32.mrb[7].mxu0  ;;  %v1798_v20 = vunpack.c.l.bf16 %v3309_v4 }
 0x169   : > { %v2255_v24 = vmul.f32 -1.442695, %v2353_v18  ;;  %v2355_v25 = vadd.f32 %v1483_v23, %v3231_v62  ;;  %v1485_v27 = vpop.f32.mrb[7].mxu1 }
 0x16a   : > { %v2256_v30 = vmul.f32 -1.442695, %v2354_v21  ;;  %v2356_v31 = vadd.f32 %v1485_v27, %v3233_v63  ;;  %v1799_v21 = vunpack.c.h.bf16 %v3309_v4  ;;  %v1801_v27 = vunpack.c.h.bf16 %v3316_v12 }
 0x16b   : > { %2672 = vpow2.f32 %v2255_v24  ;;  %v2257_v33 = vmul.f32 -1.442695, %v2355_v25  ;;  %v1800_v25 = vunpack.c.l.bf16 %v3316_v12 }
 0x16c   : > { %2674 = vpow2.f32 %v2256_v30  ;;  %v2258_v35 = vmul.f32 -1.442695, %v2356_v31 }
 0x16d   : > { %v2665_v36 = vpop.eup %2664  ;;  %2676 = vpow2.f32 %v2257_v33  ;;  %v3293_v45 = vpop.f32.mrb[8].mxu0 }
 0x16e   : > { %v2667_v40 = vpop.eup %2666  ;;  %v1644_v41 = vadd.f32 1.0, %v2665_v36  ;;  %2678 = vpow2.f32 %v2258_v35  ;;  %v1489_v46 = vpop.f32.mrb[8].mxu1  ;;  %v1802_v35 = vunpack.c.l.bf16 %v3322_v17  ;;  %v1803_v36 = vunpack.c.h.bf16 %v3322_v17 }
 0x16f   : > { %v2669_v47 = vpop.eup %2668  ;;  %v1645_v48 = vadd.f32 1.0, %v2667_v40  ;;  %v2357_v51 = vadd.f32 %v1489_v46, %v3231_v62  ;;  %v3298_v52 = vpop.f32.mrb[9].mxu0 }
 0x170   : > { %v1491_v53 = vpop.f32.mrb[9].mxu1  ;;  %v2671_v54 = vpop.eup %2670  ;;  %2680 = vrcp.f32 %v1644_v41  ;;  %v1646_v55 = vadd.f32 1.0, %v2669_v47  ;;  %v2317_v41 = vadd.f32 %v3235_v0, %v3283_v37  ;;  %v2319_v0 = vadd.f32 %v3243_v6, %v3283_v37 }
 0x171   : > { %v2358_v58 = vadd.f32 %v1491_v53, %v3233_v63  ;;  %v3305_v59 = vpop.f32.mrb[10].mxu0  ;;  %v1493_v60 = vpop.f32.mrb[10].mxu1  ;;  %2682 = vrcp.f32 %v1645_v48  ;;  %v1647_v61 = vadd.f32 1.0, %v2671_v54  ;;  %v2259_v2 = vmul.f32 -1.442695, %v2357_v51 }
 0x172   : > { %v3311_v5 = vpop.f32.mrb[11].mxu0  ;;  %v1495_v7 = vpop.f32.mrb[11].mxu1  ;;  %2684 = vrcp.f32 %v1646_v55  ;;  %v2359_v11 = vadd.f32 %v1493_v60, %v3231_v62  ;;  %v2318_v54 = vadd.f32 %v3240_v3, %v3286_v39  ;;  %v2320_v3 = vadd.f32 %v3248_v10, %v3286_v39 }
 0x173   : > { %v2260_v9 = vmul.f32 -1.442695, %v2358_v58  ;;  %2686 = vrcp.f32 %v1647_v61  ;;  %v2360_v15 = vadd.f32 %v1495_v7, %v3233_v63 }
 0x174   : > { %2688 = vpow2.f32 %v2259_v2  ;;  %v2261_v18 = vmul.f32 -1.442695, %v2359_v11 }
 0x175   : > { %v2673_v23 = vpop.eup %2672  ;;  %2690 = vpow2.f32 %v2260_v9  ;;  %v2262_v24 = vmul.f32 -1.442695, %v2360_v15  ;;  %v3328_v31 = vpop.f32.mrb[12].mxu0 }
 0x176   : > { %v2675_v28 = vpop.eup %2674  ;;  %v1648_v30 = vadd.f32 1.0, %v2673_v23  ;;  %2692 = vpow2.f32 %v2261_v18  ;;  %v1499_v33 = vpop.f32.mrb[12].mxu1 }
 0x177   : > { %v2677_v40 = vpop.eup %2676  ;;  %v1649_v46 = vadd.f32 1.0, %v2675_v28  ;;  %2694 = vpow2.f32 %v2262_v24  ;;  %v2361_v47 = vadd.f32 %v1499_v33, %v3231_v62  ;;  %v3335_v48 = vpop.f32.mrb[13].mxu0 }
 0x178   : > { %v1501_v51 = vpop.f32.mrb[13].mxu1  ;;  %v2679_v53 = vpop.eup %2678  ;;  %2696 = vrcp.f32 %v1648_v30  ;;  %v1650_v55 = vadd.f32 1.0, %v2677_v40  ;;  %v2321_v30 = vadd.f32 %v3252_v16, %v3283_v37 }
 0x179   : > { %v2362_v58 = vadd.f32 %v1501_v51, %v3233_v63  ;;  %v3340_v60 = vpop.f32.mrb[14].mxu0  ;;  %v1503_v61 = vpop.f32.mrb[14].mxu1  ;;  %2698 = vrcp.f32 %v1649_v46  ;;  %v1651_v2 = vadd.f32 1.0, %v2679_v53  ;;  %v2263_v7 = vmul.f32 -1.442695, %v2361_v47 }
 0x17a   : > { %v3344_v9 = vpop.f32.mrb[15].mxu0  ;;  %v1505_v11 = vpop.f32.mrb[15].mxu1  ;;  %2700 = vrcp.f32 %v1650_v55  ;;  %v2363_v23 = vadd.f32 %v1503_v61, %v3231_v62  ;;  %v2322_v46 = vadd.f32 %v3262_v19, %v3286_v39 }
 0x17b   : > { %v2681_v15 = vpop.eup %2680  ;;  %v2264_v18 = vmul.f32 -1.442695, %v2362_v58  ;;  %2702 = vrcp.f32 %v1651_v2  ;;  %v2364_v6 = vadd.f32 %v1505_v11, %v3233_v63 }
 0x17c   : > { %v2683_v24 = vpop.eup %2682  ;;  %v1740_v28 = vmul.f32 %v2681_v15, %v2317_v41  ;;  %2704 = vpow2.f32 %v2263_v7  ;;  %v2265_v47 = vmul.f32 -1.442695, %v2363_v23 }
 0x17d   : > { %v2685_v33 = vpop.eup %2684  ;;  %v1741_v40 = vmul.f32 %v2683_v24, %v2318_v54  ;;  %2706 = vpow2.f32 %v2264_v18  ;;  %v2266_v41 = vmul.f32 -1.442695, %v2364_v6  ;;  %v2323_v54 = vadd.f32 %v3265_v22, %v3283_v37  ;;  %v3360_v61 = vpop.f32.mrb[16].mxu0 }
 0x17e   : > { %v2687_v10 = vpop.eup %2686  ;;  %v1820_v51 = vadd.f32 %v1788_v38, %v1740_v28  ;;  %v1742_v53 = vmul.f32 %v2685_v33, %v2319_v0  ;;  %2708 = vpow2.f32 %v2265_v47  ;;  %v1509_v19 = vpop.f32.mrb[16].mxu1 }
 0x17f   : > { %v2689_v55 = vpop.eup %2688  ;;  %v1821_v16 = vadd.f32 %v1789_v42, %v1741_v40  ;;  %v1743_v58 = vmul.f32 %v2687_v10, %v2320_v3  ;;  %2710 = vpow2.f32 %v2266_v41  ;;  %v3364_v11 = vpop.f32.mrb[17].mxu0  ;;  %v2324_v3 = vadd.f32 %v3268_v26, %v3286_v39 }
 0x180   : > { %v2691_v2 = vpop.eup %2690  ;;  %v1852_v7 = vmul.f32 0.70710677, %v1820_v51  ;;  %v1822_v38 = vadd.f32 %v1790_v43, %v1742_v53  ;;  %v1652_v0 = vadd.f32 1.0, %v2689_v55  ;;  %v1511_v29 = vpop.f32.mrb[17].mxu1  ;;  %v2365_v32 = vadd.f32 %v1509_v19, %v3231_v62 }
 0x181   : > { %v2693_v42 = vpop.eup %2692  ;;  %v1853_v15 = vmul.f32 0.70710677, %v1821_v16  ;;  %v1823_v22 = vadd.f32 %v1791_v49, %v1743_v58  ;;  %v1653_v18 = vadd.f32 1.0, %v2691_v2  ;;  %v3370_v23 = vpop.f32.mrb[18].mxu0  ;;  %v2325_v41 = vadd.f32 %v3293_v45, %v3283_v37 }
 0x182   : > { %v1513_v24 = vpop.f32.mrb[18].mxu1  ;;  %v2695_v28 = vpop.eup %2694  ;;  %v1854_v43 = vmul.f32 0.70710677, %v1822_v38  ;;  %2712 = vrcp.f32 %v1652_v0  ;;  %v1654_v6 = vadd.f32 1.0, %v2693_v42  ;;  %v2267_v55 = vmul.f32 -1.442695, %v2365_v32 }
 0x183   : > { %v3380_v49 = vpop.f32.mrb[19].mxu0  ;;  %v1515_v26 = vpop.f32.mrb[19].mxu1  ;;  %v2301_v40 = vpack.c.bf16 %v1853_v15, %v1852_v7  ;;  %v1855_v47 = vmul.f32 0.70710677, %v1823_v22  ;;  %2714 = vrcp.f32 %v1653_v18  ;;  %v1655_v10 = vadd.f32 1.0, %v2695_v28 }
 0x184   : > { %v2697_v33 = vpop.eup %2696  ;;  %2716 = vrcp.f32 %v1654_v6  ;;  %v2366_v2 = vadd.f32 %v1511_v29, %v3233_v63 }
 0x185   : > { %v2699_v51 = vpop.eup %2698  ;;  %v1744_v53 = vmul.f32 %v2697_v33, %v2321_v30  ;;  %1980 = vst [vmem:[%s3377_s14] sm:$0xff] %v2301_v40  ;;  %v2302_v58 = vpack.c.bf16 %v1855_v47, %v1854_v43  ;;  %2718 = vrcp.f32 %v1655_v10  ;;  %v2326_v30 = vadd.f32 %v3298_v52, %v3286_v39  ;;  %v3394_v18 = vpop.f32.mrb[20].mxu0 }
 0x186   : > { %v2701_v16 = vpop.eup %2700  ;;  %v1745_v19 = vmul.f32 %v2699_v51, %v2322_v46  ;;  %2720 = vpow2.f32 %v2267_v55  ;;  %v2268_v22 = vmul.f32 -1.442695, %v2366_v2  ;;  %v2367_v46 = vadd.f32 %v1513_v24, %v3231_v62  ;;  %v1519_v29 = vpop.f32.mrb[20].mxu1 }
 0x187   : > { %v2703_v38 = vpop.eup %2702  ;;  %v1824_v7 = vadd.f32 %v1792_v50, %v1744_v53  ;;  %v1746_v0 = vmul.f32 %v2701_v16, %v2323_v54  ;;  %1981 = vst [vmem:[%s3377_s14 + $0x8] sm:$0xff] %v2302_v58  ;;  %v2327_v52 = vadd.f32 %v3305_v59, %v3283_v37  ;;  %v3400_v6 = vpop.f32.mrb[21].mxu0  ;;  %v2369_v2 = vadd.f32 %v1519_v29, %v3231_v62 }
 0x188   : > { %v2705_v42 = vpop.eup %2704  ;;  %v1825_v45 = vadd.f32 %v1793_v56, %v1745_v19  ;;  %v1747_v15 = vmul.f32 %v2703_v38, %v2324_v3  ;;  %v1521_v34 = vpop.f32.mrb[21].mxu1  ;;  %2722 = vpow2.f32 %v2268_v22  ;;  %v2269_v59 = vmul.f32 -1.442695, %v2367_v46 }
 0x189   : > { %v2707_v28 = vpop.eup %2706  ;;  %v1856_v43 = vmul.f32 0.70710677, %v1824_v7  ;;  %v1826_v50 = vadd.f32 %v1794_v1, %v1746_v0  ;;  %v1656_v54 = vadd.f32 1.0, %v2705_v42  ;;  %v3404_v33 = vpop.f32.mrb[22].mxu0  ;;  %v2368_v19 = vadd.f32 %v1515_v26, %v3233_v63 }
 0x18a   : > { %v2709_v56 = vpop.eup %2708  ;;  %v1857_v3 = vmul.f32 0.70710677, %v1825_v45  ;;  %v1827_v24 = vadd.f32 %v1795_v8, %v1747_v15  ;;  %v1657_v32 = vadd.f32 1.0, %v2707_v28  ;;  %v1523_v40 = vpop.f32.mrb[22].mxu1  ;;  %v2328_v8 = vadd.f32 %v3311_v5, %v3286_v39 }
 0x18b   : > { %v2711_v47 = vpop.eup %2710  ;;  %v1858_v10 = vmul.f32 0.70710677, %v1826_v50  ;;  %2724 = vrcp.f32 %v1656_v54  ;;  %v1658_v1 = vadd.f32 1.0, %v2709_v56  ;;  %v3406_v51 = vpop.f32.mrb[23].mxu0  ;;  %v2329_v42 = vadd.f32 %v3328_v31, %v3283_v37 }
 0x18c   : > { %v2303_v53 = vpack.c.bf16 %v1857_v3, %v1856_v43  ;;  %v1859_v55 = vmul.f32 0.70710677, %v1827_v24  ;;  %2726 = vrcp.f32 %v1657_v32  ;;  %v1659_v16 = vadd.f32 1.0, %v2711_v47  ;;  %v1525_v58 = vpop.f32.mrb[23].mxu1  ;;  %v2713_v44 = vpop.eup %2712 }
 0x18d   : > { %2728 = vrcp.f32 %v1658_v1  ;;  %v2715_v38 = vpop.eup %2714  ;;  %v1748_v0 = vmul.f32 %v2713_v44, %v2325_v41  ;;  %v2270_v22 = vmul.f32 -1.442695, %v2368_v19  ;;  %v2271_v46 = vmul.f32 -1.442695, %v2369_v2  ;;  %v3421_v43 = vpop.f32.mrb[24].mxu0  ;;  %v3440_v19 = vld [vmem:[%s3259_s10 + $0x40] sm:$0xff] }
 0x18e   : > { %1982 = vst [vmem:[%s3377_s14 + $0x10] sm:$0xff] %v2303_v53  ;;  %v2304_v7 = vpack.c.bf16 %v1859_v55, %v1858_v10  ;;  %2730 = vrcp.f32 %v1659_v16  ;;  %v2717_v45 = vpop.eup %2716  ;;  %v1749_v15 = vmul.f32 %v2715_v38, %v2326_v30  ;;  %v2330_v29 = vadd.f32 %v3335_v48, %v3286_v39  ;;  %v1529_v31 = vpop.f32.mrb[24].mxu1 }
 0x18f   : > { %2732 = vpow2.f32 %v2269_v59  ;;  %v2719_v5 = vpop.eup %2718  ;;  %v1828_v26 = vadd.f32 %v1796_v13, %v1748_v0  ;;  %v1750_v28 = vmul.f32 %v2717_v45, %v2327_v52  ;;  %v2370_v41 = vadd.f32 %v1521_v34, %v3233_v63  ;;  %v3426_v3 = vpop.f32.mrb[25].mxu0 }
 0x190   : > { %1983 = vst [vmem:[%s3377_s14 + $0x18] sm:$0xff] %v2304_v7  ;;  %v2721_v50 = vpop.eup %2720  ;;  %v1829_v30 = vadd.f32 %v1797_v14, %v1749_v15  ;;  %v1751_v54 = vmul.f32 %v2719_v5, %v2328_v8  ;;  %2734 = vpow2.f32 %v2270_v22  ;;  %v2371_v56 = vadd.f32 %v1523_v40, %v3231_v62  ;;  %v1531_v13 = vpop.f32.mrb[25].mxu1 }
 0x191   : > { %v1860_v52 = vmul.f32 0.70710677, %v1828_v26  ;;  %v1830_v48 = vadd.f32 %v1798_v20, %v1750_v28  ;;  %v1660_v24 = vadd.f32 1.0, %v2721_v50  ;;  %2736 = vpow2.f32 %v2271_v46  ;;  %v3430_v34 = vpop.f32.mrb[26].mxu0  ;;  %v1533_v32 = vpop.f32.mrb[26].mxu1 }
 0x192   : > { %v1861_v47 = vmul.f32 0.70710677, %v1829_v30  ;;  %v1831_v57 = vadd.f32 %v1799_v21, %v1751_v54  ;;  %v2272_v14 = vmul.f32 -1.442695, %v2370_v41  ;;  %v2273_v10 = vmul.f32 -1.442695, %v2371_v56  ;;  %v2723_v40 = vpop.eup %2722 }
 0x193   : > { %v1862_v1 = vmul.f32 0.70710677, %v1830_v48  ;;  %v2331_v59 = vadd.f32 %v3340_v60, %v3283_v37  ;;  %2738 = vrcp.f32 %v1660_v24  ;;  %v2372_v20 = vadd.f32 %v1525_v58, %v3233_v63  ;;  %v3437_v53 = vpop.f32.mrb[27].mxu0  ;;  %v1535_v55 = vpop.f32.mrb[27].mxu1 }
 0x194   : > { %v2305_v44 = vpack.c.bf16 %v1861_v47, %v1860_v52  ;;  %v1863_v8 = vmul.f32 0.70710677, %v1831_v57  ;;  %v1661_v4 = vadd.f32 1.0, %v2723_v40  ;;  %2740 = vpow2.f32 %v2272_v14 }
 0x195   : > { %v2725_v16 = vpop.eup %2724  ;;  %v2332_v38 = vadd.f32 %v3344_v9, %v3286_v39  ;;  %2742 = vpow2.f32 %v2273_v10  ;;  %v2274_v60 = vmul.f32 -1.442695, %v2372_v20  ;;  %v2373_v45 = vadd.f32 %v1529_v31, %v3231_v62  ;;  %v3449_v5 = vpop.f32.mrb[28].mxu0 }
 0x196   : > { %v2727_v21 = vpop.eup %2726  ;;  %v1752_v2 = vmul.f32 %v2725_v16, %v2329_v42  ;;  %1984 = vst [vmem:[%s3377_s14 + $0x20] sm:$0xff] %v2305_v44  ;;  %v2306_v58 = vpack.c.bf16 %v1863_v8, %v1862_v1  ;;  %2744 = vrcp.f32 %v1661_v4  ;;  %v1804_v42 = vunpack.c.l.bf16 %v3440_v19  ;;  %v1539_v9 = vpop.f32.mrb[28].mxu1 }
 0x197   : > { %v2729_v7 = vpop.eup %2728  ;;  %v1753_v0 = vmul.f32 %v2727_v21, %v2330_v29  ;;  %2746 = vpow2.f32 %v2274_v60  ;;  %v2275_v41 = vmul.f32 -1.442695, %v2373_v45  ;;  %v2374_v31 = vadd.f32 %v1531_v13, %v3233_v63  ;;  %v3455_v50 = vpop.f32.mrb[29].mxu0 }
 0x198   : > { %v2731_v15 = vpop.eup %2730  ;;  %v1832_v22 = vadd.f32 %v1800_v25, %v1752_v2  ;;  %v1754_v46 = vmul.f32 %v2729_v7, %v2331_v59  ;;  %1985 = vst [vmem:[%s3377_s14 + $0x28] sm:$0xff] %v2306_v58  ;;  %v1541_v30 = vpop.f32.mrb[29].mxu1  ;;  %v2333_v56 = vadd.f32 %v3360_v61, %v3283_v37  ;;  %v2375_v61 = vadd.f32 %v1533_v32, %v3231_v62  ;;  %v1781_v32 = vld [vmem:[%s3259_s10 + $0x48] sm:$0xff] }
 0x199   : > { %v2733_v26 = vpop.eup %2732  ;;  %v1833_v28 = vadd.f32 %v1801_v27, %v1753_v0  ;;  %v1755_v29 = vmul.f32 %v2731_v15, %v2332_v38  ;;  %v3461_v48 = vpop.f32.mrb[30].mxu0  ;;  %2748 = vpow2.f32 %v2275_v41  ;;  %v2276_v13 = vmul.f32 -1.442695, %v2374_v31 }
 0x19a   : > { %v1864_v25 = vmul.f32 0.70710677, %v1832_v22  ;;  %v1834_v54 = vadd.f32 %v1802_v35, %v1754_v46  ;;  %v1662_v52 = vadd.f32 1.0, %v2733_v26  ;;  %v1543_v24 = vpop.f32.mrb[30].mxu1  ;;  %v2735_v12 = vpop.eup %2734  ;;  %v1805_v17 = vunpack.c.h.bf16 %v3440_v19  ;;  %v3478_v26 = vld [vmem:[%s3259_s10 + $0x50] sm:$0xff] }
 0x19b   : > { %v1865_v27 = vmul.f32 0.70710677, %v1833_v28  ;;  %v1835_v47 = vadd.f32 %v1803_v36, %v1755_v29  ;;  %v3465_v57 = vpop.f32.mrb[31].mxu0  ;;  %v1545_v14 = vpop.f32.mrb[31].mxu1  ;;  %v1663_v40 = vadd.f32 1.0, %v2735_v12  ;;  %v2376_v44 = vadd.f32 %v1535_v55, %v3233_v63 }
 0x19c   : > { %v2737_v10 = vpop.eup %2736  ;;  %v1866_v35 = vmul.f32 0.70710677, %v1834_v54  ;;  %2750 = vrcp.f32 %v1662_v52  ;;  %v2277_v36 = vmul.f32 -1.442695, %v2375_v61  ;;  %v2334_v2 = vadd.f32 %v3364_v11, %v3286_v39 }
 0x19d   : > { %v2307_v1 = vpack.c.bf16 %v1865_v27, %v1864_v25  ;;  %v1867_v59 = vmul.f32 0.70710677, %v1835_v47  ;;  %v1664_v20 = vadd.f32 1.0, %v2737_v10  ;;  %2752 = vpow2.f32 %v2276_v13  ;;  %v2739_v16 = vpop.eup %2738 }
 0x19e   : > { %2754 = vrcp.f32 %v1663_v40  ;;  %v2741_v8 = vpop.eup %2740  ;;  %v1756_v21 = vmul.f32 %v2739_v16, %v2333_v56  ;;  %v2278_v7 = vmul.f32 -1.442695, %v2376_v44  ;;  %v2377_v19 = vadd.f32 %v1539_v9, %v3231_v62 }
 0x19f   : > { %1986 = vst [vmem:[%s3377_s14 + $0x30] sm:$0xff] %v2307_v1  ;;  %v2308_v4 = vpack.c.bf16 %v1867_v59, %v1866_v35  ;;  %2756 = vrcp.f32 %v1664_v20  ;;  %v2743_v38 = vpop.eup %2742  ;;  %v1665_v60 = vadd.f32 1.0, %v2741_v8  ;;  %v2378_v45 = vadd.f32 %v1541_v30, %v3233_v63  ;;  %v1783_v59 = vld [vmem:[%s3259_s10 + $0x58] sm:$0xff] }
 0x1a0   : > { %2758 = vpow2.f32 %v2277_v36  ;;  %v2745_v58 = vpop.eup %2744  ;;  %v1836_v0 = vadd.f32 %v1804_v42, %v1756_v21  ;;  %v1666_v55 = vadd.f32 1.0, %v2743_v38  ;;  %v1806_v46 = vunpack.c.l.bf16 %v1781_v32 }
 0x1a1   : > { %1987 = vst [vmem:[%s3377_s14 + $0x38] sm:$0xff] %v2308_v4  ;;  %v2747_v15 = vpop.eup %2746  ;;  %v1757_v22 = vmul.f32 %v2745_v58, %v2334_v2  ;;  %2760 = vrcp.f32 %v1665_v60  ;;  %v2279_v11 = vmul.f32 -1.442695, %v2377_v19  ;;  %v1807_v28 = vunpack.c.h.bf16 %v1781_v32 }
 0x1a2   : > { %2762 = vrcp.f32 %v1666_v55  ;;  %v1667_v29 = vadd.f32 1.0, %v2747_v15  ;;  %v2280_v41 = vmul.f32 -1.442695, %v2378_v45  ;;  %v1868_v31 = vmul.f32 0.70710677, %v1836_v0 }
 0x1a3   : > { %v1837_v25 = vadd.f32 %v1805_v17, %v1757_v22  ;;  %2764 = vpow2.f32 %v2278_v7  ;;  %v2379_v9 = vadd.f32 %v1543_v24, %v3231_v62  ;;  %v2749_v42 = vpop.eup %2748  ;;  %v2335_v30 = vadd.f32 %v3370_v23, %v3283_v37  ;;  %v1784_v7 = vld [vmem:[%s3259_s10 + $0x60] sm:$0xff] }
 0x1a4   : > { %v1808_v54 = vunpack.c.l.bf16 %v3478_v26  ;;  %2766 = vrcp.f32 %v1667_v29  ;;  %v2380_v56 = vadd.f32 %v1545_v14, %v3233_v63  ;;  %v1668_v27 = vadd.f32 1.0, %v2749_v42 }
 0x1a5   : > { %v1869_v12 = vmul.f32 0.70710677, %v1837_v25  ;;  %2768 = vpow2.f32 %v2279_v11  ;;  %v2281_v47 = vmul.f32 -1.442695, %v2379_v9  ;;  %v2336_v62 = vadd.f32 %v3380_v49, %v3286_v39 }
 0x1a6   : > { %v2751_v52 = vpop.eup %2750  ;;  %2770 = vpow2.f32 %v2280_v41  ;;  %v2282_v24 = vmul.f32 -1.442695, %v2380_v56  ;;  %v2337_v40 = vadd.f32 %v3394_v18, %v3283_v37  ;;  %v2338_v49 = vadd.f32 %v3400_v6, %v3286_v39 }
 0x1a7   : > { %v2753_v13 = vpop.eup %2752  ;;  %v1758_v10 = vmul.f32 %v2751_v52, %v2335_v30  ;;  %v2309_v35 = vpack.c.bf16 %v1869_v12, %v1868_v31  ;;  %2772 = vrcp.f32 %v1668_v27  ;;  %v1809_v17 = vunpack.c.h.bf16 %v3478_v26 }
 0x1a8   : > { %v2755_v23 = vpop.eup %2754  ;;  %v1669_v63 = vadd.f32 1.0, %v2753_v13  ;;  %2774 = vpow2.f32 %v2281_v47  ;;  %v2339_v21 = vadd.f32 %v3404_v33, %v3283_v37  ;;  %v1810_v2 = vunpack.c.l.bf16 %v1783_v59 }
 0x1a9   : > { %v2757_v14 = vpop.eup %2756  ;;  %v1838_v61 = vadd.f32 %v1806_v46, %v1758_v10  ;;  %v1759_v1 = vmul.f32 %v2755_v23, %v2336_v62  ;;  %1988 = vst [vmem:[%s3377_s14 + $0x40] sm:$0xff] %v2309_v35  ;;  %v2340_v58 = vadd.f32 %v3406_v51, %v3286_v39  ;;  %v1811_v0 = vunpack.c.h.bf16 %v1783_v59 }
 0x1aa   : > { %v2759_v20 = vpop.eup %2758  ;;  %v1760_v16 = vmul.f32 %v2757_v14, %v2337_v40  ;;  %2776 = vrcp.f32 %v1669_v63  ;;  %v2341_v31 = vadd.f32 %v3421_v43, %v3283_v37  ;;  %v1813_v30 = vunpack.c.h.bf16 %v1784_v7 }
 0x1ab   : > { %v1870_v36 = vmul.f32 0.70710677, %v1838_v61  ;;  %v1839_v44 = vadd.f32 %v1807_v28, %v1759_v1  ;;  %v1670_v18 = vadd.f32 1.0, %v2759_v20  ;;  %2778 = vpow2.f32 %v2282_v24  ;;  %v2761_v8 = vpop.eup %2760 }
 0x1ac   : > { %v1840_v4 = vadd.f32 %v1808_v54, %v1760_v16  ;;  %v2763_v32 = vpop.eup %2762  ;;  %v1761_v60 = vmul.f32 %v2761_v8, %v2338_v49  ;;  %v1812_v28 = vunpack.c.l.bf16 %v1784_v7  ;;  %v1785_v54 = vld [vmem:[%s3259_s10 + $0x68] sm:$0xff]  ;;  %v2342_v47 = vadd.f32 %v3426_v3, %v3286_v39  ;;  %v1786_v16 = vld [vmem:[%s3259_s10 + $0x70] sm:$0xff] }
 0x1ad   : > { %v1871_v38 = vmul.f32 0.70710677, %v1839_v44  ;;  %2780 = vrcp.f32 %v1670_v18  ;;  %v2765_v6 = vpop.eup %2764  ;;  %v1762_v19 = vmul.f32 %v2763_v32, %v2339_v21  ;;  %v1814_v35 = vunpack.c.l.bf16 %v1785_v54  ;;  %v1787_v21 = vld [vmem:[%s3259_s10 + $0x78] sm:$0xff] }
 0x1ae   : > { %v2767_v55 = vpop.eup %2766  ;;  %v1872_v15 = vmul.f32 0.70710677, %v1840_v4  ;;  %v1841_v22 = vadd.f32 %v1809_v17, %v1761_v60  ;;  %v1671_v46 = vadd.f32 1.0, %v2765_v6  ;;  %v2343_v63 = vadd.f32 %v3430_v34, %v3283_v37 }
 0x1af   : > { %v2310_v45 = vpack.c.bf16 %v1871_v38, %v1870_v36  ;;  %v2769_v33 = vpop.eup %2768  ;;  %v1842_v26 = vadd.f32 %v1810_v2, %v1762_v19  ;;  %v1763_v11 = vmul.f32 %v2767_v55, %v2340_v58  ;;  %v2344_v17 = vadd.f32 %v3437_v53, %v3286_v39 }
 0x1b0   : > { %v2771_v29 = vpop.eup %2770  ;;  %v1873_v41 = vmul.f32 0.70710677, %v1841_v22  ;;  %2782 = vrcp.f32 %v1671_v46  ;;  %v1672_v25 = vadd.f32 1.0, %v2769_v33  ;;  %v1815_v36 = vunpack.c.h.bf16 %v1785_v54 }
 0x1b1   : > { %1989 = vst [vmem:[%s3377_s14 + $0x48] sm:$0xff] %v2310_v45  ;;  %v2773_v51 = vpop.eup %2772  ;;  %v1874_v9 = vmul.f32 0.70710677, %v1842_v26  ;;  %v1843_v42 = vadd.f32 %v1811_v0, %v1763_v11  ;;  %v1673_v56 = vadd.f32 1.0, %v2771_v29  ;;  %v2345_v8 = vadd.f32 %v3449_v5, %v3283_v37 }
 0x1b2   : > { %v2775_v52 = vpop.eup %2774  ;;  %v2311_v12 = vpack.c.bf16 %v1873_v41, %v1872_v15  ;;  %v1764_v27 = vmul.f32 %v2773_v51, %v2341_v31  ;;  %2784 = vrcp.f32 %v1672_v25  ;;  %v1816_v4 = vunpack.c.l.bf16 %v1786_v16 }
 0x1b3   : > { %v1875_v10 = vmul.f32 0.70710677, %v1843_v42  ;;  %2786 = vrcp.f32 %v1673_v56  ;;  %v1674_v43 = vadd.f32 1.0, %v2775_v52  ;;  %v2346_v32 = vadd.f32 %v3455_v50, %v3286_v39 }
 0x1b4   : > { %v2777_v13 = vpop.eup %2776  ;;  %1990 = vst [vmem:[%s3377_s14 + $0x50] sm:$0xff] %v2311_v12  ;;  %v1844_v24 = vadd.f32 %v1812_v28, %v1764_v27  ;;  %v1817_v38 = vunpack.c.h.bf16 %v1786_v16  ;;  %v2347_v58 = vadd.f32 %v3461_v48, %v3283_v37  ;;  %v1818_v0 = vunpack.c.l.bf16 %v1787_v21 }
 0x1b5   : > { %v2779_v62 = vpop.eup %2778  ;;  %v1765_v23 = vmul.f32 %v2777_v13, %v2342_v47  ;;  %v2312_v40 = vpack.c.bf16 %v1875_v10, %v1874_v9  ;;  %2788 = vrcp.f32 %v1674_v43  ;;  %v2348_v50 = vadd.f32 %v3465_v57, %v3286_v39 }
 0x1b6   : > { %v1675_v14 = vadd.f32 1.0, %v2779_v62  ;;  %v1876_v3 = vmul.f32 0.70710677, %v1844_v24  ;;  %v1819_v46 = vunpack.c.h.bf16 %v1787_v21 }
 0x1b7   : > { %v2781_v61 = vpop.eup %2780  ;;  %v1845_v1 = vadd.f32 %v1813_v30, %v1765_v23  ;;  %1991 = vst [vmem:[%s3377_s14 + $0x58] sm:$0xff] %v2312_v40 }
 0x1b8   : > { %v1766_v59 = vmul.f32 %v2781_v61, %v2343_v63  ;;  %2790 = vrcp.f32 %v1675_v14 }
 0x1b9   : > { %v1877_v20 = vmul.f32 0.70710677, %v1845_v1 }
 0x1ba   : > { %v1846_v49 = vadd.f32 %v1814_v35, %v1766_v59  ;;  %v2783_v44 = vpop.eup %2782 }
 0x1bb   : > { %v2313_v18 = vpack.c.bf16 %v1877_v20, %v1876_v3  ;;  %v1767_v34 = vmul.f32 %v2783_v44, %v2344_v17 }
 0x1bc   : > { %v2785_v2 = vpop.eup %2784  ;;  %v1878_v7 = vmul.f32 0.70710677, %v1846_v49 }
 0x1bd   : > { %1992 = vst [vmem:[%s3377_s14 + $0x60] sm:$0xff] %v2313_v18  ;;  %v2787_v60 = vpop.eup %2786  ;;  %v1847_v6 = vadd.f32 %v1815_v36, %v1767_v34  ;;  %v1768_v19 = vmul.f32 %v2785_v2, %v2345_v8 }
 0x1be   : > { %v1769_v53 = vmul.f32 %v2787_v60, %v2346_v32 }
 0x1bf   : > { %v2789_v55 = vpop.eup %2788  ;;  %v1879_v5 = vmul.f32 0.70710677, %v1847_v6  ;;  %v1848_v45 = vadd.f32 %v1816_v4, %v1768_v19 }
 0x1c0   : > { %v1849_v15 = vadd.f32 %v1817_v38, %v1769_v53  ;;  %v1770_v22 = vmul.f32 %v2789_v55, %v2347_v58 }
 0x1c1   : > { %v2314_v26 = vpack.c.bf16 %v1879_v5, %v1878_v7  ;;  %v1880_v11 = vmul.f32 0.70710677, %v1848_v45 }
 0x1c2   : > { %v2791_v33 = vpop.eup %2790  ;;  %v1881_v28 = vmul.f32 0.70710677, %v1849_v15  ;;  %v1850_v29 = vadd.f32 %v1818_v0, %v1770_v22 }
 0x1c3   : > { %v1771_v41 = vmul.f32 %v2791_v33, %v2348_v50  ;;  %1993 = vst [vmem:[%s3377_s14 + $0x68] sm:$0xff] %v2314_v26 }
 0x1c4   : > { %v2315_v37 = vpack.c.bf16 %v1881_v28, %v1880_v11  ;;  %v1882_v48 = vmul.f32 0.70710677, %v1850_v29 }
 0x1c5   : > { %v1851_v31 = vadd.f32 %v1819_v46, %v1771_v41 }
 0x1c6   : > { %1994 = vst [vmem:[%s3377_s14 + $0x70] sm:$0xff] %v2315_v37 }
 0x1c7   : > { %v1883_v25 = vmul.f32 0.70710677, %v1851_v31 }
 0x1c9   : > { %v2316_v51 = vpack.c.bf16 %v1883_v25, %v1882_v48 }
 0x1cb   : > { %1995 = vst [vmem:[%s3377_s14 + $0x78] sm:$0xff] %v2316_v51 }
 0x1cc PF: > { %s16_s25 = sadd.s32 1, %s2830_s25   ;;  %s3547_s21 = smov %s2822_s23 }
 0x1cd   : > { %p13_p7 = scmp.ge.s32.totalorder %s16_s25, 6   ;;  %s3548_s22 = smov %s2826_s24 }
 0x1ce   : > { %s3549_s23 = smov %s3552_s26  ;;  %s3550_s24 = smov %s3556_s27 }
 0x1cf   :  { %15 = sbr.rel (!%p13_p7) target bundleno = 3 (0x3), region = 77 }

// kernel: fconv_encoder_forward.11
= control target key start
LH: loop header
LB: loop body
LE: loop exit
PB: predicated region body
PF: predicated region fallthrough
CT: control target
= control target key end

     0   :  { %s1331_s12 = smov 0   ;;  %s1489_s0 = inlined_call_operand.vmem [shape: bf16[512,256], index: 0, kind: input, shape index: {}]   ;;  %s1490_s1 = inlined_call_operand.vmem [shape: bf16[256,128], index: 1, kind: input, shape index: {}]   ;;  %s1491_s2 = inlined_call_operand.vmem [shape: f32[1,128], index: 2, kind: input, shape index: {}]   ;;  %s1492_s3 = inlined_call_operand.vmem [shape: bf16[512,128], index: 3, kind: output, shape index: {}]  }
   0x1 LB: > { %s882_s13 = sadd.s32 4294967295, %s1309_s12   ;;  %p886_p0 = scmp.ge.s32.totalorder %s1309_s12, 1  ;;  %s1309_s12 = sphi %s1331_s12, %s13_s12  }
   0x2   : > { %p139_p1 = scmp.lt.s32.totalorder %s1309_s12, 3 }
   0x4   : > { %p140_p2 = pnand %p886_p0, %p139_p1 }
   0x5   : > { %v1239_v0 = vld [vmem:[%s1490_s1 + $0x40] sm:$0xff] (!%p140_p2)   ;;  %s887_s16 = sshll.u32 (!%p140_p2), %s882_s13, 5  ;;  %v1241_v2 = vld [vmem:[%s1490_s1 + $0x48] sm:$0xff] (!%p140_p2)   ;;  %v1243_v4 = vld [vmem:[%s1490_s1 + $0x50] sm:$0xff] (!%p140_p2)  }
   0x6   : > { %143 = sbr.rel (%p140_p2) target bundleno = 316 (0x13c), region = 32  ;;  %v1240_v1 = vld [vmem:[%s1490_s1] sm:$0xff] (!%p140_p2)   ;;  %1103 = vmatprep.subr.bf16.mxu0 (!%p140_p2), %v1239_v0  ;;  %1215 = vmatprep.subr.bf16.mxu1 (!%p140_p2), %v1239_v0  ;;  %v1242_v3 = vld [vmem:[%s1490_s1 + $0x8] sm:$0xff] (!%p140_p2)   ;;  %p165_p3 = scmp.lt.s32.totalorder (!%p140_p2), %s887_s16, 63  ;;  %v1244_v5 = vld [vmem:[%s1490_s1 + $0x10] sm:$0xff] (!%p140_p2)  }
   0x7   : > { %1104 = vmatpush3.bf16.msra.mxu0 (!%p140_p2), %v1240_v1  ;;  %1223 = vmatpush3.bf16.msra.mxu1 (!%p140_p2), %v1240_v1  ;;  %v1245_v6 = vld [vmem:[%s1490_s1 + $0x58] sm:$0xff] (!%p140_p2)   ;;  %v1247_v8 = vld [vmem:[%s1490_s1 + $0x60] sm:$0xff] (!%p140_p2)   ;;  %v1249_v10 = vld [vmem:[%s1490_s1 + $0x68] sm:$0xff] (!%p140_p2)  }
   0x8   : > { %1105 = vmatprep.subr.bf16.mxu0 (!%p140_p2), %v1241_v2  ;;  %1216 = vmatprep.subr.bf16.mxu1 (!%p140_p2), %v1241_v2  ;;  %v1246_v7 = vld [vmem:[%s1490_s1 + $0x18] sm:$0xff] (!%p140_p2)   ;;  %v1248_v9 = vld [vmem:[%s1490_s1 + $0x20] sm:$0xff] (!%p140_p2)   ;;  %v1250_v13 = vld [vmem:[%s1490_s1 + $0x28] sm:$0xff] (!%p140_p2)  }
   0x9   : > { %v1251_v14 = vld [vmem:[%s1490_s1 + $0x70] sm:$0xff] (!%p140_p2)   ;;  %v1253_v16 = vld [vmem:[%s1490_s1 + $0x78] sm:$0xff] (!%p140_p2)   ;;  %v1430_v56 = vld [vmem:[%s1491_s2] ss:$0 sm:$0xff] (!%p140_p2) }
   0xa   : > { %v1252_v15 = vld [vmem:[%s1490_s1 + $0x30] sm:$0xff] (!%p140_p2)   ;;  %v1254_v17 = vld [vmem:[%s1490_s1 + $0x38] sm:$0xff] (!%p140_p2)  }
   0xb   : > { %1106 = vmatpush3.bf16.msra.mxu0 (!%p140_p2), %v1242_v3  ;;  %1224 = vmatpush3.bf16.msra.mxu1 (!%p140_p2), %v1242_v3 }
   0xc   : > { %1107 = vmatprep.subr.bf16.mxu0 (!%p140_p2), %v1243_v4  ;;  %1217 = vmatprep.subr.bf16.mxu1 (!%p140_p2), %v1243_v4 }
   0xd   : > { %s1494_s16 = smov (!%p165_p3, %s887_s16), 63 }
   0xe   : > { %s975_s4 = sshll.u32 %s1494_s16, 3  ;;  %s891_s28 = sshll.u32 %s1494_s16, 2 }
   0xf   : > { %1108 = vmatpush3.bf16.msra.mxu0 %v1244_v5  ;;  %1225 = vmatpush3.bf16.msra.mxu1 %v1244_v5  ;;  %s1372_s9 = scalar_lea.vmem %s1489_s0, %s975_s4  ;;  %s1440_s4 = scalar_lea.vmem %s1492_s3, %s891_s28 }
  0x10   : > { %1109 = vmatprep.subr.bf16.mxu0 %v1245_v6  ;;  %1218 = vmatprep.subr.bf16.mxu1 %v1245_v6  ;;  %v1257_v11 = vld [vmem:[%s1372_s9 + $0x4] ss:$8 sps:$4 sm:$0xff]   ;;  %v1255_v18 = vld [vmem:[%s1372_s9] ss:$8 sps:$4 sm:$0xff]   ;;  %v1261_v20 = vld [vmem:[%s1372_s9 + $0x14] ss:$8 sps:$4 sm:$0xff]  }
  0x11   : > { %v1260_v12 = vld [vmem:[%s1372_s9 + $0x84] ss:$8 sps:$4 sm:$0xff]   ;;  %537 = vmatprep.mubr.bf16.mxu0 %v1257_v11  ;;  %v1258_v19 = vld [vmem:[%s1372_s9 + $0x80] ss:$8 sps:$4 sm:$0xff]   ;;  %v1263_v21 = vld [vmem:[%s1372_s9 + $0x94] ss:$8 sps:$4 sm:$0xff]  }
  0x12   : > { %601 = vmatprep.mubr.bf16.mxu1 %v1260_v12  ;;  %v1265_v22 = vld [vmem:[%s1372_s9 + $0x10] ss:$8 sps:$4 sm:$0xff]   ;;  %v1267_v24 = vld [vmem:[%s1372_s9 + $0x24] ss:$8 sps:$4 sm:$0xff]   ;;  %v1271_v26 = vld [vmem:[%s1372_s9 + $0x20] ss:$8 sps:$4 sm:$0xff]  }
  0x13   : > { %1110 = vmatpush3.bf16.msra.mxu0 %v1246_v7  ;;  %1226 = vmatpush3.bf16.msra.mxu1 %v1246_v7  ;;  %v1266_v23 = vld [vmem:[%s1372_s9 + $0x90] ss:$8 sps:$4 sm:$0xff]   ;;  %v1269_v25 = vld [vmem:[%s1372_s9 + $0xa4] ss:$8 sps:$4 sm:$0xff]   ;;  %v1272_v27 = vld [vmem:[%s1372_s9 + $0xa0] ss:$8 sps:$4 sm:$0xff]  }
  0x14   : > { %1111 = vmatprep.subr.bf16.mxu0 %v1247_v8  ;;  %1219 = vmatprep.subr.bf16.mxu1 %v1247_v8  ;;  %v1273_v28 = vld [vmem:[%s1372_s9 + $0x34] ss:$8 sps:$4 sm:$0xff]   ;;  %v1277_v30 = vld [vmem:[%s1372_s9 + $0x30] ss:$8 sps:$4 sm:$0xff]   ;;  %v1279_v32 = vld [vmem:[%s1372_s9 + $0x44] ss:$8 sps:$4 sm:$0xff]  }
  0x15   : > { %v1275_v29 = vld [vmem:[%s1372_s9 + $0xb4] ss:$8 sps:$4 sm:$0xff]   ;;  %v1278_v31 = vld [vmem:[%s1372_s9 + $0xb0] ss:$8 sps:$4 sm:$0xff]   ;;  %v1281_v33 = vld [vmem:[%s1372_s9 + $0xc4] ss:$8 sps:$4 sm:$0xff]  }
  0x16   : > { %v1283_v34 = vld [vmem:[%s1372_s9 + $0x40] ss:$8 sps:$4 sm:$0xff]   ;;  %v1285_v36 = vld [vmem:[%s1372_s9 + $0x54] ss:$8 sps:$4 sm:$0xff]   ;;  %v1289_v38 = vld [vmem:[%s1372_s9 + $0x50] ss:$8 sps:$4 sm:$0xff]  }
  0x17   : > { %1112 = vmatpush3.bf16.msra.mxu0 %v1248_v9  ;;  %1227 = vmatpush3.bf16.msra.mxu1 %v1248_v9  ;;  %v1284_v35 = vld [vmem:[%s1372_s9 + $0xc0] ss:$8 sps:$4 sm:$0xff]   ;;  %v1287_v37 = vld [vmem:[%s1372_s9 + $0xd4] ss:$8 sps:$4 sm:$0xff]   ;;  %v1290_v39 = vld [vmem:[%s1372_s9 + $0xd0] ss:$8 sps:$4 sm:$0xff]  }
  0x18   : > { %1113 = vmatprep.subr.bf16.mxu0 %v1249_v10  ;;  %1220 = vmatprep.subr.bf16.mxu1 %v1249_v10  ;;  %v1291_v40 = vld [vmem:[%s1372_s9 + $0x64] ss:$8 sps:$4 sm:$0xff]   ;;  %v1295_v42 = vld [vmem:[%s1372_s9 + $0x60] ss:$8 sps:$4 sm:$0xff]   ;;  %v1297_v44 = vld [vmem:[%s1372_s9 + $0x74] ss:$8 sps:$4 sm:$0xff]  }
  0x19   : > { %v1293_v41 = vld [vmem:[%s1372_s9 + $0xe4] ss:$8 sps:$4 sm:$0xff]   ;;  %v1296_v43 = vld [vmem:[%s1372_s9 + $0xe0] ss:$8 sps:$4 sm:$0xff]   ;;  %v1299_v45 = vld [vmem:[%s1372_s9 + $0xf4] ss:$8 sps:$4 sm:$0xff]  }
  0x1a   : > { %v1301_v46 = vld [vmem:[%s1372_s9 + $0x70] ss:$8 sps:$4 sm:$0xff]  }
  0x1b   : > { %1114 = vmatpush3.bf16.msra.mxu0 %v1250_v13  ;;  %1228 = vmatpush3.bf16.msra.mxu1 %v1250_v13  ;;  %v1302_v47 = vld [vmem:[%s1372_s9 + $0xf0] ss:$8 sps:$4 sm:$0xff]  }
  0x1c   : > { %1115 = vmatprep.subr.bf16.mxu0 %v1251_v14  ;;  %1221 = vmatprep.subr.bf16.mxu1 %v1251_v14 }
  0x1f   : > { %1116 = vmatpush3.bf16.msra.mxu0 %v1252_v15  ;;  %1229 = vmatpush3.bf16.msra.mxu1 %v1252_v15 }
  0x20   : > { %1117 = vmatprep.subr.bf16.mxu0 %v1253_v16  ;;  %1222 = vmatprep.subr.bf16.mxu1 %v1253_v16 }
  0x23   : > { %1118 = vmatpush3.bf16.msra.mxu0 %v1254_v17  ;;  %1230 = vmatpush3.bf16.msra.mxu1 %v1254_v17 }
  0x26   : > { %538 = vmatmul.mubr.bf16.vlgmr.msra.gmra.mrb[0].mxu0 %v1255_v18  ;;  %602 = vmatmul.mubr.bf16.vlgmr.msra.gmra.mrb[0].mxu1 %v1258_v19 }
  0x27   : > { %545 = vmatprep.mubr.bf16.mxu0 %v1261_v20  ;;  %609 = vmatprep.mubr.bf16.mxu1 %v1263_v21 }
  0x2e   : > { %546 = vmatmul.mubr.bf16.gmra.mrb[4].mxu0 %v1265_v22  ;;  %610 = vmatmul.mubr.bf16.gmra.mrb[4].mxu1 %v1266_v23 }
  0x2f   : > { %553 = vmatprep.mubr.bf16.mxu0 %v1267_v24  ;;  %617 = vmatprep.mubr.bf16.mxu1 %v1269_v25 }
  0x36   : > { %554 = vmatmul.mubr.bf16.gmra.mrb[8].mxu0 %v1271_v26  ;;  %618 = vmatmul.mubr.bf16.gmra.mrb[8].mxu1 %v1272_v27 }
  0x37   : > { %561 = vmatprep.mubr.bf16.mxu0 %v1273_v28  ;;  %625 = vmatprep.mubr.bf16.mxu1 %v1275_v29 }
  0x3e   : > { %562 = vmatmul.mubr.bf16.gmra.mrb[12].mxu0 %v1277_v30  ;;  %626 = vmatmul.mubr.bf16.gmra.mrb[12].mxu1 %v1278_v31 }
  0x3f   : > { %569 = vmatprep.mubr.bf16.mxu0 %v1279_v32  ;;  %633 = vmatprep.mubr.bf16.mxu1 %v1281_v33 }
  0x46   : > { %570 = vmatmul.mubr.bf16.gmra.mrb[16].mxu0 %v1283_v34  ;;  %634 = vmatmul.mubr.bf16.gmra.mrb[16].mxu1 %v1284_v35 }
  0x47   : > { %577 = vmatprep.mubr.bf16.mxu0 %v1285_v36  ;;  %641 = vmatprep.mubr.bf16.mxu1 %v1287_v37 }
  0x4e   : > { %578 = vmatmul.mubr.bf16.gmra.mrb[20].mxu0 %v1289_v38  ;;  %642 = vmatmul.mubr.bf16.gmra.mrb[20].mxu1 %v1290_v39 }
  0x4f   : > { %585 = vmatprep.mubr.bf16.mxu0 %v1291_v40  ;;  %649 = vmatprep.mubr.bf16.mxu1 %v1293_v41 }
  0x56   : > { %586 = vmatmul.mubr.bf16.gmra.mrb[24].mxu0 %v1295_v42  ;;  %650 = vmatmul.mubr.bf16.gmra.mrb[24].mxu1 %v1296_v43 }
  0x57   : > { %593 = vmatprep.mubr.bf16.mxu0 %v1297_v44  ;;  %657 = vmatprep.mubr.bf16.mxu1 %v1299_v45 }
  0x5e   : > { %594 = vmatmul.mubr.bf16.gmra.mrb[28].mxu0 %v1301_v46  ;;  %658 = vmatmul.mubr.bf16.gmra.mrb[28].mxu1 %v1302_v47 }
  0xf9   : > { %v1119_v48 = vpop.f32.mrb[0].mxu0  ;;  %v1167_v49 = vpop.f32.mrb[0].mxu1 }
  0xfa   : > { %v1120_v50 = vpop.f32.mrb[1].mxu0  ;;  %v1168_v51 = vpop.f32.mrb[1].mxu1 }
  0xfb   : > { %v1121_v52 = vadd.f32 %v1120_v50, %v1119_v48  ;;  %v1169_v53 = vadd.f32 %v1168_v51, %v1167_v49  ;;  %v1122_v54 = vpop.f32.mrb[2].mxu0  ;;  %v1170_v55 = vpop.f32.mrb[2].mxu1 }
  0xfc   : > { %v1123_v57 = vpop.f32.mrb[3].mxu0  ;;  %v1171_v58 = vpop.f32.mrb[3].mxu1 }
  0xfd   : > { %v1124_v59 = vadd.f32 %v1123_v57, %v1122_v54  ;;  %v1172_v60 = vadd.f32 %v1171_v58, %v1170_v55  ;;  %v540_v61 = vadd.f32 %v1121_v52, %v1430_v56  ;;  %v604_v62 = vadd.f32 %v1169_v53, %v1430_v56 }
  0xff   : > { %v543_v63 = vadd.f32 %v1124_v59, %v1430_v56  ;;  %v607_v0 = vadd.f32 %v1172_v60, %v1430_v56 }
 0x101   : > { %v1011_v1 = vpack.c.bf16 %v543_v63, %v540_v61  ;;  %v1051_v2 = vpack.c.bf16 %v607_v0, %v604_v62  ;;  %v1125_v3 = vpop.f32.mrb[4].mxu0  ;;  %v1173_v4 = vpop.f32.mrb[4].mxu1 }
 0x102   : > { %v1126_v5 = vpop.f32.mrb[5].mxu0  ;;  %v1174_v6 = vpop.f32.mrb[5].mxu1 }
 0x103   : > { %1012 = vst [vmem:[%s1440_s4] sm:$0xff] %v1011_v1   ;;  %1095 = vst [vmem:[%s1440_s4 + $0x40] sm:$0xff] %v1051_v2   ;;  %v1127_v7 = vadd.f32 %v1126_v5, %v1125_v3  ;;  %v1175_v8 = vadd.f32 %v1174_v6, %v1173_v4  ;;  %v1128_v9 = vpop.f32.mrb[6].mxu0  ;;  %v1176_v10 = vpop.f32.mrb[6].mxu1 }
 0x104   : > { %v1129_v11 = vpop.f32.mrb[7].mxu0  ;;  %v1177_v12 = vpop.f32.mrb[7].mxu1 }
 0x105   : > { %v1130_v13 = vadd.f32 %v1129_v11, %v1128_v9  ;;  %v1178_v14 = vadd.f32 %v1177_v12, %v1176_v10  ;;  %v548_v15 = vadd.f32 %v1127_v7, %v1430_v56  ;;  %v612_v16 = vadd.f32 %v1175_v8, %v1430_v56 }
 0x107   : > { %v551_v17 = vadd.f32 %v1130_v13, %v1430_v56  ;;  %v615_v18 = vadd.f32 %v1178_v14, %v1430_v56 }
 0x109   : > { %v1016_v19 = vpack.c.bf16 %v551_v17, %v548_v15  ;;  %v1056_v20 = vpack.c.bf16 %v615_v18, %v612_v16  ;;  %v1131_v21 = vpop.f32.mrb[8].mxu0  ;;  %v1179_v22 = vpop.f32.mrb[8].mxu1 }
 0x10a   : > { %v1132_v23 = vpop.f32.mrb[9].mxu0  ;;  %v1180_v24 = vpop.f32.mrb[9].mxu1 }
 0x10b   : > { %1088 = vst [vmem:[%s1440_s4 + $0x8] sm:$0xff] %v1016_v19   ;;  %1096 = vst [vmem:[%s1440_s4 + $0x48] sm:$0xff] %v1056_v20   ;;  %v1133_v25 = vadd.f32 %v1132_v23, %v1131_v21  ;;  %v1181_v26 = vadd.f32 %v1180_v24, %v1179_v22  ;;  %v1134_v27 = vpop.f32.mrb[10].mxu0  ;;  %v1182_v28 = vpop.f32.mrb[10].mxu1 }
 0x10c   : > { %v1135_v29 = vpop.f32.mrb[11].mxu0  ;;  %v1183_v30 = vpop.f32.mrb[11].mxu1 }
 0x10d   : > { %v1136_v31 = vadd.f32 %v1135_v29, %v1134_v27  ;;  %v1184_v32 = vadd.f32 %v1183_v30, %v1182_v28  ;;  %v556_v33 = vadd.f32 %v1133_v25, %v1430_v56  ;;  %v620_v34 = vadd.f32 %v1181_v26, %v1430_v56 }
 0x10f   : > { %v559_v35 = vadd.f32 %v1136_v31, %v1430_v56  ;;  %v623_v36 = vadd.f32 %v1184_v32, %v1430_v56 }
 0x111   : > { %v1021_v37 = vpack.c.bf16 %v559_v35, %v556_v33  ;;  %v1061_v38 = vpack.c.bf16 %v623_v36, %v620_v34  ;;  %v1137_v39 = vpop.f32.mrb[12].mxu0  ;;  %v1185_v40 = vpop.f32.mrb[12].mxu1 }
 0x112   : > { %v1138_v41 = vpop.f32.mrb[13].mxu0  ;;  %v1186_v42 = vpop.f32.mrb[13].mxu1 }
 0x113   : > { %1089 = vst [vmem:[%s1440_s4 + $0x10] sm:$0xff] %v1021_v37   ;;  %1097 = vst [vmem:[%s1440_s4 + $0x50] sm:$0xff] %v1061_v38   ;;  %v1139_v43 = vadd.f32 %v1138_v41, %v1137_v39  ;;  %v1187_v44 = vadd.f32 %v1186_v42, %v1185_v40  ;;  %v1140_v45 = vpop.f32.mrb[14].mxu0  ;;  %v1188_v46 = vpop.f32.mrb[14].mxu1 }
 0x114   : > { %v1141_v47 = vpop.f32.mrb[15].mxu0  ;;  %v1189_v48 = vpop.f32.mrb[15].mxu1 }
 0x115   : > { %v1142_v49 = vadd.f32 %v1141_v47, %v1140_v45  ;;  %v1190_v50 = vadd.f32 %v1189_v48, %v1188_v46  ;;  %v564_v51 = vadd.f32 %v1139_v43, %v1430_v56  ;;  %v628_v52 = vadd.f32 %v1187_v44, %v1430_v56 }
 0x117   : > { %v567_v53 = vadd.f32 %v1142_v49, %v1430_v56  ;;  %v631_v54 = vadd.f32 %v1190_v50, %v1430_v56 }
 0x119   : > { %v1026_v55 = vpack.c.bf16 %v567_v53, %v564_v51  ;;  %v1066_v57 = vpack.c.bf16 %v631_v54, %v628_v52  ;;  %v1143_v58 = vpop.f32.mrb[16].mxu0  ;;  %v1191_v59 = vpop.f32.mrb[16].mxu1 }
 0x11a   : > { %v1144_v60 = vpop.f32.mrb[17].mxu0  ;;  %v1192_v61 = vpop.f32.mrb[17].mxu1 }
 0x11b   : > { %1090 = vst [vmem:[%s1440_s4 + $0x18] sm:$0xff] %v1026_v55   ;;  %1098 = vst [vmem:[%s1440_s4 + $0x58] sm:$0xff] %v1066_v57   ;;  %v1145_v62 = vadd.f32 %v1144_v60, %v1143_v58  ;;  %v1193_v63 = vadd.f32 %v1192_v61, %v1191_v59  ;;  %v1146_v0 = vpop.f32.mrb[18].mxu0  ;;  %v1194_v1 = vpop.f32.mrb[18].mxu1 }
 0x11c   : > { %v1147_v2 = vpop.f32.mrb[19].mxu0  ;;  %v1195_v3 = vpop.f32.mrb[19].mxu1 }
 0x11d   : > { %v1148_v4 = vadd.f32 %v1147_v2, %v1146_v0  ;;  %v1196_v5 = vadd.f32 %v1195_v3, %v1194_v1  ;;  %v572_v6 = vadd.f32 %v1145_v62, %v1430_v56  ;;  %v636_v7 = vadd.f32 %v1193_v63, %v1430_v56 }
 0x11f   : > { %v575_v8 = vadd.f32 %v1148_v4, %v1430_v56  ;;  %v639_v9 = vadd.f32 %v1196_v5, %v1430_v56 }
 0x121   : > { %v1031_v10 = vpack.c.bf16 %v575_v8, %v572_v6  ;;  %v1071_v11 = vpack.c.bf16 %v639_v9, %v636_v7  ;;  %v1149_v12 = vpop.f32.mrb[20].mxu0  ;;  %v1197_v13 = vpop.f32.mrb[20].mxu1 }
 0x122   : > { %v1150_v14 = vpop.f32.mrb[21].mxu0  ;;  %v1198_v15 = vpop.f32.mrb[21].mxu1 }
 0x123   : > { %1091 = vst [vmem:[%s1440_s4 + $0x20] sm:$0xff] %v1031_v10   ;;  %1099 = vst [vmem:[%s1440_s4 + $0x60] sm:$0xff] %v1071_v11   ;;  %v1151_v16 = vadd.f32 %v1150_v14, %v1149_v12  ;;  %v1199_v17 = vadd.f32 %v1198_v15, %v1197_v13  ;;  %v1152_v18 = vpop.f32.mrb[22].mxu0  ;;  %v1200_v19 = vpop.f32.mrb[22].mxu1 }
 0x124   : > { %v1153_v20 = vpop.f32.mrb[23].mxu0  ;;  %v1201_v21 = vpop.f32.mrb[23].mxu1 }
 0x125   : > { %v1154_v22 = vadd.f32 %v1153_v20, %v1152_v18  ;;  %v1202_v23 = vadd.f32 %v1201_v21, %v1200_v19  ;;  %v580_v24 = vadd.f32 %v1151_v16, %v1430_v56  ;;  %v644_v25 = vadd.f32 %v1199_v17, %v1430_v56 }
 0x127   : > { %v583_v26 = vadd.f32 %v1154_v22, %v1430_v56  ;;  %v647_v27 = vadd.f32 %v1202_v23, %v1430_v56 }
 0x129   : > { %v1036_v28 = vpack.c.bf16 %v583_v26, %v580_v24  ;;  %v1076_v29 = vpack.c.bf16 %v647_v27, %v644_v25  ;;  %v1155_v30 = vpop.f32.mrb[24].mxu0  ;;  %v1203_v31 = vpop.f32.mrb[24].mxu1 }
 0x12a   : > { %v1156_v32 = vpop.f32.mrb[25].mxu0  ;;  %v1204_v33 = vpop.f32.mrb[25].mxu1 }
 0x12b   : > { %1092 = vst [vmem:[%s1440_s4 + $0x28] sm:$0xff] %v1036_v28   ;;  %1100 = vst [vmem:[%s1440_s4 + $0x68] sm:$0xff] %v1076_v29   ;;  %v1157_v34 = vadd.f32 %v1156_v32, %v1155_v30  ;;  %v1205_v35 = vadd.f32 %v1204_v33, %v1203_v31  ;;  %v1158_v36 = vpop.f32.mrb[26].mxu0  ;;  %v1206_v37 = vpop.f32.mrb[26].mxu1 }
 0x12c   : > { %v1159_v38 = vpop.f32.mrb[27].mxu0  ;;  %v1207_v39 = vpop.f32.mrb[27].mxu1 }
 0x12d   : > { %v1160_v40 = vadd.f32 %v1159_v38, %v1158_v36  ;;  %v1208_v41 = vadd.f32 %v1207_v39, %v1206_v37  ;;  %v588_v42 = vadd.f32 %v1157_v34, %v1430_v56  ;;  %v652_v43 = vadd.f32 %v1205_v35, %v1430_v56 }
 0x12f   : > { %v591_v44 = vadd.f32 %v1160_v40, %v1430_v56  ;;  %v655_v45 = vadd.f32 %v1208_v41, %v1430_v56 }
 0x131   : > { %v1041_v46 = vpack.c.bf16 %v591_v44, %v588_v42  ;;  %v1081_v47 = vpack.c.bf16 %v655_v45, %v652_v43  ;;  %v1161_v48 = vpop.f32.mrb[28].mxu0  ;;  %v1209_v49 = vpop.f32.mrb[28].mxu1 }
 0x132   : > { %v1162_v50 = vpop.f32.mrb[29].mxu0  ;;  %v1210_v51 = vpop.f32.mrb[29].mxu1 }
 0x133   : > { %1093 = vst [vmem:[%s1440_s4 + $0x30] sm:$0xff] %v1041_v46   ;;  %1101 = vst [vmem:[%s1440_s4 + $0x70] sm:$0xff] %v1081_v47   ;;  %v1163_v52 = vadd.f32 %v1162_v50, %v1161_v48  ;;  %v1211_v53 = vadd.f32 %v1210_v51, %v1209_v49  ;;  %v1164_v54 = vpop.f32.mrb[30].mxu0  ;;  %v1212_v55 = vpop.f32.mrb[30].mxu1 }
 0x134   : > { %v1165_v57 = vpop.f32.mrb[31].mxu0  ;;  %v1213_v58 = vpop.f32.mrb[31].mxu1 }
 0x135   : > { %v1166_v59 = vadd.f32 %v1165_v57, %v1164_v54  ;;  %v1214_v60 = vadd.f32 %v1213_v58, %v1212_v55  ;;  %v596_v61 = vadd.f32 %v1163_v52, %v1430_v56  ;;  %v660_v62 = vadd.f32 %v1211_v53, %v1430_v56 }
 0x137   : > { %v599_v63 = vadd.f32 %v1166_v59, %v1430_v56  ;;  %v663_v0 = vadd.f32 %v1214_v60, %v1430_v56 }
 0x139   : > { %v1046_v1 = vpack.c.bf16 %v599_v63, %v596_v61  ;;  %v1086_v2 = vpack.c.bf16 %v663_v0, %v660_v62 }
 0x13b   : > { %1094 = vst [vmem:[%s1440_s4 + $0x38] sm:$0xff] %v1046_v1   ;;  %1102 = vst [vmem:[%s1440_s4 + $0x78] sm:$0xff] %v1086_v2  }
 0x13c PF: > { %s13_s12 = sadd.s32 1, %s1309_s12  }
 0x13d   : > { %p10_p4 = scmp.ge.s32.totalorder %s13_s12, 4  }
 0x13f   :  { %12 = sbr.rel (!%p10_p4) target bundleno = 1 (0x1), region = 62 }

// kernel: fconv_encoder_forward.13
= control target key start
LH: loop header
LB: loop body
LE: loop exit
PB: predicated region body
PF: predicated region fallthrough
CT: control target
= control target key end

     0   :  { %12 = vsyncpa [#allocation3], 0  ;;  %s2002_s0 = inlined_call_operand.vmem [shape: bf16[512,128], index: 0, kind: input, shape index: {}]   ;;  %s2003_s1 = inlined_call_operand.vmem [shape: bf16[128,128], index: 1, kind: input, shape index: {}]   ;;  %s2004_s2 = inlined_call_operand.vmem [shape: f32[1,128], index: 2, kind: input, shape index: {}]   ;;  %s2005_s3 = inlined_call_operand.vmem [shape: f32[512,1], index: 3, kind: input, shape index: {}]   ;;  %s2006_s4 = inlined_call_operand.vmem [shape: f32[512,128], index: 4, kind: input, shape index: {}]   ;;  %s2007_s5 = inlined_call_operand.hbm [shape: f32[512,128], index: 5, kind: output, shape index: {0}]   ;;  %s2008_s6 = inlined_call_operand.hbm [shape: f32[512,128], index: 6, kind: output, shape index: {1}]  }
   0x1   :  { %14 = vsyncpa [#allocation3 + $0x1], 0 }
   0x2   :  { %15 = vsyncpa [#allocation5], 0 }
   0x3   :  { %17 = vsyncpa [#allocation5 + $0x1], 0  ;;  %s1551_s21 = smov 0   ;;  %s1553_s22 = smov 0  }
   0x4   :  { %s1555_s23 = smov 0   ;;  %s1557_s24 = smov 0  }
   0x5 LB: > { %s1572_s25 = sadd.s32 4294967295, %s1509_s24   ;;  %s1207_s26 = sadd.s32 4294967294, %s1509_s24   ;;  %s1509_s24 = sphi %s1557_s24, %s2014_s24   ;;  %s1505_s23 = sphi %s1555_s23, %s2013_s23   ;;  %s1501_s22 = sphi %s1553_s22, %s2012_s22   ;;  %s1497_s21 = sphi %s1551_s21, %s2011_s21  }
   0x6   : > { %s1576_s27 = sadd.s32 1, %s1509_s24   ;;  %s150_s28 = sadd.s32 1, %s1505_s23 }
   0x7   : > { %s147_s29 = ssub.s32 %s1509_s24, %s1576_s27  ;;  %p160_p0 = scmp.ne.s32.totalorder %s1505_s23, %s1501_s22 }
   0x8   : > { %p148_p1 = scmp.eq.s32.totalorder %s147_s29, 0  ;;  %p161_p2 = scmp.eq.s32.totalorder %s1572_s25, 1 }
   0x9   : > { %p166_p3 = scmp.ne.s32.totalorder %s1501_s22, %s1497_s21  ;;  %p167_p4 = scmp.eq.s32.totalorder %s1207_s26, 1 }
   0xa   : > { %s1587_s30 = scalar_select %p148_p1, %s1505_s23, %s150_s28  }
   0xb   : > { %p1589_p5 = por %p161_p2, %p160_p0  ;;  %p1593_p6 = por %p167_p4, %p166_p3 }
   0xc   : > { %p1210_p7 = scmp.ge.s32.totalorder %s1509_s24, 1  ;;  %p244_p8 = scmp.lt.s32.totalorder %s1509_s24, 3 }
   0xe   : > { %p245_p9 = pnand %p1210_p7, %p244_p8 }
   0xf   : > { %v1391_v0 = vld [vmem:[%s2003_s1] sm:$0xff] (!%p245_p9)   ;;  %v1392_v1 = vld [vmem:[%s2003_s1 + $0x8] sm:$0xff] (!%p245_p9)   ;;  %v1511_v2 = vmov (!%p245_p9), 0   ;;  %s1213_s13 = sshll.u32 (!%p245_p9), %s1572_s25, 5  ;;  %v1393_v3 = vld [vmem:[%s2003_s1 + $0x10] sm:$0xff] (!%p245_p9)   ;;  %s1252_s14 = sshll.u32 (!%p245_p9), %s1572_s25, 12 }
  0x10   : > { %248 = sbr.rel (%p245_p9) target bundleno = 335 (0x14f), region = 40  ;;  %1390 = vset.pattern.permute.xlu1 (!%p245_p9), %v1511_v2  ;;  %1389 = vset.pattern.permute.xlu0 (!%p245_p9), %v1511_v2  ;;  %p290_p10 = scmp.lt.s32.totalorder (!%p245_p9), %s1213_s13, 63  ;;  %v1394_v4 = vld [vmem:[%s2003_s1 + $0x18] sm:$0xff] (!%p245_p9)   ;;  %v1395_v11 = vld [vmem:[%s2003_s1 + $0x20] sm:$0xff] (!%p245_p9)   ;;  %v1396_v14 = vld [vmem:[%s2003_s1 + $0x28] sm:$0xff] (!%p245_p9)  }
  0x11   : > { %1278 = vmatprep.subr.bf16.mxu0 (!%p245_p9), %v1391_v0  ;;  %1326 = vmatprep.subr.bf16.mxu1 (!%p245_p9), %v1391_v0  ;;  %v1397_v17 = vld [vmem:[%s2003_s1 + $0x30] sm:$0xff] (!%p245_p9)   ;;  %v1398_v20 = vld [vmem:[%s2003_s1 + $0x38] sm:$0xff] (!%p245_p9)   ;;  %s1897_s20 = scalar_lea.hbm (!%p245_p9), %s2007_s5, %s1252_s14  ;;  %s1512_s9 = smov (!%p245_p9), [#allocation2]  }
  0x12   : > { %1279 = vmatpush3.bf16.msra.mxu0 (!%p245_p9), %v1391_v0  ;;  %1334 = vmatpush3.bf16.msra.mxu1 (!%p245_p9), %v1391_v0 }
  0x13   : > { %1280 = vmatprep.subr.bf16.mxu0 (!%p245_p9), %v1392_v1  ;;  %1327 = vmatprep.subr.bf16.mxu1 (!%p245_p9), %v1392_v1 }
  0x16   : > { %1281 = vmatpush3.bf16.msra.mxu0 (!%p245_p9), %v1392_v1  ;;  %1335 = vmatpush3.bf16.msra.mxu1 (!%p245_p9), %v1392_v1 }
  0x17   : > { %s2016_s13 = smov (!%p290_p10, %s1213_s13), 63  ;;  %1282 = vmatprep.subr.bf16.mxu0 %v1393_v3  ;;  %1328 = vmatprep.subr.bf16.mxu1 %v1393_v3 }
  0x18   : > { %s1216_s16 = sshll.u32 %s2016_s13, 3  ;;  %s1214_s28 = sshll.u32 %s2016_s13, 2 }
  0x19   : > { %s1617_s19 = scalar_lea.vmem %s2005_s3, %s1216_s16  ;;  %s1630_s10 = scalar_lea.vmem %s2002_s0, %s1214_s28 }
  0x1a   : > { %v672_v5 = vld [vmem:[%s1617_s19 + $0x10] sm:$0xff]  ;;  %v670_v6 = vld [vmem:[%s1617_s19] sm:$0xff]  ;;  %v673_v7 = vld [vmem:[%s1617_s19 + $0x18] sm:$0xff]  ;;  %1283 = vmatpush3.bf16.msra.mxu0 %v1393_v3  ;;  %1336 = vmatpush3.bf16.msra.mxu1 %v1393_v3  ;;  %s1733_s11 = scalar_lea.vmem %s2006_s4, %s1216_s16 }
  0x1b   : > { %714 = vperm.xlu1 %1390, %v672_v5   ;;  %704 = vperm.xlu0 %1389, %v670_v6   ;;  %v671_v8 = vld [vmem:[%s1617_s19 + $0x8] sm:$0xff]  ;;  %v1399_v9 = vld [vmem:[%s1630_s10] sm:$0xff]   ;;  %v677_v15 = vld [vmem:[%s1617_s19 + $0x38] sm:$0xff] }
  0x1c   : > { %v1400_v10 = vld [vmem:[%s1630_s10 + $0x40] sm:$0xff]   ;;  %1284 = vmatprep.subr.bf16.mxu0 %v1394_v4  ;;  %1329 = vmatprep.subr.bf16.mxu1 %v1394_v4  ;;  %v675_v12 = vld [vmem:[%s1617_s19 + $0x28] sm:$0xff]  ;;  %v676_v16 = vld [vmem:[%s1617_s19 + $0x30] sm:$0xff] }
  0x1d   : > { %1294 = vmatprep.mubr.bf16.mxu0 %v1399_v9  ;;  %1310 = vmatprep.mubr.bf16.mxu1 %v1400_v10  ;;  %v674_v13 = vld [vmem:[%s1617_s19 + $0x20] sm:$0xff]  ;;  %v679_v18 = vld [vmem:[%s1617_s19 + $0x48] sm:$0xff]  ;;  %v681_v21 = vld [vmem:[%s1617_s19 + $0x58] sm:$0xff] }
  0x1e   : > { %1285 = vmatpush3.bf16.msra.mxu0 %v1394_v4  ;;  %1337 = vmatpush3.bf16.msra.mxu1 %v1394_v4  ;;  %v678_v19 = vld [vmem:[%s1617_s19 + $0x40] sm:$0xff]  ;;  %v680_v22 = vld [vmem:[%s1617_s19 + $0x50] sm:$0xff]  ;;  %v1401_v23 = vld [vmem:[%s1630_s10 + $0x8] sm:$0xff]  }
  0x1f   : > { %719 = vperm.xlu1 %1390, %v673_v7   ;;  %709 = vperm.xlu0 %1389, %v671_v8   ;;  %v1402_v24 = vld [vmem:[%s1630_s10 + $0x48] sm:$0xff]   ;;  %v682_v26 = vld [vmem:[%s1617_s19 + $0x60] sm:$0xff]  ;;  %v1403_v27 = vld [vmem:[%s1630_s10 + $0x10] sm:$0xff]  }
  0x20   : > { %1286 = vmatprep.subr.bf16.mxu0 %v1395_v11  ;;  %1330 = vmatprep.subr.bf16.mxu1 %v1395_v11  ;;  %v683_v25 = vld [vmem:[%s1617_s19 + $0x68] sm:$0xff]  ;;  %v1404_v28 = vld [vmem:[%s1630_s10 + $0x50] sm:$0xff]   ;;  %v685_v29 = vld [vmem:[%s1617_s19 + $0x78] sm:$0xff] }
  0x21   : > { %v684_v30 = vld [vmem:[%s1617_s19 + $0x70] sm:$0xff]  ;;  %v1405_v31 = vld [vmem:[%s1630_s10 + $0x18] sm:$0xff]   ;;  %v687_v33 = vld [vmem:[%s1617_s19 + $0x88] sm:$0xff] }
  0x22   : > { %1287 = vmatpush3.bf16.msra.mxu0 %v1395_v11  ;;  %1338 = vmatpush3.bf16.msra.mxu1 %v1395_v11  ;;  %v1406_v32 = vld [vmem:[%s1630_s10 + $0x58] sm:$0xff]   ;;  %v686_v34 = vld [vmem:[%s1617_s19 + $0x80] sm:$0xff]  ;;  %v688_v38 = vld [vmem:[%s1617_s19 + $0x90] sm:$0xff] }
  0x23   : > { %729 = vperm.xlu1 %1390, %v675_v12   ;;  %724 = vperm.xlu0 %1389, %v674_v13   ;;  %v1407_v35 = vld [vmem:[%s1630_s10 + $0x20] sm:$0xff]   ;;  %v689_v37 = vld [vmem:[%s1617_s19 + $0x98] sm:$0xff]  ;;  %v1409_v39 = vld [vmem:[%s1630_s10 + $0x28] sm:$0xff]  }
  0x24   : > { %1288 = vmatprep.subr.bf16.mxu0 %v1396_v14  ;;  %1331 = vmatprep.subr.bf16.mxu1 %v1396_v14  ;;  %v1408_v36 = vld [vmem:[%s1630_s10 + $0x60] sm:$0xff]   ;;  %v1410_v40 = vld [vmem:[%s1630_s10 + $0x68] sm:$0xff]   ;;  %v1411_v43 = vld [vmem:[%s1630_s10 + $0x30] sm:$0xff]  }
  0x25   : > { %v691_v41 = vld [vmem:[%s1617_s19 + $0xa8] sm:$0xff]  ;;  %v690_v42 = vld [vmem:[%s1617_s19 + $0xa0] sm:$0xff]  ;;  %v1412_v44 = vld [vmem:[%s1630_s10 + $0x70] sm:$0xff]  }
  0x26   : > { %1289 = vmatpush3.bf16.msra.mxu0 %v1396_v14  ;;  %1339 = vmatpush3.bf16.msra.mxu1 %v1396_v14  ;;  %v693_v45 = vld [vmem:[%s1617_s19 + $0xb8] sm:$0xff]  ;;  %v692_v46 = vld [vmem:[%s1617_s19 + $0xb0] sm:$0xff]  ;;  %v695_v49 = vld [vmem:[%s1617_s19 + $0xc8] sm:$0xff] }
  0x27   : > { %739 = vperm.xlu1 %1390, %v677_v15   ;;  %734 = vperm.xlu0 %1389, %v676_v16   ;;  %v1413_v47 = vld [vmem:[%s1630_s10 + $0x38] sm:$0xff]   ;;  %v694_v50 = vld [vmem:[%s1617_s19 + $0xc0] sm:$0xff]  ;;  %v696_v52 = vld [vmem:[%s1617_s19 + $0xd0] sm:$0xff] }
  0x28   : > { %1290 = vmatprep.subr.bf16.mxu0 %v1397_v17  ;;  %1332 = vmatprep.subr.bf16.mxu1 %v1397_v17  ;;  %v1414_v48 = vld [vmem:[%s1630_s10 + $0x78] sm:$0xff]   ;;  %v699_v53 = vld [vmem:[%s1617_s19 + $0xe8] sm:$0xff]  ;;  %v698_v54 = vld [vmem:[%s1617_s19 + $0xe0] sm:$0xff]  ;;  %s1419_s10 = sshll.u32 %s1512_s9, 4  ;;  %s1420_s10 = int_to_ptr.vmem [resolvable:$false] %s1419_s10 }
  0x29   : > { %v697_v51 = vld [vmem:[%s1617_s19 + $0xd8] sm:$0xff]  ;;  %v700_v56 = vld [vmem:[%s1617_s19 + $0xf0] sm:$0xff]  ;;  %v1726_v16 = vld [vmem:[%s2004_s2] ss:$0 sm:$0xff] }
  0x2a   : > { %1291 = vmatpush3.bf16.msra.mxu0 %v1397_v17  ;;  %1340 = vmatpush3.bf16.msra.mxu1 %v1397_v17  ;;  %v701_v55 = vld [vmem:[%s1617_s19 + $0xf8] sm:$0xff]  ;;  %s1721_s19 = sand.u32 1, %s1501_s22  }
  0x2b   : > { %749 = vperm.xlu1 %1390, %v679_v18   ;;  %744 = vperm.xlu0 %1389, %v678_v19   ;;  %s1211_s12 = sshll.u32 %s1721_s19, 8  ;;  %s1055_s28 = scalar_lea.sflag [#allocation3], %s1721_s19 }
  0x2c   : > { %1292 = vmatprep.subr.bf16.mxu0 %v1398_v20  ;;  %1333 = vmatprep.subr.bf16.mxu1 %v1398_v20  ;;  %s1756_s13 = scalar_lea.vmem [#allocation2], %s1211_s12  ;;  %s1777_s16 = scalar_lea.vmem [#allocation4], %s1211_s12 }
  0x2d   : > { %s1073_s15 = sshll.u32 %s1756_s13, 4  ;;  %s1089_s26 = sshll.u32 %s1777_s16, 4  ;;  %s1901_s15 = int_to_ptr.vmem [resolvable:$true] %s1073_s15  ;;  %s1952_s26 = int_to_ptr.vmem [resolvable:$true] %s1089_s26 }
  0x2e   : > { %1293 = vmatpush3.bf16.msra.mxu0 %v1398_v20  ;;  %1341 = vmatpush3.bf16.msra.mxu1 %v1398_v20  ;;  %s1415_s29 = scalar_lea.vmem %s1901_s15, 4096  ;;  %p1422_p0 = scmp.lt.s32.totalorder %s1901_s15, %s1420_s10 }
  0x2f   : > { %759 = vperm.xlu1 %1390, %v681_v21   ;;  %754 = vperm.xlu0 %1389, %v680_v22   ;;  %p1416_p11 = scmp.ne.s32.totalorder %s1901_s15, %s1415_s29 }
  0x31   : > { %1295 = vmatmul.mubr.bf16.vlgmr.msra.gmra.mrb[0].mxu0 %v1401_v23  ;;  %1311 = vmatmul.mubr.bf16.vlgmr.msra.gmra.mrb[0].mxu1 %v1402_v24  ;;  %p1417_p12 = pnand %p1416_p11, %p1589_p5 }
  0x32   : > { %1298 = vmatprep.mubr.bf16.mxu0 %v1403_v27  ;;  %1314 = vmatprep.mubr.bf16.mxu1 %v1404_v28 }
  0x33   : > { %769 = vperm.xlu1 %1390, %v683_v25   ;;  %764 = vperm.xlu0 %1389, %v682_v26   ;;  %v928_v25 = vld [vmem:[%s1733_s11 + $0x10] sm:$0xff]  ;;  %p1418_p13 = pneg %p1417_p12 }
  0x34   : > { %v944_v26 = vld [vmem:[%s1733_s11 + $0x90] sm:$0xff] }
  0x37   : > { %779 = vperm.xlu1 %1390, %v685_v29   ;;  %774 = vperm.xlu0 %1389, %v684_v30  }
  0x39   : > { %1299 = vmatmul.mubr.bf16.gmra.mrb[4].mxu0 %v1405_v31  ;;  %1315 = vmatmul.mubr.bf16.gmra.mrb[4].mxu1 %v1406_v32 }
  0x3a   : > { %1302 = vmatprep.mubr.bf16.mxu0 %v1407_v35  ;;  %1318 = vmatprep.mubr.bf16.mxu1 %v1408_v36 }
  0x3b   : > { %789 = vperm.xlu1 %1390, %v687_v33   ;;  %784 = vperm.xlu0 %1389, %v686_v34   ;;  %v926_v33 = vld [vmem:[%s1733_s11] sm:$0xff] }
  0x3c   : > { %v942_v34 = vld [vmem:[%s1733_s11 + $0x80] sm:$0xff] }
  0x3f   : > { %799 = vperm.xlu1 %1390, %v689_v37   ;;  %794 = vperm.xlu0 %1389, %v688_v38  }
  0x41   : > { %1303 = vmatmul.mubr.bf16.gmra.mrb[8].mxu0 %v1409_v39  ;;  %1319 = vmatmul.mubr.bf16.gmra.mrb[8].mxu1 %v1410_v40 }
  0x42   : > { %1306 = vmatprep.mubr.bf16.mxu0 %v1411_v43  ;;  %1322 = vmatprep.mubr.bf16.mxu1 %v1412_v44 }
  0x43   : > { %809 = vperm.xlu1 %1390, %v691_v41   ;;  %804 = vperm.xlu0 %1389, %v690_v42   ;;  %v929_v41 = vld [vmem:[%s1733_s11 + $0x18] sm:$0xff] }
  0x44   : > { %v945_v42 = vld [vmem:[%s1733_s11 + $0x98] sm:$0xff] }
  0x47   : > { %819 = vperm.xlu1 %1390, %v693_v45   ;;  %814 = vperm.xlu0 %1389, %v692_v46  }
  0x49   : > { %1307 = vmatmul.mubr.bf16.gmra.mrb[12].mxu0 %v1413_v47  ;;  %1323 = vmatmul.mubr.bf16.gmra.mrb[12].mxu1 %v1414_v48 }
  0x4b   : > { %829 = vperm.xlu1 %1390, %v695_v49   ;;  %824 = vperm.xlu0 %1389, %v694_v50   ;;  %v927_v49 = vld [vmem:[%s1733_s11 + $0x8] sm:$0xff] }
  0x4c   : > { %v943_v50 = vld [vmem:[%s1733_s11 + $0x88] sm:$0xff] }
  0x4f   : > { %839 = vperm.xlu1 %1390, %v697_v51   ;;  %834 = vperm.xlu0 %1389, %v696_v52  }
  0x53   : > { %849 = vperm.xlu1 %1390, %v699_v53   ;;  %844 = vperm.xlu0 %1389, %v698_v54  }
  0x57   : > { %859 = vperm.xlu1 %1390, %v701_v55   ;;  %854 = vperm.xlu0 %1389, %v700_v56  }
  0x9a   : > { %v705_v57 = vpop.permute.xlu0 %704  ;;  %v715_v58 = vpop.permute.xlu1 %714 }
  0x9e   : > { %v1688_v59 = vpop.permute.xlu0 %709  ;;  %v720_v60 = vpop.permute.xlu1 %719 }
  0xa2   : > { %v1690_v61 = vpop.permute.xlu0 %724  ;;  %v1692_v62 = vpop.permute.xlu1 %729 }
  0xa6   : > { %v1694_v63 = vpop.permute.xlu0 %734  ;;  %v1696_v0 = vpop.permute.xlu1 %739 }
  0xaa   : > { %v1698_v1 = vpop.permute.xlu0 %744  ;;  %v1700_v2 = vpop.permute.xlu1 %749 }
  0xae   : > { %v1702_v3 = vpop.permute.xlu0 %754  ;;  %v1704_v4 = vpop.permute.xlu1 %759 }
  0xb2   : > { %v1706_v5 = vpop.permute.xlu0 %764  ;;  %v1708_v6 = vpop.permute.xlu1 %769 }
  0xb6   : > { %v1710_v7 = vpop.permute.xlu0 %774  ;;  %v1712_v8 = vpop.permute.xlu1 %779 }
  0xba   : > { %v785_v9 = vpop.permute.xlu0 %784  ;;  %v790_v10 = vpop.permute.xlu1 %789 }
  0xbe   : > { %v795_v11 = vpop.permute.xlu0 %794  ;;  %v800_v12 = vpop.permute.xlu1 %799 }
  0xc2   : > { %v1714_v13 = vpop.permute.xlu0 %804  ;;  %v1716_v14 = vpop.permute.xlu1 %809 }
  0xc6   : > { %v1718_v15 = vpop.permute.xlu0 %814  ;;  %v1735_v17 = vpop.permute.xlu1 %819 }
  0xca   : > { %v1737_v18 = vpop.permute.xlu0 %824  ;;  %v1765_v55 = vpop.permute.xlu1 %829 }
  0xce   : > { %v1767_v56 = vpop.permute.xlu0 %834 }
 0x104   : > { %v1296_v19 = vpop.f32.mrb[0].mxu0  ;;  %v1312_v20 = vpop.f32.mrb[0].mxu1 }
 0x105   : > { %v552_v21 = vadd.f32 %v1296_v19, %v1726_v16  ;;  %v616_v22 = vadd.f32 %v1312_v20, %v1726_v16  ;;  %v543_v23 = vpop.f32.mrb[1].mxu0  ;;  %v607_v24 = vpop.f32.mrb[1].mxu1  ;;  %v932_v20 = vld [vmem:[%s1733_s11 + $0x30] sm:$0xff] }
 0x106   : > { %v544_v27 = vadd.f32 %v1726_v16, %v543_v23  ;;  %v608_v28 = vadd.f32 %v1726_v16, %v607_v24  ;;  %v1297_v29 = vpop.f32.mrb[2].mxu0  ;;  %v1313_v30 = vpop.f32.mrb[2].mxu1 }
 0x107   : > { %v864_v31 = vmul.f32 %v715_v58, %v552_v21  ;;  %v880_v32 = vmul.f32 %v795_v11, %v616_v22  ;;  %v555_v35 = vadd.f32 %v1297_v29, %v1726_v16  ;;  %v619_v36 = vadd.f32 %v1313_v30, %v1726_v16  ;;  %v546_v37 = vpop.f32.mrb[3].mxu0  ;;  %v610_v38 = vpop.f32.mrb[3].mxu1  ;;  %v948_v22 = vld [vmem:[%s1733_s11 + $0xb0] sm:$0xff] }
 0x108   : > { %v862_v39 = vmul.f32 %v705_v57, %v544_v27  ;;  %v878_v40 = vmul.f32 %v785_v9, %v608_v28  ;;  %v547_v43 = vadd.f32 %v1726_v16, %v546_v37  ;;  %v611_v44 = vadd.f32 %v1726_v16, %v610_v38  ;;  %v930_v37 = vld [vmem:[%s1733_s11 + $0x20] sm:$0xff] }
 0x109   : > { %896 = vst [vmem:[%s1756_s13 + $0x10] sm:$0xff] %v864_v31  ;;  %v960_v45 = vadd.f32 %v928_v25, %v864_v31  ;;  %912 = vst [vmem:[%s1756_s13 + $0x90] sm:$0xff] %v880_v32  ;;  %v976_v46 = vadd.f32 %v944_v26, %v880_v32  ;;  %v865_v47 = vmul.f32 %v720_v60, %v555_v35  ;;  %v946_v38 = vld [vmem:[%s1733_s11 + $0xa0] sm:$0xff] }
 0x10a   : > { %v881_v48 = vmul.f32 %v800_v12, %v619_v36  ;;  %894 = vst [vmem:[%s1756_s13] sm:$0xff] %v862_v39  ;;  %v958_v51 = vadd.f32 %v926_v33, %v862_v39  ;;  %910 = vst [vmem:[%s1756_s13 + $0x80] sm:$0xff] %v878_v40  ;;  %v974_v52 = vadd.f32 %v942_v34, %v878_v40 }
 0x10b   : > { %v863_v53 = vmul.f32 %v1688_v59, %v547_v43  ;;  %v879_v54 = vmul.f32 %v790_v10, %v611_v44  ;;  %v992_v57 = vmul.f32 0.70710677, %v960_v45  ;;  %v1008_v58 = vmul.f32 0.70710677, %v976_v46  ;;  %897 = vst [vmem:[%s1756_s13 + $0x18] sm:$0xff] %v865_v47  ;;  %v949_v44 = vld [vmem:[%s1733_s11 + $0xb8] sm:$0xff] }
 0x10c   : > { %v961_v60 = vadd.f32 %v929_v41, %v865_v47  ;;  %913 = vst [vmem:[%s1756_s13 + $0x98] sm:$0xff] %v881_v48  ;;  %v977_v9 = vadd.f32 %v945_v42, %v881_v48  ;;  %v990_v11 = vmul.f32 0.70710677, %v958_v51  ;;  %v1006_v12 = vmul.f32 0.70710677, %v974_v52  ;;  %v1300_v10 = vpop.f32.mrb[4].mxu0 }
 0x10d   : > { %895 = vst [vmem:[%s1756_s13 + $0x8] sm:$0xff] %v863_v53  ;;  %v959_v19 = vadd.f32 %v927_v49, %v863_v53  ;;  %911 = vst [vmem:[%s1756_s13 + $0x88] sm:$0xff] %v879_v54  ;;  %v975_v59 = vadd.f32 %v943_v50, %v879_v54  ;;  %v1316_v21 = vpop.f32.mrb[4].mxu1  ;;  %v568_v25 = vadd.f32 %v1300_v10, %v1726_v16  ;;  %v559_v27 = vpop.f32.mrb[5].mxu0  ;;  %v947_v51 = vld [vmem:[%s1733_s11 + $0xa8] sm:$0xff] }
 0x10e   : > { %1024 = vst [vmem:[%s1777_s16 + $0x10] sm:$0xff] %v992_v57  ;;  %1040 = vst [vmem:[%s1777_s16 + $0x90] sm:$0xff] %v1008_v58  ;;  %v993_v23 = vmul.f32 0.70710677, %v961_v60  ;;  %v1009_v24 = vmul.f32 0.70710677, %v977_v9  ;;  %v632_v26 = vadd.f32 %v1316_v21, %v1726_v16  ;;  %v560_v31 = vadd.f32 %v1726_v16, %v559_v27  ;;  %v840_v57 = vpop.permute.xlu1 %839  ;;  %v1813_v58 = vpop.permute.xlu0 %844 }
 0x10f   : > { %v623_v28 = vpop.f32.mrb[5].mxu1  ;;  %1022 = vst [vmem:[%s1777_s16] sm:$0xff] %v990_v11  ;;  %1038 = vst [vmem:[%s1777_s16 + $0x80] sm:$0xff] %v1006_v12  ;;  %v991_v29 = vmul.f32 0.70710677, %v959_v19  ;;  %v1007_v30 = vmul.f32 0.70710677, %v975_v59  ;;  %v868_v35 = vmul.f32 %v1694_v63, %v568_v25 }
 0x110   : > { %v624_v32 = vadd.f32 %v1726_v16, %v623_v28  ;;  %v1301_v33 = vpop.f32.mrb[6].mxu0  ;;  %v1317_v34 = vpop.f32.mrb[6].mxu1  ;;  %1025 = vst [vmem:[%s1777_s16 + $0x18] sm:$0xff] %v993_v23  ;;  %1041 = vst [vmem:[%s1777_s16 + $0x98] sm:$0xff] %v1009_v24  ;;  %v884_v36 = vmul.f32 %v1718_v15, %v632_v26  ;;  %v866_v43 = vmul.f32 %v1690_v61, %v560_v31  ;;  %v933_v15 = vld [vmem:[%s1733_s11 + $0x38] sm:$0xff]  ;;  %v931_v61 = vld [vmem:[%s1733_s11 + $0x28] sm:$0xff] }
 0x111   : > { %v571_v39 = vadd.f32 %v1301_v33, %v1726_v16  ;;  %v635_v40 = vadd.f32 %v1317_v34, %v1726_v16  ;;  %v562_v41 = vpop.f32.mrb[7].mxu0  ;;  %v626_v42 = vpop.f32.mrb[7].mxu1  ;;  %1023 = vst [vmem:[%s1777_s16 + $0x8] sm:$0xff] %v991_v29  ;;  %1039 = vst [vmem:[%s1777_s16 + $0x88] sm:$0xff] %v1007_v30  ;;  %v964_v47 = vadd.f32 %v932_v20, %v868_v35  ;;  %v936_v59 = vld [vmem:[%s1733_s11 + $0x50] sm:$0xff] }
 0x112   : > { %v882_v63 = vmul.f32 %v1714_v13, %v624_v32  ;;  %v563_v45 = vadd.f32 %v1726_v16, %v562_v41  ;;  %v627_v46 = vadd.f32 %v1726_v16, %v626_v42  ;;  %900 = vst [vmem:[%s1756_s13 + $0x30] sm:$0xff] %v868_v35  ;;  %916 = vst [vmem:[%s1756_s13 + $0xb0] sm:$0xff] %v884_v36  ;;  %v952_v20 = vld [vmem:[%s1733_s11 + $0xd0] sm:$0xff]  ;;  %v934_v35 = vld [vmem:[%s1733_s11 + $0x40] sm:$0xff] }
 0x113   : > { %v980_v48 = vadd.f32 %v948_v22, %v884_v36  ;;  %v869_v49 = vmul.f32 %v1696_v0, %v571_v39  ;;  %v885_v50 = vmul.f32 %v1735_v17, %v635_v40  ;;  %898 = vst [vmem:[%s1756_s13 + $0x20] sm:$0xff] %v866_v43  ;;  %v962_v13 = vadd.f32 %v930_v37, %v866_v43  ;;  %v950_v36 = vld [vmem:[%s1733_s11 + $0xc0] sm:$0xff]  ;;  %v953_v42 = vld [vmem:[%s1733_s11 + $0xd8] sm:$0xff] }
 0x114   : > { %914 = vst [vmem:[%s1756_s13 + $0xa0] sm:$0xff] %v882_v63  ;;  %v978_v52 = vadd.f32 %v946_v38, %v882_v63  ;;  %v867_v53 = vmul.f32 %v1692_v62, %v563_v45  ;;  %v883_v54 = vmul.f32 %v1716_v14, %v627_v46  ;;  %v996_v0 = vmul.f32 0.70710677, %v964_v47  ;;  %v1304_v19 = vpop.f32.mrb[8].mxu0  ;;  %v1320_v10 = vpop.f32.mrb[8].mxu1  ;;  %v935_v47 = vld [vmem:[%s1733_s11 + $0x48] sm:$0xff] }
 0x115   : > { %v1012_v17 = vmul.f32 0.70710677, %v980_v48  ;;  %901 = vst [vmem:[%s1756_s13 + $0x38] sm:$0xff] %v869_v49  ;;  %v965_v60 = vadd.f32 %v933_v15, %v869_v49  ;;  %917 = vst [vmem:[%s1756_s13 + $0xb8] sm:$0xff] %v885_v50  ;;  %v981_v9 = vadd.f32 %v949_v44, %v885_v50  ;;  %v994_v11 = vmul.f32 0.70710677, %v962_v13 }
 0x116   : > { %v1010_v12 = vmul.f32 0.70710677, %v978_v52  ;;  %899 = vst [vmem:[%s1756_s13 + $0x28] sm:$0xff] %v867_v53  ;;  %v963_v62 = vadd.f32 %v931_v61, %v867_v53  ;;  %915 = vst [vmem:[%s1756_s13 + $0xa8] sm:$0xff] %v883_v54  ;;  %v979_v14 = vadd.f32 %v947_v51, %v883_v54  ;;  %v584_v23 = vadd.f32 %v1304_v19, %v1726_v16  ;;  %v575_v25 = vpop.f32.mrb[9].mxu0  ;;  %v639_v26 = vpop.f32.mrb[9].mxu1 }
 0x117   : > { %1028 = vst [vmem:[%s1777_s16 + $0x30] sm:$0xff] %v996_v0  ;;  %1044 = vst [vmem:[%s1777_s16 + $0xb0] sm:$0xff] %v1012_v17  ;;  %v997_v21 = vmul.f32 0.70710677, %v965_v60  ;;  %v1013_v22 = vmul.f32 0.70710677, %v981_v9  ;;  %v648_v24 = vadd.f32 %v1320_v10, %v1726_v16  ;;  %v576_v29 = vadd.f32 %v1726_v16, %v575_v25  ;;  %v855_v51 = vpop.permute.xlu0 %854 }
 0x118   : > { %1026 = vst [vmem:[%s1777_s16 + $0x20] sm:$0xff] %v994_v11  ;;  %1042 = vst [vmem:[%s1777_s16 + $0xa0] sm:$0xff] %v1010_v12  ;;  %v995_v27 = vmul.f32 0.70710677, %v963_v62  ;;  %v1011_v28 = vmul.f32 0.70710677, %v979_v14  ;;  %v640_v30 = vadd.f32 %v1726_v16, %v639_v26  ;;  %v872_v33 = vmul.f32 %v1702_v3, %v584_v23 }
 0x119   : > { %v1305_v31 = vpop.f32.mrb[10].mxu0  ;;  %v1321_v32 = vpop.f32.mrb[10].mxu1  ;;  %1029 = vst [vmem:[%s1777_s16 + $0x38] sm:$0xff] %v997_v21  ;;  %1045 = vst [vmem:[%s1777_s16 + $0xb8] sm:$0xff] %v1013_v22  ;;  %v888_v34 = vmul.f32 %v1767_v56, %v648_v24  ;;  %v870_v41 = vmul.f32 %v1698_v1, %v576_v29  ;;  %v937_v56 = vld [vmem:[%s1733_s11 + $0x58] sm:$0xff]  ;;  %v951_v1 = vld [vmem:[%s1733_s11 + $0xc8] sm:$0xff] }
 0x11a   : > { %v587_v37 = vadd.f32 %v1305_v31, %v1726_v16  ;;  %v651_v38 = vadd.f32 %v1321_v32, %v1726_v16  ;;  %v578_v39 = vpop.f32.mrb[11].mxu0  ;;  %v642_v40 = vpop.f32.mrb[11].mxu1  ;;  %1027 = vst [vmem:[%s1777_s16 + $0x28] sm:$0xff] %v995_v27  ;;  %1043 = vst [vmem:[%s1777_s16 + $0xa8] sm:$0xff] %v1011_v28  ;;  %v886_v3 = vmul.f32 %v1737_v18, %v640_v30  ;;  %v940_v17 = vld [vmem:[%s1733_s11 + $0x70] sm:$0xff]  ;;  %v938_v27 = vld [vmem:[%s1733_s11 + $0x60] sm:$0xff] }
 0x11b   : > { %v579_v43 = vadd.f32 %v1726_v16, %v578_v39  ;;  %v643_v63 = vadd.f32 %v1726_v16, %v642_v40  ;;  %904 = vst [vmem:[%s1756_s13 + $0x50] sm:$0xff] %v872_v33  ;;  %v968_v15 = vadd.f32 %v936_v59, %v872_v33  ;;  %920 = vst [vmem:[%s1756_s13 + $0xd0] sm:$0xff] %v888_v34  ;;  %v1850_v18 = vpop.permute.xlu1 %849  ;;  %v956_v9 = vld [vmem:[%s1733_s11 + $0xf0] sm:$0xff]  ;;  %v954_v28 = vld [vmem:[%s1733_s11 + $0xe0] sm:$0xff] }
 0x11c   : > { %v984_v44 = vadd.f32 %v952_v20, %v888_v34  ;;  %v873_v45 = vmul.f32 %v1704_v4, %v587_v37  ;;  %v889_v46 = vmul.f32 %v840_v57, %v651_v38  ;;  %902 = vst [vmem:[%s1756_s13 + $0x40] sm:$0xff] %v870_v41  ;;  %v966_v48 = vadd.f32 %v934_v35, %v870_v41  ;;  %v1308_v0 = vpop.f32.mrb[12].mxu0  ;;  %v1324_v60 = vpop.f32.mrb[12].mxu1  ;;  %v941_v35 = vld [vmem:[%s1733_s11 + $0x78] sm:$0xff] }
 0x11d   : > { %918 = vst [vmem:[%s1756_s13 + $0xc0] sm:$0xff] %v886_v3  ;;  %v982_v49 = vadd.f32 %v950_v36, %v886_v3  ;;  %v871_v50 = vmul.f32 %v1700_v2, %v579_v43  ;;  %v887_v61 = vmul.f32 %v1765_v55, %v643_v63  ;;  %v1000_v4 = vmul.f32 0.70710677, %v968_v15  ;;  %v591_v19 = vpop.f32.mrb[13].mxu0  ;;  %v655_v59 = vpop.f32.mrb[13].mxu1  ;;  %v957_v36 = vld [vmem:[%s1733_s11 + $0xf8] sm:$0xff] }
 0x11e   : > { %v1016_v13 = vmul.f32 0.70710677, %v984_v44  ;;  %905 = vst [vmem:[%s1756_s13 + $0x58] sm:$0xff] %v873_v45  ;;  %v969_v52 = vadd.f32 %v937_v56, %v873_v45  ;;  %921 = vst [vmem:[%s1756_s13 + $0xd8] sm:$0xff] %v889_v46  ;;  %v985_v53 = vadd.f32 %v953_v42, %v889_v46  ;;  %v998_v54 = vmul.f32 0.70710677, %v966_v48 }
 0x11f   : > { %v1014_v57 = vmul.f32 0.70710677, %v982_v49  ;;  %903 = vst [vmem:[%s1756_s13 + $0x48] sm:$0xff] %v871_v50  ;;  %v967_v2 = vadd.f32 %v935_v47, %v871_v50  ;;  %919 = vst [vmem:[%s1756_s13 + $0xc8] sm:$0xff] %v887_v61  ;;  %v983_v55 = vadd.f32 %v951_v1, %v887_v61  ;;  %v600_v62 = vadd.f32 %v1308_v0, %v1726_v16  ;;  %v1309_v23 = vpop.f32.mrb[14].mxu0  ;;  %v1325_v24 = vpop.f32.mrb[14].mxu1 }
 0x120   : > { %1032 = vst [vmem:[%s1777_s16 + $0x50] sm:$0xff] %v1000_v4  ;;  %1048 = vst [vmem:[%s1777_s16 + $0xd0] sm:$0xff] %v1016_v13  ;;  %v1001_v11 = vmul.f32 0.70710677, %v969_v52  ;;  %v1017_v12 = vmul.f32 0.70710677, %v985_v53  ;;  %v664_v14 = vadd.f32 %v1324_v60, %v1726_v16  ;;  %v592_v21 = vadd.f32 %v1726_v16, %v591_v19  ;;  %v860_v33 = vpop.permute.xlu1 %859 }
 0x121   : > { %1030 = vst [vmem:[%s1777_s16 + $0x40] sm:$0xff] %v998_v54  ;;  %1046 = vst [vmem:[%s1777_s16 + $0xc0] sm:$0xff] %v1014_v57  ;;  %v999_v10 = vmul.f32 0.70710677, %v967_v2  ;;  %v1015_v20 = vmul.f32 0.70710677, %v983_v55  ;;  %v656_v22 = vadd.f32 %v1726_v16, %v655_v59  ;;  %v876_v25 = vmul.f32 %v1710_v7, %v600_v62 }
 0x122   : > { %1033 = vst [vmem:[%s1777_s16 + $0x58] sm:$0xff] %v1001_v11  ;;  %1049 = vst [vmem:[%s1777_s16 + $0xd8] sm:$0xff] %v1017_v12  ;;  %v892_v26 = vmul.f32 %v855_v51, %v664_v14  ;;  %v603_v29 = vadd.f32 %v1309_v23, %v1726_v16  ;;  %v667_v30 = vadd.f32 %v1325_v24, %v1726_v16  ;;  %v594_v31 = vpop.f32.mrb[15].mxu0  ;;  %v658_v32 = vpop.f32.mrb[15].mxu1  ;;  %v955_v56 = vld [vmem:[%s1733_s11 + $0xe8] sm:$0xff] }
 0x123   : > { %1031 = vst [vmem:[%s1777_s16 + $0x48] sm:$0xff] %v999_v10  ;;  %1047 = vst [vmem:[%s1777_s16 + $0xc8] sm:$0xff] %v1015_v20  ;;  %v874_v7 = vmul.f32 %v1706_v5, %v592_v21  ;;  %v890_v34 = vmul.f32 %v1813_v58, %v656_v22  ;;  %v595_v37 = vadd.f32 %v1726_v16, %v594_v31  ;;  %v939_v5 = vld [vmem:[%s1733_s11 + $0x68] sm:$0xff]  ;;  %s1421_s11 = scalar_lea.vmem %s1420_s10, 8192 }
 0x124   : > { %v659_v38 = vadd.f32 %v1726_v16, %v658_v32  ;;  %908 = vst [vmem:[%s1756_s13 + $0x70] sm:$0xff] %v876_v25  ;;  %v972_v39 = vadd.f32 %v940_v17, %v876_v25  ;;  %924 = vst [vmem:[%s1756_s13 + $0xf0] sm:$0xff] %v892_v26  ;;  %v988_v40 = vadd.f32 %v956_v9, %v892_v26  ;;  %p1423_p1 = scmp.lt.s32.totalorder %s1421_s11, %s1415_s29 }
 0x125   : > { %v877_v41 = vmul.f32 %v1712_v8, %v603_v29  ;;  %v893_v3 = vmul.f32 %v860_v33, %v667_v30  ;;  %906 = vst [vmem:[%s1756_s13 + $0x60] sm:$0xff] %v874_v7  ;;  %v970_v16 = vadd.f32 %v938_v27, %v874_v7  ;;  %922 = vst [vmem:[%s1756_s13 + $0xe0] sm:$0xff] %v890_v34 }
 0x126   : > { %v986_v8 = vadd.f32 %v954_v28, %v890_v34  ;;  %v875_v58 = vmul.f32 %v1708_v6, %v595_v37  ;;  %v891_v42 = vmul.f32 %v1850_v18, %v659_v38  ;;  %v1004_v43 = vmul.f32 0.70710677, %v972_v39  ;;  %p1424_p2 = por %p1423_p1, %p1422_p0 }
 0x127   : > { %v1020_v63 = vmul.f32 0.70710677, %v988_v40  ;;  %909 = vst [vmem:[%s1756_s13 + $0x78] sm:$0xff] %v877_v41  ;;  %v973_v15 = vadd.f32 %v941_v35, %v877_v41  ;;  %925 = vst [vmem:[%s1756_s13 + $0xf8] sm:$0xff] %v893_v3  ;;  %v989_v44 = vadd.f32 %v957_v36, %v893_v3  ;;  %v1002_v45 = vmul.f32 0.70710677, %v970_v16 }
 0x128   : > { %v1018_v46 = vmul.f32 0.70710677, %v986_v8  ;;  %907 = vst [vmem:[%s1756_s13 + $0x68] sm:$0xff] %v875_v58  ;;  %v971_v47 = vadd.f32 %v939_v5, %v875_v58  ;;  %923 = vst [vmem:[%s1756_s13 + $0xe8] sm:$0xff] %v891_v42  ;;  %v987_v6 = vadd.f32 %v955_v56, %v891_v42  ;;  %p1425_p3 = pnand %p1424_p2, %p1418_p13 }
 0x129   : > { %1036 = vst [vmem:[%s1777_s16 + $0x70] sm:$0xff] %v1004_v43  ;;  %1052 = vst [vmem:[%s1777_s16 + $0xf0] sm:$0xff] %v1020_v63  ;;  %v1005_v1 = vmul.f32 0.70710677, %v973_v15  ;;  %v1021_v18 = vmul.f32 0.70710677, %v989_v44 }
 0x12a   : > { %1428 = shalt.err (!%p1425_p3)
}
 0x12b   : > { %s1429_s12 = scalar_lea.hbm %s1897_s20, 4096  ;;  %s1433_s18 = scalar_lea.hbm %s2007_s5, 8192 }
 0x12c   : > { %p1430_p4 = scmp.ne.s32.totalorder %s1897_s20, %s1429_s12  ;;  %p1434_p9 = scmp.lt.u32.totalorder %s1897_s20, %s2007_s5 }
 0x12d   : > { %p1435_p10 = scmp.lt.u32.totalorder %s1433_s18, %s1429_s12  ;;  %p1437_p12 = scmp.lt.u32.totalorder %s1429_s12, %s1897_s20 }
 0x12e   : > { %p1431_p7 = pnand %p1430_p4, %p1589_p5 }
 0x12f   : > { %p1436_p11 = por %p1435_p10, %p1434_p9 }
 0x130   : > { %p1432_p8 = pneg %p1431_p7 }
 0x131   : > { %p1438_p13 = por %p1437_p12, %p1436_p11 }
 0x133   : > { %p1439_p0 = pnand %p1438_p13, %p1432_p8 }
 0x135   : > { %1442 = shalt.err (!%p1439_p0)
}
 0x136   : > { %s1513_s29 = smov 128   ;;  %s1514_s11 = smov 8   ;;  %1034 = vst [vmem:[%s1777_s16 + $0x60] sm:$0xff] %v1002_v45  ;;  %1050 = vst [vmem:[%s1777_s16 + $0xe0] sm:$0xff] %v1018_v46  ;;  %v1003_v48 = vmul.f32 0.70710677, %v971_v47 }
 0x137   : > { %1342 = dma.vmem_to_hbm [thread:$0]  (%p1589_p5), %s1901_s15, 4096, %s1897_s20, %s1055_s28, %s1513_s29, %s1513_s29, %s1514_s11   ;;  %v1019_v49 = vmul.f32 0.70710677, %v987_v6 }
 0x138   : > { %s1948_s17 = scalar_lea.hbm %s2008_s6, %s1252_s14  ;;  %1037 = vst [vmem:[%s1777_s16 + $0x78] sm:$0xff] %v1005_v1  ;;  %1053 = vst [vmem:[%s1777_s16 + $0xf8] sm:$0xff] %v1021_v18  ;;  %s1060_s15 = scalar_lea.sflag [#allocation5], %s1721_s19 }
 0x139   : > { %1035 = vst [vmem:[%s1777_s16 + $0x68] sm:$0xff] %v1003_v48  ;;  %1051 = vst [vmem:[%s1777_s16 + $0xe8] sm:$0xff] %v1019_v49  ;;  %s1443_s20 = scalar_lea.vmem %s1952_s26, 4096  ;;  %s1515_s25 = smov [#allocation4]  }
 0x13a   : > { %p1444_p1 = scmp.ne.s32.totalorder %s1952_s26, %s1443_s20  ;;  %s1447_s28 = sshll.u32 %s1515_s25, 4  ;;  %s1448_s28 = int_to_ptr.vmem [resolvable:$false] %s1447_s28 }
 0x13b   : > { %s1449_s14 = scalar_lea.vmem %s1448_s28, 8192  ;;  %p1450_p4 = scmp.lt.s32.totalorder %s1952_s26, %s1448_s28 }
 0x13c   : > { %p1445_p2 = pnand %p1444_p1, %p1589_p5  ;;  %p1451_p7 = scmp.lt.s32.totalorder %s1449_s14, %s1443_s20 }
 0x13e   : > { %p1446_p3 = pneg %p1445_p2  ;;  %p1452_p8 = por %p1451_p7, %p1450_p4 }
 0x140   : > { %p1453_p9 = pnand %p1452_p8, %p1446_p3 }
 0x142   : > { %1456 = shalt.err (!%p1453_p9)
}
 0x143   : > { %s1457_s16 = scalar_lea.hbm %s1948_s17, 4096  ;;  %s1461_s10 = scalar_lea.hbm %s2008_s6, 8192 }
 0x144   : > { %p1458_p10 = scmp.ne.s32.totalorder %s1948_s17, %s1457_s16  ;;  %p1462_p13 = scmp.lt.u32.totalorder %s1948_s17, %s2008_s6 }
 0x145   : > { %p1463_p0 = scmp.lt.u32.totalorder %s1461_s10, %s1457_s16  ;;  %p1465_p2 = scmp.lt.u32.totalorder %s1457_s16, %s1948_s17 }
 0x146   : > { %p1459_p11 = pnand %p1458_p10, %p1589_p5 }
 0x147   : > { %p1464_p1 = por %p1463_p0, %p1462_p13 }
 0x148   : > { %p1460_p12 = pneg %p1459_p11 }
 0x149   : > { %p1466_p3 = por %p1465_p2, %p1464_p1 }
 0x14b   : > { %p1467_p4 = pnand %p1466_p3, %p1460_p12 }
 0x14d   : > { %1470 = shalt.err (!%p1467_p4)
}
 0x14e   : > { %1343 = dma.vmem_to_hbm [thread:$0]  (%p1589_p5), %s1952_s26, 4096, %s1948_s17, %s1060_s15, %s1513_s29, %s1513_s29, %s1514_s11  }
 0x14f PF: > { %p1353_p7 = scmp.ge.s32.totalorder %s1509_s24, 2  ;;  %s1104_s20 = sand.u32 1, %s1497_s21  }
 0x150   : > { %s1105_s25 = scalar_lea.sflag [#allocation3], %s1104_s20 }
 0x151   : > { %p1347_p8 = pnand %p1353_p7, %p1593_p6 }
 0x153   : > { %1488 = dma.done.wait (!%p1347_p8), %s1105_s25, 4096  }
 0x154   : > { %1490 = vsyncadd (!%p1347_p8), %s1105_s25, 4294963200  ;;  %s1114_s7 = scalar_lea.sflag [#allocation5], %s1104_s20 }
 0x155   : > { %1492 = dma.done.wait (!%p1347_p8), %s1114_s7, 4096  }
 0x156   : > { %1494 = vsyncadd (!%p1347_p8), %s1114_s7, 4294963200  ;;  %p20_p5 = scmp.ge.s32.totalorder %s1576_s27, 4   ;;  %s2011_s21 = smov %s1501_s22 }
 0x157   : > { %s2012_s22 = smov %s1505_s23  ;;  %s2013_s23 = smov %s1587_s30 }
 0x158   : > { %s2014_s24 = smov %s1576_s27  ;;  %22 = sbr.rel (!%p20_p5) target bundleno = 5 (0x5), region = 98 }
 0x15f   :  { %1119 = vsyncpa [#allocation3], 1 }
 0x160   :  { %1121 = vsyncpa [#allocation3 + $0x1], 1 }
 0x161   :  { %1122 = vsyncpa [#allocation5], 1 }
 0x162   :  { %1124 = vsyncpa [#allocation5 + $0x1], 1 }

// kernel: fconv_encoder_forward.12
= control target key start
LH: loop header
LB: loop body
LE: loop exit
PB: predicated region body
PF: predicated region fallthrough
CT: control target
= control target key end

     0   :  { %s3378_s21 = smov 0   ;;  %s3380_s22 = smov 0   ;;  %s4158_s0 = inlined_call_operand.vmem [shape: bf16[2,256,768], index: 0, kind: input, shape index: {}]   ;;  %s4159_s1 = inlined_call_operand.vmem [shape: bf16[768,128], index: 1, kind: input, shape index: {}]   ;;  %s4160_s2 = inlined_call_operand.vmem [shape: bf16[768,128], index: 2, kind: input, shape index: {}]   ;;  %s4161_s3 = inlined_call_operand.vmem [shape: f32[1,128], index: 3, kind: input, shape index: {}]   ;;  %s4162_s4 = inlined_call_operand.vmem [shape: f32[1,128], index: 4, kind: input, shape index: {}]   ;;  %s4163_s5 = inlined_call_operand.vmem [shape: bf16[2,256,128], index: 5, kind: input, shape index: {}]   ;;  %s4164_s6 = inlined_call_operand.vmem [shape: bf16[2,256,128], index: 6, kind: output, shape index: {}]  }
   0x1   :  { %s3382_s23 = smov 0   ;;  %s3384_s24 = smov 0  }
   0x2   :  { %s3386_s25 = smov 0  }
   0x3 LB: > { %s25_s26 = sadd.s32 1, %s3333_s23  ;;  %s28_s27 = sadd.s32 1, %s3337_s24  ;;  %s3341_s25 = sphi %s3386_s25, %s16_s25   ;;  %s3337_s24 = sphi %s3384_s24, %s4168_s24   ;;  %s3333_s23 = sphi %s3382_s23, %s4167_s23   ;;  %s3329_s22 = sphi %s3380_s22, %s4166_s22   ;;  %s3325_s21 = sphi %s3378_s21, %s4165_s21  }
   0x4   : > { %p26_p0 = scmp.ge.s32.totalorder %s25_s26, 2  ;;  %p2354_p1 = scmp.ge.s32.totalorder %s3341_s25, 1 }
   0x5   : > { %p251_p2 = scmp.lt.s32.totalorder %s3341_s25, 5 }
   0x6   : > { %s4170_s26 = smov (%p26_p0, %s25_s26), 0  ;;  %s4172_s27 = smov (!%p26_p0, %s28_s27), %s3337_s24 }
   0x7   : > { %p252_p3 = pnand %p2354_p1, %p251_p2  ;;  %p30_p4 = scmp.ge.s32.totalorder %s4172_s27, 2 }
   0x8   : > { %v3071_v0 = vld [vmem:[%s4159_s1 + $0x40] sm:$0xff] (!%p252_p3)   ;;  %v3075_v4 = vld [vmem:[%s4159_s1 + $0x48] sm:$0xff] (!%p252_p3)   ;;  %v3079_v8 = vld [vmem:[%s4159_s1 + $0x50] sm:$0xff] (!%p252_p3)   ;;  %s2355_s29 = sshll.u32 (!%p252_p3), %s3325_s21, 4  ;;  %p300_p5 = scmp.lt.s32.totalorder (!%p252_p3), %s3329_s22, 1 }
   0x9   : > { %s4174_s27 = smov (%p30_p4, %s4172_s27), 0  ;;  %255 = sbr.rel (%p252_p3) target bundleno = 484 (0x1e4), region = 44 }
   0xa   : > { %v3072_v1 = vld [vmem:[%s4159_s1 + $0xc0] sm:$0xff] (!%p252_p3)   ;;  %2645 = vmatprep.subr.bf16.mxu0 (!%p252_p3), %v3071_v0  ;;  %v3076_v5 = vld [vmem:[%s4159_s1 + $0xc8] sm:$0xff] (!%p252_p3)   ;;  %v3080_v9 = vld [vmem:[%s4159_s1 + $0xd0] sm:$0xff] (!%p252_p3)   ;;  %p302_p6 = scmp.lt.s32.totalorder (!%p252_p3), %s2355_s29, 31 }
   0xb   : > { %v3073_v2 = vld [vmem:[%s4159_s1] sm:$0xff] (!%p252_p3)   ;;  %2709 = vmatprep.subr.bf16.mxu1 (!%p252_p3), %v3072_v1  ;;  %v3077_v6 = vld [vmem:[%s4159_s1 + $0x8] sm:$0xff] (!%p252_p3)   ;;  %v3081_v10 = vld [vmem:[%s4159_s1 + $0x10] sm:$0xff] (!%p252_p3)  }
   0xc   : > { %v3074_v3 = vld [vmem:[%s4159_s1 + $0x80] sm:$0xff] (!%p252_p3)   ;;  %2646 = vmatpush3.bf16.msra.mxu0 (!%p252_p3), %v3073_v2  ;;  %v3078_v7 = vld [vmem:[%s4159_s1 + $0x88] sm:$0xff] (!%p252_p3)   ;;  %v3082_v11 = vld [vmem:[%s4159_s1 + $0x90] sm:$0xff] (!%p252_p3)  }
   0xd   : > { %2710 = vmatpush3.bf16.msra.mxu1 (!%p252_p3), %v3074_v3  ;;  %2647 = vmatprep.subr.bf16.mxu0 (!%p252_p3), %v3075_v4  ;;  %v3083_v12 = vld [vmem:[%s4159_s1 + $0x58] sm:$0xff] (!%p252_p3)   ;;  %v3087_v16 = vld [vmem:[%s4159_s1 + $0x60] sm:$0xff] (!%p252_p3)   ;;  %v3091_v20 = vld [vmem:[%s4159_s1 + $0x68] sm:$0xff] (!%p252_p3)  }
   0xe   : > { %2711 = vmatprep.subr.bf16.mxu1 (!%p252_p3), %v3076_v5  ;;  %v3084_v13 = vld [vmem:[%s4159_s1 + $0xd8] sm:$0xff] (!%p252_p3)   ;;  %v3088_v17 = vld [vmem:[%s4159_s1 + $0xe0] sm:$0xff] (!%p252_p3)   ;;  %v3092_v21 = vld [vmem:[%s4159_s1 + $0xe8] sm:$0xff] (!%p252_p3)  }
   0xf   : > { %v3085_v14 = vld [vmem:[%s4159_s1 + $0x18] sm:$0xff] (!%p252_p3)   ;;  %v3089_v18 = vld [vmem:[%s4159_s1 + $0x20] sm:$0xff] (!%p252_p3)   ;;  %v3093_v22 = vld [vmem:[%s4159_s1 + $0x28] sm:$0xff] (!%p252_p3)  }
  0x10   : > { %2648 = vmatpush3.bf16.msra.mxu0 %v3077_v6  ;;  %s4176_s22 = smov (!%p300_p5, %s3329_s22), 1  ;;  %v3086_v15 = vld [vmem:[%s4159_s1 + $0x98] sm:$0xff]   ;;  %s4178_s29 = smov (!%p302_p6, %s2355_s29), 31  ;;  %v3090_v19 = vld [vmem:[%s4159_s1 + $0xa0] sm:$0xff]   ;;  %v3094_v23 = vld [vmem:[%s4159_s1 + $0xa8] sm:$0xff]  }
  0x11   : > { %2712 = vmatpush3.bf16.msra.mxu1 %v3078_v7  ;;  %2649 = vmatprep.subr.bf16.mxu0 %v3079_v8  ;;  %s3030_s9 = smul.u32 192, %s4176_s22  ;;  %v3095_v24 = vld [vmem:[%s4159_s1 + $0x70] sm:$0xff]   ;;  %v3099_v28 = vld [vmem:[%s4159_s1 + $0x78] sm:$0xff]   ;;  %v3109_v36 = vld [vmem:[%s4159_s1 + $0x140] sm:$0xff]  }
  0x12   : > { %2713 = vmatprep.subr.bf16.mxu1 %v3080_v9  ;;  %s3029_s12 = smul.u32 6, %s4178_s29  ;;  %v3096_v25 = vld [vmem:[%s4159_s1 + $0xf0] sm:$0xff]   ;;  %v3100_v29 = vld [vmem:[%s4159_s1 + $0xf8] sm:$0xff]   ;;  %v3110_v37 = vld [vmem:[%s4159_s1 + $0x100] sm:$0xff]  }
  0x13   : > { %v3097_v26 = vld [vmem:[%s4159_s1 + $0x30] sm:$0xff]   ;;  %v3101_v30 = vld [vmem:[%s4159_s1 + $0x38] sm:$0xff]   ;;  %v3111_v38 = vld [vmem:[%s4160_s2 + $0x40] sm:$0xff]  }
  0x14   : > { %2650 = vmatpush3.bf16.msra.mxu0 %v3081_v10  ;;  %s306_s20 = sadd.s32 %s3030_s9, %s3029_s12  ;;  %v3098_v27 = vld [vmem:[%s4159_s1 + $0xb0] sm:$0xff]   ;;  %v3102_v31 = vld [vmem:[%s4159_s1 + $0xb8] sm:$0xff]   ;;  %v3112_v39 = vld [vmem:[%s4160_s2] sm:$0xff]  }
  0x15   : > { %2714 = vmatpush3.bf16.msra.mxu1 %v3082_v11  ;;  %2651 = vmatprep.subr.bf16.mxu0 %v3083_v12  ;;  %s2356_s21 = sshll.u32 %s306_s20, 2  ;;  %v3119_v44 = vld [vmem:[%s4159_s1 + $0x148] sm:$0xff]   ;;  %v3129_v52 = vld [vmem:[%s4159_s1 + $0x150] sm:$0xff]   ;;  %v3139_v60 = vld [vmem:[%s4159_s1 + $0x158] sm:$0xff]  }
  0x16   : > { %2715 = vmatprep.subr.bf16.mxu1 %v3084_v13  ;;  %s3514_s19 = scalar_lea.vmem %s4158_s0, %s2356_s21  ;;  %v3120_v45 = vld [vmem:[%s4159_s1 + $0x108] sm:$0xff]   ;;  %v3130_v53 = vld [vmem:[%s4159_s1 + $0x110] sm:$0xff]   ;;  %v3140_v61 = vld [vmem:[%s4159_s1 + $0x118] sm:$0xff]   ;;  %s2358_s21 = sshll.u32 %s4176_s22, 5 }
  0x17   : > { %v3523_v32 = vld [vmem:[%s3514_s19] ss:$24 sps:$4 sm:$0xff]   ;;  %v3526_v33 = vld [vmem:[%s3514_s19 + $0x4] ss:$24 sps:$4 sm:$0xff]   ;;  %v3551_v40 = vld [vmem:[%s3514_s19 + $0x34] ss:$24 sps:$4 sm:$0xff]   ;;  %s4074_s13 = sadd.s32 %s2358_s21, %s4178_s29 }
  0x18   : > { %2652 = vmatpush3.bf16.msra.mxu0 %v3085_v14  ;;  %v3529_v34 = vld [vmem:[%s3514_s19 + $0x8] ss:$24 sps:$4 sm:$0xff]   ;;  %v3532_v35 = vld [vmem:[%s3514_s19 + $0xc] ss:$24 sps:$4 sm:$0xff]   ;;  %1042 = vmatprep.mubr.bf16.mxu0 %v3526_v33  ;;  %v3554_v41 = vld [vmem:[%s3514_s19 + $0x3c] ss:$24 sps:$4 sm:$0xff]  }
  0x19   : > { %2716 = vmatpush3.bf16.msra.mxu1 %v3086_v15  ;;  %2653 = vmatprep.subr.bf16.mxu0 %v3087_v16  ;;  %v3557_v42 = vld [vmem:[%s3514_s19 + $0x30] ss:$24 sps:$4 sm:$0xff]   ;;  %v3579_v48 = vld [vmem:[%s3514_s19 + $0x64] ss:$24 sps:$4 sm:$0xff]   ;;  %v3585_v50 = vld [vmem:[%s3514_s19 + $0x60] ss:$24 sps:$4 sm:$0xff]  }
  0x1a   : > { %2717 = vmatprep.subr.bf16.mxu1 %v3088_v17  ;;  %1139 = vmatprep.mubr.bf16.mxu1 %v3532_v35  ;;  %v3561_v43 = vld [vmem:[%s3514_s19 + $0x38] ss:$24 sps:$4 sm:$0xff]   ;;  %v3121_v46 = vld [vmem:[%s4160_s2 + $0x48] sm:$0xff]   ;;  %v3610_v57 = vld [vmem:[%s3514_s19 + $0x9c] ss:$24 sps:$4 sm:$0xff]   ;;  %s2359_s22 = sshll.u32 %s4074_s13, 2 }
  0x1b   : > { %v3122_v47 = vld [vmem:[%s4160_s2 + $0x8] sm:$0xff]   ;;  %v3131_v54 = vld [vmem:[%s4160_s2 + $0x50] sm:$0xff]   ;;  %v3141_v62 = vld [vmem:[%s4160_s2 + $0x58] sm:$0xff]   ;;  %s4084_s9 = scalar_lea.vmem %s4163_s5, %s2359_s22  ;;  %s4103_s16 = scalar_lea.vmem %s4164_s6, %s2359_s22 }
  0x1c   : > { %2654 = vmatpush3.bf16.msra.mxu0 %v3089_v18  ;;  %v3582_v49 = vld [vmem:[%s3514_s19 + $0x6c] ss:$24 sps:$4 sm:$0xff]   ;;  %v3588_v51 = vld [vmem:[%s3514_s19 + $0x68] ss:$24 sps:$4 sm:$0xff]   ;;  %v3132_v55 = vld [vmem:[%s4160_s2 + $0x10] sm:$0xff]  }
  0x1d   : > { %2718 = vmatpush3.bf16.msra.mxu1 %v3090_v19  ;;  %2655 = vmatprep.subr.bf16.mxu0 %v3091_v20  ;;  %v3606_v56 = vld [vmem:[%s3514_s19 + $0x94] ss:$24 sps:$4 sm:$0xff]   ;;  %v3614_v58 = vld [vmem:[%s3514_s19 + $0x90] ss:$24 sps:$4 sm:$0xff]   ;;  %v3142_v63 = vld [vmem:[%s4160_s2 + $0x18] sm:$0xff]  }
  0x1e   : > { %2719 = vmatprep.subr.bf16.mxu1 %v3092_v21  ;;  %v3618_v59 = vld [vmem:[%s3514_s19 + $0x98] ss:$24 sps:$4 sm:$0xff]   ;;  %v3633_v0 = vld [vmem:[%s3514_s19 + $0xc4] ss:$24 sps:$4 sm:$0xff]   ;;  %v3649_v4 = vld [vmem:[%s3514_s19 + $0xc8] ss:$24 sps:$4 sm:$0xff]  }
  0x1f   : > { %v3637_v1 = vld [vmem:[%s3514_s19 + $0xcc] ss:$24 sps:$4 sm:$0xff]   ;;  %v3643_v2 = vld [vmem:[%s3514_s19 + $0xc0] ss:$24 sps:$4 sm:$0xff]   ;;  %v3664_v9 = vld [vmem:[%s3514_s19 + $0xfc] ss:$24 sps:$4 sm:$0xff]  }
  0x20   : > { %2656 = vmatpush3.bf16.msra.mxu0 %v3093_v22  ;;  %v3149_v3 = vld [vmem:[%s4159_s1 + $0x160] sm:$0xff]   ;;  %v3661_v8 = vld [vmem:[%s3514_s19 + $0xf4] ss:$24 sps:$4 sm:$0xff]   ;;  %v3677_v12 = vld [vmem:[%s3514_s19 + $0xf0] ss:$24 sps:$4 sm:$0xff]  }
  0x21   : > { %2720 = vmatpush3.bf16.msra.mxu1 %v3094_v23  ;;  %2657 = vmatprep.subr.bf16.mxu0 %v3095_v24  ;;  %v3150_v5 = vld [vmem:[%s4159_s1 + $0x120] sm:$0xff]   ;;  %v3159_v10 = vld [vmem:[%s4159_s1 + $0x168] sm:$0xff]   ;;  %v3686_v15 = vld [vmem:[%s3514_s19 + $0xf8] ss:$24 sps:$4 sm:$0xff]  }
  0x22   : > { %2721 = vmatprep.subr.bf16.mxu1 %v3096_v25  ;;  %v3151_v6 = vld [vmem:[%s4160_s2 + $0x60] sm:$0xff]   ;;  %v3160_v11 = vld [vmem:[%s4159_s1 + $0x128] sm:$0xff]   ;;  %v3169_v18 = vld [vmem:[%s4159_s1 + $0x170] sm:$0xff]  }
  0x23   : > { %v3152_v7 = vld [vmem:[%s4160_s2 + $0x20] sm:$0xff]   ;;  %v3161_v13 = vld [vmem:[%s4160_s2 + $0x68] sm:$0xff]   ;;  %v3170_v19 = vld [vmem:[%s4159_s1 + $0x130] sm:$0xff]  }
  0x24   : > { %2658 = vmatpush3.bf16.msra.mxu0 %v3097_v26  ;;  %v3162_v14 = vld [vmem:[%s4160_s2 + $0x28] sm:$0xff]   ;;  %v3689_v16 = vld [vmem:[%s3514_s19 + $0x124] ss:$24 sps:$4 sm:$0xff]   ;;  %v3171_v20 = vld [vmem:[%s4160_s2 + $0x70] sm:$0xff]  }
  0x25   : > { %2722 = vmatpush3.bf16.msra.mxu1 %v3098_v27  ;;  %2659 = vmatprep.subr.bf16.mxu0 %v3099_v28  ;;  %v3692_v17 = vld [vmem:[%s3514_s19 + $0x12c] ss:$24 sps:$4 sm:$0xff]   ;;  %v3172_v21 = vld [vmem:[%s4160_s2 + $0x30] sm:$0xff]   ;;  %v3711_v22 = vld [vmem:[%s3514_s19 + $0x120] ss:$24 sps:$4 sm:$0xff]  }
  0x26   : > { %2723 = vmatprep.subr.bf16.mxu1 %v3100_v29  ;;  %v3714_v23 = vld [vmem:[%s3514_s19 + $0x128] ss:$24 sps:$4 sm:$0xff]   ;;  %v3717_v24 = vld [vmem:[%s3514_s19 + $0x154] ss:$24 sps:$4 sm:$0xff]   ;;  %v3179_v26 = vld [vmem:[%s4159_s1 + $0x178] sm:$0xff]  }
  0x27   : > { %v3720_v25 = vld [vmem:[%s3514_s19 + $0x15c] ss:$24 sps:$4 sm:$0xff]  }
  0x28   : > { %2660 = vmatpush3.bf16.msra.mxu0 %v3101_v30  ;;  %v3180_v27 = vld [vmem:[%s4159_s1 + $0x138] sm:$0xff]   ;;  %v3739_v30 = vld [vmem:[%s3514_s19 + $0x150] ss:$24 sps:$4 sm:$0xff]  }
  0x29   : > { %2724 = vmatpush3.bf16.msra.mxu1 %v3102_v31  ;;  %2773 = vmatprep.subr.bf16.mxu0 %v3109_v36  ;;  %v3181_v28 = vld [vmem:[%s4160_s2 + $0x78] sm:$0xff]   ;;  %v3186_v36 = vld [vmem:[%s4160_s2 + $0xc0] sm:$0xff]  }
  0x2a   : > { %2837 = vmatprep.subr.bf16.mxu1 %v3111_v38  ;;  %v3182_v29 = vld [vmem:[%s4160_s2 + $0x38] sm:$0xff]   ;;  %v3188_v38 = vld [vmem:[%s4160_s2 + $0x140] sm:$0xff]  }
  0x2b   : > { %1043 = vmatmul.mubr.bf16.vlgmr.msra.gmra.mrb[0].mxu0 %v3523_v32  ;;  %v3742_v31 = vld [vmem:[%s3514_s19 + $0x158] ss:$24 sps:$4 sm:$0xff]  }
  0x2c   : > { %1140 = vmatmul.mubr.bf16.vlgmr.msra.gmra.mrb[0].mxu1 %v3529_v34  ;;  %2774 = vmatpush3.bf16.msra.mxu0 %v3110_v37  ;;  %v3748_v37 = vld [vmem:[%s3514_s19 + $0x14] ss:$24 sps:$4 sm:$0xff]  }
  0x2d   : > { %2838 = vmatpush3.bf16.msra.mxu1 %v3112_v39  ;;  %1050 = vmatprep.mubr.bf16.mxu0 %v3551_v40  ;;  %v3758_v39 = vld [vmem:[%s3514_s19 + $0x10] ss:$24 sps:$4 sm:$0xff]  }
  0x2e   : > { %1147 = vmatprep.mubr.bf16.mxu1 %v3554_v41  ;;  %2775 = vmatprep.subr.bf16.mxu0 %v3119_v44  ;;  %v3187_v44 = vld [vmem:[%s4160_s2 + $0x80] sm:$0xff]  }
  0x2f   : > { %2839 = vmatprep.subr.bf16.mxu1 %v3121_v46  ;;  %v3767_v46 = vld [vmem:[%s3514_s19 + $0x44] ss:$24 sps:$4 sm:$0xff]  }
  0x30   : > { %2776 = vmatpush3.bf16.msra.mxu0 %v3120_v45  ;;  %v3189_v45 = vld [vmem:[%s4160_s2 + $0x100] sm:$0xff]  }
  0x31   : > { %2840 = vmatpush3.bf16.msra.mxu1 %v3122_v47  ;;  %2777 = vmatprep.subr.bf16.mxu0 %v3129_v52  ;;  %v3193_v47 = vld [vmem:[%s4160_s2 + $0xc8] sm:$0xff]  }
  0x32   : > { %2841 = vmatprep.subr.bf16.mxu1 %v3131_v54  ;;  %v3194_v52 = vld [vmem:[%s4160_s2 + $0x88] sm:$0xff]   ;;  %v3200_v54 = vld [vmem:[%s4160_s2 + $0xd0] sm:$0xff]  }
  0x33   : > { %1051 = vmatmul.mubr.bf16.gmra.mrb[4].mxu0 %v3557_v42 }
  0x34   : > { %1148 = vmatmul.mubr.bf16.gmra.mrb[4].mxu1 %v3561_v43  ;;  %1058 = vmatprep.mubr.bf16.mxu0 %v3579_v48 }
  0x35   : > { %1155 = vmatprep.mubr.bf16.mxu1 %v3582_v49  ;;  %2778 = vmatpush3.bf16.msra.mxu0 %v3130_v53  ;;  %v3196_v53 = vld [vmem:[%s4160_s2 + $0x108] sm:$0xff]  }
  0x36   : > { %2842 = vmatpush3.bf16.msra.mxu1 %v3132_v55  ;;  %2779 = vmatprep.subr.bf16.mxu0 %v3139_v60  ;;  %v3792_v55 = vld [vmem:[%s3514_s19 + $0x40] ss:$24 sps:$4 sm:$0xff]   ;;  %v3795_v60 = vld [vmem:[%s3514_s19 + $0x74] ss:$24 sps:$4 sm:$0xff]  }
  0x37   : > { %2843 = vmatprep.subr.bf16.mxu1 %v3141_v62  ;;  %v3207_v62 = vld [vmem:[%s4160_s2 + $0xd8] sm:$0xff]  }
  0x39   : > { %2780 = vmatpush3.bf16.msra.mxu0 %v3140_v61  ;;  %v3201_v61 = vld [vmem:[%s4160_s2 + $0x90] sm:$0xff]  }
  0x3a   : > { %2844 = vmatpush3.bf16.msra.mxu1 %v3142_v63  ;;  %2781 = vmatprep.subr.bf16.mxu0 %v3149_v3  ;;  %v3209_v63 = vld [vmem:[%s4160_s2 + $0x158] sm:$0xff]  }
  0x3b   : > { %1059 = vmatmul.mubr.bf16.gmra.mrb[8].mxu0 %v3585_v50  ;;  %2845 = vmatprep.subr.bf16.mxu1 %v3151_v6  ;;  %v3208_v3 = vld [vmem:[%s4160_s2 + $0x98] sm:$0xff]  }
  0x3c   : > { %1156 = vmatmul.mubr.bf16.gmra.mrb[8].mxu1 %v3588_v51  ;;  %1066 = vmatprep.mubr.bf16.mxu0 %v3606_v56  ;;  %v3210_v6 = vld [vmem:[%s4160_s2 + $0x118] sm:$0xff]  }
  0x3d   : > { %1163 = vmatprep.mubr.bf16.mxu1 %v3610_v57  ;;  %2782 = vmatpush3.bf16.msra.mxu0 %v3150_v5  ;;  %v3817_v5 = vld [vmem:[%s3514_s19 + $0x70] ss:$24 sps:$4 sm:$0xff]  }
  0x3e   : > { %2846 = vmatpush3.bf16.msra.mxu1 %v3152_v7  ;;  %2783 = vmatprep.subr.bf16.mxu0 %v3159_v10  ;;  %v3823_v7 = vld [vmem:[%s3514_s19 + $0xa4] ss:$24 sps:$4 sm:$0xff]  }
  0x3f   : > { %2847 = vmatprep.subr.bf16.mxu1 %v3161_v13  ;;  %v3215_v10 = vld [vmem:[%s4160_s2 + $0xa0] sm:$0xff]   ;;  %v3221_v13 = vld [vmem:[%s4160_s2 + $0xe8] sm:$0xff]  }
  0x41   : > { %2784 = vmatpush3.bf16.msra.mxu0 %v3160_v11  ;;  %v3217_v11 = vld [vmem:[%s4160_s2 + $0x120] sm:$0xff]  }
  0x42   : > { %2848 = vmatpush3.bf16.msra.mxu1 %v3162_v14  ;;  %2785 = vmatprep.subr.bf16.mxu0 %v3169_v18  ;;  %v3223_v14 = vld [vmem:[%s4160_s2 + $0x168] sm:$0xff]   ;;  %v3848_v18 = vld [vmem:[%s3514_s19 + $0xa0] ss:$24 sps:$4 sm:$0xff]  }
  0x43   : > { %1067 = vmatmul.mubr.bf16.gmra.mrb[12].mxu0 %v3614_v58  ;;  %2849 = vmatprep.subr.bf16.mxu1 %v3171_v20  ;;  %v3224_v20 = vld [vmem:[%s4160_s2 + $0x128] sm:$0xff]  }
  0x44   : > { %1164 = vmatmul.mubr.bf16.gmra.mrb[12].mxu1 %v3618_v59  ;;  %1074 = vmatprep.mubr.bf16.mxu0 %v3633_v0 }
  0x45   : > { %1171 = vmatprep.mubr.bf16.mxu1 %v3637_v1  ;;  %2786 = vmatpush3.bf16.msra.mxu0 %v3170_v19  ;;  %v3222_v19 = vld [vmem:[%s4160_s2 + $0xa8] sm:$0xff]  }
  0x46   : > { %2850 = vmatpush3.bf16.msra.mxu1 %v3172_v21  ;;  %2787 = vmatprep.subr.bf16.mxu0 %v3179_v26  ;;  %v3211_v21 = vld [vmem:[%s3514_s19 + $0xd4] ss:$24 sps:$4 sm:$0xff]  }
  0x47   : > { %2851 = vmatprep.subr.bf16.mxu1 %v3181_v28  ;;  %v3229_v26 = vld [vmem:[%s4160_s2 + $0xb0] sm:$0xff]   ;;  %v3235_v28 = vld [vmem:[%s4160_s2 + $0xf8] sm:$0xff]  }
  0x49   : > { %2788 = vmatpush3.bf16.msra.mxu0 %v3180_v27  ;;  %v3231_v27 = vld [vmem:[%s4160_s2 + $0x130] sm:$0xff]  }
  0x4a   : > { %2852 = vmatpush3.bf16.msra.mxu1 %v3182_v29  ;;  %2901 = vmatprep.subr.bf16.mxu0 %v3186_v36  ;;  %v3236_v29 = vld [vmem:[%s4160_s2 + $0xb8] sm:$0xff]  }
  0x4b   : > { %1075 = vmatmul.mubr.bf16.gmra.mrb[16].mxu0 %v3643_v2  ;;  %2965 = vmatprep.subr.bf16.mxu1 %v3188_v38  ;;  %v3237_v36 = vld [vmem:[%s4160_s2 + $0x178] sm:$0xff]   ;;  %v3213_v38 = vld [vmem:[%s3514_s19 + $0xd0] ss:$24 sps:$4 sm:$0xff]  }
  0x4c   : > { %1172 = vmatmul.mubr.bf16.gmra.mrb[16].mxu1 %v3649_v4  ;;  %1082 = vmatprep.mubr.bf16.mxu0 %v3661_v8 }
  0x4d   : > { %1179 = vmatprep.mubr.bf16.mxu1 %v3664_v9 }
  0x53   : > { %1083 = vmatmul.mubr.bf16.gmra.mrb[20].mxu0 %v3677_v12 }
  0x54   : > { %1180 = vmatmul.mubr.bf16.gmra.mrb[20].mxu1 %v3686_v15  ;;  %1090 = vmatprep.mubr.bf16.mxu0 %v3689_v16 }
  0x55   : > { %1187 = vmatprep.mubr.bf16.mxu1 %v3692_v17 }
  0x5b   : > { %1091 = vmatmul.mubr.bf16.gmra.mrb[24].mxu0 %v3711_v22 }
  0x5c   : > { %1188 = vmatmul.mubr.bf16.gmra.mrb[24].mxu1 %v3714_v23  ;;  %1098 = vmatprep.mubr.bf16.mxu0 %v3717_v24 }
  0x5d   : > { %1195 = vmatprep.mubr.bf16.mxu1 %v3720_v25 }
  0x63   : > { %1099 = vmatmul.mubr.bf16.gmra.mrb[28].mxu0 %v3739_v30 }
  0x64   : > { %1196 = vmatmul.mubr.bf16.gmra.mrb[28].mxu1 %v3742_v31  ;;  %1236 = vmatprep.mubr.bf16.mxu0 %v3748_v37 }
  0x65   : > { %1724 = vmatprep.mubr.bf16.mxu1 %v3526_v33  ;;  %v3195_v33 = vld [vmem:[%s4160_s2 + $0x148] sm:$0xff]  }
  0x6b   : > { %1237 = vmatmul.mubr.bf16.vlgmr.msra.gmra.mrb[32].mxu0 %v3758_v39 }
  0x6c   : > { %1725 = vmatmul.mubr.bf16.vlgmr.msra.gmra.mrb[32].mxu1 %v3523_v32  ;;  %2902 = vmatpush3.bf16.msra.mxu0 %v3187_v44  ;;  %v3202_v32 = vld [vmem:[%s4160_s2 + $0x150] sm:$0xff]   ;;  %v3218_v44 = vld [vmem:[%s3514_s19 + $0x104] ss:$24 sps:$4 sm:$0xff]  }
  0x6d   : > { %2966 = vmatpush3.bf16.msra.mxu1 %v3189_v45  ;;  %1244 = vmatprep.mubr.bf16.mxu0 %v3767_v46  ;;  %v3225_v45 = vld [vmem:[%s3514_s19 + $0x134] ss:$24 sps:$4 sm:$0xff]  }
  0x6e   : > { %1732 = vmatprep.mubr.bf16.mxu1 %v3551_v40  ;;  %2903 = vmatprep.subr.bf16.mxu0 %v3193_v47  ;;  %v3203_v40 = vld [vmem:[%s4160_s2 + $0x110] sm:$0xff]  }
  0x6f   : > { %2967 = vmatprep.subr.bf16.mxu1 %v3195_v33  ;;  %v3227_v47 = vld [vmem:[%s3514_s19 + $0x130] ss:$24 sps:$4 sm:$0xff]   ;;  %v3232_v33 = vld [vmem:[%s3514_s19 + $0x164] ss:$24 sps:$4 sm:$0xff]  }
  0x70   : > { %2904 = vmatpush3.bf16.msra.mxu0 %v3194_v52 }
  0x71   : > { %2968 = vmatpush3.bf16.msra.mxu1 %v3196_v53  ;;  %2905 = vmatprep.subr.bf16.mxu0 %v3200_v54 }
  0x72   : > { %2969 = vmatprep.subr.bf16.mxu1 %v3202_v32 }
  0x73   : > { %1245 = vmatmul.mubr.bf16.gmra.mrb[36].mxu0 %v3792_v55 }
  0x74   : > { %1733 = vmatmul.mubr.bf16.gmra.mrb[36].mxu1 %v3557_v42  ;;  %1252 = vmatprep.mubr.bf16.mxu0 %v3795_v60  ;;  %v3214_v42 = vld [vmem:[%s4160_s2 + $0xe0] sm:$0xff]  }
  0x75   : > { %1740 = vmatprep.mubr.bf16.mxu1 %v3579_v48  ;;  %2906 = vmatpush3.bf16.msra.mxu0 %v3201_v61  ;;  %v3216_v48 = vld [vmem:[%s4160_s2 + $0x160] sm:$0xff]  }
  0x76   : > { %2970 = vmatpush3.bf16.msra.mxu1 %v3203_v40  ;;  %2907 = vmatprep.subr.bf16.mxu0 %v3207_v62 }
  0x77   : > { %2971 = vmatprep.subr.bf16.mxu1 %v3209_v63 }
  0x79   : > { %2908 = vmatpush3.bf16.msra.mxu0 %v3208_v3 }
  0x7a   : > { %2972 = vmatpush3.bf16.msra.mxu1 %v3210_v6  ;;  %2909 = vmatprep.subr.bf16.mxu0 %v3214_v42 }
  0x7b   : > { %1253 = vmatmul.mubr.bf16.gmra.mrb[40].mxu0 %v3817_v5  ;;  %2973 = vmatprep.subr.bf16.mxu1 %v3216_v48 }
  0x7c   : > { %1741 = vmatmul.mubr.bf16.gmra.mrb[40].mxu1 %v3585_v50  ;;  %1260 = vmatprep.mubr.bf16.mxu0 %v3823_v7  ;;  %v3228_v50 = vld [vmem:[%s4160_s2 + $0xf0] sm:$0xff]  }
  0x7d   : > { %1748 = vmatprep.mubr.bf16.mxu1 %v3606_v56  ;;  %2910 = vmatpush3.bf16.msra.mxu0 %v3215_v10  ;;  %v3230_v56 = vld [vmem:[%s4160_s2 + $0x170] sm:$0xff]  }
  0x7e   : > { %2974 = vmatpush3.bf16.msra.mxu1 %v3217_v11  ;;  %2911 = vmatprep.subr.bf16.mxu0 %v3221_v13 }
  0x7f   : > { %2975 = vmatprep.subr.bf16.mxu1 %v3223_v14 }
  0x81   : > { %2912 = vmatpush3.bf16.msra.mxu0 %v3222_v19 }
  0x82   : > { %2976 = vmatpush3.bf16.msra.mxu1 %v3224_v20  ;;  %2913 = vmatprep.subr.bf16.mxu0 %v3228_v50 }
  0x83   : > { %1261 = vmatmul.mubr.bf16.gmra.mrb[44].mxu0 %v3848_v18  ;;  %2977 = vmatprep.subr.bf16.mxu1 %v3230_v56 }
  0x84   : > { %1749 = vmatmul.mubr.bf16.gmra.mrb[44].mxu1 %v3614_v58  ;;  %1268 = vmatprep.mubr.bf16.mxu0 %v3211_v21  ;;  %v3238_v58 = vld [vmem:[%s4160_s2 + $0x138] sm:$0xff]  }
  0x85   : > { %1756 = vmatprep.mubr.bf16.mxu1 %v3633_v0  ;;  %2914 = vmatpush3.bf16.msra.mxu0 %v3229_v26  ;;  %v3220_v0 = vld [vmem:[%s3514_s19 + $0x100] ss:$24 sps:$4 sm:$0xff]  }
  0x86   : > { %2978 = vmatpush3.bf16.msra.mxu1 %v3231_v27  ;;  %2915 = vmatprep.subr.bf16.mxu0 %v3235_v28 }
  0x87   : > { %2979 = vmatprep.subr.bf16.mxu1 %v3237_v36 }
  0x89   : > { %2916 = vmatpush3.bf16.msra.mxu0 %v3236_v29 }
  0x8a   : > { %2980 = vmatpush3.bf16.msra.mxu1 %v3238_v58 }
  0x8b   : > { %1269 = vmatmul.mubr.bf16.gmra.mrb[48].mxu0 %v3213_v38 }
  0x8c   : > { %1757 = vmatmul.mubr.bf16.gmra.mrb[48].mxu1 %v3643_v2  ;;  %1276 = vmatprep.mubr.bf16.mxu0 %v3218_v44  ;;  %v3234_v2 = vld [vmem:[%s3514_s19 + $0x160] ss:$24 sps:$4 sm:$0xff]  }
  0x8d   : > { %1764 = vmatprep.mubr.bf16.mxu1 %v3661_v8 }
  0x93   : > { %1277 = vmatmul.mubr.bf16.gmra.mrb[52].mxu0 %v3220_v0 }
  0x94   : > { %1765 = vmatmul.mubr.bf16.gmra.mrb[52].mxu1 %v3677_v12  ;;  %1284 = vmatprep.mubr.bf16.mxu0 %v3225_v45 }
  0x95   : > { %1772 = vmatprep.mubr.bf16.mxu1 %v3689_v16 }
  0x9b   : > { %1285 = vmatmul.mubr.bf16.gmra.mrb[56].mxu0 %v3227_v47 }
  0x9c   : > { %1773 = vmatmul.mubr.bf16.gmra.mrb[56].mxu1 %v3711_v22  ;;  %1292 = vmatprep.mubr.bf16.mxu0 %v3232_v33 }
  0x9d   : > { %1780 = vmatprep.mubr.bf16.mxu1 %v3717_v24 }
  0xa3   : > { %1293 = vmatmul.mubr.bf16.gmra.mrb[60].mxu0 %v3234_v2 }
  0xa4   : > { %1781 = vmatmul.mubr.bf16.gmra.mrb[60].mxu1 %v3739_v30  ;;  %1821 = vmatprep.mubr.bf16.mxu0 %v3532_v35 }
  0xa5   : > { %1918 = vmatprep.mubr.bf16.mxu1 %v3748_v37 }
  0xab   : > { %1822 = vmatmul.mubr.bf16.vlgmr.msra.gmra.mrb[64].mxu0 %v3529_v34 }
  0xac   : > { %1919 = vmatmul.mubr.bf16.vlgmr.msra.gmra.mrb[64].mxu1 %v3758_v39  ;;  %1829 = vmatprep.mubr.bf16.mxu0 %v3554_v41  ;;  %v3925_v41 = vld [vmem:[%s4161_s3] ss:$0 sm:$0xff] }
  0xad   : > { %1926 = vmatprep.mubr.bf16.mxu1 %v3767_v46 }
  0xb3   : > { %1830 = vmatmul.mubr.bf16.gmra.mrb[68].mxu0 %v3561_v43 }
  0xb4   : > { %1927 = vmatmul.mubr.bf16.gmra.mrb[68].mxu1 %v3792_v55  ;;  %1837 = vmatprep.mubr.bf16.mxu0 %v3582_v49 }
  0xb5   : > { %1934 = vmatprep.mubr.bf16.mxu1 %v3795_v60 }
  0xbb   : > { %1838 = vmatmul.mubr.bf16.gmra.mrb[72].mxu0 %v3588_v51 }
  0xbc   : > { %1935 = vmatmul.mubr.bf16.gmra.mrb[72].mxu1 %v3817_v5  ;;  %1845 = vmatprep.mubr.bf16.mxu0 %v3610_v57 }
  0xbd   : > { %1942 = vmatprep.mubr.bf16.mxu1 %v3823_v7 }
  0xc3   : > { %1846 = vmatmul.mubr.bf16.gmra.mrb[76].mxu0 %v3618_v59 }
  0xc4   : > { %1943 = vmatmul.mubr.bf16.gmra.mrb[76].mxu1 %v3848_v18  ;;  %1853 = vmatprep.mubr.bf16.mxu0 %v3637_v1 }
  0xc5   : > { %1950 = vmatprep.mubr.bf16.mxu1 %v3211_v21 }
  0xcb   : > { %1854 = vmatmul.mubr.bf16.gmra.mrb[80].mxu0 %v3649_v4 }
  0xcc   : > { %1951 = vmatmul.mubr.bf16.gmra.mrb[80].mxu1 %v3213_v38  ;;  %1861 = vmatprep.mubr.bf16.mxu0 %v3664_v9 }
  0xcd   : > { %1958 = vmatprep.mubr.bf16.mxu1 %v3218_v44 }
  0xd3   : > { %1862 = vmatmul.mubr.bf16.gmra.mrb[84].mxu0 %v3686_v15 }
  0xd4   : > { %1959 = vmatmul.mubr.bf16.gmra.mrb[84].mxu1 %v3220_v0  ;;  %1869 = vmatprep.mubr.bf16.mxu0 %v3692_v17 }
  0xd5   : > { %1966 = vmatprep.mubr.bf16.mxu1 %v3225_v45 }
  0xdb   : > { %1870 = vmatmul.mubr.bf16.gmra.mrb[88].mxu0 %v3714_v23 }
  0xdc   : > { %1967 = vmatmul.mubr.bf16.gmra.mrb[88].mxu1 %v3227_v47  ;;  %1877 = vmatprep.mubr.bf16.mxu0 %v3720_v25 }
  0xdd   : > { %1974 = vmatprep.mubr.bf16.mxu1 %v3232_v33 }
  0xe3   : > { %1878 = vmatmul.mubr.bf16.gmra.mrb[92].mxu0 %v3742_v31 }
  0xe4   : > { %1975 = vmatmul.mubr.bf16.gmra.mrb[92].mxu1 %v3234_v2 }
  0xfe   : > { %v2661_v34 = vpop.f32.mrb[0].mxu0 }
  0xff   : > { %v2725_v35 = vpop.f32.mrb[0].mxu1  ;;  %v2662_v43 = vpop.f32.mrb[1].mxu0 }
 0x100   : > { %v2663_v49 = vadd.f32 %v2662_v43, %v2661_v34  ;;  %v2726_v51 = vpop.f32.mrb[1].mxu1  ;;  %v2664_v57 = vpop.f32.mrb[2].mxu0 }
 0x101   : > { %v2727_v59 = vadd.f32 %v2726_v51, %v2725_v35  ;;  %v2728_v1 = vpop.f32.mrb[2].mxu1  ;;  %v2665_v4 = vpop.f32.mrb[3].mxu0 }
 0x102   : > { %v1045_v8 = vadd.f32 %v2663_v49, %v3925_v41  ;;  %v2666_v9 = vadd.f32 %v2665_v4, %v2664_v57  ;;  %v2729_v12 = vpop.f32.mrb[3].mxu1 }
 0x103   : > { %v2730_v15 = vadd.f32 %v2729_v12, %v2728_v1 }
 0x104   : > { %v3928_v16 = vadd.f32 %v2727_v59, %v1045_v8  ;;  %v1048_v17 = vadd.f32 %v2666_v9, %v3925_v41 }
 0x106   : > { %v3931_v22 = vadd.f32 %v2730_v15, %v1048_v17  ;;  %v2667_v23 = vpop.f32.mrb[4].mxu0 }
 0x107   : > { %v2731_v24 = vpop.f32.mrb[4].mxu1  ;;  %v2668_v25 = vpop.f32.mrb[5].mxu0 }
 0x108   : > { %v2669_v30 = vadd.f32 %v2668_v25, %v2667_v23  ;;  %v2732_v31 = vpop.f32.mrb[5].mxu1  ;;  %v2670_v37 = vpop.f32.mrb[6].mxu0 }
 0x109   : > { %v2733_v39 = vadd.f32 %v2732_v31, %v2731_v24  ;;  %v2734_v46 = vpop.f32.mrb[6].mxu1  ;;  %v2671_v52 = vpop.f32.mrb[7].mxu0 }
 0x10a   : > { %v1053_v53 = vadd.f32 %v2669_v30, %v3925_v41  ;;  %v2672_v54 = vadd.f32 %v2671_v52, %v2670_v37  ;;  %v2735_v32 = vpop.f32.mrb[7].mxu1 }
 0x10b   : > { %v2736_v55 = vadd.f32 %v2735_v32, %v2734_v46 }
 0x10c   : > { %v3934_v60 = vadd.f32 %v2733_v39, %v1053_v53  ;;  %v1056_v61 = vadd.f32 %v2672_v54, %v3925_v41 }
 0x10e   : > { %v3937_v40 = vadd.f32 %v2736_v55, %v1056_v61  ;;  %v2673_v62 = vpop.f32.mrb[8].mxu0 }
 0x10f   : > { %v2737_v63 = vpop.f32.mrb[8].mxu1  ;;  %v2674_v3 = vpop.f32.mrb[9].mxu0 }
 0x110   : > { %v2675_v5 = vadd.f32 %v2674_v3, %v2673_v62  ;;  %v2738_v6 = vpop.f32.mrb[9].mxu1  ;;  %v2676_v7 = vpop.f32.mrb[10].mxu0 }
 0x111   : > { %v2739_v42 = vadd.f32 %v2738_v6, %v2737_v63  ;;  %v2740_v48 = vpop.f32.mrb[10].mxu1  ;;  %v2677_v10 = vpop.f32.mrb[11].mxu0 }
 0x112   : > { %v1061_v11 = vadd.f32 %v2675_v5, %v3925_v41  ;;  %v2678_v13 = vadd.f32 %v2677_v10, %v2676_v7  ;;  %v2741_v14 = vpop.f32.mrb[11].mxu1 }
 0x113   : > { %v2742_v18 = vadd.f32 %v2741_v14, %v2740_v48 }
 0x114   : > { %v3940_v19 = vadd.f32 %v2739_v42, %v1061_v11  ;;  %v1064_v20 = vadd.f32 %v2678_v13, %v3925_v41 }
 0x116   : > { %v3943_v50 = vadd.f32 %v2742_v18, %v1064_v20  ;;  %v2679_v21 = vpop.f32.mrb[12].mxu0 }
 0x117   : > { %v2743_v56 = vpop.f32.mrb[12].mxu1  ;;  %v2680_v26 = vpop.f32.mrb[13].mxu0 }
 0x118   : > { %v2681_v27 = vadd.f32 %v2680_v26, %v2679_v21  ;;  %v2744_v28 = vpop.f32.mrb[13].mxu1  ;;  %v2682_v29 = vpop.f32.mrb[14].mxu0 }
 0x119   : > { %v2745_v36 = vadd.f32 %v2744_v28, %v2743_v56  ;;  %v2746_v58 = vpop.f32.mrb[14].mxu1  ;;  %v2683_v38 = vpop.f32.mrb[15].mxu0 }
 0x11a   : > { %v1069_v44 = vadd.f32 %v2681_v27, %v3925_v41  ;;  %v2684_v0 = vadd.f32 %v2683_v38, %v2682_v29  ;;  %v2747_v45 = vpop.f32.mrb[15].mxu1 }
 0x11b   : > { %v2748_v47 = vadd.f32 %v2747_v45, %v2746_v58 }
 0x11c   : > { %v3946_v33 = vadd.f32 %v2745_v36, %v1069_v44  ;;  %v1072_v2 = vadd.f32 %v2684_v0, %v3925_v41 }
 0x11e   : > { %v3949_v34 = vadd.f32 %v2748_v47, %v1072_v2  ;;  %v2685_v35 = vpop.f32.mrb[16].mxu0 }
 0x11f   : > { %v2749_v43 = vpop.f32.mrb[16].mxu1  ;;  %v2686_v49 = vpop.f32.mrb[17].mxu0 }
 0x120   : > { %v2687_v51 = vadd.f32 %v2686_v49, %v2685_v35  ;;  %v2750_v57 = vpop.f32.mrb[17].mxu1  ;;  %v2688_v59 = vpop.f32.mrb[18].mxu0 }
 0x121   : > { %v2751_v1 = vadd.f32 %v2750_v57, %v2749_v43  ;;  %v2752_v4 = vpop.f32.mrb[18].mxu1  ;;  %v2689_v8 = vpop.f32.mrb[19].mxu0 }
 0x122   : > { %v1077_v9 = vadd.f32 %v2687_v51, %v3925_v41  ;;  %v2690_v12 = vadd.f32 %v2689_v8, %v2688_v59  ;;  %v2753_v15 = vpop.f32.mrb[19].mxu1 }
 0x123   : > { %v2754_v17 = vadd.f32 %v2753_v15, %v2752_v4 }
 0x124   : > { %v3952_v23 = vadd.f32 %v2751_v1, %v1077_v9  ;;  %v1080_v24 = vadd.f32 %v2690_v12, %v3925_v41 }
 0x126   : > { %v3955_v25 = vadd.f32 %v2754_v17, %v1080_v24  ;;  %v2691_v30 = vpop.f32.mrb[20].mxu0 }
 0x127   : > { %v2755_v31 = vpop.f32.mrb[20].mxu1  ;;  %v2692_v37 = vpop.f32.mrb[21].mxu0 }
 0x128   : > { %v2693_v39 = vadd.f32 %v2692_v37, %v2691_v30  ;;  %v2756_v46 = vpop.f32.mrb[21].mxu1  ;;  %v2694_v52 = vpop.f32.mrb[22].mxu0 }
 0x129   : > { %v2757_v53 = vadd.f32 %v2756_v46, %v2755_v31  ;;  %v2758_v54 = vpop.f32.mrb[22].mxu1  ;;  %v2695_v32 = vpop.f32.mrb[23].mxu0 }
 0x12a   : > { %v1085_v55 = vadd.f32 %v2693_v39, %v3925_v41  ;;  %v2696_v61 = vadd.f32 %v2695_v32, %v2694_v52  ;;  %v2759_v62 = vpop.f32.mrb[23].mxu1 }
 0x12b   : > { %v2760_v63 = vadd.f32 %v2759_v62, %v2758_v54 }
 0x12c   : > { %v3958_v3 = vadd.f32 %v2757_v53, %v1085_v55  ;;  %v1088_v5 = vadd.f32 %v2696_v61, %v3925_v41 }
 0x12e   : > { %v3961_v6 = vadd.f32 %v2760_v63, %v1088_v5  ;;  %v2697_v7 = vpop.f32.mrb[24].mxu0 }
 0x12f   : > { %v2761_v42 = vpop.f32.mrb[24].mxu1  ;;  %v2698_v48 = vpop.f32.mrb[25].mxu0 }
 0x130   : > { %v2699_v10 = vadd.f32 %v2698_v48, %v2697_v7  ;;  %v2762_v11 = vpop.f32.mrb[25].mxu1  ;;  %v2700_v13 = vpop.f32.mrb[26].mxu0 }
 0x131   : > { %v2763_v14 = vadd.f32 %v2762_v11, %v2761_v42  ;;  %v2764_v18 = vpop.f32.mrb[26].mxu1  ;;  %v2701_v20 = vpop.f32.mrb[27].mxu0 }
 0x132   : > { %v1093_v21 = vadd.f32 %v2699_v10, %v3925_v41  ;;  %v2702_v56 = vadd.f32 %v2701_v20, %v2700_v13  ;;  %v2765_v26 = vpop.f32.mrb[27].mxu1 }
 0x133   : > { %v2766_v27 = vadd.f32 %v2765_v26, %v2764_v18 }
 0x134   : > { %v3964_v28 = vadd.f32 %v2763_v14, %v1093_v21  ;;  %v1096_v29 = vadd.f32 %v2702_v56, %v3925_v41 }
 0x136   : > { %v3967_v36 = vadd.f32 %v2766_v27, %v1096_v29  ;;  %v2703_v58 = vpop.f32.mrb[28].mxu0 }
 0x137   : > { %v2767_v38 = vpop.f32.mrb[28].mxu1  ;;  %v2704_v44 = vpop.f32.mrb[29].mxu0 }
 0x138   : > { %v2705_v0 = vadd.f32 %v2704_v44, %v2703_v58  ;;  %v2768_v45 = vpop.f32.mrb[29].mxu1  ;;  %v2706_v47 = vpop.f32.mrb[30].mxu0 }
 0x139   : > { %v2769_v2 = vadd.f32 %v2768_v45, %v2767_v38  ;;  %v2770_v35 = vpop.f32.mrb[30].mxu1  ;;  %v2707_v43 = vpop.f32.mrb[31].mxu0 }
 0x13a   : > { %v1101_v49 = vadd.f32 %v2705_v0, %v3925_v41  ;;  %v2708_v51 = vadd.f32 %v2707_v43, %v2706_v47  ;;  %v2771_v57 = vpop.f32.mrb[31].mxu1 }
 0x13b   : > { %v2772_v59 = vadd.f32 %v2771_v57, %v2770_v35 }
 0x13c   : > { %v3970_v1 = vadd.f32 %v2769_v2, %v1101_v49  ;;  %v1104_v4 = vadd.f32 %v2708_v51, %v3925_v41 }
 0x13e   : > { %v3973_v8 = vadd.f32 %v2772_v59, %v1104_v4  ;;  %v2789_v9 = vpop.f32.mrb[32].mxu0 }
 0x13f   : > { %v2853_v12 = vpop.f32.mrb[32].mxu1  ;;  %v2790_v15 = vpop.f32.mrb[33].mxu0 }
 0x140   : > { %v2791_v17 = vadd.f32 %v2790_v15, %v2789_v9  ;;  %v2854_v24 = vpop.f32.mrb[33].mxu1  ;;  %v2792_v30 = vpop.f32.mrb[34].mxu0 }
 0x141   : > { %v3975_v31 = vadd.f32 %v2854_v24, %v2853_v12  ;;  %v2856_v37 = vpop.f32.mrb[34].mxu1  ;;  %v2793_v39 = vpop.f32.mrb[35].mxu0 }
 0x142   : > { %v3978_v46 = vadd.f32 %v2791_v17, %v3928_v16  ;;  %v2794_v52 = vadd.f32 %v2793_v39, %v2792_v30  ;;  %v2857_v53 = vpop.f32.mrb[35].mxu1 }
 0x143   : > { %v3980_v54 = vadd.f32 %v2857_v53, %v2856_v37 }
 0x144   : > { %v3983_v41 = vadd.f32 %v2794_v52, %v3931_v22 }
 0x146   : > { %v2795_v32 = vpop.f32.mrb[36].mxu0 }
 0x147   : > { %v2859_v55 = vpop.f32.mrb[36].mxu1  ;;  %v2796_v61 = vpop.f32.mrb[37].mxu0 }
 0x148   : > { %v2797_v62 = vadd.f32 %v2796_v61, %v2795_v32  ;;  %v2860_v63 = vpop.f32.mrb[37].mxu1  ;;  %v2798_v5 = vpop.f32.mrb[38].mxu0 }
 0x149   : > { %v3985_v7 = vadd.f32 %v2860_v63, %v2859_v55  ;;  %v2862_v42 = vpop.f32.mrb[38].mxu1  ;;  %v2799_v48 = vpop.f32.mrb[39].mxu0 }
 0x14a   : > { %v3988_v16 = vadd.f32 %v2797_v62, %v3934_v60  ;;  %v2800_v10 = vadd.f32 %v2799_v48, %v2798_v5  ;;  %v2863_v11 = vpop.f32.mrb[39].mxu1 }
 0x14b   : > { %v3990_v13 = vadd.f32 %v2863_v11, %v2862_v42 }
 0x14c   : > { %v3993_v22 = vadd.f32 %v2800_v10, %v3937_v40 }
 0x14e   : > { %v2801_v14 = vpop.f32.mrb[40].mxu0 }
 0x14f   : > { %v2865_v18 = vpop.f32.mrb[40].mxu1  ;;  %v2802_v20 = vpop.f32.mrb[41].mxu0 }
 0x150   : > { %v2803_v21 = vadd.f32 %v2802_v20, %v2801_v14  ;;  %v2866_v56 = vpop.f32.mrb[41].mxu1  ;;  %v2804_v26 = vpop.f32.mrb[42].mxu0 }
 0x151   : > { %v3995_v27 = vadd.f32 %v2866_v56, %v2865_v18  ;;  %v2868_v29 = vpop.f32.mrb[42].mxu1  ;;  %v2805_v58 = vpop.f32.mrb[43].mxu0 }
 0x152   : > { %v3998_v60 = vadd.f32 %v2803_v21, %v3940_v19  ;;  %v2806_v38 = vadd.f32 %v2805_v58, %v2804_v26  ;;  %v2869_v44 = vpop.f32.mrb[43].mxu1 }
 0x153   : > { %v4000_v0 = vadd.f32 %v2869_v44, %v2868_v29 }
 0x154   : > { %v4003_v40 = vadd.f32 %v2806_v38, %v3943_v50 }
 0x156   : > { %v2807_v45 = vpop.f32.mrb[44].mxu0 }
 0x157   : > { %v2871_v47 = vpop.f32.mrb[44].mxu1  ;;  %v2808_v2 = vpop.f32.mrb[45].mxu0 }
 0x158   : > { %v2809_v35 = vadd.f32 %v2808_v2, %v2807_v45  ;;  %v2872_v43 = vpop.f32.mrb[45].mxu1  ;;  %v2810_v49 = vpop.f32.mrb[46].mxu0 }
 0x159   : > { %v4005_v51 = vadd.f32 %v2872_v43, %v2871_v47  ;;  %v2874_v57 = vpop.f32.mrb[46].mxu1  ;;  %v2811_v59 = vpop.f32.mrb[47].mxu0 }
 0x15a   : > { %v4008_v19 = vadd.f32 %v2809_v35, %v3946_v33  ;;  %v2812_v4 = vadd.f32 %v2811_v59, %v2810_v49  ;;  %v2875_v9 = vpop.f32.mrb[47].mxu1 }
 0x15b   : > { %v4010_v12 = vadd.f32 %v2875_v9, %v2874_v57 }
 0x15c   : > { %v4013_v50 = vadd.f32 %v2812_v4, %v3949_v34 }
 0x15e   : > { %v2813_v15 = vpop.f32.mrb[48].mxu0 }
 0x15f   : > { %v2877_v17 = vpop.f32.mrb[48].mxu1  ;;  %v2814_v24 = vpop.f32.mrb[49].mxu0 }
 0x160   : > { %v2815_v30 = vadd.f32 %v2814_v24, %v2813_v15  ;;  %v2878_v37 = vpop.f32.mrb[49].mxu1  ;;  %v2816_v39 = vpop.f32.mrb[50].mxu0 }
 0x161   : > { %v4015_v52 = vadd.f32 %v2878_v37, %v2877_v17  ;;  %v2880_v53 = vpop.f32.mrb[50].mxu1  ;;  %v2817_v32 = vpop.f32.mrb[51].mxu0 }
 0x162   : > { %v4018_v33 = vadd.f32 %v2815_v30, %v3952_v23  ;;  %v2818_v55 = vadd.f32 %v2817_v32, %v2816_v39  ;;  %v2881_v61 = vpop.f32.mrb[51].mxu1 }
 0x163   : > { %v4020_v62 = vadd.f32 %v2881_v61, %v2880_v53 }
 0x164   : > { %v4023_v34 = vadd.f32 %v2818_v55, %v3955_v25 }
 0x166   : > { %v2819_v63 = vpop.f32.mrb[52].mxu0 }
 0x167   : > { %v2883_v5 = vpop.f32.mrb[52].mxu1  ;;  %v2820_v42 = vpop.f32.mrb[53].mxu0 }
 0x168   : > { %v2821_v48 = vadd.f32 %v2820_v42, %v2819_v63  ;;  %v2884_v10 = vpop.f32.mrb[53].mxu1  ;;  %v2822_v11 = vpop.f32.mrb[54].mxu0  ;;  %v4058_v63 = vld [vmem:[%s4162_s4] ss:$0 sm:$0xff] }
 0x169   : > { %v4025_v14 = vadd.f32 %v2884_v10, %v2883_v5  ;;  %v2886_v18 = vpop.f32.mrb[54].mxu1  ;;  %v2823_v20 = vpop.f32.mrb[55].mxu0  ;;  %v1727_v10 = vadd.f32 %v3975_v31, %v4058_v63 }
 0x16a   : > { %v4028_v23 = vadd.f32 %v2821_v48, %v3958_v3  ;;  %v2824_v21 = vadd.f32 %v2823_v20, %v2822_v11  ;;  %v2887_v56 = vpop.f32.mrb[55].mxu1 }
 0x16b   : > { %v4030_v26 = vadd.f32 %v2887_v56, %v2886_v18 }
 0x16c   : > { %v4033_v25 = vadd.f32 %v2824_v21, %v3961_v6 }
 0x16e   : > { %v2825_v29 = vpop.f32.mrb[56].mxu0 }
 0x16f   : > { %v2889_v58 = vpop.f32.mrb[56].mxu1  ;;  %v2826_v38 = vpop.f32.mrb[57].mxu0 }
 0x170   : > { %v2827_v44 = vadd.f32 %v2826_v38, %v2825_v29  ;;  %v2890_v45 = vpop.f32.mrb[57].mxu1  ;;  %v2828_v47 = vpop.f32.mrb[58].mxu0 }
 0x171   : > { %v4035_v2 = vadd.f32 %v2890_v45, %v2889_v58  ;;  %v2892_v35 = vpop.f32.mrb[58].mxu1  ;;  %v2829_v43 = vpop.f32.mrb[59].mxu0 }
 0x172   : > { %v4038_v3 = vadd.f32 %v2827_v44, %v3964_v28  ;;  %v2830_v49 = vadd.f32 %v2829_v43, %v2828_v47  ;;  %v2893_v57 = vpop.f32.mrb[59].mxu1 }
 0x173   : > { %v4040_v59 = vadd.f32 %v2893_v57, %v2892_v35 }
 0x174   : > { %v4043_v6 = vadd.f32 %v2830_v49, %v3967_v36 }
 0x176   : > { %v2831_v4 = vpop.f32.mrb[60].mxu0 }
 0x177   : > { %v2895_v9 = vpop.f32.mrb[60].mxu1  ;;  %v2832_v15 = vpop.f32.mrb[61].mxu0 }
 0x178   : > { %v2833_v17 = vadd.f32 %v2832_v15, %v2831_v4  ;;  %v2896_v24 = vpop.f32.mrb[61].mxu1  ;;  %v2834_v30 = vpop.f32.mrb[62].mxu0  ;;  %v1735_v4 = vadd.f32 %v3985_v7, %v4058_v63 }
 0x179   : > { %v4045_v37 = vadd.f32 %v2896_v24, %v2895_v9  ;;  %v2898_v39 = vpop.f32.mrb[62].mxu1  ;;  %v2835_v53 = vpop.f32.mrb[63].mxu0 }
 0x17a   : > { %v4048_v28 = vadd.f32 %v2833_v17, %v3970_v1  ;;  %v2836_v32 = vadd.f32 %v2835_v53, %v2834_v30  ;;  %v2899_v55 = vpop.f32.mrb[63].mxu1  ;;  %v1738_v53 = vadd.f32 %v3990_v13, %v4058_v63 }
 0x17b   : > { %v4050_v61 = vadd.f32 %v2899_v55, %v2898_v39 }
 0x17c   : > { %v4053_v36 = vadd.f32 %v2836_v32, %v3973_v8  ;;  %v1730_v8 = vadd.f32 %v3980_v54, %v4058_v63 }
 0x17e   : > { %v2917_v5 = vpop.f32.mrb[64].mxu0 }
 0x17f   : > { %v2981_v42 = vpop.f32.mrb[64].mxu1  ;;  %v2918_v48 = vpop.f32.mrb[65].mxu0 }
 0x180   : > { %v2919_v1 = vadd.f32 %v2918_v48, %v2917_v5  ;;  %v2982_v11 = vpop.f32.mrb[65].mxu1  ;;  %v2920_v18 = vpop.f32.mrb[66].mxu0 }
 0x181   : > { %v2983_v20 = vadd.f32 %v2982_v11, %v2981_v42  ;;  %v2984_v21 = vpop.f32.mrb[66].mxu1  ;;  %v2921_v56 = vpop.f32.mrb[67].mxu0 }
 0x182   : > { %v1824_v29 = vadd.f32 %v2919_v1, %v1727_v10  ;;  %v2922_v58 = vadd.f32 %v2921_v56, %v2920_v18  ;;  %v2985_v38 = vpop.f32.mrb[67].mxu1 }
 0x183   : > { %v2986_v44 = vadd.f32 %v2985_v38, %v2984_v21  ;;  %v1743_v21 = vadd.f32 %v3995_v27, %v4058_v63 }
 0x184   : > { %v1921_v45 = vadd.f32 %v2983_v20, %v1824_v29  ;;  %v1827_v47 = vadd.f32 %v2922_v58, %v1730_v8 }
 0x186   : > { %v2509_v35 = vmul.f32 -1.442695, %v1921_v45  ;;  %v1924_v43 = vadd.f32 %v2986_v44, %v1827_v47  ;;  %v2923_v49 = vpop.f32.mrb[68].mxu0  ;;  %v1746_v47 = vadd.f32 %v4000_v0, %v4058_v63 }
 0x187   : > { %v2987_v57 = vpop.f32.mrb[68].mxu1  ;;  %v2924_v31 = vpop.f32.mrb[69].mxu0 }
 0x188   : > { %3239 = vpow2.f32 %v2509_v35  ;;  %v2510_v9 = vmul.f32 -1.442695, %v1924_v43  ;;  %v2925_v15 = vadd.f32 %v2924_v31, %v2923_v49  ;;  %v2988_v17 = vpop.f32.mrb[69].mxu1  ;;  %v2926_v54 = vpop.f32.mrb[70].mxu0 }
 0x189   : > { %v2989_v24 = vadd.f32 %v2988_v17, %v2987_v57  ;;  %v2990_v30 = vpop.f32.mrb[70].mxu1  ;;  %v2927_v39 = vpop.f32.mrb[71].mxu0 }
 0x18a   : > { %3241 = vpow2.f32 %v2510_v9  ;;  %v1832_v32 = vadd.f32 %v2925_v15, %v1735_v4  ;;  %v2928_v55 = vadd.f32 %v2927_v39, %v2926_v54  ;;  %v2991_v5 = vpop.f32.mrb[71].mxu1  ;;  %v1751_v39 = vadd.f32 %v4005_v51, %v4058_v63 }
 0x18b   : > { %v2992_v42 = vadd.f32 %v2991_v5, %v2990_v30 }
 0x18c   : > { %v1929_v48 = vadd.f32 %v2989_v24, %v1832_v32  ;;  %v1835_v10 = vadd.f32 %v2928_v55, %v1738_v53 }
 0x18e   : > { %v2511_v7 = vmul.f32 -1.442695, %v1929_v48  ;;  %v1932_v1 = vadd.f32 %v2992_v42, %v1835_v10  ;;  %v2929_v11 = vpop.f32.mrb[72].mxu0 }
 0x18f   : > { %v2993_v18 = vpop.f32.mrb[72].mxu1  ;;  %v2930_v20 = vpop.f32.mrb[73].mxu0 }
 0x190   : > { %3243 = vpow2.f32 %v2511_v7  ;;  %v2512_v56 = vmul.f32 -1.442695, %v1932_v1  ;;  %v2931_v13 = vadd.f32 %v2930_v20, %v2929_v11  ;;  %v2994_v8 = vpop.f32.mrb[73].mxu1  ;;  %v2932_v29 = vpop.f32.mrb[74].mxu0  ;;  %v1754_v1 = vadd.f32 %v4010_v12, %v4058_v63  ;;  %v2560_v20 = vld [vmem:[%s4084_s9] sm:$0xff]  }
 0x191   : > { %v2995_v58 = vadd.f32 %v2994_v8, %v2993_v18  ;;  %v2996_v38 = vpop.f32.mrb[74].mxu1  ;;  %v2933_v44 = vpop.f32.mrb[75].mxu0  ;;  %v1759_v12 = vadd.f32 %v4015_v52, %v4058_v63 }
 0x192   : > { %v3240_v45 = vpop.eup %3239  ;;  %3245 = vpow2.f32 %v2512_v56  ;;  %v1840_v35 = vadd.f32 %v2931_v13, %v1743_v21  ;;  %v2934_v43 = vadd.f32 %v2933_v44, %v2932_v29  ;;  %v2997_v49 = vpop.f32.mrb[75].mxu1 }
 0x193   : > { %v2031_v27 = vadd.f32 1.0, %v3240_v45  ;;  %v2998_v57 = vadd.f32 %v2997_v49, %v2996_v38  ;;  %v2561_v38 = vunpack.c.l.bf16 %v2560_v20 }
 0x194   : > { %v3242_v31 = vpop.eup %3241  ;;  %v1937_v4 = vadd.f32 %v2995_v58, %v1840_v35  ;;  %v1843_v9 = vadd.f32 %v2934_v43, %v1746_v47  ;;  %v2562_v43 = vunpack.c.h.bf16 %v2560_v20 }
 0x195   : > { %3247 = vrcp.f32 %v2031_v27  ;;  %v2032_v15 = vadd.f32 1.0, %v3242_v31 }
 0x196   : > { %v2513_v17 = vmul.f32 -1.442695, %v1937_v4  ;;  %v1940_v54 = vadd.f32 %v2998_v57, %v1843_v9  ;;  %v2935_v24 = vpop.f32.mrb[76].mxu0 }
 0x197   : > { %3249 = vrcp.f32 %v2032_v15  ;;  %v2999_v0 = vpop.f32.mrb[76].mxu1  ;;  %v2936_v30 = vpop.f32.mrb[77].mxu0 }
 0x198   : > { %3251 = vpow2.f32 %v2513_v17  ;;  %v2514_v53 = vmul.f32 -1.442695, %v1940_v54  ;;  %v2937_v32 = vadd.f32 %v2936_v30, %v2935_v24  ;;  %v3000_v55 = vpop.f32.mrb[77].mxu1  ;;  %v2938_v5 = vpop.f32.mrb[78].mxu0 }
 0x199   : > { %v3001_v42 = vadd.f32 %v3000_v55, %v2999_v0  ;;  %v3002_v48 = vpop.f32.mrb[78].mxu1  ;;  %v2939_v10 = vpop.f32.mrb[79].mxu0  ;;  %v2631_v55 = vld [vmem:[%s4084_s9 + $0x8] sm:$0xff]  }
 0x19a   : > { %v3244_v7 = vpop.eup %3243  ;;  %3253 = vpow2.f32 %v2514_v53  ;;  %v1848_v51 = vadd.f32 %v2937_v32, %v1751_v39  ;;  %v2940_v11 = vadd.f32 %v2939_v10, %v2938_v5  ;;  %v3003_v18 = vpop.f32.mrb[79].mxu1 }
 0x19b   : > { %v2033_v21 = vadd.f32 1.0, %v3244_v7  ;;  %v3004_v56 = vadd.f32 %v3003_v18, %v3002_v48 }
 0x19c   : > { %v3246_v13 = vpop.eup %3245  ;;  %v1945_v8 = vadd.f32 %v3001_v42, %v1848_v51  ;;  %v1851_v29 = vadd.f32 %v2940_v11, %v1754_v1 }
 0x19d   : > { %3255 = vrcp.f32 %v2033_v21  ;;  %v2034_v58 = vadd.f32 1.0, %v3246_v13 }
 0x19e   : > { %v2515_v44 = vmul.f32 -1.442695, %v1945_v8  ;;  %v1948_v45 = vadd.f32 %v3004_v56, %v1851_v29  ;;  %v2941_v47 = vpop.f32.mrb[80].mxu0  ;;  %v2566_v8 = vunpack.c.h.bf16 %v2631_v55 }
 0x19f   : > { %v3248_v35 = vpop.eup %3247  ;;  %3257 = vrcp.f32 %v2034_v58  ;;  %v3005_v49 = vpop.f32.mrb[80].mxu1 }
 0x1a0   : > { %v2942_v27 = vpop.f32.mrb[81].mxu0  ;;  %v2079_v57 = vmul.f32 %v3248_v35, %v3978_v46  ;;  %3259 = vpow2.f32 %v2515_v44  ;;  %v2516_v31 = vmul.f32 -1.442695, %v1948_v45  ;;  %v3006_v9 = vpop.f32.mrb[81].mxu1  ;;  %v1762_v46 = vadd.f32 %v4020_v62, %v4058_v63 }
 0x1a1   : > { %v2943_v4 = vadd.f32 %v2942_v27, %v2941_v47  ;;  %v2944_v15 = vpop.f32.mrb[82].mxu0  ;;  %v3250_v17 = vpop.eup %3249  ;;  %v3007_v54 = vadd.f32 %v3006_v9, %v3005_v49  ;;  %v1767_v62 = vadd.f32 %v4025_v14, %v4058_v63 }
 0x1a2   : > { %v3008_v24 = vpop.f32.mrb[82].mxu1  ;;  %v2945_v0 = vpop.f32.mrb[83].mxu0  ;;  %v2127_v39 = vadd.f32 %v2561_v38, %v2079_v57  ;;  %v2080_v52 = vmul.f32 %v3250_v17, %v3983_v41  ;;  %3261 = vpow2.f32 %v2516_v31  ;;  %v2565_v41 = vunpack.c.l.bf16 %v2631_v55 }
 0x1a3   : > { %v3252_v30 = vpop.eup %3251  ;;  %v1856_v53 = vadd.f32 %v2943_v4, %v1759_v12  ;;  %v3009_v32 = vpop.f32.mrb[83].mxu1  ;;  %v2946_v42 = vadd.f32 %v2945_v0, %v2944_v15 }
 0x1a4   : > { %v2035_v5 = vadd.f32 1.0, %v3252_v30  ;;  %v3010_v48 = vadd.f32 %v3009_v32, %v3008_v24  ;;  %v3254_v10 = vpop.eup %3253  ;;  %v2128_v7 = vadd.f32 %v2562_v43, %v2080_v52  ;;  %v2143_v51 = vmul.f32 0.70710677, %v2127_v39  ;;  %v2632_v24 = vld [vmem:[%s4084_s9 + $0x10] sm:$0xff]  }
 0x1a5   : > { %v1953_v1 = vadd.f32 %v3007_v54, %v1856_v53  ;;  %v2036_v11 = vadd.f32 1.0, %v3254_v10  ;;  %v1859_v18 = vadd.f32 %v2946_v42, %v1762_v46  ;;  %v1770_v43 = vadd.f32 %v4030_v26, %v4058_v63 }
 0x1a6   : > { %3263 = vrcp.f32 %v2035_v5  ;;  %v2144_v20 = vmul.f32 0.70710677, %v2128_v7  ;;  %v2947_v56 = vpop.f32.mrb[84].mxu0  ;;  %v2569_v5 = vunpack.c.l.bf16 %v2632_v24  ;;  %v2570_v7 = vunpack.c.h.bf16 %v2632_v24 }
 0x1a7   : > { %v2517_v21 = vmul.f32 -1.442695, %v1953_v1  ;;  %v3256_v13 = vpop.eup %3255  ;;  %3265 = vrcp.f32 %v2036_v11  ;;  %v1956_v29 = vadd.f32 %v3010_v48, %v1859_v18  ;;  %v3011_v58 = vpop.f32.mrb[84].mxu1 }
 0x1a8   : > { %v2948_v38 = vpop.f32.mrb[85].mxu0  ;;  %v2594_v44 = vpack.c.bf16 %v2144_v20, %v2143_v51  ;;  %v2081_v45 = vmul.f32 %v3256_v13, %v3988_v16  ;;  %v3012_v35 = vpop.f32.mrb[85].mxu1  ;;  %v1775_v13 = vadd.f32 %v4035_v2, %v4058_v63 }
 0x1a9   : > { %3267 = vpow2.f32 %v2517_v21  ;;  %v2949_v47 = vadd.f32 %v2948_v38, %v2947_v56  ;;  %v2950_v14 = vpop.f32.mrb[86].mxu0  ;;  %v3258_v12 = vpop.eup %3257  ;;  %v2518_v49 = vmul.f32 -1.442695, %v1956_v29  ;;  %v3013_v27 = vadd.f32 %v3012_v35, %v3011_v58 }
 0x1aa   : > { %v3014_v57 = vpop.f32.mrb[86].mxu1  ;;  %v2951_v31 = vpop.f32.mrb[87].mxu0  ;;  %2595 = vst [vmem:[%s4103_s16] sm:$0xff] %v2594_v44   ;;  %v2129_v9 = vadd.f32 %v2565_v41, %v2081_v45  ;;  %v2082_v15 = vmul.f32 %v3258_v12, %v3993_v22 }
 0x1ab   : > { %v3260_v4 = vpop.eup %3259  ;;  %v1864_v17 = vadd.f32 %v2949_v47, %v1767_v62  ;;  %v2952_v16 = vadd.f32 %v2951_v31, %v2950_v14  ;;  %v3015_v54 = vpop.f32.mrb[87].mxu1  ;;  %3269 = vpow2.f32 %v2518_v49  ;;  %v1778_v62 = vadd.f32 %v4040_v59, %v4058_v63  ;;  %v2633_v47 = vld [vmem:[%s4084_s9 + $0x18] sm:$0xff]  }
 0x1ac   : > { %v2037_v0 = vadd.f32 1.0, %v3260_v4  ;;  %v3016_v30 = vadd.f32 %v3015_v54, %v3014_v57  ;;  %v3262_v39 = vpop.eup %3261  ;;  %v2130_v52 = vadd.f32 %v2566_v8, %v2082_v15  ;;  %v2145_v32 = vmul.f32 0.70710677, %v2129_v9 }
 0x1ad   : > { %v1961_v53 = vadd.f32 %v3013_v27, %v1864_v17  ;;  %v1867_v26 = vadd.f32 %v2952_v16, %v1770_v43  ;;  %v2038_v46 = vadd.f32 1.0, %v3262_v39  ;;  %v2573_v59 = vunpack.c.l.bf16 %v2633_v47 }
 0x1ae   : > { %3271 = vrcp.f32 %v2037_v0  ;;  %v2146_v55 = vmul.f32 0.70710677, %v2130_v52  ;;  %v2953_v10 = vpop.f32.mrb[88].mxu0  ;;  %v2574_v24 = vunpack.c.h.bf16 %v2633_v47 }
 0x1af   : > { %v2519_v42 = vmul.f32 -1.442695, %v1961_v53  ;;  %v1964_v48 = vadd.f32 %v3016_v30, %v1867_v26  ;;  %3273 = vrcp.f32 %v2038_v46  ;;  %v3017_v1 = vpop.f32.mrb[88].mxu1  ;;  %v2954_v51 = vpop.f32.mrb[89].mxu0 }
 0x1b0   : > { %v3264_v22 = vpop.eup %3263  ;;  %v2599_v11 = vpack.c.bf16 %v2146_v55, %v2145_v32  ;;  %v3018_v41 = vpop.f32.mrb[89].mxu1  ;;  %v2955_v8 = vadd.f32 %v2954_v51, %v2953_v10 }
 0x1b1   : > { %v2083_v18 = vmul.f32 %v3264_v22, %v3998_v60  ;;  %3275 = vpow2.f32 %v2519_v42  ;;  %v2520_v20 = vmul.f32 -1.442695, %v1964_v48  ;;  %v2956_v21 = vpop.f32.mrb[90].mxu0  ;;  %v3266_v56 = vpop.eup %3265  ;;  %v3019_v29 = vadd.f32 %v3018_v41, %v3017_v1 }
 0x1b2   : > { %v3020_v58 = vpop.f32.mrb[90].mxu1  ;;  %v2957_v38 = vpop.f32.mrb[91].mxu0  ;;  %2638 = vst [vmem:[%s4103_s16 + $0x8] sm:$0xff] %v2599_v11   ;;  %v2084_v60 = vmul.f32 %v3266_v56, %v4003_v40  ;;  %v1872_v43 = vadd.f32 %v2955_v8, %v1775_v13  ;;  %v1783_v40 = vadd.f32 %v4045_v37, %v4058_v63 }
 0x1b3   : > { %v3268_v44 = vpop.eup %3267  ;;  %v2131_v45 = vadd.f32 %v2569_v5, %v2083_v18  ;;  %3277 = vpow2.f32 %v2520_v20  ;;  %v2958_v35 = vadd.f32 %v2957_v38, %v2956_v21  ;;  %v3021_v14 = vpop.f32.mrb[91].mxu1  ;;  %v1786_v5 = vadd.f32 %v4050_v61, %v4058_v63  ;;  %v2634_v61 = vld [vmem:[%s4084_s9 + $0x20] sm:$0xff]  }
 0x1b4   : > { %v2039_v12 = vadd.f32 1.0, %v3268_v44  ;;  %v3022_v49 = vadd.f32 %v3021_v14, %v3020_v58  ;;  %v2132_v2 = vadd.f32 %v2570_v7, %v2084_v60  ;;  %v1969_v31 = vadd.f32 %v3019_v29, %v1872_v43 }
 0x1b5   : > { %v1875_v27 = vadd.f32 %v2958_v35, %v1778_v62  ;;  %v3270_v57 = vpop.eup %3269  ;;  %v2147_v4 = vmul.f32 0.70710677, %v2131_v45  ;;  %v2578_v47 = vunpack.c.h.bf16 %v2634_v61 }
 0x1b6   : > { %3279 = vrcp.f32 %v2039_v12  ;;  %v2148_v9 = vmul.f32 0.70710677, %v2132_v2  ;;  %v2040_v15 = vadd.f32 1.0, %v3270_v57  ;;  %v2959_v16 = vpop.f32.mrb[92].mxu0  ;;  %v2521_v0 = vmul.f32 -1.442695, %v1969_v31 }
 0x1b7   : > { %v1972_v17 = vadd.f32 %v3022_v49, %v1875_v27  ;;  %v3023_v30 = vpop.f32.mrb[92].mxu1  ;;  %v2960_v39 = vpop.f32.mrb[93].mxu0  ;;  %v2635_v49 = vld [vmem:[%s4084_s9 + $0x28] sm:$0xff]  }
 0x1b8   : > { %v3272_v54 = vpop.eup %3271  ;;  %v2604_v52 = vpack.c.bf16 %v2148_v9, %v2147_v4  ;;  %3281 = vrcp.f32 %v2040_v15  ;;  %v3024_v32 = vpop.f32.mrb[93].mxu1  ;;  %v2961_v42 = vadd.f32 %v2960_v39, %v2959_v16  ;;  %v2581_v31 = vunpack.c.l.bf16 %v2635_v49  ;;  %v2636_v39 = vld [vmem:[%s4084_s9 + $0x30] sm:$0xff]  }
 0x1b9   : > { %v2085_v53 = vmul.f32 %v3272_v54, %v4008_v19  ;;  %v2522_v26 = vmul.f32 -1.442695, %v1972_v17  ;;  %v2962_v46 = vpop.f32.mrb[94].mxu0  ;;  %v3274_v55 = vpop.eup %3273  ;;  %3283 = vpow2.f32 %v2521_v0  ;;  %v3025_v37 = vadd.f32 %v3024_v32, %v3023_v30 }
 0x1ba   : > { %v3026_v48 = vpop.f32.mrb[94].mxu1  ;;  %v2963_v10 = vpop.f32.mrb[95].mxu0  ;;  %2639 = vst [vmem:[%s4103_s16 + $0x10] sm:$0xff] %v2604_v52   ;;  %v2086_v1 = vmul.f32 %v3274_v55, %v4013_v50  ;;  %v1880_v18 = vadd.f32 %v2961_v42, %v1783_v40  ;;  %v2577_v50 = vunpack.c.l.bf16 %v2634_v61  ;;  %v2582_v17 = vunpack.c.h.bf16 %v2635_v49 }
 0x1bb   : > { %v3276_v22 = vpop.eup %3275  ;;  %v2133_v7 = vadd.f32 %v2573_v59, %v2085_v53  ;;  %3285 = vpow2.f32 %v2522_v26  ;;  %v2964_v19 = vadd.f32 %v2963_v10, %v2962_v46  ;;  %v3027_v51 = vpop.f32.mrb[95].mxu1  ;;  %v2585_v46 = vunpack.c.l.bf16 %v2636_v39 }
 0x1bc   : > { %v2041_v11 = vadd.f32 1.0, %v3276_v22  ;;  %v3028_v20 = vadd.f32 %v3027_v51, %v3026_v48  ;;  %v2134_v21 = vadd.f32 %v2574_v24, %v2086_v1  ;;  %v1977_v13 = vadd.f32 %v3025_v37, %v1880_v18  ;;  %v2637_v22 = vld [vmem:[%s4084_s9 + $0x38] sm:$0xff]  }
 0x1bd   : > { %v3278_v41 = vpop.eup %3277  ;;  %v1883_v63 = vadd.f32 %v2964_v19, %v1786_v5  ;;  %v2149_v62 = vmul.f32 0.70710677, %v2133_v7  ;;  %v2586_v5 = vunpack.c.h.bf16 %v2636_v39  ;;  %v2589_v19 = vunpack.c.l.bf16 %v2637_v22 }
 0x1be   : > { %3287 = vrcp.f32 %v2041_v11  ;;  %v2042_v56 = vadd.f32 1.0, %v3278_v41  ;;  %v2150_v8 = vmul.f32 0.70710677, %v2134_v21  ;;  %v2523_v38 = vmul.f32 -1.442695, %v1977_v13 }
 0x1bf   : > { %v1980_v29 = vadd.f32 %v3028_v20, %v1883_v63  ;;  %v2590_v18 = vunpack.c.h.bf16 %v2637_v22 }
 0x1c0   : > { %v3280_v58 = vpop.eup %3279  ;;  %3289 = vrcp.f32 %v2042_v56  ;;  %v2609_v44 = vpack.c.bf16 %v2150_v8, %v2149_v62 }
 0x1c1   : > { %v2087_v45 = vmul.f32 %v3280_v58, %v4018_v33  ;;  %v2524_v60 = vmul.f32 -1.442695, %v1980_v29  ;;  %3291 = vpow2.f32 %v2523_v38 }
 0x1c2   : > { %v3282_v35 = vpop.eup %3281  ;;  %2640 = vst [vmem:[%s4103_s16 + $0x18] sm:$0xff] %v2609_v44  }
 0x1c3   : > { %3293 = vpow2.f32 %v2524_v60  ;;  %v3284_v14 = vpop.eup %3283  ;;  %v2135_v12 = vadd.f32 %v2577_v50, %v2087_v45  ;;  %v2088_v43 = vmul.f32 %v3282_v35, %v4023_v34 }
 0x1c4   : > { %v2043_v27 = vadd.f32 1.0, %v3284_v14 }
 0x1c5   : > { %v3286_v2 = vpop.eup %3285  ;;  %v2136_v57 = vadd.f32 %v2578_v47, %v2088_v43  ;;  %v2151_v4 = vmul.f32 0.70710677, %v2135_v12 }
 0x1c6   : > { %v2044_v59 = vadd.f32 1.0, %v3286_v2  ;;  %3295 = vrcp.f32 %v2043_v27 }
 0x1c7   : > { %v2152_v9 = vmul.f32 0.70710677, %v2136_v57 }
 0x1c8   : > { %v3288_v33 = vpop.eup %3287  ;;  %3297 = vrcp.f32 %v2044_v59 }
 0x1c9   : > { %v2089_v15 = vmul.f32 %v3288_v33, %v4028_v23  ;;  %v2614_v54 = vpack.c.bf16 %v2152_v9, %v2151_v4 }
 0x1ca   : > { %v3290_v16 = vpop.eup %3289 }
 0x1cb   : > { %v2137_v40 = vadd.f32 %v2581_v31, %v2089_v15  ;;  %v2090_v34 = vmul.f32 %v3290_v16, %v4033_v25  ;;  %v3292_v24 = vpop.eup %3291  ;;  %2641 = vst [vmem:[%s4103_s16 + $0x20] sm:$0xff] %v2614_v54  }
 0x1cc   : > { %v2045_v52 = vadd.f32 1.0, %v3292_v24 }
 0x1cd   : > { %v3294_v0 = vpop.eup %3293  ;;  %v2138_v30 = vadd.f32 %v2582_v17, %v2090_v34  ;;  %v2153_v26 = vmul.f32 0.70710677, %v2137_v40 }
 0x1ce   : > { %v2046_v53 = vadd.f32 1.0, %v3294_v0  ;;  %3299 = vrcp.f32 %v2045_v52 }
 0x1cf   : > { %v2154_v32 = vmul.f32 0.70710677, %v2138_v30 }
 0x1d0   : > { %3301 = vrcp.f32 %v2046_v53  ;;  %v3296_v23 = vpop.eup %3295 }
 0x1d1   : > { %v2619_v55 = vpack.c.bf16 %v2154_v32, %v2153_v26  ;;  %v2091_v25 = vmul.f32 %v3296_v23, %v4038_v3 }
 0x1d2   : > { %v3298_v42 = vpop.eup %3297 }
 0x1d3   : > { %2642 = vst [vmem:[%s4103_s16 + $0x28] sm:$0xff] %v2619_v55   ;;  %v2092_v37 = vmul.f32 %v3298_v42, %v4043_v6  ;;  %v2139_v48 = vadd.f32 %v2585_v46, %v2091_v25 }
 0x1d5   : > { %v2140_v10 = vadd.f32 %v2586_v5, %v2092_v37  ;;  %v2155_v7 = vmul.f32 0.70710677, %v2139_v48 }
 0x1d7   : > { %v2156_v1 = vmul.f32 0.70710677, %v2140_v10 }
 0x1d8   : > { %v3300_v51 = vpop.eup %3299 }
 0x1d9   : > { %v2624_v11 = vpack.c.bf16 %v2156_v1, %v2155_v7  ;;  %v2093_v41 = vmul.f32 %v3300_v51, %v4048_v28 }
 0x1da   : > { %v3302_v20 = vpop.eup %3301 }
 0x1db   : > { %2643 = vst [vmem:[%s4103_s16 + $0x30] sm:$0xff] %v2624_v11   ;;  %v2094_v21 = vmul.f32 %v3302_v20, %v4053_v36  ;;  %v2141_v3 = vadd.f32 %v2589_v19, %v2093_v41 }
 0x1dd   : > { %v2142_v61 = vadd.f32 %v2590_v18, %v2094_v21  ;;  %v2157_v63 = vmul.f32 0.70710677, %v2141_v3 }
 0x1df   : > { %v2158_v6 = vmul.f32 0.70710677, %v2142_v61 }
 0x1e1   : > { %v2629_v56 = vpack.c.bf16 %v2158_v6, %v2157_v63 }
 0x1e3   : > { %2644 = vst [vmem:[%s4103_s16 + $0x38] sm:$0xff] %v2629_v56  }
 0x1e4 PF: > { %s16_s25 = sadd.s32 1, %s3341_s25   ;;  %s4165_s21 = smov %s3333_s23 }
 0x1e5   : > { %p13_p7 = scmp.ge.s32.totalorder %s16_s25, 6   ;;  %s4166_s22 = smov %s3337_s24 }
 0x1e6   : > { %s4167_s23 = smov %s4170_s26  ;;  %s4168_s24 = smov %s4174_s27 }
 0x1e7   :  { %15 = sbr.rel (!%p13_p7) target bundleno = 3 (0x3), region = 77 }

</bundles_post_ra>
